<compile_context>
chip_gen: v6e
topology: v6e:2x2x1
jax: 0.10.0
libtpu: 0.0.40
codegen_flags: <defaults>
</compile_context>

<pallas_src>
import functools
import numpy as np
import jax
import jax.numpy as jnp
from jax.experimental import pallas as pl
from jax.experimental.pallas import tpu as pltpu


# ----------------------------------------------------------------------------
# Fused Pallas kernel: conv stack (BN + LeakyReLU) + final conv + predict_transform
# ----------------------------------------------------------------------------

def make_fused_kernel(num_bn_layers, slope, eps, grid_size, grid_cells):
    """Build the fused kernel body.

    Ref order: patches, (w, gamma, beta) * num_bn_layers, w_last, b_last,
               consts, out.
    """

    def kernel(*refs):
        p_ref = refs[0]
        w_last_ref, b_last_ref, const_ref, o_ref = refs[-4], refs[-3], refs[-2], refs[-1]

        h = p_ref[...]                                  # (M, K) bf16 patch matrix
        idx = 1
        for _ in range(num_bn_layers):
            w_ref, g_ref, b_ref = refs[idx], refs[idx + 1], refs[idx + 2]
            idx += 3
            # conv-as-matmul, f32 accumulation on the MXU
            acc = jnp.dot(h, w_ref[...], preferred_element_type=jnp.float32)   # (M, C)
            m_rows = acc.shape[0]
            inv_m = 1.0 / m_rows
            # one-pass batch statistics (activations are O(1): no cancellation issue)
            s1 = jnp.sum(acc, axis=0, keepdims=True)
            s2 = jnp.sum(acc * acc, axis=0, keepdims=True)
            mu = s1 * inv_m
            var = s2 * inv_m - mu * mu
            y = g_ref[...] * (acc - mu) * jax.lax.rsqrt(var + eps) + b_ref[...]
            y = jnp.where(y > 0, y, slope * y)           # LeakyReLU (f32)
            h = y.astype(jnp.bfloat16)                   # bf16 feed for the next MXU matmul

        # final detection conv (1x1 + bias, no BN/activation)
        y = jnp.dot(h, w_last_ref[...], preferred_element_type=jnp.float32) + b_last_ref[...]

        # --- fused predict_transform (inference path) ---
        # row r = n*G*G + gy*G + gx ; column c = anchor*bbox_attrs + attr
        m_rows = y.shape[0]
        r = jax.lax.broadcasted_iota(jnp.int32, (m_rows, 1), 0).astype(jnp.float32)
        # +0.5 makes the floor(divide) robust to 1-ulp division rounding.
        cell = r - jnp.floor((r + 0.5) / grid_cells) * grid_cells      # r mod G*G
        gy = jnp.floor((cell + 0.5) / grid_size)
        gx = cell - gy * grid_size

        sig_coef = const_ref[0:1, :]   # stride on x/y cols, 1 on conf/cls cols, 0 on w/h
        is_gx    = const_ref[1:2, :]   # 1 on x cols
        is_gy    = const_ref[2:3, :]   # 1 on y cols
        is_exp   = const_ref[3:4, :]   # 1 only on w/h cols (masks exp input -> no inf)
        exp_scl  = const_ref[4:5, :]   # (anchor/stride)*stride on w/h cols, 0 elsewhere

        sig = jax.nn.sigmoid(y)
        out = sig_coef * (sig + gx * is_gx + gy * is_gy) + jnp.exp(y * is_exp) * exp_scl
        o_ref[...] = out

    return kernel


def _full_spec(shape):
    return pl.BlockSpec(shape, lambda i: (0,) * len(shape))


# ----------------------------------------------------------------------------
# Wrapper glue: im2col (first spatial conv only), constant table, forward
# ----------------------------------------------------------------------------

def im2col(x_nchw, kh, kw, stride, pad):
    N, C, H, W = x_nchw.shape
    xp = jnp.pad(x_nchw, ((0, 0), (0, 0), (pad, pad), (pad, pad)))
    Ho = (H + 2 * pad - kh) // stride + 1
    Wo = (W + 2 * pad - kw) // stride + 1
    cols = []
    for i in range(kh):
        for j in range(kw):
            cols.append(xp[:, :, i:i + stride * Ho:stride, j:j + stride * Wo:stride])
    cols = jnp.stack(cols, axis=2)                      # (N, C, kh*kw, Ho, Wo)
    cols = cols.reshape(N, C * kh * kw, Ho, Wo)
    cols = cols.transpose(0, 2, 3, 1).reshape(N * Ho * Wo, C * kh * kw)
    return cols, Ho, Wo


def build_transform_consts(anchors, classes, det_stride):
    """Per-output-column constants for the fused predict_transform."""
    A = len(anchors)
    ba = 5 + classes
    C = A * ba
    sig_coef = np.zeros((C,), np.float32)
    is_gx = np.zeros((C,), np.float32)
    is_gy = np.zeros((C,), np.float32)
    is_exp = np.zeros((C,), np.float32)
    exp_scl = np.zeros((C,), np.float32)
    for a, (aw, ah) in enumerate(anchors):
        base = a * ba
        sig_coef[base + 0] = det_stride; is_gx[base + 0] = 1.0
        sig_coef[base + 1] = det_stride; is_gy[base + 1] = 1.0
        is_exp[base + 2] = 1.0
        exp_scl[base + 2] = np.float32(np.float32(aw) / det_stride) * np.float32(det_stride)
        is_exp[base + 3] = 1.0
        exp_scl[base + 3] = np.float32(np.float32(ah) / det_stride) * np.float32(det_stride)
        sig_coef[base + 4:base + ba] = 1.0
    return np.stack([sig_coef, is_gx, is_gy, is_exp, exp_scl], axis=0)  # (5, C)


def init_params(key, structs):
    params = []
    in_dim = structs[0]
    for s in structs[1:]:
        if len(s) == 4:
            out_dim, kr, st, pd = s
            key, k1, k2, k3 = jax.random.split(key, 4)
            w = jax.random.normal(k1, (out_dim, in_dim, kr, kr), jnp.float32) * 0.1
            gamma = 1.0 + 0.1 * jax.random.normal(k2, (out_dim,), jnp.float32)
            beta = 0.1 * jax.random.normal(k3, (out_dim,), jnp.float32)
            params.append(dict(kind="bn", w=w, gamma=gamma, beta=beta,
                               kr=kr, stride=st, pad=pd))
        else:
            out_dim, kr, st, pd, _ = s
            key, k1, k2 = jax.random.split(key, 3)
            w = jax.random.normal(k1, (out_dim, in_dim, kr, kr), jnp.float32) * 0.1
            b = 0.1 * jax.random.normal(k2, (out_dim,), jnp.float32)
            params.append(dict(kind="bias", w=w, b=b, kr=kr, stride=st, pad=pd))
        in_dim = out_dim
    return params


def basic_pred_forward(x, params, anchors, classes, height):
    """Pallas implementation of BasicPred.forward (targets=None, route_index=0)."""
    N = x.shape[0]
    first = params[0]
    # The fused kernel keeps one (rows = N*Ho*Wo, channels) slab for all layers,
    # so every layer after the first must be a 1x1 / stride-1 / pad-0 conv
    # (true for the YOLOv3 prediction head), the last one being the bias conv.
    for p in params[1:]:
        assert p["kr"] == 1 and p["stride"] == 1 and p["pad"] == 0
    assert params[-1]["kind"] == "bias" and all(p["kind"] == "bn" for p in params[:-1])

    # im2col for the (only) spatial conv; the 1x1 layers reuse the same rows.
    patches, Ho, Wo = im2col(x, first["kr"], first["kr"], first["stride"], first["pad"])
    patches = patches.astype(jnp.bfloat16)
    M = N * Ho * Wo

    kernel_inputs = [patches]
    in_specs = [_full_spec(patches.shape)]

    bn_layers = params[:-1]
    for p in bn_layers:
        Cout = p["w"].shape[0]
        w_mat = p["w"].reshape(Cout, -1).T.astype(jnp.bfloat16)        # (K, Cout)
        kernel_inputs += [w_mat,
                          p["gamma"].reshape(1, Cout).astype(jnp.float32),
                          p["beta"].reshape(1, Cout).astype(jnp.float32)]
        in_specs += [_full_spec(tuple(w_mat.shape)),
                     _full_spec((1, Cout)), _full_spec((1, Cout))]

    plast = params[-1]
    C3 = plast["w"].shape[0]
    w_last = plast["w"].reshape(C3, -1).T.astype(jnp.bfloat16)         # (K_last, C3)
    b_last = plast["b"].reshape(1, C3).astype(jnp.float32)

    A = len(anchors)
    ba = 5 + classes
    assert C3 == A * ba
    G = Ho
    det_stride = height // G
    consts = jnp.asarray(build_transform_consts(anchors, classes, det_stride))  # (5, C3)

    kernel_inputs += [w_last, b_last, consts]
    in_specs += [_full_spec(tuple(w_last.shape)), _full_spec((1, C3)),
                 _full_spec(tuple(consts.shape))]

    kern = make_fused_kernel(num_bn_layers=len(bn_layers), slope=0.1, eps=1e-5,
                             grid_size=float(G), grid_cells=float(G * G))
    out = pl.pallas_call(
        kern,
        out_shape=jax.ShapeDtypeStruct((M, C3), jnp.float32),
        grid=(1,),
        in_specs=in_specs,
        out_specs=_full_spec((M, C3)),
        compiler_params=pltpu.CompilerParams(dimension_semantics=("arbitrary",)),
    )(*kernel_inputs)

    # (N*G*G, A*ba) -> (N, A*G*G, ba): one tiny (~48 KB) XLA transpose.
    detections = out.reshape(N, G, G, A, ba).transpose(0, 3, 1, 2, 4).reshape(N, A * G * G, ba)
    return detections
    # TODO(synk): training path (targets is not None: build_targets python loops,
    # losses) and route_index != 0 dual output are host-side bookkeeping with no
    # clean Pallas equivalent; only the inference path is implemented.


# ----------------------------------------------------------------------------
# Pure-JAX reference (bf16 matmul inputs / f32 accumulation, like the kernel)
# ----------------------------------------------------------------------------

def reference_forward(x, params, anchors, classes, height):
    for p in params:
        out = jax.lax.conv_general_dilated(
            x.astype(jnp.bfloat16), p["w"].astype(jnp.bfloat16),
            (p["stride"], p["stride"]),
            [(p["pad"], p["pad"]), (p["pad"], p["pad"])],
            dimension_numbers=("NCHW", "OIHW", "NCHW"),
            preferred_element_type=jnp.float32)
        if p["kind"] == "bn":
            mu = jnp.mean(out, axis=(0, 2, 3), keepdims=True)
            var = jnp.mean((out - mu) ** 2, axis=(0, 2, 3), keepdims=True)
            g = p["gamma"].reshape(1, -1, 1, 1)
            b = p["beta"].reshape(1, -1, 1, 1)
            out = g * (out - mu) * jax.lax.rsqrt(var + 1e-5) + b
            out = jnp.where(out > 0, out, 0.1 * out)
        else:
            out = out + p["b"].reshape(1, -1, 1, 1)
        x = out

    N, C, G, _ = x.shape
    A = len(anchors)
    ba = 5 + classes
    det_stride = height // G
    pred = x.reshape(N, A, ba, G, G).transpose(0, 1, 3, 4, 2)
    sx = jax.nn.sigmoid(pred[..., 0]); sy = jax.nn.sigmoid(pred[..., 1])
    w_ = pred[..., 2]; h_ = pred[..., 3]
    conf = jax.nn.sigmoid(pred[..., 4]); cls = jax.nn.sigmoid(pred[..., 5:])
    grid_x = jnp.arange(G, dtype=jnp.float32)[None, None, None, :]
    grid_y = jnp.arange(G, dtype=jnp.float32)[None, None, :, None]
    anc = jnp.asarray(anchors, jnp.float32) / float(det_stride)
    aw = anc[:, 0].reshape(1, A, 1, 1); ah = anc[:, 1].reshape(1, A, 1, 1)
    boxes = jnp.stack([sx + grid_x, sy + grid_y,
                       jnp.exp(w_) * aw, jnp.exp(h_) * ah], axis=-1)
    out = jnp.concatenate([boxes.reshape(N, -1, 4) * det_stride,
                           conf.reshape(N, -1, 1),
                           cls.reshape(N, -1, classes)], axis=-1)
    return out


# ----------------------------------------------------------------------------

if __name__ == "__main__":
    key = jax.random.PRNGKey(0)
    kx, kp = jax.random.split(key)

    # small config: batch=2, in_channels=4, spatial=16, classes=3, 3 anchors
    classes = 3
    anchors = [(10.0, 13.0), (16.0, 30.0), (33.0, 23.0)]
    height = 416
    bbox_attrs = 5 + classes
    structs = [4, (8, 3, 1, 1), (16, 1, 1, 0), (len(anchors) * bbox_attrs, 1, 1, 0, 0)]

    x = jax.random.normal(kx, (2, 4, 16, 16), jnp.float32)
    params = init_params(kp, structs)

    fwd = jax.jit(lambda inp: basic_pred_forward(inp, params, anchors, classes, height))
    detections = jax.block_until_ready(fwd(x))

    ref = reference_forward(x, params, anchors, classes, height)
    assert detections.shape == (2, len(anchors) * 16 * 16, bbox_attrs), detections.shape
    max_err = float(jnp.max(jnp.abs(detections - ref)))
    assert jnp.allclose(detections, ref, atol=1e-2, rtol=1e-3), max_err

    print("KERNEL_OK")
</pallas_src>

<mosaic_0001>
module attributes {stable_mosaic.version = 11 : i64} {
  func.func @kernel(%arg0: i32, %arg1: memref<512x36xbf16, #tpu.memory_space<vmem>>, %arg2: memref<36x8xbf16, #tpu.memory_space<vmem>>, %arg3: memref<1x8xf32, #tpu.memory_space<vmem>>, %arg4: memref<1x8xf32, #tpu.memory_space<vmem>>, %arg5: memref<8x16xbf16, #tpu.memory_space<vmem>>, %arg6: memref<1x16xf32, #tpu.memory_space<vmem>>, %arg7: memref<1x16xf32, #tpu.memory_space<vmem>>, %arg8: memref<16x24xbf16, #tpu.memory_space<vmem>>, %arg9: memref<1x24xf32, #tpu.memory_space<vmem>>, %arg10: memref<5x24xf32, #tpu.memory_space<vmem>>, %arg11: memref<512x24xf32, #tpu.memory_space<vmem>>) attributes {dimension_semantics = [#tpu.dimension_semantics<arbitrary>], iteration_bounds = array<i64: 1>, scalar_prefetch = 0 : i64, scratch_operands = 0 : i64, tpu.core_type = #tpu.core_type<tc>, window_params = [{pipeline_mode = #tpu.pipeline_mode<synchronous>, transform_indices = @transform_0, window_bounds = array<i64: 512, 36>}, {pipeline_mode = #tpu.pipeline_mode<synchronous>, transform_indices = @transform_1, window_bounds = array<i64: 36, 8>}, {pipeline_mode = #tpu.pipeline_mode<synchronous>, transform_indices = @transform_2, window_bounds = array<i64: 1, 8>}, {pipeline_mode = #tpu.pipeline_mode<synchronous>, transform_indices = @transform_3, window_bounds = array<i64: 1, 8>}, {pipeline_mode = #tpu.pipeline_mode<synchronous>, transform_indices = @transform_4, window_bounds = array<i64: 8, 16>}, {pipeline_mode = #tpu.pipeline_mode<synchronous>, transform_indices = @transform_5, window_bounds = array<i64: 1, 16>}, {pipeline_mode = #tpu.pipeline_mode<synchronous>, transform_indices = @transform_6, window_bounds = array<i64: 1, 16>}, {pipeline_mode = #tpu.pipeline_mode<synchronous>, transform_indices = @transform_7, window_bounds = array<i64: 16, 24>}, {pipeline_mode = #tpu.pipeline_mode<synchronous>, transform_indices = @transform_8, window_bounds = array<i64: 1, 24>}, {pipeline_mode = #tpu.pipeline_mode<synchronous>, transform_indices = @transform_9, window_bounds = array<i64: 5, 24>}, {pipeline_mode = #tpu.pipeline_mode<synchronous>, transform_indices = @transform_10, window_bounds = array<i64: 512, 24>}]} {
    %c0 = arith.constant 0 : index
    %c0_0 = arith.constant 0 : index
    %0 = vector.load %arg1[%c0, %c0_0] : memref<512x36xbf16, #tpu.memory_space<vmem>>, vector<512x36xbf16>
    %c0_1 = arith.constant 0 : index
    %c0_2 = arith.constant 0 : index
    %1 = vector.load %arg2[%c0_1, %c0_2] : memref<36x8xbf16, #tpu.memory_space<vmem>>, vector<36x8xbf16>
    %cst = arith.constant dense<0.000000e+00> : vector<512x8xf32>
    %2 = tpu.matmul %0, %1, %cst {dimension_numbers = #tpu.dot_dimension_numbers<[1], [0], [0], [1], [0, 0, 1, 1], [], []>} : vector<512x36xbf16>, vector<36x8xbf16>, vector<512x8xf32> -> vector<512x8xf32>
    %cst_3 = arith.constant dense<0.000000e+00> : vector<8xf32>
    %3 = vector.multi_reduction <add>, %2, %cst_3 [0] : vector<512x8xf32> to vector<8xf32>
    %4 = vector.shape_cast %3 : vector<8xf32> to vector<1x8xf32>
    %5 = arith.mulf %2, %2 : vector<512x8xf32>
    %cst_4 = arith.constant dense<0.000000e+00> : vector<8xf32>
    %6 = vector.multi_reduction <add>, %5, %cst_4 [0] : vector<512x8xf32> to vector<8xf32>
    %7 = vector.shape_cast %6 : vector<8xf32> to vector<1x8xf32>
    %cst_5 = arith.constant 0.001953125 : f32
    %8 = vector.broadcast %cst_5 : f32 to vector<1x8xf32>
    %9 = arith.mulf %4, %8 : vector<1x8xf32>
    %cst_6 = arith.constant 0.001953125 : f32
    %10 = vector.broadcast %cst_6 : f32 to vector<1x8xf32>
    %11 = arith.mulf %7, %10 : vector<1x8xf32>
    %12 = arith.mulf %9, %9 : vector<1x8xf32>
    %13 = arith.subf %11, %12 : vector<1x8xf32>
    %c0_7 = arith.constant 0 : index
    %c0_8 = arith.constant 0 : index
    %14 = vector.load %arg3[%c0_7, %c0_8] : memref<1x8xf32, #tpu.memory_space<vmem>>, vector<1x8xf32>
    %15 = vector.broadcast %9 : vector<1x8xf32> to vector<512x8xf32>
    %16 = arith.subf %2, %15 : vector<512x8xf32>
    %17 = vector.broadcast %14 : vector<1x8xf32> to vector<512x8xf32>
    %18 = arith.mulf %17, %16 : vector<512x8xf32>
    %cst_9 = arith.constant 9.99999974E-6 : f32
    %19 = vector.broadcast %cst_9 : f32 to vector<1x8xf32>
    %20 = arith.addf %13, %19 : vector<1x8xf32>
    %21 = math.rsqrt %20 : vector<1x8xf32>
    %22 = vector.broadcast %21 : vector<1x8xf32> to vector<512x8xf32>
    %23 = arith.mulf %18, %22 : vector<512x8xf32>
    %c0_10 = arith.constant 0 : index
    %c0_11 = arith.constant 0 : index
    %24 = vector.load %arg4[%c0_10, %c0_11] : memref<1x8xf32, #tpu.memory_space<vmem>>, vector<1x8xf32>
    %25 = vector.broadcast %24 : vector<1x8xf32> to vector<512x8xf32>
    %26 = arith.addf %23, %25 : vector<512x8xf32>
    %cst_12 = arith.constant 0.000000e+00 : f32
    %27 = vector.broadcast %cst_12 : f32 to vector<512x8xf32>
    %28 = arith.cmpf ogt, %26, %27 : vector<512x8xf32>
    %cst_13 = arith.constant 1.000000e-01 : f32
    %29 = vector.broadcast %cst_13 : f32 to vector<512x8xf32>
    %30 = arith.mulf %29, %26 : vector<512x8xf32>
    %31 = arith.select %28, %26, %30 : vector<512x8xi1>, vector<512x8xf32>
    %32 = arith.truncf %31 : vector<512x8xf32> to vector<512x8xbf16>
    %c0_14 = arith.constant 0 : index
    %c0_15 = arith.constant 0 : index
    %33 = vector.load %arg5[%c0_14, %c0_15] : memref<8x16xbf16, #tpu.memory_space<vmem>>, vector<8x16xbf16>
    %cst_16 = arith.constant dense<0.000000e+00> : vector<512x16xf32>
    %34 = tpu.matmul %32, %33, %cst_16 {dimension_numbers = #tpu.dot_dimension_numbers<[1], [0], [0], [1], [0, 0, 1, 1], [], []>} : vector<512x8xbf16>, vector<8x16xbf16>, vector<512x16xf32> -> vector<512x16xf32>
    %cst_17 = arith.constant dense<0.000000e+00> : vector<16xf32>
    %35 = vector.multi_reduction <add>, %34, %cst_17 [0] : vector<512x16xf32> to vector<16xf32>
    %36 = vector.shape_cast %35 : vector<16xf32> to vector<1x16xf32>
    %37 = arith.mulf %34, %34 : vector<512x16xf32>
    %cst_18 = arith.constant dense<0.000000e+00> : vector<16xf32>
    %38 = vector.multi_reduction <add>, %37, %cst_18 [0] : vector<512x16xf32> to vector<16xf32>
    %39 = vector.shape_cast %38 : vector<16xf32> to vector<1x16xf32>
    %cst_19 = arith.constant 0.001953125 : f32
    %40 = vector.broadcast %cst_19 : f32 to vector<1x16xf32>
    %41 = arith.mulf %36, %40 : vector<1x16xf32>
    %cst_20 = arith.constant 0.001953125 : f32
    %42 = vector.broadcast %cst_20 : f32 to vector<1x16xf32>
    %43 = arith.mulf %39, %42 : vector<1x16xf32>
    %44 = arith.mulf %41, %41 : vector<1x16xf32>
    %45 = arith.subf %43, %44 : vector<1x16xf32>
    %c0_21 = arith.constant 0 : index
    %c0_22 = arith.constant 0 : index
    %46 = vector.load %arg6[%c0_21, %c0_22] : memref<1x16xf32, #tpu.memory_space<vmem>>, vector<1x16xf32>
    %47 = vector.broadcast %41 : vector<1x16xf32> to vector<512x16xf32>
    %48 = arith.subf %34, %47 : vector<512x16xf32>
    %49 = vector.broadcast %46 : vector<1x16xf32> to vector<512x16xf32>
    %50 = arith.mulf %49, %48 : vector<512x16xf32>
    %cst_23 = arith.constant 9.99999974E-6 : f32
    %51 = vector.broadcast %cst_23 : f32 to vector<1x16xf32>
    %52 = arith.addf %45, %51 : vector<1x16xf32>
    %53 = math.rsqrt %52 : vector<1x16xf32>
    %54 = vector.broadcast %53 : vector<1x16xf32> to vector<512x16xf32>
    %55 = arith.mulf %50, %54 : vector<512x16xf32>
    %c0_24 = arith.constant 0 : index
    %c0_25 = arith.constant 0 : index
    %56 = vector.load %arg7[%c0_24, %c0_25] : memref<1x16xf32, #tpu.memory_space<vmem>>, vector<1x16xf32>
    %57 = vector.broadcast %56 : vector<1x16xf32> to vector<512x16xf32>
    %58 = arith.addf %55, %57 : vector<512x16xf32>
    %cst_26 = arith.constant 0.000000e+00 : f32
    %59 = vector.broadcast %cst_26 : f32 to vector<512x16xf32>
    %60 = arith.cmpf ogt, %58, %59 : vector<512x16xf32>
    %cst_27 = arith.constant 1.000000e-01 : f32
    %61 = vector.broadcast %cst_27 : f32 to vector<512x16xf32>
    %62 = arith.mulf %61, %58 : vector<512x16xf32>
    %63 = arith.select %60, %58, %62 : vector<512x16xi1>, vector<512x16xf32>
    %64 = arith.truncf %63 : vector<512x16xf32> to vector<512x16xbf16>
    %c0_28 = arith.constant 0 : index
    %c0_29 = arith.constant 0 : index
    %65 = vector.load %arg8[%c0_28, %c0_29] : memref<16x24xbf16, #tpu.memory_space<vmem>>, vector<16x24xbf16>
    %cst_30 = arith.constant dense<0.000000e+00> : vector<512x24xf32>
    %66 = tpu.matmul %64, %65, %cst_30 {dimension_numbers = #tpu.dot_dimension_numbers<[1], [0], [0], [1], [0, 0, 1, 1], [], []>} : vector<512x16xbf16>, vector<16x24xbf16>, vector<512x24xf32> -> vector<512x24xf32>
    %c0_31 = arith.constant 0 : index
    %c0_32 = arith.constant 0 : index
    %67 = vector.load %arg9[%c0_31, %c0_32] : memref<1x24xf32, #tpu.memory_space<vmem>>, vector<1x24xf32>
    %68 = vector.broadcast %67 : vector<1x24xf32> to vector<512x24xf32>
    %69 = arith.addf %66, %68 : vector<512x24xf32>
    %70 = tpu.iota {dimensions = array<i32: 0>} : vector<512x1xi32>
    %71 = arith.sitofp %70 : vector<512x1xi32> to vector<512x1xf32>
    %cst_33 = arith.constant 5.000000e-01 : f32
    %72 = vector.broadcast %cst_33 : f32 to vector<512x1xf32>
    %73 = arith.addf %71, %72 : vector<512x1xf32>
    %cst_34 = arith.constant 2.560000e+02 : f32
    %74 = vector.broadcast %cst_34 : f32 to vector<512x1xf32>
    %75 = arith.divf %73, %74 : vector<512x1xf32>
    %76 = math.floor %75 : vector<512x1xf32>
    %cst_35 = arith.constant 2.560000e+02 : f32
    %77 = vector.broadcast %cst_35 : f32 to vector<512x1xf32>
    %78 = arith.mulf %76, %77 : vector<512x1xf32>
    %79 = arith.subf %71, %78 : vector<512x1xf32>
    %cst_36 = arith.constant 5.000000e-01 : f32
    %80 = vector.broadcast %cst_36 : f32 to vector<512x1xf32>
    %81 = arith.addf %79, %80 : vector<512x1xf32>
    %cst_37 = arith.constant 1.600000e+01 : f32
    %82 = vector.broadcast %cst_37 : f32 to vector<512x1xf32>
    %83 = arith.divf %81, %82 : vector<512x1xf32>
    %84 = math.floor %83 : vector<512x1xf32>
    %cst_38 = arith.constant 1.600000e+01 : f32
    %85 = vector.broadcast %cst_38 : f32 to vector<512x1xf32>
    %86 = arith.mulf %84, %85 : vector<512x1xf32>
    %87 = arith.subf %79, %86 : vector<512x1xf32>
    %c0_39 = arith.constant 0 : index
    %c0_40 = arith.constant 0 : index
    %88 = vector.load %arg10[%c0_39, %c0_40] : memref<5x24xf32, #tpu.memory_space<vmem>>, vector<1x24xf32>
    %c1 = arith.constant 1 : index
    %c0_41 = arith.constant 0 : index
    %89 = vector.load %arg10[%c1, %c0_41] : memref<5x24xf32, #tpu.memory_space<vmem>>, vector<1x24xf32>
    %c2 = arith.constant 2 : index
    %c0_42 = arith.constant 0 : index
    %90 = vector.load %arg10[%c2, %c0_42] : memref<5x24xf32, #tpu.memory_space<vmem>>, vector<1x24xf32>
    %c3 = arith.constant 3 : index
    %c0_43 = arith.constant 0 : index
    %91 = vector.load %arg10[%c3, %c0_43] : memref<5x24xf32, #tpu.memory_space<vmem>>, vector<1x24xf32>
    %c4 = arith.constant 4 : index
    %c0_44 = arith.constant 0 : index
    %92 = vector.load %arg10[%c4, %c0_44] : memref<5x24xf32, #tpu.memory_space<vmem>>, vector<1x24xf32>
    %93 = arith.negf %69 : vector<512x24xf32>
    %94 = math.exp %93 : vector<512x24xf32>
    %cst_45 = arith.constant 1.000000e+00 : f32
    %95 = vector.broadcast %cst_45 : f32 to vector<512x24xf32>
    %96 = arith.addf %95, %94 : vector<512x24xf32>
    %97 = arith.divf %95, %96 : vector<512x24xf32>
    %98 = vector.broadcast %87 : vector<512x1xf32> to vector<512x24xf32>
    %99 = vector.broadcast %89 : vector<1x24xf32> to vector<512x24xf32>
    %100 = arith.mulf %98, %99 : vector<512x24xf32>
    %101 = arith.addf %97, %100 : vector<512x24xf32>
    %102 = vector.broadcast %84 : vector<512x1xf32> to vector<512x24xf32>
    %103 = vector.broadcast %90 : vector<1x24xf32> to vector<512x24xf32>
    %104 = arith.mulf %102, %103 : vector<512x24xf32>
    %105 = arith.addf %101, %104 : vector<512x24xf32>
    %106 = vector.broadcast %88 : vector<1x24xf32> to vector<512x24xf32>
    %107 = arith.mulf %106, %105 : vector<512x24xf32>
    %108 = vector.broadcast %91 : vector<1x24xf32> to vector<512x24xf32>
    %109 = arith.mulf %69, %108 : vector<512x24xf32>
    %110 = math.exp %109 : vector<512x24xf32>
    %111 = vector.broadcast %92 : vector<1x24xf32> to vector<512x24xf32>
    %112 = arith.mulf %110, %111 : vector<512x24xf32>
    %113 = arith.addf %107, %112 : vector<512x24xf32>
    %c0_46 = arith.constant 0 : index
    %c0_47 = arith.constant 0 : index
    %114 = vector.load %arg11[%c0_46, %c0_47] : memref<512x24xf32, #tpu.memory_space<vmem>>, vector<512x24xf32>
    tpu.vector_store %arg11[%c0_46, %c0_47], %113 {strides = array<i32>} : memref<512x24xf32, #tpu.memory_space<vmem>>, vector<512x24xf32>,
    return
  }
  func.func @transform_0(%arg0: i32) -> (i32, i32) {
    %c0_i32 = arith.constant 0 : i32
    %c0_i32_0 = arith.constant 0 : i32
    %c0_i32_1 = arith.constant 0 : i32
    return %c0_i32, %c0_i32_0 : i32, i32
  }
  func.func @transform_1(%arg0: i32) -> (i32, i32) {
    %c0_i32 = arith.constant 0 : i32
    %c0_i32_0 = arith.constant 0 : i32
    %c0_i32_1 = arith.constant 0 : i32
    return %c0_i32, %c0_i32_0 : i32, i32
  }
  func.func @transform_2(%arg0: i32) -> (i32, i32) {
    %c0_i32 = arith.constant 0 : i32
    %c0_i32_0 = arith.constant 0 : i32
    %c0_i32_1 = arith.constant 0 : i32
    return %c0_i32, %c0_i32_0 : i32, i32
  }
  func.func @transform_3(%arg0: i32) -> (i32, i32) {
    %c0_i32 = arith.constant 0 : i32
    %c0_i32_0 = arith.constant 0 : i32
    %c0_i32_1 = arith.constant 0 : i32
    return %c0_i32, %c0_i32_0 : i32, i32
  }
  func.func @transform_4(%arg0: i32) -> (i32, i32) {
    %c0_i32 = arith.constant 0 : i32
    %c0_i32_0 = arith.constant 0 : i32
    %c0_i32_1 = arith.constant 0 : i32
    return %c0_i32, %c0_i32_0 : i32, i32
  }
  func.func @transform_5(%arg0: i32) -> (i32, i32) {
    %c0_i32 = arith.constant 0 : i32
    %c0_i32_0 = arith.constant 0 : i32
    %c0_i32_1 = arith.constant 0 : i32
    return %c0_i32, %c0_i32_0 : i32, i32
  }
  func.func @transform_6(%arg0: i32) -> (i32, i32) {
    %c0_i32 = arith.constant 0 : i32
    %c0_i32_0 = arith.constant 0 : i32
    %c0_i32_1 = arith.constant 0 : i32
    return %c0_i32, %c0_i32_0 : i32, i32
  }
  func.func @transform_7(%arg0: i32) -> (i32, i32) {
    %c0_i32 = arith.constant 0 : i32
    %c0_i32_0 = arith.constant 0 : i32
    %c0_i32_1 = arith.constant 0 : i32
    return %c0_i32, %c0_i32_0 : i32, i32
  }
  func.func @transform_8(%arg0: i32) -> (i32, i32) {
    %c0_i32 = arith.constant 0 : i32
    %c0_i32_0 = arith.constant 0 : i32
    %c0_i32_1 = arith.constant 0 : i32
    return %c0_i32, %c0_i32_0 : i32, i32
  }
  func.func @transform_9(%arg0: i32) -> (i32, i32) {
    %c0_i32 = arith.constant 0 : i32
    %c0_i32_0 = arith.constant 0 : i32
    %c0_i32_1 = arith.constant 0 : i32
    return %c0_i32, %c0_i32_0 : i32, i32
  }
  func.func @transform_10(%arg0: i32) -> (i32, i32) {
    %c0_i32 = arith.constant 0 : i32
    %c0_i32_0 = arith.constant 0 : i32
    %c0_i32_1 = arith.constant 0 : i32
    return %c0_i32, %c0_i32_0 : i32, i32
  }
}

</mosaic_0001>

<bundles_post_ra>
// kernel: _lambda_.1
= control target key start
LH: loop header
LB: loop body
LE: loop exit
PB: predicated region body
PF: predicated region fallthrough
CT: control target
= control target key end

     0   :  { %vm377_vm0 = vcmask 1041408   ;;  %vm280_vm1 = vcmask 293888   ;;  %vm1598_vm2 = vcmask 1043456   ;;  %vm670_vm3 = vcmask 64512   ;;  %s10997_s1 = inlined_call_operand.vmem [shape: bf16[36,8], index: 1, kind: input, shape index: {}]   ;;  %s10998_s0 = inlined_call_operand.vmem [shape: bf16[512,36], index: 0, kind: input, shape index: {}]   ;;  %s10999_s4 = inlined_call_operand.vmem [shape: bf16[8,16], index: 4, kind: input, shape index: {}]   ;;  %s11000_s2 = inlined_call_operand.vmem [shape: f32[1,8], index: 2, kind: input, shape index: {}]   ;;  %s11001_s3 = inlined_call_operand.vmem [shape: f32[1,8], index: 3, kind: input, shape index: {}]   ;;  %s11002_s7 = inlined_call_operand.vmem [shape: bf16[16,24], index: 7, kind: input, shape index: {}]   ;;  %s11003_s5 = inlined_call_operand.vmem [shape: f32[1,16], index: 5, kind: input, shape index: {}]   ;;  %s11004_s6 = inlined_call_operand.vmem [shape: f32[1,16], index: 6, kind: input, shape index: {}]   ;;  %s11005_s9 = inlined_call_operand.vmem [shape: f32[5,24], index: 9, kind: input, shape index: {}]   ;;  %s11006_s8 = inlined_call_operand.vmem [shape: f32[1,24], index: 8, kind: input, shape index: {}]   ;;  %s11007_s10 = inlined_call_operand.vmem [shape: f32[512,24], index: 10, kind: output, shape index: {}]  }
   0x1   :  { %v5525_v0 = vld [vmem:[%s10997_s1 + $0x10] ss:$0 sps:$4 sm:$0x33]   ;;  %v5526_v1 = vld [vmem:[%s10997_s1 + $0x8] sm:$0xff]   ;;  %v5528_v3 = vld [vmem:[%s10998_s0] sm:$0xff]  }
   0x2   :  { %5522 = vmatprep.subr.msk.bf16.mxu0 %vm377_vm0, %v5525_v0  ;;  %v379_v2 = vsel %vm377_vm0, %v5525_v0, 0  ;;  %v5527_v4 = vld [vmem:[%s10997_s1] sm:$0xff]   ;;  %5324 = vmatprep.mubr.msk.bf16.mxu0 %vm280_vm1, %v5528_v3  ;;  %v5529_v5 = vld [vmem:[%s10998_s0 + $0x8] sm:$0xff]   ;;  %v5530_v6 = vld [vmem:[%s10998_s0 + $0x10] sm:$0xff]  }
   0x3   :  { %5319 = vmatpush3.bf16.msra.mxu0 %v379_v2  ;;  %v5531_v7 = vld [vmem:[%s10998_s0 + $0x18] sm:$0xff]   ;;  %v5532_v8 = vld [vmem:[%s10998_s0 + $0x20] sm:$0xff]   ;;  %v5533_v9 = vld [vmem:[%s10998_s0 + $0x28] sm:$0xff]  }
   0x4   :  { %5320 = vmatprep.subr.bf16.mxu0 %v5526_v1  ;;  %v5534_v10 = vld [vmem:[%s10998_s0 + $0x30] sm:$0xff]   ;;  %v5535_v11 = vld [vmem:[%s10998_s0 + $0x38] sm:$0xff]   ;;  %v5536_v12 = vld [vmem:[%s10998_s0 + $0x40] sm:$0xff]  }
   0x5   :  { %v5537_v13 = vld [vmem:[%s10998_s0 + $0x48] sm:$0xff]   ;;  %v5538_v14 = vld [vmem:[%s10998_s0 + $0x50] sm:$0xff]   ;;  %v5539_v15 = vld [vmem:[%s10998_s0 + $0x58] sm:$0xff]  }
   0x6   :  { %v5540_v16 = vld [vmem:[%s10998_s0 + $0x60] sm:$0xff]   ;;  %v5541_v17 = vld [vmem:[%s10998_s0 + $0x68] sm:$0xff]   ;;  %v5542_v18 = vld [vmem:[%s10998_s0 + $0x70] sm:$0xff]  }
   0x7   :  { %5321 = vmatpush3.bf16.msra.mxu0 %v5526_v1  ;;  %v5543_v19 = vld [vmem:[%s10998_s0 + $0x78] sm:$0xff]   ;;  %v5544_v20 = vld [vmem:[%s10998_s0 + $0x80] sm:$0xff]   ;;  %v5545_v21 = vld [vmem:[%s10998_s0 + $0x88] sm:$0xff]  }
   0x8   :  { %5322 = vmatprep.subr.bf16.mxu0 %v5527_v4  ;;  %v5546_v22 = vld [vmem:[%s10998_s0 + $0x90] sm:$0xff]   ;;  %v5547_v23 = vld [vmem:[%s10998_s0 + $0x98] sm:$0xff]   ;;  %v5548_v24 = vld [vmem:[%s10998_s0 + $0xa0] sm:$0xff]  }
   0x9   :  { %v5549_v25 = vld [vmem:[%s10998_s0 + $0xa8] sm:$0xff]   ;;  %v5550_v26 = vld [vmem:[%s10998_s0 + $0xb0] sm:$0xff]   ;;  %v5551_v27 = vld [vmem:[%s10998_s0 + $0xb8] sm:$0xff]  }
   0xa   :  { %v5552_v28 = vld [vmem:[%s10998_s0 + $0xc0] sm:$0xff]   ;;  %v5553_v29 = vld [vmem:[%s10998_s0 + $0xc8] sm:$0xff]   ;;  %v5554_v30 = vld [vmem:[%s10998_s0 + $0xd0] sm:$0xff]  }
   0xb   :  { %5323 = vmatpush3.bf16.msra.mxu0 %v5527_v4  ;;  %v5555_v31 = vld [vmem:[%s10998_s0 + $0xd8] sm:$0xff]   ;;  %v5556_v32 = vld [vmem:[%s10998_s0 + $0xe0] sm:$0xff]   ;;  %v5557_v33 = vld [vmem:[%s10998_s0 + $0xe8] sm:$0xff]  }
   0xc   :  { %v5558_v34 = vld [vmem:[%s10998_s0 + $0xf0] sm:$0xff]   ;;  %v5559_v35 = vld [vmem:[%s10998_s0 + $0xf8] sm:$0xff]   ;;  %v1501_v36 = vld [vmem:[%s10999_s4] sm:$0xf] }
   0xd   :  { %5523 = vmatprep.subr.msk.bf16.mxu0 %vm1598_vm2, %v1501_v36  ;;  %5524 = vmatprep.subr.msk.bf16.mxu1 %vm1598_vm2, %v1501_v36  ;;  %v1600_v37 = vsel %vm1598_vm2, %v1501_v36, 0 }
   0xe   :  { %5325 = vmatmul.mubr.msk.bf16.vlgmr.msra.gmra.mxu0 %vm280_vm1, %v5529_v5  ;;  %5521 = vmatpush3.bf16.msra.mxu1 %v1600_v37 }
   0xf   :  { %5328 = vmatprep.mubr.msk.bf16.mxu0 %vm280_vm1, %v5530_v6  ;;  %5389 = vmatpush3.bf16.msra.mxu0 %v1600_v37 }
  0x16   :  { %5329 = vmatmul.mubr.msk.bf16.gmra.mxu0 %vm280_vm1, %v5531_v7 }
  0x17   :  { %5332 = vmatprep.mubr.msk.bf16.mxu0 %vm280_vm1, %v5532_v8 }
  0x1e   :  { %5333 = vmatmul.mubr.msk.bf16.gmra.mxu0 %vm280_vm1, %v5533_v9 }
  0x1f   :  { %5336 = vmatprep.mubr.msk.bf16.mxu0 %vm280_vm1, %v5534_v10 }
  0x26   :  { %5337 = vmatmul.mubr.msk.bf16.gmra.mxu0 %vm280_vm1, %v5535_v11 }
  0x27   :  { %5340 = vmatprep.mubr.msk.bf16.mxu0 %vm280_vm1, %v5536_v12 }
  0x2e   :  { %5341 = vmatmul.mubr.msk.bf16.gmra.mxu0 %vm280_vm1, %v5537_v13 }
  0x2f   :  { %5344 = vmatprep.mubr.msk.bf16.mxu0 %vm280_vm1, %v5538_v14 }
  0x36   :  { %5345 = vmatmul.mubr.msk.bf16.gmra.mxu0 %vm280_vm1, %v5539_v15 }
  0x37   :  { %5348 = vmatprep.mubr.msk.bf16.mxu0 %vm280_vm1, %v5540_v16 }
  0x3e   :  { %5349 = vmatmul.mubr.msk.bf16.gmra.mxu0 %vm280_vm1, %v5541_v17 }
  0x3f   :  { %5352 = vmatprep.mubr.msk.bf16.mxu0 %vm280_vm1, %v5542_v18 }
  0x46   :  { %5353 = vmatmul.mubr.msk.bf16.gmra.mxu0 %vm280_vm1, %v5543_v19 }
  0x47   :  { %5356 = vmatprep.mubr.msk.bf16.mxu0 %vm280_vm1, %v5544_v20 }
  0x4e   :  { %5357 = vmatmul.mubr.msk.bf16.gmra.mxu0 %vm280_vm1, %v5545_v21 }
  0x4f   :  { %5360 = vmatprep.mubr.msk.bf16.mxu0 %vm280_vm1, %v5546_v22 }
  0x56   :  { %5361 = vmatmul.mubr.msk.bf16.gmra.mxu0 %vm280_vm1, %v5547_v23 }
  0x57   :  { %5364 = vmatprep.mubr.msk.bf16.mxu0 %vm280_vm1, %v5548_v24 }
  0x5e   :  { %5365 = vmatmul.mubr.msk.bf16.gmra.mxu0 %vm280_vm1, %v5549_v25 }
  0x5f   :  { %5368 = vmatprep.mubr.msk.bf16.mxu0 %vm280_vm1, %v5550_v26 }
  0x66   :  { %5369 = vmatmul.mubr.msk.bf16.gmra.mxu0 %vm280_vm1, %v5551_v27 }
  0x67   :  { %5372 = vmatprep.mubr.msk.bf16.mxu0 %vm280_vm1, %v5552_v28 }
  0x6e   :  { %5373 = vmatmul.mubr.msk.bf16.gmra.mxu0 %vm280_vm1, %v5553_v29 }
  0x6f   :  { %5376 = vmatprep.mubr.msk.bf16.mxu0 %vm280_vm1, %v5554_v30 }
  0x76   :  { %5377 = vmatmul.mubr.msk.bf16.gmra.mxu0 %vm280_vm1, %v5555_v31 }
  0x77   :  { %5380 = vmatprep.mubr.msk.bf16.mxu0 %vm280_vm1, %v5556_v32 }
  0x7e   :  { %5381 = vmatmul.mubr.msk.bf16.gmra.mxu0 %vm280_vm1, %v5557_v33 }
  0x7f   :  { %5384 = vmatprep.mubr.msk.bf16.mxu0 %vm280_vm1, %v5558_v34 }
  0x86   :  { %5385 = vmatmul.mubr.msk.bf16.gmra.mxu0 %vm280_vm1, %v5559_v35 }
  0xce   :  { %v6161_v38 = vpop.f32.mrf.mxu0 }
  0xcf   :  { %v806_v43 = vmul.f32 %v6161_v38, %v6161_v38  ;;  %v674_v49 = vsel %vm670_vm3, %v6161_v38, 0.0 }
  0xd0   :  { %v6163_v39 = vpop.f32.mrf.mxu0 }
  0xd1   :  { %v804_v41 = vmul.f32 %v6163_v39, %v6163_v39  ;;  %v671_v44 = vsel %vm670_vm3, %v6163_v39, 0.0  ;;  %v871_v56 = vsel %vm670_vm3, %v806_v43, 0.0 }
  0xd2   :  { %v6165_v40 = vpop.f32.mrf.mxu0 }
  0xd3   :  { %v868_v50 = vsel %vm670_vm3, %v804_v41, 0.0  ;;  %v807_v51 = vmul.f32 %v6165_v40, %v6165_v40  ;;  %v676_v57 = vsel %vm670_vm3, %v6165_v40, 0.0 }
  0xd4   :  { %v6169_v42 = vpop.f32.mrf.mxu0 }
  0xd5   :  { %v672_v45 = vsel %vm670_vm3, %v6169_v42, 0.0  ;;  %v805_v46 = vmul.f32 %v6169_v42, %v6169_v42  ;;  %v873_v62 = vsel %vm670_vm3, %v807_v51, 0.0 }
  0xd6   :  { %v673_v47 = vadd.f32 %v672_v45, %v671_v44  ;;  %v6179_v48 = vpop.f32.mrf.mxu0 }
  0xd7   :  { %v869_v52 = vsel %vm670_vm3, %v805_v46, 0.0  ;;  %v810_v3 = vmul.f32 %v6179_v48, %v6179_v48  ;;  %v682_v10 = vsel %vm670_vm3, %v6179_v48, 0.0 }
  0xd8   :  { %v675_v53 = vadd.f32 %v674_v49, %v673_v47  ;;  %v870_v54 = vadd.f32 %v869_v52, %v868_v50  ;;  %v6187_v55 = vpop.f32.mrf.mxu0 }
  0xd9   :  { %v808_v58 = vmul.f32 %v6187_v55, %v6187_v55  ;;  %v678_v63 = vsel %vm670_vm3, %v6187_v55, 0.0  ;;  %v879_v16 = vsel %vm670_vm3, %v810_v3, 0.0 }
  0xda   :  { %v872_v59 = vadd.f32 %v871_v56, %v870_v54  ;;  %v677_v60 = vadd.f32 %v676_v57, %v675_v53  ;;  %v6194_v61 = vpop.f32.mrf.mxu0 }
  0xdb   :  { %v875_v4 = vsel %vm670_vm3, %v808_v58, 0.0  ;;  %v811_v11 = vmul.f32 %v6194_v61, %v6194_v61  ;;  %v684_v17 = vsel %vm670_vm3, %v6194_v61, 0.0 }
  0xdc   :  { %v679_v0 = vadd.f32 %v678_v63, %v677_v60  ;;  %v874_v1 = vadd.f32 %v873_v62, %v872_v59  ;;  %v6199_v2 = vpop.f32.mrf.mxu0 }
  0xdd   :  { %v680_v5 = vsel %vm670_vm3, %v6199_v2, 0.0  ;;  %v809_v6 = vmul.f32 %v6199_v2, %v6199_v2  ;;  %v881_v22 = vsel %vm670_vm3, %v811_v11, 0.0 }
  0xde   :  { %v876_v7 = vadd.f32 %v875_v4, %v874_v1  ;;  %v681_v8 = vadd.f32 %v680_v5, %v679_v0  ;;  %v6208_v9 = vpop.f32.mrf.mxu0 }
  0xdf   :  { %v877_v12 = vsel %vm670_vm3, %v809_v6, 0.0  ;;  %v814_v27 = vmul.f32 %v6208_v9, %v6208_v9  ;;  %v690_v34 = vsel %vm670_vm3, %v6208_v9, 0.0 }
  0xe0   :  { %v683_v13 = vadd.f32 %v682_v10, %v681_v8  ;;  %v878_v14 = vadd.f32 %v877_v12, %v876_v7  ;;  %v6215_v15 = vpop.f32.mrf.mxu0 }
  0xe1   :  { %v812_v18 = vmul.f32 %v6215_v15, %v6215_v15  ;;  %v686_v23 = vsel %vm670_vm3, %v6215_v15, 0.0  ;;  %v887_v44 = vsel %vm670_vm3, %v814_v27, 0.0 }
  0xe2   :  { %v880_v19 = vadd.f32 %v879_v16, %v878_v14  ;;  %v685_v20 = vadd.f32 %v684_v17, %v683_v13  ;;  %v6222_v21 = vpop.f32.mrf.mxu0 }
  0xe3   :  { %v883_v28 = vsel %vm670_vm3, %v812_v18, 0.0  ;;  %v815_v35 = vmul.f32 %v6222_v21, %v6222_v21  ;;  %v692_v45 = vsel %vm670_vm3, %v6222_v21, 0.0 }
  0xe4   :  { %v687_v24 = vadd.f32 %v686_v23, %v685_v20  ;;  %v882_v25 = vadd.f32 %v881_v22, %v880_v19  ;;  %v6227_v26 = vpop.f32.mrf.mxu0 }
  0xe5   :  { %v688_v29 = vsel %vm670_vm3, %v6227_v26, 0.0  ;;  %v813_v30 = vmul.f32 %v6227_v26, %v6227_v26  ;;  %v889_v51 = vsel %vm670_vm3, %v815_v35, 0.0 }
  0xe6   :  { %v884_v31 = vadd.f32 %v883_v28, %v882_v25  ;;  %v689_v32 = vadd.f32 %v688_v29, %v687_v24  ;;  %v6236_v33 = vpop.f32.mrf.mxu0 }
  0xe7   :  { %v885_v36 = vsel %vm670_vm3, %v813_v30, 0.0  ;;  %v818_v57 = vmul.f32 %v6236_v33, %v6236_v33  ;;  %v698_v1 = vsel %vm670_vm3, %v6236_v33, 0.0 }
  0xe8   :  { %v691_v37 = vadd.f32 %v690_v34, %v689_v32  ;;  %v886_v41 = vadd.f32 %v885_v36, %v884_v31  ;;  %v6243_v43 = vpop.f32.mrf.mxu0 }
  0xe9   :  { %v816_v46 = vmul.f32 %v6243_v43, %v6243_v43  ;;  %v694_v52 = vsel %vm670_vm3, %v6243_v43, 0.0  ;;  %v895_v8 = vsel %vm670_vm3, %v818_v57, 0.0 }
  0xea   :  { %v888_v47 = vadd.f32 %v887_v44, %v886_v41  ;;  %v693_v49 = vadd.f32 %v692_v45, %v691_v37  ;;  %v6250_v50 = vpop.f32.mrf.mxu0 }
  0xeb   :  { %v891_v58 = vsel %vm670_vm3, %v816_v46, 0.0  ;;  %v819_v3 = vmul.f32 %v6250_v50, %v6250_v50  ;;  %v700_v10 = vsel %vm670_vm3, %v6250_v50, 0.0 }
  0xec   :  { %v695_v53 = vadd.f32 %v694_v52, %v693_v49  ;;  %v890_v54 = vadd.f32 %v889_v51, %v888_v47  ;;  %v6255_v56 = vpop.f32.mrf.mxu0 }
  0xed   :  { %v696_v59 = vsel %vm670_vm3, %v6255_v56, 0.0  ;;  %v817_v60 = vmul.f32 %v6255_v56, %v6255_v56  ;;  %v897_v16 = vsel %vm670_vm3, %v819_v3, 0.0 }
  0xee   :  { %v892_v62 = vadd.f32 %v891_v58, %v890_v54  ;;  %v697_v63 = vadd.f32 %v696_v59, %v695_v53  ;;  %v6264_v0 = vpop.f32.mrf.mxu0 }
  0xef   :  { %v893_v4 = vsel %vm670_vm3, %v817_v60, 0.0  ;;  %v822_v22 = vmul.f32 %v6264_v0, %v6264_v0  ;;  %v706_v30 = vsel %vm670_vm3, %v6264_v0, 0.0 }
  0xf0   :  { %v699_v5 = vadd.f32 %v698_v1, %v697_v63  ;;  %v894_v6 = vadd.f32 %v893_v4, %v892_v62  ;;  %v6271_v7 = vpop.f32.mrf.mxu0 }
  0xf1   :  { %v820_v11 = vmul.f32 %v6271_v7, %v6271_v7  ;;  %v702_v17 = vsel %vm670_vm3, %v6271_v7, 0.0  ;;  %v903_v37 = vsel %vm670_vm3, %v822_v22, 0.0 }
  0xf2   :  { %v896_v12 = vadd.f32 %v895_v8, %v894_v6  ;;  %v701_v13 = vadd.f32 %v700_v10, %v699_v5  ;;  %v6278_v14 = vpop.f32.mrf.mxu0 }
  0xf3   :  { %v899_v23 = vsel %vm670_vm3, %v820_v11, 0.0  ;;  %v823_v31 = vmul.f32 %v6278_v14, %v6278_v14  ;;  %v708_v41 = vsel %vm670_vm3, %v6278_v14, 0.0 }
  0xf4   :  { %v703_v18 = vadd.f32 %v702_v17, %v701_v13  ;;  %v898_v19 = vadd.f32 %v897_v16, %v896_v12  ;;  %v6283_v20 = vpop.f32.mrf.mxu0 }
  0xf5   :  { %v704_v24 = vsel %vm670_vm3, %v6283_v20, 0.0  ;;  %v821_v25 = vmul.f32 %v6283_v20, %v6283_v20  ;;  %v905_v49 = vsel %vm670_vm3, %v823_v31, 0.0 }
  0xf6   :  { %v900_v27 = vadd.f32 %v899_v23, %v898_v19  ;;  %v705_v28 = vadd.f32 %v704_v24, %v703_v18  ;;  %v6292_v29 = vpop.f32.mrf.mxu0 }
  0xf7   :  { %v901_v32 = vsel %vm670_vm3, %v821_v25, 0.0  ;;  %v826_v57 = vmul.f32 %v6292_v29, %v6292_v29  ;;  %v714_v3 = vsel %vm670_vm3, %v6292_v29, 0.0 }
  0xf8   :  { %v707_v34 = vadd.f32 %v706_v30, %v705_v28  ;;  %v902_v35 = vadd.f32 %v901_v32, %v900_v27  ;;  %v6299_v36 = vpop.f32.mrf.mxu0 }
  0xf9   :  { %v824_v44 = vmul.f32 %v6299_v36, %v6299_v36  ;;  %v710_v51 = vsel %vm670_vm3, %v6299_v36, 0.0  ;;  %v911_v11 = vsel %vm670_vm3, %v826_v57, 0.0 }
  0xfa   :  { %v904_v45 = vadd.f32 %v903_v37, %v902_v35  ;;  %v709_v46 = vadd.f32 %v708_v41, %v707_v34  ;;  %v6306_v47 = vpop.f32.mrf.mxu0 }
  0xfb   :  { %v907_v58 = vsel %vm670_vm3, %v824_v44, 0.0  ;;  %v827_v4 = vmul.f32 %v6306_v47, %v6306_v47  ;;  %v716_v12 = vsel %vm670_vm3, %v6306_v47, 0.0 }
  0xfc   :  { %v711_v52 = vadd.f32 %v710_v51, %v709_v46  ;;  %v906_v53 = vadd.f32 %v905_v49, %v904_v45  ;;  %v6311_v54 = vpop.f32.mrf.mxu0 }
  0xfd   :  { %v712_v59 = vsel %vm670_vm3, %v6311_v54, 0.0  ;;  %v825_v60 = vmul.f32 %v6311_v54, %v6311_v54  ;;  %v913_v19 = vsel %vm670_vm3, %v827_v4, 0.0 }
  0xfe   :  { %v908_v62 = vadd.f32 %v907_v58, %v906_v53  ;;  %v713_v63 = vadd.f32 %v712_v59, %v711_v52  ;;  %v6320_v1 = vpop.f32.mrf.mxu0 }
  0xff   :  { %v909_v5 = vsel %vm670_vm3, %v825_v60, 0.0  ;;  %v830_v27 = vmul.f32 %v6320_v1, %v6320_v1  ;;  %v722_v37 = vsel %vm670_vm3, %v6320_v1, 0.0 }
 0x100   :  { %v715_v6 = vadd.f32 %v714_v3, %v713_v63  ;;  %v910_v8 = vadd.f32 %v909_v5, %v908_v62  ;;  %v6327_v10 = vpop.f32.mrf.mxu0 }
 0x101   :  { %v828_v13 = vmul.f32 %v6327_v10, %v6327_v10  ;;  %v718_v22 = vsel %vm670_vm3, %v6327_v10, 0.0  ;;  %v919_v51 = vsel %vm670_vm3, %v830_v27, 0.0 }
 0x102   :  { %v912_v16 = vadd.f32 %v911_v11, %v910_v8  ;;  %v717_v17 = vadd.f32 %v716_v12, %v715_v6  ;;  %v6334_v18 = vpop.f32.mrf.mxu0 }
 0x103   :  { %v915_v28 = vsel %vm670_vm3, %v828_v13, 0.0  ;;  %v831_v41 = vmul.f32 %v6334_v18, %v6334_v18  ;;  %v724_v52 = vsel %vm670_vm3, %v6334_v18, 0.0 }
 0x104   :  { %v719_v23 = vadd.f32 %v718_v22, %v717_v17  ;;  %v914_v24 = vadd.f32 %v913_v19, %v912_v16  ;;  %v6339_v25 = vpop.f32.mrf.mxu0 }
 0x105   :  { %v720_v30 = vsel %vm670_vm3, %v6339_v25, 0.0  ;;  %v829_v31 = vmul.f32 %v6339_v25, %v6339_v25  ;;  %v921_v60 = vsel %vm670_vm3, %v831_v41, 0.0 }
 0x106   :  { %v916_v32 = vadd.f32 %v915_v28, %v914_v24  ;;  %v721_v34 = vadd.f32 %v720_v30, %v719_v23  ;;  %v6348_v35 = vpop.f32.mrf.mxu0 }
 0x107   :  { %v917_v44 = vsel %vm670_vm3, %v829_v31, 0.0  ;;  %v834_v5 = vmul.f32 %v6348_v35, %v6348_v35  ;;  %v730_v17 = vsel %vm670_vm3, %v6348_v35, 0.0 }
 0x108   :  { %v723_v45 = vadd.f32 %v722_v37, %v721_v34  ;;  %v918_v46 = vadd.f32 %v917_v44, %v916_v32  ;;  %v6355_v49 = vpop.f32.mrf.mxu0 }
 0x109   :  { %v832_v53 = vmul.f32 %v6355_v49, %v6355_v49  ;;  %v726_v62 = vsel %vm670_vm3, %v6355_v49, 0.0  ;;  %v927_v28 = vsel %vm670_vm3, %v834_v5, 0.0 }
 0x10a   :  { %v920_v57 = vadd.f32 %v919_v51, %v918_v46  ;;  %v725_v58 = vadd.f32 %v724_v52, %v723_v45  ;;  %v6362_v59 = vpop.f32.mrf.mxu0 }
 0x10b   :  { %v923_v6 = vsel %vm670_vm3, %v832_v53, 0.0  ;;  %v835_v19 = vmul.f32 %v6362_v59, %v6362_v59  ;;  %v732_v30 = vsel %vm670_vm3, %v6362_v59, 0.0 }
 0x10c   :  { %v727_v63 = vadd.f32 %v726_v62, %v725_v58  ;;  %v922_v3 = vadd.f32 %v921_v60, %v920_v57  ;;  %v6367_v4 = vpop.f32.mrf.mxu0 }
 0x10d   :  { %v728_v8 = vsel %vm670_vm3, %v6367_v4, 0.0  ;;  %v833_v11 = vmul.f32 %v6367_v4, %v6367_v4  ;;  %v929_v41 = vsel %vm670_vm3, %v835_v19, 0.0 }
 0x10e   :  { %v924_v12 = vadd.f32 %v923_v6, %v922_v3  ;;  %v729_v13 = vadd.f32 %v728_v8, %v727_v63  ;;  %v6376_v16 = vpop.f32.mrf.mxu0 }
 0x10f   :  { %v925_v22 = vsel %vm670_vm3, %v833_v11, 0.0  ;;  %v838_v52 = vmul.f32 %v6376_v16, %v6376_v16  ;;  %v738_v3 = vsel %vm670_vm3, %v6376_v16, 0.0 }
 0x110   :  { %v731_v23 = vadd.f32 %v730_v17, %v729_v13  ;;  %v926_v24 = vadd.f32 %v925_v22, %v924_v12  ;;  %v6383_v27 = vpop.f32.mrf.mxu0 }
 0x111   :  { %v836_v31 = vmul.f32 %v6383_v27, %v6383_v27  ;;  %v734_v44 = vsel %vm670_vm3, %v6383_v27, 0.0  ;;  %v935_v13 = vsel %vm670_vm3, %v838_v52, 0.0 }
 0x112   :  { %v928_v32 = vadd.f32 %v927_v28, %v926_v24  ;;  %v733_v34 = vadd.f32 %v732_v30, %v731_v23  ;;  %v6390_v37 = vpop.f32.mrf.mxu0 }
 0x113   :  { %v931_v53 = vsel %vm670_vm3, %v836_v31, 0.0  ;;  %v839_v5 = vmul.f32 %v6390_v37, %v6390_v37  ;;  %v740_v17 = vsel %vm670_vm3, %v6390_v37, 0.0 }
 0x114   :  { %v735_v45 = vadd.f32 %v734_v44, %v733_v34  ;;  %v930_v46 = vadd.f32 %v929_v41, %v928_v32  ;;  %v6395_v51 = vpop.f32.mrf.mxu0 }
 0x115   :  { %v736_v57 = vsel %vm670_vm3, %v6395_v51, 0.0  ;;  %v837_v58 = vmul.f32 %v6395_v51, %v6395_v51  ;;  %v937_v28 = vsel %vm670_vm3, %v839_v5, 0.0 }
 0x116   :  { %v932_v60 = vadd.f32 %v931_v53, %v930_v46  ;;  %v737_v62 = vadd.f32 %v736_v57, %v735_v45  ;;  %v6404_v63 = vpop.f32.mrf.mxu0 }
 0x117   :  { %v933_v6 = vsel %vm670_vm3, %v837_v58, 0.0  ;;  %v842_v41 = vmul.f32 %v6404_v63, %v6404_v63  ;;  %v746_v58 = vsel %vm670_vm3, %v6404_v63, 0.0 }
 0x118   :  { %v739_v8 = vadd.f32 %v738_v3, %v737_v62  ;;  %v934_v11 = vadd.f32 %v933_v6, %v932_v60  ;;  %v6411_v12 = vpop.f32.mrf.mxu0 }
 0x119   :  { %v840_v19 = vmul.f32 %v6411_v12, %v6411_v12  ;;  %v742_v30 = vsel %vm670_vm3, %v6411_v12, 0.0 }
 0x11a   :  { %v936_v22 = vadd.f32 %v935_v13, %v934_v11  ;;  %v741_v23 = vadd.f32 %v740_v17, %v739_v8  ;;  %v6418_v24 = vpop.f32.mrf.mxu0  ;;  %v943_v8 = vsel %vm670_vm3, %v842_v41, 0.0 }
 0x11b   :  { %v939_v44 = vsel %vm670_vm3, %v840_v19, 0.0  ;;  %v843_v60 = vmul.f32 %v6418_v24, %v6418_v24  ;;  %v748_v11 = vsel %vm670_vm3, %v6418_v24, 0.0 }
 0x11c   :  { %v743_v31 = vadd.f32 %v742_v30, %v741_v23  ;;  %v938_v32 = vadd.f32 %v937_v28, %v936_v22  ;;  %v6423_v34 = vpop.f32.mrf.mxu0 }
 0x11d   :  { %v744_v45 = vsel %vm670_vm3, %v6423_v34, 0.0  ;;  %v841_v46 = vmul.f32 %v6423_v34, %v6423_v34  ;;  %v945_v23 = vsel %vm670_vm3, %v843_v60, 0.0 }
 0x11e   :  { %v940_v52 = vadd.f32 %v939_v44, %v938_v32  ;;  %v745_v53 = vadd.f32 %v744_v45, %v743_v31  ;;  %v6432_v57 = vpop.f32.mrf.mxu0 }
 0x11f   :  { %11136 = vst [vmem:[#allocation2_spill] sm:$0xff] %v6432_v57  ;;  %v941_v62 = vsel %vm670_vm3, %v841_v46, 0.0  ;;  %v846_v41 = vmul.f32 %v6432_v57, %v6432_v57  ;;  %v754_v60 = vsel %vm670_vm3, %v6432_v57, 0.0 }
 0x120   :  { %v747_v3 = vadd.f32 %v746_v58, %v745_v53  ;;  %v942_v5 = vadd.f32 %v941_v62, %v940_v52  ;;  %v6439_v6 = vpop.f32.mrf.mxu0 }
 0x121   :  { %11137 = vst [vmem:[#allocation3_spill] sm:$0xff] %v6439_v6  ;;  %v844_v13 = vmul.f32 %v6439_v6, %v6439_v6  ;;  %v750_v28 = vsel %vm670_vm3, %v6439_v6, 0.0 }
 0x122   :  { %v944_v17 = vadd.f32 %v943_v8, %v942_v5  ;;  %v749_v19 = vadd.f32 %v748_v11, %v747_v3  ;;  %v6446_v22 = vpop.f32.mrf.mxu0 }
 0x123   :  { %11138 = vst [vmem:[#allocation4_spill] sm:$0xff] %v6446_v22  ;;  %v947_v44 = vsel %vm670_vm3, %v844_v13, 0.0  ;;  %v847_v62 = vmul.f32 %v6446_v22, %v6446_v22  ;;  %v951_v13 = vsel %vm670_vm3, %v846_v41, 0.0 }
 0x124   :  { %v751_v30 = vadd.f32 %v750_v28, %v749_v19  ;;  %v946_v31 = vadd.f32 %v945_v23, %v944_v17  ;;  %v6451_v32 = vpop.f32.mrf.mxu0  ;;  %v756_v17 = vsel %vm670_vm3, %v6446_v22, 0.0 }
 0x125   :  { %11139 = vst [vmem:[#allocation5_spill] sm:$0xff] %v6451_v32  ;;  %v752_v45 = vsel %vm670_vm3, %v6451_v32, 0.0  ;;  %v845_v46 = vmul.f32 %v6451_v32, %v6451_v32 }
 0x126   :  { %v948_v52 = vadd.f32 %v947_v44, %v946_v31  ;;  %v753_v53 = vadd.f32 %v752_v45, %v751_v30  ;;  %v6460_v58 = vpop.f32.mrf.mxu0  ;;  %v953_v31 = vsel %vm670_vm3, %v847_v62, 0.0 }
 0x127   :  { %11140 = vst [vmem:[#allocation6_spill] sm:$0xff] %v6460_v58  ;;  %v949_v3 = vsel %vm670_vm3, %v845_v46, 0.0  ;;  %v850_v41 = vmul.f32 %v6460_v58, %v6460_v58 }
 0x128   :  { %v755_v5 = vadd.f32 %v754_v60, %v753_v53  ;;  %v950_v8 = vadd.f32 %v949_v3, %v948_v52  ;;  %v6467_v11 = vpop.f32.mrf.mxu0 }
 0x129   :  { %11141 = vst [vmem:[#allocation7_spill] sm:$0xff] %v6467_v11  ;;  %v848_v19 = vmul.f32 %v6467_v11, %v6467_v11  ;;  %v758_v44 = vsel %vm670_vm3, %v6467_v11, 0.0 }
 0x12a   :  { %v952_v23 = vadd.f32 %v951_v13, %v950_v8  ;;  %v757_v28 = vadd.f32 %v756_v17, %v755_v5  ;;  %v6474_v30 = vpop.f32.mrf.mxu0  ;;  %v762_v13 = vsel %vm670_vm3, %v6460_v58, 0.0 }
 0x12b   :  { %11142 = vst [vmem:[#allocation8_spill] sm:$0xff] %v6474_v30  ;;  %v955_v53 = vsel %vm670_vm3, %v848_v19, 0.0  ;;  %v851_v17 = vmul.f32 %v6474_v30, %v6474_v30 }
 0x12c   :  { %v759_v45 = vadd.f32 %v758_v44, %v757_v28  ;;  %v954_v46 = vadd.f32 %v953_v31, %v952_v23  ;;  %v6479_v52 = vpop.f32.mrf.mxu0  ;;  %v959_v44 = vsel %vm670_vm3, %v850_v41, 0.0 }
 0x12d   :  { %11143 = vst [vmem:[#allocation9_spill] sm:$0xff] %v6479_v52  ;;  %v760_v60 = vsel %vm670_vm3, %v6479_v52, 0.0  ;;  %v849_v3 = vmul.f32 %v6479_v52, %v6479_v52  ;;  %v961_v52 = vsel %vm670_vm3, %v851_v17, 0.0 }
 0x12e   :  { %v956_v5 = vadd.f32 %v955_v53, %v954_v46  ;;  %v761_v62 = vadd.f32 %v760_v60, %v759_v45  ;;  %v6488_v8 = vpop.f32.mrf.mxu0  ;;  %v764_v46 = vsel %vm670_vm3, %v6474_v30, 0.0 }
 0x12f   :  { %11144 = vst [vmem:[#allocation10_spill] sm:$0xff] %v6488_v8  ;;  %v957_v23 = vsel %vm670_vm3, %v849_v3, 0.0  ;;  %v854_v41 = vmul.f32 %v6488_v8, %v6488_v8 }
 0x130   :  { %v763_v28 = vadd.f32 %v762_v13, %v761_v62  ;;  %v958_v19 = vadd.f32 %v957_v23, %v956_v5  ;;  %v6495_v31 = vpop.f32.mrf.mxu0 }
 0x131   :  { %11145 = vst [vmem:[#allocation11_spill] sm:$0xff] %v6495_v31  ;;  %v852_v45 = vmul.f32 %v6495_v31, %v6495_v31  ;;  %v766_v3 = vsel %vm670_vm3, %v6495_v31, 0.0  ;;  %v967_v30 = vsel %vm670_vm3, %v854_v41, 0.0 }
 0x132   :  { %v960_v53 = vadd.f32 %v959_v44, %v958_v19  ;;  %v765_v60 = vadd.f32 %v764_v46, %v763_v28  ;;  %v6502_v58 = vpop.f32.mrf.mxu0 }
 0x133   :  { %11146 = vst [vmem:[#allocation12_spill] sm:$0xff] %v6502_v58  ;;  %v963_v23 = vsel %vm670_vm3, %v852_v45, 0.0 }
 0x134   :  { %v767_v5 = vadd.f32 %v766_v3, %v765_v60  ;;  %v962_v62 = vadd.f32 %v961_v52, %v960_v53  ;;  %v6507_v13 = vpop.f32.mrf.mxu0  ;;  %v770_v52 = vsel %vm670_vm3, %v6488_v8, 0.0  ;;  %v855_v53 = vmul.f32 %v6502_v58, %v6502_v58 }
 0x135   :  { %11147 = vst [vmem:[#allocation13_spill] sm:$0xff] %v6507_v13  ;;  %v768_v19 = vsel %vm670_vm3, %v6507_v13, 0.0  ;;  %v853_v28 = vmul.f32 %v6507_v13, %v6507_v13 }
 0x136   :  { %v964_v44 = vadd.f32 %v963_v23, %v962_v62  ;;  %v769_v17 = vadd.f32 %v768_v19, %v767_v5  ;;  %v6516_v46 = vpop.f32.mrf.mxu0  ;;  %v772_v62 = vsel %vm670_vm3, %v6502_v58, 0.0  ;;  %v969_v13 = vsel %vm670_vm3, %v855_v53, 0.0 }
 0x137   :  { %11148 = vst [vmem:[#allocation14_spill] sm:$0xff] %v6516_v46  ;;  %v965_v60 = vsel %vm670_vm3, %v853_v28, 0.0  ;;  %v858_v41 = vmul.f32 %v6516_v46, %v6516_v46 }
 0x138   :  { %v771_v3 = vadd.f32 %v770_v52, %v769_v17  ;;  %v966_v45 = vadd.f32 %v965_v60, %v964_v44  ;;  %v6523_v31 = vpop.f32.mrf.mxu0 }
 0x139   :  { %11149 = vst [vmem:[#allocation15_spill] sm:$0xff] %v6523_v31  ;;  %v856_v5 = vmul.f32 %v6523_v31, %v6523_v31  ;;  %v774_v28 = vsel %vm670_vm3, %v6523_v31, 0.0  ;;  %v975_v58 = vsel %vm670_vm3, %v858_v41, 0.0 }
 0x13a   :  { %v968_v23 = vadd.f32 %v967_v30, %v966_v45  ;;  %v773_v19 = vadd.f32 %v772_v62, %v771_v3  ;;  %v6530_v8 = vpop.f32.mrf.mxu0 }
 0x13b   :  { %11150 = vst [vmem:[#allocation16_spill] sm:$0xff] %v6530_v8  ;;  %v971_v60 = vsel %vm670_vm3, %v856_v5, 0.0 }
 0x13c   :  { %v775_v44 = vadd.f32 %v774_v28, %v773_v19  ;;  %v970_v17 = vadd.f32 %v969_v13, %v968_v23  ;;  %v6535_v52 = vpop.f32.mrf.mxu0  ;;  %v778_v13 = vsel %vm670_vm3, %v6516_v46, 0.0  ;;  %v859_v23 = vmul.f32 %v6530_v8, %v6530_v8 }
 0x13d   :  { %11151 = vst [vmem:[#allocation17_spill] sm:$0xff] %v6535_v52  ;;  %v776_v30 = vsel %vm670_vm3, %v6535_v52, 0.0  ;;  %v857_v3 = vmul.f32 %v6535_v52, %v6535_v52 }
 0x13e   :  { %v972_v45 = vadd.f32 %v971_v60, %v970_v17  ;;  %v777_v53 = vadd.f32 %v776_v30, %v775_v44  ;;  %v6544_v62 = vpop.f32.mrf.mxu0  ;;  %v780_v17 = vsel %vm670_vm3, %v6530_v8, 0.0  ;;  %v977_v52 = vsel %vm670_vm3, %v859_v23, 0.0 }
 0x13f   :  { %11152 = vst [vmem:[#allocation18_spill] sm:$0xff] %v6544_v62  ;;  %v973_v19 = vsel %vm670_vm3, %v857_v3, 0.0  ;;  %v862_v41 = vmul.f32 %v6544_v62, %v6544_v62 }
 0x140   :  { %v779_v28 = vadd.f32 %v778_v13, %v777_v53  ;;  %v974_v5 = vadd.f32 %v973_v19, %v972_v45  ;;  %v6551_v31 = vpop.f32.mrf.mxu0 }
 0x141   :  { %11153 = vst [vmem:[#allocation19_spill] sm:$0xff] %v6551_v31  ;;  %v860_v44 = vmul.f32 %v6551_v31, %v6551_v31  ;;  %v782_v3 = vsel %vm670_vm3, %v6551_v31, 0.0  ;;  %v983_v8 = vsel %vm670_vm3, %v862_v41, 0.0 }
 0x142   :  { %v976_v60 = vadd.f32 %v975_v58, %v974_v5  ;;  %v781_v30 = vadd.f32 %v780_v17, %v779_v28  ;;  %v6558_v46 = vpop.f32.mrf.mxu0 }
 0x143   :  { %11154 = vst [vmem:[#allocation20_spill] sm:$0xff] %v6558_v46  ;;  %v979_v19 = vsel %vm670_vm3, %v860_v44, 0.0 }
 0x144   :  { %v783_v45 = vadd.f32 %v782_v3, %v781_v30  ;;  %v978_v53 = vadd.f32 %v977_v52, %v976_v60  ;;  %v6563_v13 = vpop.f32.mrf.mxu0  ;;  %v786_v52 = vsel %vm670_vm3, %v6544_v62, 0.0  ;;  %v863_v60 = vmul.f32 %v6558_v46, %v6558_v46 }
 0x145   :  { %11155 = vst [vmem:[#allocation21_spill] sm:$0xff] %v6563_v13  ;;  %v784_v58 = vsel %vm670_vm3, %v6563_v13, 0.0  ;;  %v861_v28 = vmul.f32 %v6563_v13, %v6563_v13 }
 0x146   :  { %v980_v5 = vadd.f32 %v979_v19, %v978_v53  ;;  %v785_v23 = vadd.f32 %v784_v58, %v783_v45  ;;  %v6572_v17 = vpop.f32.mrf.mxu0  ;;  %v788_v53 = vsel %vm670_vm3, %v6558_v46, 0.0  ;;  %v985_v13 = vsel %vm670_vm3, %v863_v60, 0.0 }
 0x147   :  { %11156 = vst [vmem:[#allocation22_spill] sm:$0xff] %v6572_v17  ;;  %v981_v30 = vsel %vm670_vm3, %v861_v28, 0.0  ;;  %v866_v41 = vmul.f32 %v6572_v17, %v6572_v17 }
 0x148   :  { %v787_v3 = vadd.f32 %v786_v52, %v785_v23  ;;  %v982_v44 = vadd.f32 %v981_v30, %v980_v5  ;;  %v6579_v31 = vpop.f32.mrf.mxu0 }
 0x149   :  { %11157 = vst [vmem:[#allocation23_spill] sm:$0xff] %v6579_v31  ;;  %v864_v45 = vmul.f32 %v6579_v31, %v6579_v31  ;;  %v790_v28 = vsel %vm670_vm3, %v6579_v31, 0.0 }
 0x14a   :  { %v984_v19 = vadd.f32 %v983_v8, %v982_v44  ;;  %v789_v58 = vadd.f32 %v788_v53, %v787_v3  ;;  %v6586_v62 = vpop.f32.mrf.mxu0  ;;  %v794_v44 = vsel %vm670_vm3, %v6572_v17, 0.0 }
 0x14b   :  { %v987_v30 = vsel %vm670_vm3, %v864_v45, 0.0  ;;  %v867_v60 = vmul.f32 %v6586_v62, %v6586_v62  ;;  %v796_v45 = vsel %vm670_vm3, %v6586_v62, 0.0 }
 0x14c   :  { %v791_v5 = vadd.f32 %v790_v28, %v789_v58  ;;  %v986_v23 = vadd.f32 %v985_v13, %v984_v19  ;;  %v658_v52 = vpop.f32.mrf.mxu0  ;;  %v991_v58 = vsel %vm670_vm3, %v866_v41, 0.0 }
 0x14d   :  { %v792_v46 = vsel %vm670_vm3, %v658_v52, 0.0  ;;  %v865_v11 = vmul.f32 %v658_v52, %v658_v52 }
 0x14e   :  { %v988_v8 = vadd.f32 %v987_v30, %v986_v23  ;;  %v793_v3 = vadd.f32 %v792_v46, %v791_v5  ;;  %v993_v23 = vsel %vm670_vm3, %v867_v60, 0.0 }
 0x14f   :  { %v989_v53 = vsel %vm670_vm3, %v865_v11, 0.0 }
 0x150   :  { %v795_v13 = vadd.f32 %v794_v44, %v793_v3  ;;  %v990_v19 = vadd.f32 %v989_v53, %v988_v8 }
 0x152   :  { %v797_v28 = vadd.f32 %v796_v45, %v795_v13  ;;  %v992_v31 = vadd.f32 %v991_v58, %v990_v19  ;;  %v6609_v13 = vld [vmem:[%s11000_s2] ss:$0 sm:$0xff]  ;;  %v11173_v19 = vld [vmem:[#allocation16_spill] sm:$0xff] }
 0x154   :  { %v798_v46 = vrot.slane %v797_v28, 4  ;;  %v994_v5 = vadd.f32 %v993_v23, %v992_v31 }
 0x156   :  { %v799_v30 = vadd.f32 %v798_v46, %v797_v28  ;;  %v995_v17 = vrot.slane %v994_v5, 4 }
 0x158   :  { %v800_v22 = vrot.slane %v799_v30, 2  ;;  %v996_v57 = vadd.f32 %v995_v17, %v994_v5 }
 0x15a   :  { %v801_v32 = vadd.f32 %v800_v22, %v799_v30  ;;  %v997_v6 = vrot.slane %v996_v57, 2  ;;  %v11177_v22 = vld [vmem:[#allocation20_spill] sm:$0xff] }
 0x15c   :  { %v802_v11 = vrot.slane %v801_v32, 1  ;;  %v998_v3 = vadd.f32 %v997_v6, %v996_v57  ;;  %v11175_v6 = vld [vmem:[#allocation21_spill] sm:$0xff]  ;;  %v11176_v57 = vld [vmem:[#allocation18_spill] sm:$0xff] }
 0x15e   :  { %v803_v8 = vadd.f32 %v802_v11, %v801_v32  ;;  %v999_v44 = vrot.slane %v998_v3, 1  ;;  %v11174_v32 = vld [vmem:[#allocation19_spill] sm:$0xff] }
 0x160   :  { %v1000_v41 = vadd.f32 %v999_v44, %v998_v3  ;;  %v6604_v53 = vmul.f32 0.001953125, %v803_v8  ;;  %v11158_v8 = vld [vmem:[#allocation3_spill] sm:$0xff]  ;;  %v11159_v44 = vld [vmem:[#allocation5_spill] sm:$0xff] }
 0x162   :  { %v1002_v60 = vmul.f32 0.001953125, %v1000_v41  ;;  %v1003_v31 = vmul.f32 %v6604_v53, %v6604_v53  ;;  %v1067_v17 = vsub.f32 %v658_v52, %v6604_v53  ;;  %v11160_v41 = vld [vmem:[#allocation2_spill] sm:$0xff]  ;;  %v11180_v30 = vsub.f32 %v6163_v39, %v6604_v53 }
 0x163   :  { %v11181_v46 = vsub.f32 %v6169_v42, %v6604_v53  ;;  %v11182_v28 = vsub.f32 %v6161_v38, %v6604_v53  ;;  %v11183_v3 = vsub.f32 %v6165_v40, %v6604_v53  ;;  %v6784_v40 = vld [vmem:[%s11001_s3] ss:$0 sm:$0xff] }
 0x164   :  { %v1004_v58 = vsub.f32 %v1002_v60, %v1003_v31  ;;  %v6625_v45 = vmul.f32 %v6609_v13, %v1067_v17  ;;  %v11161_v60 = vld [vmem:[#allocation4_spill] sm:$0xff]  ;;  %v11162_v31 = vld [vmem:[#allocation7_spill] sm:$0xff]  ;;  %v11179_v17 = vld [vmem:[#allocation22_spill] sm:$0xff]  ;;  %v6747_v5 = vmul.f32 %v6609_v13, %v11180_v30  ;;  %v11184_v30 = vsub.f32 %v6187_v55, %v6604_v53  ;;  %11188 = vst [vmem:[#allocation2_spill] sm:$0xff] %v6784_v40 }
 0x165   :  { %v6753_v23 = vmul.f32 %v6609_v13, %v11181_v46  ;;  %v6759_v52 = vmul.f32 %v6609_v13, %v11182_v28  ;;  %v6765_v39 = vmul.f32 %v6609_v13, %v11183_v3  ;;  %v11186_v46 = vsub.f32 %v6199_v2, %v6604_v53 }
 0x166   :  { %v1140_v11 = vadd.f32 1e-05, %v1004_v58  ;;  %v11178_v58 = vld [vmem:[#allocation23_spill] sm:$0xff]  ;;  %v6771_v42 = vmul.f32 %v6609_v13, %v11184_v30  ;;  %v11189_v3 = vsub.f32 %v6179_v48, %v6604_v53  ;;  %v11190_v30 = vsub.f32 %v6194_v61, %v6604_v53 }
 0x167   :  { %v6777_v38 = vmul.f32 %v6609_v13, %v11186_v46  ;;  %v11191_v46 = vsub.f32 %v6215_v15, %v6604_v53  ;;  %v11193_v61 = vsub.f32 %v6208_v9, %v6604_v53  ;;  %v11194_v15 = vsub.f32 %v6222_v21, %v6604_v53 }
 0x168   :  { %5561 = vrsqrt.f32 %v1140_v11  ;;  %v11163_v11 = vld [vmem:[#allocation9_spill] sm:$0xff]  ;;  %11185 = vst [vmem:[#allocation3_spill] sm:$0xff] %v6771_v42  ;;  %v6790_v55 = vmul.f32 %v6609_v13, %v11189_v3  ;;  %v6796_v2 = vmul.f32 %v6609_v13, %v11190_v30  ;;  %v11192_v42 = vsub.f32 %v6227_v26, %v6604_v53 }
 0x169   :  { %11187 = vst [vmem:[#allocation5_spill] sm:$0xff] %v6777_v38  ;;  %v6802_v38 = vmul.f32 %v6609_v13, %v11191_v46  ;;  %v6816_v30 = vmul.f32 %v6609_v13, %v11193_v61  ;;  %v6822_v46 = vmul.f32 %v6609_v13, %v11194_v15  ;;  %v11195_v26 = vsub.f32 %v6243_v43, %v6604_v53 }
 0x16a   :  { %v6808_v48 = vmul.f32 %v6609_v13, %v11192_v42  ;;  %v11197_v61 = vsub.f32 %v6236_v33, %v6604_v53  ;;  %v11198_v15 = vsub.f32 %v6250_v50, %v6604_v53  ;;  %v11201_v33 = vsub.f32 %v6283_v20, %v6604_v53 }
 0x16b   :  { %v6828_v42 = vmul.f32 %v6609_v13, %v11195_v26  ;;  %v11199_v26 = vsub.f32 %v6271_v7, %v6604_v53  ;;  %v11202_v50 = vsub.f32 %v6264_v0, %v6604_v53  ;;  %v11203_v7 = vsub.f32 %v6278_v14, %v6604_v53 }
 0x16c   :  { %v6840_v21 = vmul.f32 %v6609_v13, %v11197_v61  ;;  %v6846_v43 = vmul.f32 %v6609_v13, %v11198_v15  ;;  %v6861_v61 = vmul.f32 %v6609_v13, %v11201_v33  ;;  %v11205_v33 = vsub.f32 %v6311_v54, %v6604_v53 }
 0x16d   :  { %v6867_v15 = vmul.f32 %v6609_v13, %v11202_v50  ;;  %v11206_v50 = vsub.f32 %v6292_v29, %v6604_v53 }
 0x16e   :  { %v6885_v0 = vmul.f32 %v6609_v13, %v11205_v33  ;;  %v11209_v33 = vsub.f32 %v6339_v25, %v6604_v53 }
 0x16f   :  { %v6891_v14 = vmul.f32 %v6609_v13, %v11206_v50  ;;  %v11210_v50 = vsub.f32 %v6320_v1, %v6604_v53 }
 0x170   :  { %v6909_v29 = vmul.f32 %v6609_v13, %v11209_v33  ;;  %v11213_v33 = vsub.f32 %v6367_v4, %v6604_v53 }
 0x172   :  { %v6933_v1 = vmul.f32 %v6609_v13, %v11213_v33  ;;  %v11217_v33 = vsub.f32 %v6395_v51, %v6604_v53 }
 0x175   :  { %v6779_v28 = vpop.eup %5561 }
 0x176   :  { %v1203_v3 = vmul.f32 %v6779_v28, %v6625_v45  ;;  %v11196_v45 = vsub.f32 %v6255_v56, %v6604_v53  ;;  %v6852_v56 = vmul.f32 %v6609_v13, %v11199_v26  ;;  %v6873_v26 = vmul.f32 %v6609_v13, %v11203_v7 }
 0x177   :  { %v11207_v7 = vsub.f32 %v6306_v47, %v6604_v53  ;;  %v6915_v47 = vmul.f32 %v6609_v13, %v11210_v50  ;;  %v11214_v50 = vsub.f32 %v6348_v35, %v6604_v53  ;;  %v6957_v35 = vmul.f32 %v6609_v13, %v11217_v33 }
 0x178   :  { %v6834_v9 = vmul.f32 %v6609_v13, %v11196_v45  ;;  %v6855_v45 = vadd.f32 %v6784_v40, %v1203_v3  ;;  %v11204_v3 = vsub.f32 %v6299_v36, %v6604_v53  ;;  %v11221_v33 = vsub.f32 %v6423_v34, %v6604_v53 }
 0x179   :  { %v6897_v36 = vmul.f32 %v6609_v13, %v11207_v7  ;;  %v11211_v7 = vsub.f32 %v6334_v18, %v6604_v53  ;;  %v6939_v18 = vmul.f32 %v6609_v13, %v11214_v50  ;;  %v11218_v50 = vsub.f32 %v6376_v16, %v6604_v53 }
 0x17a   :  { %11200 = vst [vmem:[#allocation4_spill] sm:$0xff] %v6855_v45  ;;  %v6879_v20 = vmul.f32 %v6609_v13, %v11204_v3  ;;  %v11208_v3 = vsub.f32 %v6327_v10, %v6604_v53  ;;  %v6981_v16 = vmul.f32 %v6609_v13, %v11221_v33  ;;  %v11225_v33 = vsub.f32 %v11159_v44, %v6604_v53 }
 0x17b   :  { %v6921_v10 = vmul.f32 %v6609_v13, %v11211_v7  ;;  %v11215_v7 = vsub.f32 %v6362_v59, %v6604_v53  ;;  %v6963_v59 = vmul.f32 %v6609_v13, %v11218_v50  ;;  %v11222_v50 = vsub.f32 %v6404_v63, %v6604_v53 }
 0x17c   :  { %v6903_v54 = vmul.f32 %v6609_v13, %v11208_v3  ;;  %v11212_v3 = vsub.f32 %v6355_v49, %v6604_v53  ;;  %v7005_v63 = vmul.f32 %v6609_v13, %v11225_v33  ;;  %v11230_v33 = vsub.f32 %v11163_v11, %v6604_v53 }
 0x17d   :  { %v6945_v49 = vmul.f32 %v6609_v13, %v11215_v7  ;;  %v11219_v7 = vsub.f32 %v6390_v37, %v6604_v53  ;;  %v6987_v37 = vmul.f32 %v6609_v13, %v11222_v50  ;;  %v11226_v50 = vsub.f32 %v11160_v41, %v6604_v53 }
 0x17e   :  { %v6927_v25 = vmul.f32 %v6609_v13, %v11212_v3  ;;  %v11216_v3 = vsub.f32 %v6383_v27, %v6604_v53  ;;  %v7029_v41 = vmul.f32 %v6609_v13, %v11230_v33  ;;  %v11241_v33 = vld [vmem:[#allocation13_spill] sm:$0xff] }
 0x17f   :  { %v6969_v27 = vmul.f32 %v6609_v13, %v11219_v7  ;;  %v11223_v7 = vsub.f32 %v6418_v24, %v6604_v53  ;;  %v7011_v24 = vmul.f32 %v6609_v13, %v11226_v50  ;;  %v11232_v50 = vld [vmem:[#allocation6_spill] sm:$0xff] }
 0x180   :  { %v6951_v4 = vmul.f32 %v6609_v13, %v11216_v3  ;;  %v11220_v3 = vsub.f32 %v6411_v12, %v6604_v53  ;;  %11231 = vst [vmem:[#allocation9_spill] sm:$0xff] %v7029_v41  ;;  %v11233_v45 = vsub.f32 %v11232_v50, %v6604_v53  ;;  %v11242_v41 = vsub.f32 %v11241_v33, %v6604_v53 }
 0x181   :  { %v6993_v12 = vmul.f32 %v6609_v13, %v11223_v7  ;;  %v11227_v7 = vsub.f32 %v11161_v60, %v6604_v53 }
 0x182   :  { %v6975_v51 = vmul.f32 %v6609_v13, %v11220_v3  ;;  %v11224_v3 = vsub.f32 %v11158_v8, %v6604_v53  ;;  %v7035_v60 = vmul.f32 %v6609_v13, %v11233_v45  ;;  %v7053_v50 = vmul.f32 %v6609_v13, %v11242_v41  ;;  %v11244_v45 = vld [vmem:[#allocation10_spill] sm:$0xff]  ;;  %v11251_v41 = vld [vmem:[#allocation17_spill] sm:$0xff] }
 0x183   :  { %v7017_v8 = vmul.f32 %v6609_v13, %v11227_v7  ;;  %v11235_v7 = vld [vmem:[#allocation8_spill] sm:$0xff] }
 0x184   :  { %v6999_v34 = vmul.f32 %v6609_v13, %v11224_v3  ;;  %v11228_v3 = vsub.f32 %v11162_v31, %v6604_v53  ;;  %11234 = vst [vmem:[#allocation16_spill] sm:$0xff] %v7035_v60  ;;  %v11236_v40 = vsub.f32 %v11235_v7, %v6604_v53  ;;  %11243 = vst [vmem:[#allocation18_spill] sm:$0xff] %v7053_v50 }
 0x185   :  { %v11245_v60 = vsub.f32 %v11244_v45, %v6604_v53  ;;  %v11252_v50 = vsub.f32 %v11251_v41, %v6604_v53 }
 0x186   :  { %v7023_v44 = vmul.f32 %v6609_v13, %v11228_v3  ;;  %v7041_v31 = vmul.f32 %v6609_v13, %v11236_v40  ;;  %v11238_v3 = vld [vmem:[#allocation11_spill] sm:$0xff]  ;;  %v11247_v40 = vld [vmem:[#allocation12_spill] sm:$0xff] }
 0x187   :  { %v7059_v7 = vmul.f32 %v6609_v13, %v11245_v60  ;;  %v7077_v45 = vmul.f32 %v6609_v13, %v11252_v50  ;;  %v11253_v60 = vld [vmem:[#allocation14_spill] sm:$0xff]  ;;  %v11257_v50 = vsub.f32 %v11175_v6, %v6604_v53 }
 0x188   :  { %11229 = vst [vmem:[#allocation7_spill] sm:$0xff] %v7023_v44  ;;  %11237 = vst [vmem:[#allocation19_spill] sm:$0xff] %v7041_v31  ;;  %v11239_v44 = vsub.f32 %v11238_v3, %v6604_v53  ;;  %v11248_v31 = vsub.f32 %v11247_v40, %v6604_v53 }
 0x189   :  { %11246 = vst [vmem:[#allocation20_spill] sm:$0xff] %v7059_v7  ;;  %v11254_v7 = vsub.f32 %v11253_v60, %v6604_v53  ;;  %v7101_v60 = vmul.f32 %v6609_v13, %v11257_v50  ;;  %v11261_v50 = vsub.f32 %v11179_v17, %v6604_v53  ;;  %v7143_v17 = vmul.f32 %v6779_v28, %v6759_v52 }
 0x18a   :  { %v7047_v11 = vmul.f32 %v6609_v13, %v11239_v44  ;;  %v7065_v3 = vmul.f32 %v6609_v13, %v11248_v31  ;;  %v11249_v44 = vld [vmem:[#allocation15_spill] sm:$0xff]  ;;  %v11255_v31 = vsub.f32 %v11173_v19, %v6604_v53  ;;  %v7163_v52 = vmul.f32 %v6779_v28, %v6796_v2 }
 0x18b   :  { %v7083_v40 = vmul.f32 %v6609_v13, %v11254_v7  ;;  %v11258_v7 = vsub.f32 %v11176_v57, %v6604_v53  ;;  %v7125_v57 = vmul.f32 %v6609_v13, %v11261_v50  ;;  %v7171_v50 = vmul.f32 %v6779_v28, %v6808_v48 }
 0x18c   :  { %11240 = vst [vmem:[#allocation21_spill] sm:$0xff] %v7047_v11  ;;  %v11250_v11 = vsub.f32 %v11249_v44, %v6604_v53  ;;  %v7089_v44 = vmul.f32 %v6609_v13, %v11255_v31  ;;  %v11259_v31 = vsub.f32 %v11177_v22, %v6604_v53  ;;  %v7183_v2 = vmul.f32 %v6779_v28, %v6828_v42 }
 0x18d   :  { %v7107_v19 = vmul.f32 %v6609_v13, %v11258_v7  ;;  %v11262_v7 = vsub.f32 %v6586_v62, %v6604_v53  ;;  %v11263_v62 = vld [vmem:[#allocation3_spill] sm:$0xff]  ;;  %v7191_v48 = vmul.f32 %v6779_v28, %v6840_v21  ;;  %v7203_v42 = vmul.f32 %v6779_v28, %v6861_v61 }
 0x18e   :  { %v7071_v33 = vmul.f32 %v6609_v13, %v11250_v11  ;;  %v11256_v11 = vsub.f32 %v11174_v32, %v6604_v53  ;;  %v7113_v32 = vmul.f32 %v6609_v13, %v11259_v31  ;;  %v7135_v31 = vmul.f32 %v6779_v28, %v6747_v5 }
 0x18f   :  { %v7131_v22 = vmul.f32 %v6609_v13, %v11262_v7  ;;  %v7175_v7 = vmul.f32 %v6779_v28, %v6816_v30  ;;  %v7195_v30 = vmul.f32 %v6779_v28, %v6846_v43  ;;  %v7211_v21 = vmul.f32 %v6779_v28, %v6873_v26 }
 0x190   :  { %v7095_v41 = vmul.f32 %v6609_v13, %v11256_v11  ;;  %v11260_v11 = vsub.f32 %v11178_v58, %v6604_v53  ;;  %v7139_v58 = vmul.f32 %v6779_v28, %v6753_v23  ;;  %v7151_v53 = vmul.f32 %v6779_v28, %v11263_v62 }
 0x191   :  { %v7159_v23 = vmul.f32 %v6779_v28, %v6790_v55  ;;  %v7179_v55 = vmul.f32 %v6779_v28, %v6822_v46  ;;  %v7199_v46 = vmul.f32 %v6779_v28, %v6852_v56  ;;  %v7215_v43 = vmul.f32 %v6779_v28, %v6879_v20 }
 0x192   :  { %v7119_v6 = vmul.f32 %v6609_v13, %v11260_v11  ;;  %v7147_v11 = vmul.f32 %v6779_v28, %v6765_v39  ;;  %v11264_v13 = vld [vmem:[#allocation5_spill] sm:$0xff]  ;;  %v7167_v39 = vmul.f32 %v6779_v28, %v6802_v38  ;;  %v7187_v38 = vmul.f32 %v6779_v28, %v6834_v9 }
 0x193   :  { %v7155_v5 = vmul.f32 %v6779_v28, %v11264_v13  ;;  %v7207_v9 = vmul.f32 %v6779_v28, %v6867_v15  ;;  %v7219_v56 = vmul.f32 %v6779_v28, %v6885_v0  ;;  %v7223_v61 = vmul.f32 %v6779_v28, %v6891_v14 }
 0x194   :  { %v7227_v15 = vmul.f32 %v6779_v28, %v6897_v36  ;;  %v7231_v26 = vmul.f32 %v6779_v28, %v6903_v54  ;;  %v7235_v20 = vmul.f32 %v6779_v28, %v6909_v29  ;;  %v7239_v0 = vmul.f32 %v6779_v28, %v6915_v47 }
 0x195   :  { %11265 = vst [vmem:[#allocation23_spill] sm:$0xff] %v7223_v61  ;;  %v7243_v14 = vmul.f32 %v6779_v28, %v6921_v10  ;;  %v7247_v36 = vmul.f32 %v6779_v28, %v6927_v25  ;;  %v7251_v54 = vmul.f32 %v6779_v28, %v6933_v1  ;;  %v1172_v29 = vmul.f32 %v6779_v28, %v6939_v18 }
 0x196   :  { %11266 = vst [vmem:[#allocation22_spill] sm:$0xff] %v7227_v15  ;;  %11267 = vst [vmem:[#allocation6_spill] sm:$0xff] %v7231_v26  ;;  %v1173_v62 = vmul.f32 %v6779_v28, %v6945_v49  ;;  %v1174_v47 = vmul.f32 %v6779_v28, %v6951_v4  ;;  %v1175_v10 = vmul.f32 %v6779_v28, %v6957_v35  ;;  %v11278_v26 = vld [vmem:[#allocation18_spill] sm:$0xff]  ;;  %v11279_v15 = vld [vmem:[#allocation20_spill] sm:$0xff] }
 0x197   :  { %11268 = vst [vmem:[#allocation8_spill] sm:$0xff] %v7235_v20  ;;  %11269 = vst [vmem:[#allocation11_spill] sm:$0xff] %v7239_v0  ;;  %v1176_v25 = vmul.f32 %v6779_v28, %v6963_v59  ;;  %v1177_v13 = vmul.f32 %v6779_v28, %v6969_v27  ;;  %v1178_v1 = vmul.f32 %v6779_v28, %v6975_v51  ;;  %v11276_v0 = vld [vmem:[#allocation19_spill] sm:$0xff]  ;;  %v11277_v20 = vld [vmem:[#allocation21_spill] sm:$0xff] }
 0x198   :  { %11270 = vst [vmem:[#allocation13_spill] sm:$0xff] %v7243_v14  ;;  %11271 = vst [vmem:[#allocation10_spill] sm:$0xff] %v7247_v36  ;;  %v1179_v18 = vmul.f32 %v6779_v28, %v6981_v16  ;;  %v1180_v49 = vmul.f32 %v6779_v28, %v6987_v37  ;;  %v1181_v4 = vmul.f32 %v6779_v28, %v6993_v12  ;;  %v11274_v36 = vld [vmem:[#allocation9_spill] sm:$0xff]  ;;  %v11275_v14 = vld [vmem:[#allocation16_spill] sm:$0xff] }
 0x199   :  { %11272 = vst [vmem:[#allocation12_spill] sm:$0xff] %v7251_v54  ;;  %v1182_v35 = vmul.f32 %v6779_v28, %v6999_v34  ;;  %v1183_v59 = vmul.f32 %v6779_v28, %v7005_v63  ;;  %v1184_v27 = vmul.f32 %v6779_v28, %v7011_v24  ;;  %v1185_v51 = vmul.f32 %v6779_v28, %v7017_v8  ;;  %v11273_v54 = vld [vmem:[#allocation7_spill] sm:$0xff] }
 0x19a   :  { %v1186_v16 = vmul.f32 %v6779_v28, %v11273_v54  ;;  %v1187_v37 = vmul.f32 %v6779_v28, %v11274_v36  ;;  %v1188_v12 = vmul.f32 %v6779_v28, %v11275_v14  ;;  %v1189_v34 = vmul.f32 %v6779_v28, %v11276_v0 }
 0x19b   :  { %v1190_v63 = vmul.f32 %v6779_v28, %v11277_v20  ;;  %v1191_v24 = vmul.f32 %v6779_v28, %v11278_v26  ;;  %v1192_v8 = vmul.f32 %v6779_v28, %v11279_v15  ;;  %v1193_v54 = vmul.f32 %v6779_v28, %v7065_v3 }
 0x19c   :  { %v1194_v36 = vmul.f32 %v6779_v28, %v7071_v33  ;;  %v1195_v14 = vmul.f32 %v6779_v28, %v7077_v45  ;;  %v1196_v0 = vmul.f32 %v6779_v28, %v7083_v40  ;;  %v1197_v20 = vmul.f32 %v6779_v28, %v7089_v44 }
 0x19d   :  { %v1198_v26 = vmul.f32 %v6779_v28, %v7095_v41  ;;  %v1199_v15 = vmul.f32 %v6779_v28, %v7101_v60  ;;  %v1200_v3 = vmul.f32 %v6779_v28, %v7107_v19  ;;  %v1201_v33 = vmul.f32 %v6779_v28, %v7113_v32  ;;  %v11280_v41 = vld [vmem:[#allocation2_spill] sm:$0xff] }
 0x19e   :  { %v1202_v45 = vmul.f32 %v6779_v28, %v7119_v6  ;;  %v1204_v40 = vmul.f32 %v6779_v28, %v7125_v57  ;;  %v1205_v44 = vmul.f32 %v6779_v28, %v7131_v22  ;;  %v7321_v61 = vadd.f32 %v11280_v41, %v7135_v31 }
 0x19f   :  { %v7325_v60 = vadd.f32 %v11280_v41, %v7139_v58  ;;  %v7329_v19 = vadd.f32 %v11280_v41, %v7143_v17  ;;  %v7333_v32 = vadd.f32 %v11280_v41, %v7147_v11  ;;  %v7337_v6 = vadd.f32 %v11280_v41, %v7151_v53 }
 0x1a0   :  { %v7341_v28 = vadd.f32 %v11280_v41, %v7155_v5  ;;  %v7345_v57 = vadd.f32 %v11280_v41, %v7159_v23  ;;  %v7349_v22 = vadd.f32 %v11280_v41, %v7163_v52  ;;  %v7353_v31 = vadd.f32 %v11280_v41, %v7167_v39 }
 0x1a1   :  { %v7357_v58 = vadd.f32 %v11280_v41, %v7171_v50  ;;  %v7361_v17 = vadd.f32 %v11280_v41, %v7175_v7  ;;  %v7365_v11 = vadd.f32 %v11280_v41, %v7179_v55  ;;  %v7369_v53 = vadd.f32 %v11280_v41, %v7183_v2 }
 0x1a2   :  { %v7373_v5 = vadd.f32 %v11280_v41, %v7187_v38  ;;  %v7377_v23 = vadd.f32 %v11280_v41, %v7191_v48  ;;  %v7381_v52 = vadd.f32 %v11280_v41, %v7195_v30  ;;  %v7385_v39 = vadd.f32 %v11280_v41, %v7199_v46  ;;  %v11284_v48 = vld [vmem:[#allocation23_spill] sm:$0xff]  ;;  %v11286_v46 = vld [vmem:[#allocation22_spill] sm:$0xff] }
 0x1a3   :  { %v7389_v50 = vadd.f32 %v11280_v41, %v7203_v42  ;;  %v7393_v7 = vadd.f32 %v11280_v41, %v7207_v9  ;;  %v7397_v55 = vadd.f32 %v11280_v41, %v7211_v21  ;;  %v7401_v2 = vadd.f32 %v11280_v41, %v7215_v43  ;;  %v11287_v9 = vld [vmem:[#allocation6_spill] sm:$0xff] }
 0x1a4   :  { %v7405_v38 = vadd.f32 %v11280_v41, %v7219_v56  ;;  %v7409_v30 = vadd.f32 %v11280_v41, %v11284_v48  ;;  %v7413_v42 = vadd.f32 %v11280_v41, %v11286_v46  ;;  %v7417_v21 = vadd.f32 %v11280_v41, %v11287_v9 }
 0x1a5   :  { %11281 = vst [vmem:[#allocation15_spill] sm:$0xff] %v7397_v55  ;;  %11282 = vst [vmem:[#allocation17_spill] sm:$0xff] %v7401_v2  ;;  %v11288_v55 = vld [vmem:[#allocation8_spill] sm:$0xff]  ;;  %v11290_v2 = vld [vmem:[#allocation11_spill] sm:$0xff]  ;;  %v7435_v46 = vadd.f32 %v11280_v41, %v1173_v62  ;;  %v7438_v9 = vadd.f32 %v11280_v41, %v1174_v47  ;;  %v7456_v62 = vadd.f32 %v11280_v41, %v1180_v49  ;;  %vm1279_vm4 = vcmp.gt.f32.partialorder %v7329_v19, 0.0 }
 0x1a6   :  { %11283 = vst [vmem:[#allocation14_spill] sm:$0xff] %v7405_v38  ;;  %11285 = vst [vmem:[#allocation3_spill] sm:$0xff] %v7409_v30  ;;  %v7421_v43 = vadd.f32 %v11280_v41, %v11288_v55  ;;  %v7425_v56 = vadd.f32 %v11280_v41, %v11290_v2  ;;  %v11291_v38 = vld [vmem:[#allocation13_spill] sm:$0xff]  ;;  %v7432_v30 = vadd.f32 %v11280_v41, %v1172_v29  ;;  %vm1280_vm5 = vcmp.gt.f32.partialorder %v7333_v32, 0.0 }
 0x1a7   :  { %v7429_v48 = vadd.f32 %v11280_v41, %v11291_v38  ;;  %v7441_v55 = vadd.f32 %v11280_v41, %v1175_v10  ;;  %v7447_v2 = vadd.f32 %v11280_v41, %v1177_v13  ;;  %v7450_v38 = vadd.f32 %v11280_v41, %v1178_v1 }
 0x1a8   :  { %11289 = vst [vmem:[#allocation5_spill] sm:$0xff] %v7421_v43  ;;  %v7444_v43 = vadd.f32 %v11280_v41, %v1176_v25  ;;  %v7453_v29 = vadd.f32 %v11280_v41, %v1179_v18  ;;  %v7459_v47 = vadd.f32 %v11280_v41, %v1181_v4  ;;  %v7462_v10 = vadd.f32 %v11280_v41, %v1182_v35 }
 0x1a9   :  { %v7465_v25 = vadd.f32 %v11280_v41, %v1183_v59  ;;  %v7468_v13 = vadd.f32 %v11280_v41, %v1184_v27  ;;  %v7471_v1 = vadd.f32 %v11280_v41, %v1185_v51  ;;  %v7474_v18 = vadd.f32 %v11280_v41, %v1186_v16 }
 0x1aa   :  { %v7477_v49 = vadd.f32 %v11280_v41, %v1187_v37  ;;  %v7480_v4 = vadd.f32 %v11280_v41, %v1188_v12  ;;  %v7483_v35 = vadd.f32 %v11280_v41, %v1189_v34  ;;  %v7486_v59 = vadd.f32 %v11280_v41, %v1190_v63 }
 0x1ab   :  { %v7489_v27 = vadd.f32 %v11280_v41, %v1191_v24  ;;  %v7492_v51 = vadd.f32 %v11280_v41, %v1192_v8  ;;  %v7495_v16 = vadd.f32 %v11280_v41, %v1193_v54  ;;  %v7498_v37 = vadd.f32 %v11280_v41, %v1194_v36 }
 0x1ac   :  { %v7501_v12 = vadd.f32 %v11280_v41, %v1195_v14  ;;  %v7504_v34 = vadd.f32 %v11280_v41, %v1196_v0  ;;  %v7507_v63 = vadd.f32 %v11280_v41, %v1197_v20  ;;  %v7510_v24 = vadd.f32 %v11280_v41, %v1198_v26 }
 0x1ad   :  { %v7513_v8 = vadd.f32 %v11280_v41, %v1199_v15  ;;  %v7516_v54 = vadd.f32 %v11280_v41, %v1200_v3  ;;  %v7519_v36 = vadd.f32 %v11280_v41, %v1201_v33  ;;  %v7522_v14 = vadd.f32 %v11280_v41, %v1202_v45  ;;  %v11301_v45 = vld [vmem:[#allocation10_spill] sm:$0xff] }
 0x1ae   :  { %11292 = vst [vmem:[#allocation7_spill] sm:$0xff] %v7504_v34  ;;  %11293 = vst [vmem:[#allocation9_spill] sm:$0xff] %v7507_v63  ;;  %v7525_v0 = vadd.f32 %v11280_v41, %v1204_v40  ;;  %v7528_v20 = vadd.f32 %v11280_v41, %v1205_v44  ;;  %v1343_v26 = vmul.f32 0.1, %v7329_v19  ;;  %v1344_v15 = vmul.f32 0.1, %v7333_v32 }
 0x1af   :  { %11294 = vst [vmem:[#allocation16_spill] sm:$0xff] %v7510_v24  ;;  %11295 = vst [vmem:[#allocation19_spill] sm:$0xff] %v7513_v8  ;;  %vm1277_vm6 = vcmp.gt.f32.partialorder %v7321_v61, 0.0  ;;  %vm1278_vm7 = vcmp.gt.f32.partialorder %v7325_v60, 0.0  ;;  %v1341_v3 = vmul.f32 0.1, %v7321_v61  ;;  %v1241_v40 = vadd.f32 %v11280_v41, %v11301_v45 }
 0x1b0   :  { %11296 = vst [vmem:[#allocation21_spill] sm:$0xff] %v7516_v54  ;;  %11297 = vst [vmem:[#allocation18_spill] sm:$0xff] %v7519_v36  ;;  %v1342_v33 = vmul.f32 0.1, %v7325_v60  ;;  %v1407_v44 = vsel %vm1279_vm4, %v7329_v19, %v1343_v26  ;;  %vm1307_vm8 = vcmp.gt.f32.partialorder %v7432_v30, 0.0  ;;  %vm1308_vm11 = vcmp.gt.f32.partialorder %v7435_v46, 0.0 }
 0x1b1   :  { %11298 = vst [vmem:[#allocation20_spill] sm:$0xff] %v7522_v14  ;;  %11299 = vst [vmem:[#allocation2_spill] sm:$0xff] %v7525_v0  ;;  %v11302_v0 = vld [vmem:[#allocation12_spill] sm:$0xff]  ;;  %v1405_v54 = vsel %vm1277_vm6, %v7321_v61, %v1341_v3  ;;  %vm1305_vm9 = vcmp.gt.f32.partialorder %v1241_v40, 0.0  ;;  %v1369_v63 = vmul.f32 0.1, %v1241_v40 }
 0x1b2   :  { %11300 = vst [vmem:[#allocation23_spill] sm:$0xff] %v7528_v20  ;;  %v1408_v20 = vsel %vm1280_vm5, %v7333_v32, %v1344_v15  ;;  %v1242_v14 = vadd.f32 %v11280_v41, %v11302_v0  ;;  %v1406_v8 = vsel %vm1278_vm7, %v7325_v60, %v1342_v33  ;;  %v1371_v19 = vmul.f32 0.1, %v7432_v30 }
 0x1b3   :  { %v1470_v36 = vpack.c.bf16 %v1408_v20, %v1407_v44  ;;  %v1469_v24 = vpack.c.bf16 %v1406_v8, %v1405_v54  ;;  %v1372_v32 = vmul.f32 0.1, %v7435_v46  ;;  %vm1281_vm12 = vcmp.gt.f32.partialorder %v7337_v6, 0.0 }
 0x1b4   :  { %vm1306_vm10 = vcmp.gt.f32.partialorder %v1242_v14, 0.0  ;;  %v1370_v34 = vmul.f32 0.1, %v1242_v14  ;;  %v1433_v41 = vsel %vm1305_vm9, %v1241_v40, %v1369_v63  ;;  %vm1282_vm13 = vcmp.gt.f32.partialorder %v7341_v28, 0.0 }
 0x1b5   :  { %5390 = vmatprep.mubr.msk.bf16.mxu0 %vm670_vm3, %v1469_v24  ;;  %v1345_v61 = vmul.f32 0.1, %v7337_v6  ;;  %v1435_v8 = vsel %vm1307_vm8, %v7432_v30, %v1371_v19  ;;  %v1436_v54 = vsel %vm1308_vm11, %v7435_v46, %v1372_v32  ;;  %v1346_v20 = vmul.f32 0.1, %v7341_v28 }
 0x1b6   :  { %v1434_v0 = vsel %vm1306_vm10, %v1242_v14, %v1370_v34  ;;  %5391 = vmatmul.mubr.msk.bf16.vlgmr.msra.gmra.mxu0 %vm670_vm3, %v1470_v36  ;;  %v1484_v26 = vpack.c.bf16 %v1436_v54, %v1435_v8  ;;  %vm1309_vm14 = vcmp.gt.f32.partialorder %v7438_v9, 0.0  ;;  %vm1310_vm15 = vcmp.gt.f32.partialorder %v7441_v55, 0.0 }
 0x1b7   :  { %v1483_v60 = vpack.c.bf16 %v1434_v0, %v1433_v41  ;;  %v1409_v24 = vsel %vm1281_vm12, %v7337_v6, %v1345_v61  ;;  %v1410_v34 = vsel %vm1282_vm13, %v7341_v28, %v1346_v20  ;;  %v1373_v63 = vmul.f32 0.1, %v7438_v9 }
 0x1b8   :  { %v1374_v36 = vmul.f32 0.1, %v7441_v55  ;;  %vm1283_vm0 = vcmp.gt.f32.partialorder %v7345_v57, 0.0  ;;  %v1471_v30 = vpack.c.bf16 %v1410_v34, %v1409_v24  ;;  %vm1284_vm1 = vcmp.gt.f32.partialorder %v7349_v22, 0.0 }
 0x1b9   :  { %5418 = vmatprep.mubr.msk.bf16.mxu1 %vm670_vm3, %v1483_v60  ;;  %v1347_v6 = vmul.f32 0.1, %v7345_v57  ;;  %v1348_v46 = vmul.f32 0.1, %v7349_v22  ;;  %v1437_v14 = vsel %vm1309_vm14, %v7438_v9, %v1373_v63  ;;  %vm1311_vm2 = vcmp.gt.f32.partialorder %v7444_v43, 0.0 }
 0x1ba   :  { %5419 = vmatmul.mubr.msk.bf16.vlgmr.msra.gmra.mxu1 %vm670_vm3, %v1484_v26  ;;  %v1438_v15 = vsel %vm1310_vm15, %v7441_v55, %v1374_v36  ;;  %vm1312_vm4 = vcmp.gt.f32.partialorder %v7447_v2, 0.0  ;;  %5394 = vmatprep.mubr.msk.bf16.mxu0 %vm670_vm3, %v1471_v30  ;;  %v1375_v45 = vmul.f32 0.1, %v7444_v43  ;;  %v1376_v44 = vmul.f32 0.1, %v7447_v2 }
 0x1bb   :  { %v1485_v28 = vpack.c.bf16 %v1438_v15, %v1437_v14  ;;  %v1411_v3 = vsel %vm1283_vm0, %v7345_v57, %v1347_v6  ;;  %v1412_v33 = vsel %vm1284_vm1, %v7349_v22, %v1348_v46  ;;  %vm1285_vm5 = vcmp.gt.f32.partialorder %v7353_v31, 0.0 }
 0x1bc   :  { %v1472_v40 = vpack.c.bf16 %v1412_v33, %v1411_v3  ;;  %vm1286_vm6 = vcmp.gt.f32.partialorder %v7357_v58, 0.0  ;;  %v1439_v9 = vsel %vm1311_vm2, %v7444_v43, %v1375_v45  ;;  %v1349_v55 = vmul.f32 0.1, %v7353_v31 }
 0x1bd   :  { %5422 = vmatprep.mubr.msk.bf16.mxu1 %vm670_vm3, %v1485_v28  ;;  %v1350_v19 = vmul.f32 0.1, %v7357_v58  ;;  %vm1313_vm7 = vcmp.gt.f32.partialorder %v7450_v38, 0.0  ;;  %v1440_v57 = vsel %vm1312_vm4, %v7447_v2, %v1376_v44  ;;  %vm1314_vm8 = vcmp.gt.f32.partialorder %v7453_v29, 0.0 }
 0x1be   :  { %5395 = vmatmul.mubr.msk.bf16.gmra.mxu0 %vm670_vm3, %v1472_v40  ;;  %v1377_v22 = vmul.f32 0.1, %v7450_v38  ;;  %v1378_v32 = vmul.f32 0.1, %v7453_v29  ;;  %v1486_v41 = vpack.c.bf16 %v1440_v57, %v1439_v9  ;;  %v1413_v43 = vsel %vm1285_vm5, %v7353_v31, %v1349_v55 }
 0x1bf   :  { %v1414_v0 = vsel %vm1286_vm6, %v7357_v58, %v1350_v19  ;;  %vm1287_vm9 = vcmp.gt.f32.partialorder %v7361_v17, 0.0  ;;  %vm1288_vm10 = vcmp.gt.f32.partialorder %v7365_v11, 0.0  ;;  %v1351_v54 = vmul.f32 0.1, %v7361_v17 }
 0x1c0   :  { %v1473_v61 = vpack.c.bf16 %v1414_v0, %v1413_v43  ;;  %v1441_v60 = vsel %vm1313_vm7, %v7450_v38, %v1377_v22  ;;  %v1442_v8 = vsel %vm1314_vm8, %v7453_v29, %v1378_v32  ;;  %v1352_v20 = vmul.f32 0.1, %v7365_v11  ;;  %v11303_v32 = vld [vmem:[#allocation15_spill] sm:$0xff] }
 0x1c1   :  { %v1487_v2 = vpack.c.bf16 %v1442_v8, %v1441_v60  ;;  %vm1315_vm11 = vcmp.gt.f32.partialorder %v7456_v62, 0.0  ;;  %vm1316_vm12 = vcmp.gt.f32.partialorder %v7459_v47, 0.0  ;;  %v1379_v31 = vmul.f32 0.1, %v7456_v62  ;;  %v11305_v60 = vld [vmem:[#allocation14_spill] sm:$0xff] }
 0x1c2   :  { %5423 = vmatmul.mubr.msk.bf16.gmra.mxu1 %vm670_vm3, %v1486_v41  ;;  %5398 = vmatprep.mubr.msk.bf16.mxu0 %vm670_vm3, %v1473_v61  ;;  %v1380_v58 = vmul.f32 0.1, %v7459_v47  ;;  %vm1289_vm13 = vcmp.gt.f32.partialorder %v7369_v53, 0.0  ;;  %v1415_v38 = vsel %vm1287_vm9, %v7361_v17, %v1351_v54  ;;  %v1416_v29 = vsel %vm1288_vm10, %v7365_v11, %v1352_v20 }
 0x1c3   :  { %5426 = vmatprep.mubr.msk.bf16.mxu1 %vm670_vm3, %v1487_v2  ;;  %vm1290_vm14 = vcmp.gt.f32.partialorder %v7373_v5, 0.0  ;;  %v1353_v26 = vmul.f32 0.1, %v7369_v53  ;;  %v1474_v24 = vpack.c.bf16 %v1416_v29, %v1415_v38  ;;  %v1443_v34 = vsel %vm1315_vm11, %v7456_v62, %v1379_v31 }
 0x1c4   :  { %v1444_v63 = vsel %vm1316_vm12, %v7459_v47, %v1380_v58  ;;  %v1354_v36 = vmul.f32 0.1, %v7373_v5  ;;  %vm1317_vm15 = vcmp.gt.f32.partialorder %v7462_v10, 0.0  ;;  %vm1318_vm0 = vcmp.gt.f32.partialorder %v7465_v25, 0.0 }
 0x1c5   :  { %v1488_v30 = vpack.c.bf16 %v1444_v63, %v1443_v34  ;;  %v1417_v6 = vsel %vm1289_vm13, %v7369_v53, %v1353_v26  ;;  %v1381_v11 = vmul.f32 0.1, %v7462_v10  ;;  %v1382_v46 = vmul.f32 0.1, %v7465_v25 }
 0x1c6   :  { %5399 = vmatmul.mubr.msk.bf16.gmra.mxu0 %vm670_vm3, %v1474_v24  ;;  %v1418_v17 = vsel %vm1290_vm14, %v7373_v5, %v1354_v36  ;;  %vm1291_vm1 = vcmp.gt.f32.partialorder %v7377_v23, 0.0  ;;  %vm1292_vm2 = vcmp.gt.f32.partialorder %v7381_v52, 0.0  ;;  %v1355_v47 = vmul.f32 0.1, %v7377_v23  ;;  %v11306_v24 = vld [vmem:[#allocation3_spill] sm:$0xff] }
 0x1c7   :  { %v1475_v62 = vpack.c.bf16 %v1418_v17, %v1417_v6  ;;  %v1356_v53 = vmul.f32 0.1, %v7381_v52  ;;  %v1445_v14 = vsel %vm1317_vm15, %v7462_v10, %v1381_v11  ;;  %v1446_v15 = vsel %vm1318_vm0, %v7465_v25, %v1382_v46 }
 0x1c8   :  { %vm1319_vm4 = vcmp.gt.f32.partialorder %v7468_v13, 0.0  ;;  %vm1320_vm5 = vcmp.gt.f32.partialorder %v7471_v1, 0.0  ;;  %v1489_v5 = vpack.c.bf16 %v1446_v15, %v1445_v14  ;;  %v1419_v28 = vsel %vm1291_vm1, %v7377_v23, %v1355_v47 }
 0x1c9   :  { %5402 = vmatprep.mubr.msk.bf16.mxu0 %vm670_vm3, %v1475_v62  ;;  %v1420_v3 = vsel %vm1292_vm2, %v7381_v52, %v1356_v53  ;;  %v1383_v33 = vmul.f32 0.1, %v7468_v13  ;;  %v1384_v10 = vmul.f32 0.1, %v7471_v1  ;;  %vm1293_vm6 = vcmp.gt.f32.partialorder %v7385_v39, 0.0 }
 0x1ca   :  { %5427 = vmatmul.mubr.msk.bf16.gmra.mxu1 %vm670_vm3, %v1488_v30  ;;  %v1476_v45 = vpack.c.bf16 %v1420_v3, %v1419_v28  ;;  %vm1294_vm7 = vcmp.gt.f32.partialorder %v7389_v50, 0.0  ;;  %v1357_v40 = vmul.f32 0.1, %v7385_v39  ;;  %v1358_v44 = vmul.f32 0.1, %v7389_v50 }
 0x1cb   :  { %5430 = vmatprep.mubr.msk.bf16.mxu1 %vm670_vm3, %v1489_v5  ;;  %v1447_v25 = vsel %vm1319_vm4, %v7468_v13, %v1383_v33  ;;  %vm1321_vm8 = vcmp.gt.f32.partialorder %v7474_v18, 0.0  ;;  %v1448_v23 = vsel %vm1320_vm5, %v7471_v1, %v1384_v10  ;;  %vm1322_vm9 = vcmp.gt.f32.partialorder %v7477_v49, 0.0 }
 0x1cc   :  { %v1385_v52 = vmul.f32 0.1, %v7474_v18  ;;  %v1386_v9 = vmul.f32 0.1, %v7477_v49  ;;  %v1490_v55 = vpack.c.bf16 %v1448_v23, %v1447_v25  ;;  %v1421_v19 = vsel %vm1293_vm6, %v7385_v39, %v1357_v40  ;;  %v11308_v40 = vld [vmem:[#allocation7_spill] sm:$0xff] }
 0x1cd   :  { %v1422_v13 = vsel %vm1294_vm7, %v7389_v50, %v1358_v44  ;;  %vm1295_vm10 = vcmp.gt.f32.partialorder %v7393_v7, 0.0  ;;  %vm1296_vm11 = vcmp.gt.f32.partialorder %v11303_v32, 0.0  ;;  %v1359_v43 = vmul.f32 0.1, %v7393_v7 }
 0x1ce   :  { %5403 = vmatmul.mubr.msk.bf16.gmra.mxu0 %vm670_vm3, %v1476_v45  ;;  %v1477_v57 = vpack.c.bf16 %v1422_v13, %v1421_v19  ;;  %v1449_v22 = vsel %vm1321_vm8, %v7474_v18, %v1385_v52  ;;  %v1450_v1 = vsel %vm1322_vm9, %v7477_v49, %v1386_v9  ;;  %v1360_v0 = vmul.f32 0.1, %v11303_v32  ;;  %v11304_v18 = vld [vmem:[#allocation17_spill] sm:$0xff]  ;;  %v11311_v9 = vld [vmem:[#allocation19_spill] sm:$0xff] }
 0x1cf   :  { %v1491_v41 = vpack.c.bf16 %v1450_v1, %v1449_v22  ;;  %vm1323_vm12 = vcmp.gt.f32.partialorder %v7480_v4, 0.0  ;;  %vm1324_vm13 = vcmp.gt.f32.partialorder %v7483_v35, 0.0  ;;  %v1387_v39 = vmul.f32 0.1, %v7480_v4 }
 0x1d0   :  { %5406 = vmatprep.mubr.msk.bf16.mxu0 %vm670_vm3, %v1477_v57  ;;  %v1388_v50 = vmul.f32 0.1, %v7483_v35  ;;  %vm1297_vm14 = vcmp.gt.f32.partialorder %v11304_v18, 0.0  ;;  %v1423_v49 = vsel %vm1295_vm10, %v7393_v7, %v1359_v43  ;;  %v1424_v61 = vsel %vm1296_vm11, %v11303_v32, %v1360_v0 }
 0x1d1   :  { %vm1298_vm15 = vcmp.gt.f32.partialorder %v11305_v60, 0.0  ;;  %v1361_v8 = vmul.f32 0.1, %v11304_v18  ;;  %v1478_v2 = vpack.c.bf16 %v1424_v61, %v1423_v49  ;;  %v1451_v54 = vsel %vm1323_vm12, %v7480_v4, %v1387_v39  ;;  %v11314_v39 = vld [vmem:[#allocation20_spill] sm:$0xff] }
 0x1d2   :  { %5431 = vmatmul.mubr.msk.bf16.gmra.mxu1 %vm670_vm3, %v1490_v55  ;;  %v1452_v20 = vsel %vm1324_vm13, %v7483_v35, %v1388_v50  ;;  %v1362_v31 = vmul.f32 0.1, %v11305_v60  ;;  %vm1325_vm0 = vcmp.gt.f32.partialorder %v7486_v59, 0.0  ;;  %vm1326_vm1 = vcmp.gt.f32.partialorder %v7489_v27, 0.0 }
 0x1d3   :  { %5434 = vmatprep.mubr.msk.bf16.mxu1 %vm670_vm3, %v1491_v41  ;;  %v1492_v58 = vpack.c.bf16 %v1452_v20, %v1451_v54  ;;  %v1425_v38 = vsel %vm1297_vm14, %v11304_v18, %v1361_v8  ;;  %v1389_v29 = vmul.f32 0.1, %v7486_v59  ;;  %v1390_v26 = vmul.f32 0.1, %v7489_v27  ;;  %v11312_v41 = vld [vmem:[#allocation21_spill] sm:$0xff]  ;;  %v11315_v18 = vld [vmem:[#allocation4_spill] sm:$0xff] }
 0x1d4   :  { %v1426_v7 = vsel %vm1298_vm15, %v11305_v60, %v1362_v31  ;;  %vm1299_vm2 = vcmp.gt.f32.partialorder %v11306_v24, 0.0  ;;  %vm1300_vm4 = vcmp.gt.f32.partialorder %v7413_v42, 0.0  ;;  %v1363_v35 = vmul.f32 0.1, %v11306_v24  ;;  %v11317_v54 = vld [vmem:[#allocation23_spill] sm:$0xff] }
 0x1d5   :  { %v1479_v4 = vpack.c.bf16 %v1426_v7, %v1425_v38  ;;  %v1364_v34 = vmul.f32 0.1, %v7413_v42  ;;  %v1453_v63 = vsel %vm1325_vm0, %v7486_v59, %v1389_v29  ;;  %v1454_v36 = vsel %vm1326_vm1, %v7489_v27, %v1390_v26  ;;  %v11307_v59 = vld [vmem:[#allocation5_spill] sm:$0xff] }
 0x1d6   :  { %5407 = vmatmul.mubr.msk.bf16.gmra.mxu0 %vm670_vm3, %v1478_v2  ;;  %vm1327_vm5 = vcmp.gt.f32.partialorder %v7492_v51, 0.0  ;;  %vm1328_vm6 = vcmp.gt.f32.partialorder %v7495_v16, 0.0  ;;  %v1493_v30 = vpack.c.bf16 %v1454_v36, %v1453_v63  ;;  %v1427_v6 = vsel %vm1299_vm2, %v11306_v24, %v1363_v35  ;;  %v11316_v2 = vld [vmem:[#allocation2_spill] sm:$0xff] }
 0x1d7   :  { %5410 = vmatprep.mubr.msk.bf16.mxu0 %vm670_vm3, %v1479_v4  ;;  %v1428_v17 = vsel %vm1300_vm4, %v7413_v42, %v1364_v34  ;;  %v1391_v11 = vmul.f32 0.1, %v7492_v51  ;;  %v1392_v62 = vmul.f32 0.1, %v7495_v16  ;;  %vm1301_vm7 = vcmp.gt.f32.partialorder %v7417_v21, 0.0 }
 0x1d8   :  { %v1480_v46 = vpack.c.bf16 %v1428_v17, %v1427_v6  ;;  %vm1302_vm8 = vcmp.gt.f32.partialorder %v11307_v59, 0.0  ;;  %v1365_v47 = vmul.f32 0.1, %v7417_v21  ;;  %v1366_v53 = vmul.f32 0.1, %v11307_v59 }
 0x1d9   :  { %v1455_v27 = vsel %vm1327_vm5, %v7492_v51, %v1391_v11  ;;  %vm1329_vm9 = vcmp.gt.f32.partialorder %v7498_v37, 0.0  ;;  %v1456_v42 = vsel %vm1328_vm6, %v7495_v16, %v1392_v62  ;;  %vm1330_vm10 = vcmp.gt.f32.partialorder %v7501_v12, 0.0 }
 0x1da   :  { %5435 = vmatmul.mubr.msk.bf16.gmra.mxu1 %vm670_vm3, %v1492_v58  ;;  %v1393_v14 = vmul.f32 0.1, %v7498_v37  ;;  %v1394_v15 = vmul.f32 0.1, %v7501_v12  ;;  %v1494_v5 = vpack.c.bf16 %v1456_v42, %v1455_v27  ;;  %v1429_v51 = vsel %vm1301_vm7, %v7417_v21, %v1365_v47  ;;  %v11309_v21 = vld [vmem:[#allocation9_spill] sm:$0xff] }
 0x1db   :  { %5438 = vmatprep.mubr.msk.bf16.mxu1 %vm670_vm3, %v1493_v30  ;;  %v1430_v28 = vsel %vm1302_vm8, %v11307_v59, %v1366_v53  ;;  %vm1303_vm11 = vcmp.gt.f32.partialorder %v7425_v56, 0.0  ;;  %vm1304_vm12 = vcmp.gt.f32.partialorder %v7429_v48, 0.0  ;;  %v1367_v10 = vmul.f32 0.1, %v7425_v56 }
 0x1dc   :  { %v1481_v3 = vpack.c.bf16 %v1430_v28, %v1429_v51  ;;  %v1457_v33 = vsel %vm1329_vm9, %v7498_v37, %v1393_v14  ;;  %v1458_v45 = vsel %vm1330_vm10, %v7501_v12, %v1394_v15  ;;  %v1368_v25 = vmul.f32 0.1, %v7429_v48  ;;  %v11310_v37 = vld [vmem:[#allocation16_spill] sm:$0xff] }
 0x1dd   :  { %v1495_v16 = vpack.c.bf16 %v1458_v45, %v1457_v33  ;;  %vm1331_vm13 = vcmp.gt.f32.partialorder %v11308_v40, 0.0  ;;  %vm1332_vm14 = vcmp.gt.f32.partialorder %v11309_v21, 0.0  ;;  %v1395_v44 = vmul.f32 0.1, %v11308_v40 }
 0x1de   :  { %5411 = vmatmul.mubr.msk.bf16.gmra.mxu0 %vm670_vm3, %v1480_v46  ;;  %v1396_v23 = vmul.f32 0.1, %v11309_v21  ;;  %vm1333_vm15 = vcmp.gt.f32.partialorder %v11310_v37, 0.0  ;;  %v1431_v12 = vsel %vm1303_vm11, %v7425_v56, %v1367_v10  ;;  %v1432_v52 = vsel %vm1304_vm12, %v7429_v48, %v1368_v25  ;;  %v11313_v56 = vld [vmem:[#allocation18_spill] sm:$0xff] }
 0x1df   :  { %5414 = vmatprep.mubr.msk.bf16.mxu0 %vm670_vm3, %v1481_v3  ;;  %vm1334_vm0 = vcmp.gt.f32.partialorder %v11311_v9, 0.0  ;;  %v1397_v55 = vmul.f32 0.1, %v11310_v37  ;;  %v1482_v19 = vpack.c.bf16 %v1432_v52, %v1431_v12  ;;  %v1459_v13 = vsel %vm1331_vm13, %v11308_v40, %v1395_v44 }
 0x1e0   :  { %v1460_v57 = vsel %vm1332_vm14, %v11309_v21, %v1396_v23  ;;  %v1398_v22 = vmul.f32 0.1, %v11311_v9  ;;  %vm1335_vm1 = vcmp.gt.f32.partialorder %v11312_v41, 0.0  ;;  %vm1336_vm2 = vcmp.gt.f32.partialorder %v11313_v56, 0.0 }
 0x1e1   :  { %v1496_v1 = vpack.c.bf16 %v1460_v57, %v1459_v13  ;;  %v1461_v32 = vsel %vm1333_vm15, %v11310_v37, %v1397_v55  ;;  %v1399_v43 = vmul.f32 0.1, %v11312_v41  ;;  %v1400_v0 = vmul.f32 0.1, %v11313_v56 }
 0x1e2   :  { %5439 = vmatmul.mubr.msk.bf16.gmra.mxu1 %vm670_vm3, %v1494_v5  ;;  %v1462_v48 = vsel %vm1334_vm0, %v11311_v9, %v1398_v22  ;;  %vm1337_vm4 = vcmp.gt.f32.partialorder %v11314_v39, 0.0  ;;  %vm1338_vm5 = vcmp.gt.f32.partialorder %v11315_v18, 0.0  ;;  %v1401_v49 = vmul.f32 0.1, %v11314_v39 }
 0x1e3   :  { %5442 = vmatprep.mubr.msk.bf16.mxu1 %vm670_vm3, %v1495_v16  ;;  %v1497_v50 = vpack.c.bf16 %v1462_v48, %v1461_v32  ;;  %v1402_v61 = vmul.f32 0.1, %v11315_v18  ;;  %v1463_v60 = vsel %vm1335_vm1, %v11312_v41, %v1399_v43  ;;  %v1464_v8 = vsel %vm1336_vm2, %v11313_v56, %v1400_v0 }
 0x1e4   :  { %vm1339_vm6 = vcmp.gt.f32.partialorder %v11316_v2, 0.0  ;;  %vm1340_vm7 = vcmp.gt.f32.partialorder %v11317_v54, 0.0  ;;  %v1498_v20 = vpack.c.bf16 %v1464_v8, %v1463_v60  ;;  %v1465_v31 = vsel %vm1337_vm4, %v11314_v39, %v1401_v49 }
 0x1e5   :  { %v1466_v58 = vsel %vm1338_vm5, %v11315_v18, %v1402_v61  ;;  %v1403_v38 = vmul.f32 0.1, %v11316_v2  ;;  %v1404_v29 = vmul.f32 0.1, %v11317_v54  ;;  %vm1891_vm8 = vcmask 130048  }
 0x1e6   :  { %5415 = vmatmul.mubr.msk.bf16.gmra.mxu0 %vm670_vm3, %v1482_v19  ;;  %v1499_v7 = vpack.c.bf16 %v1466_v58, %v1465_v31 }
 0x1e7   :  { %v1467_v26 = vsel %vm1339_vm6, %v11316_v2, %v1403_v38  ;;  %v1468_v24 = vsel %vm1340_vm7, %v11317_v54, %v1404_v29 }
 0x1e8   :  { %v1500_v4 = vpack.c.bf16 %v1468_v24, %v1467_v26 }
 0x1ea   :  { %5443 = vmatmul.mubr.msk.bf16.gmra.mxu1 %vm670_vm3, %v1496_v1 }
 0x1eb   :  { %5446 = vmatprep.mubr.msk.bf16.mxu1 %vm670_vm3, %v1497_v50 }
 0x1f2   :  { %5447 = vmatmul.mubr.msk.bf16.gmra.mxu1 %vm670_vm3, %v1498_v20 }
 0x1f3   :  { %5450 = vmatprep.mubr.msk.bf16.mxu1 %vm670_vm3, %v1499_v7 }
 0x1fa   :  { %5451 = vmatmul.mubr.msk.bf16.gmra.mxu1 %vm670_vm3, %v1500_v4 }
 0x276   :  { %v7764_v35 = vpop.f32.mrf.mxu0 }
 0x277   :  { %v2027_v11 = vmul.f32 %v7764_v35, %v7764_v35  ;;  %v1895_v42 = vsel %vm1891_vm8, %v7764_v35, 0.0 }
 0x278   :  { %v7766_v34 = vpop.f32.mrf.mxu0 }
 0x279   :  { %v2025_v30 = vmul.f32 %v7766_v34, %v7766_v34  ;;  %v1892_v46 = vsel %vm1891_vm8, %v7766_v34, 0.0  ;;  %v2092_v45 = vsel %vm1891_vm8, %v2027_v11, 0.0 }
 0x27a   :  { %v7768_v63 = vpop.f32.mrf.mxu1  ;;  %v7770_v36 = vpop.f32.mrf.mxu0 }
 0x27b   :  { %11318 = vst [vmem:[#allocation22_spill] sm:$0xff] %v7768_v63  ;;  %v2089_v14 = vsel %vm1891_vm8, %v2025_v30, 0.0  ;;  %v2028_v15 = vmul.f32 %v7770_v36, %v7770_v36  ;;  %v1897_v16 = vsel %vm1891_vm8, %v7770_v36, 0.0 }
 0x27c   :  { %v7774_v6 = vpop.f32.mrf.mxu1  ;;  %v7776_v17 = vpop.f32.mrf.mxu0 }
 0x27d   :  { %11319 = vst [vmem:[#allocation6_spill] sm:$0xff] %v7774_v6  ;;  %v1893_v59 = vsel %vm1891_vm8, %v7776_v17, 0.0  ;;  %v2026_v27 = vmul.f32 %v7776_v17, %v7776_v17  ;;  %v2094_v23 = vsel %vm1891_vm8, %v2028_v15, 0.0 }
 0x27e   :  { %v7782_v62 = vpop.f32.mrf.mxu1  ;;  %v1894_v47 = vadd.f32 %v1893_v59, %v1892_v46  ;;  %v7788_v53 = vpop.f32.mrf.mxu0 }
 0x27f   :  { %v2090_v5 = vsel %vm1891_vm8, %v2026_v27, 0.0  ;;  %v2031_v19 = vmul.f32 %v7788_v53, %v7788_v53  ;;  %v1903_v48 = vsel %vm1891_vm8, %v7788_v53, 0.0 }
 0x280   :  { %v7796_v51 = vpop.f32.mrf.mxu1  ;;  %v1896_v28 = vadd.f32 %v1895_v42, %v1894_v47  ;;  %v2091_v3 = vadd.f32 %v2090_v5, %v2089_v14  ;;  %v7798_v33 = vpop.f32.mrf.mxu0 }
 0x281   :  { %v2029_v25 = vmul.f32 %v7798_v33, %v7798_v33  ;;  %v1899_v37 = vsel %vm1891_vm8, %v7798_v33, 0.0  ;;  %v2100_v61 = vsel %vm1891_vm8, %v2031_v19, 0.0 }
 0x282   :  { %v7803_v10 = vpop.f32.mrf.mxu1  ;;  %v2093_v40 = vadd.f32 %v2092_v45, %v2091_v3  ;;  %v1898_v21 = vadd.f32 %v1897_v16, %v1896_v28  ;;  %v7807_v44 = vpop.f32.mrf.mxu0 }
 0x283   :  { %11320 = vst [vmem:[#allocation8_spill] sm:$0xff] %v7803_v10  ;;  %v2096_v13 = vsel %vm1891_vm8, %v2029_v25, 0.0  ;;  %v2032_v43 = vmul.f32 %v7807_v44, %v7807_v44  ;;  %v1905_v60 = vsel %vm1891_vm8, %v7807_v44, 0.0 }
 0x284   :  { %v7812_v12 = vpop.f32.mrf.mxu1  ;;  %v1900_v52 = vadd.f32 %v1899_v37, %v1898_v21  ;;  %v2095_v9 = vadd.f32 %v2094_v23, %v2093_v40  ;;  %v7814_v55 = vpop.f32.mrf.mxu0 }
 0x285   :  { %11321 = vst [vmem:[#allocation11_spill] sm:$0xff] %v7812_v12  ;;  %v1901_v22 = vsel %vm1891_vm8, %v7814_v55, 0.0  ;;  %v2030_v1 = vmul.f32 %v7814_v55, %v7814_v55  ;;  %v2102_v58 = vsel %vm1891_vm8, %v2032_v43, 0.0 }
 0x286   :  { %v7819_v57 = vpop.f32.mrf.mxu1  ;;  %v2097_v32 = vadd.f32 %v2096_v13, %v2095_v9  ;;  %v1902_v41 = vadd.f32 %v1901_v22, %v1900_v52  ;;  %v7825_v56 = vpop.f32.mrf.mxu0 }
 0x287   :  { %v2098_v0 = vsel %vm1891_vm8, %v2030_v1, 0.0  ;;  %v2035_v4 = vmul.f32 %v7825_v56, %v7825_v56  ;;  %v1911_v14 = vsel %vm1891_vm8, %v7825_v56, 0.0 }
 0x288   :  { %v7832_v39 = vpop.f32.mrf.mxu1  ;;  %v1904_v50 = vadd.f32 %v1903_v48, %v1902_v41  ;;  %v2099_v18 = vadd.f32 %v2098_v0, %v2097_v32  ;;  %v7834_v49 = vpop.f32.mrf.mxu0 }
 0x289   :  { %11322 = vst [vmem:[#allocation13_spill] sm:$0xff] %v7832_v39  ;;  %v2033_v2 = vmul.f32 %v7834_v49, %v7834_v49  ;;  %v1907_v38 = vsel %vm1891_vm8, %v7834_v49, 0.0  ;;  %v2108_v25 = vsel %vm1891_vm8, %v2035_v4, 0.0 }
 0x28a   :  { %v7839_v8 = vpop.f32.mrf.mxu1  ;;  %v2101_v54 = vadd.f32 %v2100_v61, %v2099_v18  ;;  %v1906_v20 = vadd.f32 %v1905_v60, %v1904_v50  ;;  %v7843_v31 = vpop.f32.mrf.mxu0 }
 0x28b   :  { %11323 = vst [vmem:[#allocation10_spill] sm:$0xff] %v7839_v8  ;;  %v2104_v30 = vsel %vm1891_vm8, %v2033_v2, 0.0  ;;  %v2036_v15 = vmul.f32 %v7843_v31, %v7843_v31  ;;  %v1913_v40 = vsel %vm1891_vm8, %v7843_v31, 0.0 }
 0x28c   :  { %v7848_v7 = vpop.f32.mrf.mxu1  ;;  %v1908_v29 = vadd.f32 %v1907_v38, %v1906_v20  ;;  %v2103_v26 = vadd.f32 %v2102_v58, %v2101_v54  ;;  %v7850_v24 = vpop.f32.mrf.mxu0 }
 0x28d   :  { %11324 = vst [vmem:[#allocation12_spill] sm:$0xff] %v7848_v7  ;;  %v1909_v46 = vsel %vm1891_vm8, %v7850_v24, 0.0  ;;  %v2034_v59 = vmul.f32 %v7850_v24, %v7850_v24  ;;  %v2110_v9 = vsel %vm1891_vm8, %v2036_v15, 0.0 }
 0x28e   :  { %v7855_v11 = vpop.f32.mrf.mxu1  ;;  %v2105_v27 = vadd.f32 %v2104_v30, %v2103_v26  ;;  %v1910_v47 = vadd.f32 %v1909_v46, %v1908_v29  ;;  %v7861_v42 = vpop.f32.mrf.mxu0 }
 0x28f   :  { %v2106_v5 = vsel %vm1891_vm8, %v2034_v59, 0.0  ;;  %v2039_v41 = vmul.f32 %v7861_v42, %v7861_v42  ;;  %v1919_v60 = vsel %vm1891_vm8, %v7861_v42, 0.0 }
 0x290   :  { %v1912_v28 = vadd.f32 %v1911_v14, %v1910_v47  ;;  %v2107_v3 = vadd.f32 %v2106_v5, %v2105_v27  ;;  %v7868_v45 = vpop.f32.mrf.mxu1  ;;  %v7870_v16 = vpop.f32.mrf.mxu0 }
 0x291   :  { %v2037_v21 = vmul.f32 %v7870_v16, %v7870_v16  ;;  %v1915_v19 = vsel %vm1891_vm8, %v7870_v16, 0.0  ;;  %v2116_v26 = vsel %vm1891_vm8, %v2039_v41, 0.0 }
 0x292   :  { %v2109_v23 = vadd.f32 %v2108_v25, %v2107_v3  ;;  %v1914_v37 = vadd.f32 %v1913_v40, %v1912_v28  ;;  %v7877_v52 = vpop.f32.mrf.mxu0  ;;  %v7882_v13 = vpop.f32.mrf.mxu1 }
 0x293   :  { %11325 = vst [vmem:[#allocation15_spill] sm:$0xff] %v7882_v13  ;;  %v2112_v48 = vsel %vm1891_vm8, %v2037_v21, 0.0  ;;  %v2040_v2 = vmul.f32 %v7877_v52, %v7877_v52  ;;  %v1921_v4 = vsel %vm1891_vm8, %v7877_v52, 0.0 }
 0x294   :  { %v1916_v22 = vadd.f32 %v1915_v19, %v1914_v37  ;;  %v2111_v1 = vadd.f32 %v2110_v9, %v2109_v23  ;;  %v7884_v32 = vpop.f32.mrf.mxu0  ;;  %v7900_v20 = vpop.f32.mrf.mxu1 }
 0x295   :  { %v1917_v43 = vsel %vm1891_vm8, %v7884_v32, 0.0  ;;  %v2038_v0 = vmul.f32 %v7884_v32, %v7884_v32  ;;  %11326 = vst [vmem:[#allocation17_spill] sm:$0xff] %v7900_v20  ;;  %v2118_v47 = vsel %vm1891_vm8, %v2040_v2, 0.0 }
 0x296   :  { %v2113_v50 = vadd.f32 %v2112_v48, %v2111_v1  ;;  %v1918_v18 = vadd.f32 %v1917_v43, %v1916_v22  ;;  %v7893_v61 = vpop.f32.mrf.mxu0  ;;  %v7914_v15 = vpop.f32.mrf.mxu1 }
 0x297   :  { %v2114_v54 = vsel %vm1891_vm8, %v2038_v0, 0.0  ;;  %11327 = vst [vmem:[#allocation14_spill] sm:$0xff] %v7914_v15  ;;  %v2043_v25 = vmul.f32 %v7893_v61, %v7893_v61  ;;  %v1927_v22 = vsel %vm1891_vm8, %v7893_v61, 0.0 }
 0x298   :  { %v1920_v58 = vadd.f32 %v1919_v60, %v1918_v18  ;;  %v2115_v38 = vadd.f32 %v2114_v54, %v2113_v50  ;;  %v7902_v29 = vpop.f32.mrf.mxu0  ;;  %v7932_v48 = vpop.f32.mrf.mxu1 }
 0x299   :  { %v2041_v30 = vmul.f32 %v7902_v29, %v7902_v29  ;;  %v1923_v14 = vsel %vm1891_vm8, %v7902_v29, 0.0  ;;  %v2124_v18 = vsel %vm1891_vm8, %v2043_v25, 0.0 }
 0x29a   :  { %v2117_v46 = vadd.f32 %v2116_v26, %v2115_v38  ;;  %v1922_v59 = vadd.f32 %v1921_v4, %v1920_v58  ;;  %v7909_v27 = vpop.f32.mrf.mxu0 }
 0x29b   :  { %v2120_v40 = vsel %vm1891_vm8, %v2041_v30, 0.0  ;;  %v2044_v1 = vmul.f32 %v7909_v27, %v7909_v27  ;;  %v1929_v60 = vsel %vm1891_vm8, %v7909_v27, 0.0  ;;  %v7946_v30 = vpop.f32.mrf.mxu1 }
 0x29c   :  { %v1924_v5 = vadd.f32 %v1923_v14, %v1922_v59  ;;  %v2119_v28 = vadd.f32 %v2118_v47, %v2117_v46  ;;  %v7916_v3 = vpop.f32.mrf.mxu0  ;;  %11328 = vst [vmem:[#allocation3_spill] sm:$0xff] %v7946_v30 }
 0x29d   :  { %v1925_v21 = vsel %vm1891_vm8, %v7916_v3, 0.0  ;;  %v2042_v23 = vmul.f32 %v7916_v3, %v7916_v3  ;;  %v2126_v26 = vsel %vm1891_vm8, %v2044_v1, 0.0  ;;  %v7964_v1 = vpop.f32.mrf.mxu1 }
 0x29e   :  { %v2121_v37 = vadd.f32 %v2120_v40, %v2119_v28  ;;  %v1926_v9 = vadd.f32 %v1925_v21, %v1924_v5  ;;  %v7925_v19 = vpop.f32.mrf.mxu0 }
 0x29f   :  { %v2122_v41 = vsel %vm1891_vm8, %v2042_v23, 0.0  ;;  %v2047_v14 = vmul.f32 %v7925_v19, %v7925_v19 }
 0x2a0   :  { %v1928_v43 = vadd.f32 %v1927_v22, %v1926_v9  ;;  %v2123_v0 = vadd.f32 %v2122_v41, %v2121_v37  ;;  %v7934_v50 = vpop.f32.mrf.mxu0  ;;  %v1935_v37 = vsel %vm1891_vm8, %v7925_v19, 0.0 }
 0x2a1   :  { %v2045_v2 = vmul.f32 %v7934_v50, %v7934_v50  ;;  %v1931_v4 = vsel %vm1891_vm8, %v7934_v50, 0.0 }
 0x2a2   :  { %v2125_v54 = vadd.f32 %v2124_v18, %v2123_v0  ;;  %v1930_v58 = vadd.f32 %v1929_v60, %v1928_v43  ;;  %v7941_v38 = vpop.f32.mrf.mxu0  ;;  %v2132_v18 = vsel %vm1891_vm8, %v2047_v14, 0.0 }
 0x2a3   :  { %v2128_v5 = vsel %vm1891_vm8, %v2045_v2, 0.0  ;;  %v2048_v9 = vmul.f32 %v7941_v38, %v7941_v38  ;;  %v1937_v60 = vsel %vm1891_vm8, %v7941_v38, 0.0 }
 0x2a4   :  { %v1932_v46 = vadd.f32 %v1931_v4, %v1930_v58  ;;  %v2127_v59 = vadd.f32 %v2126_v26, %v2125_v54  ;;  %v7948_v47 = vpop.f32.mrf.mxu0 }
 0x2a5   :  { %v1933_v28 = vsel %vm1891_vm8, %v7948_v47, 0.0  ;;  %v2046_v25 = vmul.f32 %v7948_v47, %v7948_v47  ;;  %v2134_v4 = vsel %vm1891_vm8, %v2048_v9, 0.0 }
 0x2a6   :  { %v2129_v40 = vadd.f32 %v2128_v5, %v2127_v59  ;;  %v1934_v21 = vadd.f32 %v1933_v28, %v1932_v46  ;;  %v7957_v23 = vpop.f32.mrf.mxu0  ;;  %v7978_v59 = vpop.f32.mrf.mxu1 }
 0x2a7   :  { %v2130_v22 = vsel %vm1891_vm8, %v2046_v25, 0.0  ;;  %v2051_v25 = vmul.f32 %v7957_v23, %v7957_v23 }
 0x2a8   :  { %v1936_v41 = vadd.f32 %v1935_v37, %v1934_v21  ;;  %v2131_v43 = vadd.f32 %v2130_v22, %v2129_v40  ;;  %v7966_v0 = vpop.f32.mrf.mxu0 }
 0x2a9   :  { %v2049_v2 = vmul.f32 %v7966_v0, %v7966_v0  ;;  %v1939_v46 = vsel %vm1891_vm8, %v7966_v0, 0.0 }
 0x2aa   :  { %v2133_v54 = vadd.f32 %v2132_v18, %v2131_v43  ;;  %v1938_v58 = vadd.f32 %v1937_v60, %v1936_v41  ;;  %v7973_v26 = vpop.f32.mrf.mxu0  ;;  %v1943_v41 = vsel %vm1891_vm8, %v7957_v23, 0.0  ;;  %v7994_v60 = vpop.f32.mrf.mxu1 }
 0x2ab   :  { %v2136_v40 = vsel %vm1891_vm8, %v2049_v2, 0.0  ;;  %v2052_v43 = vmul.f32 %v7973_v26, %v7973_v26 }
 0x2ac   :  { %v1940_v5 = vadd.f32 %v1939_v46, %v1938_v58  ;;  %v2135_v28 = vadd.f32 %v2134_v4, %v2133_v54  ;;  %v7980_v14 = vpop.f32.mrf.mxu0  ;;  %v2053_v58 = vmul.f32 %v7774_v6, %v7774_v6  ;;  %v2140_v4 = vsel %vm1891_vm8, %v2051_v25, 0.0 }
 0x2ad   :  { %v1941_v21 = vsel %vm1891_vm8, %v7980_v14, 0.0  ;;  %v2050_v37 = vmul.f32 %v7980_v14, %v7980_v14  ;;  %v1945_v46 = vsel %vm1891_vm8, %v7973_v26, 0.0  ;;  %v2055_v25 = vmul.f32 %v7768_v63, %v7768_v63 }
 0x2ae   :  { %v2137_v9 = vadd.f32 %v2136_v40, %v2135_v28  ;;  %v1942_v22 = vadd.f32 %v1941_v21, %v1940_v5  ;;  %v1947_v40 = vsel %vm1891_vm8, %v7774_v6, 0.0  ;;  %v2054_v21 = vmul.f32 %v7796_v51, %v7796_v51 }
 0x2af   :  { %v2138_v18 = vsel %vm1891_vm8, %v2050_v37, 0.0  ;;  %v2142_v37 = vsel %vm1891_vm8, %v2052_v43, 0.0  ;;  %v2056_v43 = vmul.f32 %v7782_v62, %v7782_v62 }
 0x2b0   :  { %v1944_v54 = vadd.f32 %v1943_v41, %v1942_v22  ;;  %v2139_v2 = vadd.f32 %v2138_v18, %v2137_v9  ;;  %v8006_v22 = vpop.f32.mrf.mxu1  ;;  %v2144_v18 = vsel %vm1891_vm8, %v2053_v58, 0.0  ;;  %v2146_v6 = vsel %vm1891_vm8, %v2054_v21, 0.0 }
 0x2b1   :  { %11329 = vst [vmem:[#allocation5_spill] sm:$0xff] %v8006_v22  ;;  %v1953_v58 = vsel %vm1891_vm8, %v7782_v62, 0.0  ;;  %v2058_v21 = vmul.f32 %v7832_v39, %v7832_v39 }
 0x2b2   :  { %v1946_v5 = vadd.f32 %v1945_v46, %v1944_v54  ;;  %v2141_v28 = vadd.f32 %v2140_v4, %v2139_v2  ;;  %v1949_v54 = vsel %vm1891_vm8, %v7796_v51, 0.0  ;;  %v1951_v46 = vsel %vm1891_vm8, %v7768_v63, 0.0 }
 0x2b3   :  { %v1955_v63 = vsel %vm1891_vm8, %v7812_v12, 0.0 }
 0x2b4   :  { %v1948_v9 = vadd.f32 %v1947_v40, %v1946_v5  ;;  %v2143_v41 = vadd.f32 %v2142_v37, %v2141_v28  ;;  %v8018_v5 = vpop.f32.mrf.mxu1  ;;  %v2148_v37 = vsel %vm1891_vm8, %v2055_v25, 0.0 }
 0x2b5   :  { %11330 = vst [vmem:[#allocation7_spill] sm:$0xff] %v8018_v5 }
 0x2b6   :  { %v1950_v2 = vadd.f32 %v1949_v54, %v1948_v9  ;;  %v2145_v4 = vadd.f32 %v2144_v18, %v2143_v41  ;;  %v2057_v9 = vmul.f32 %v7812_v12, %v7812_v12  ;;  %v2150_v54 = vsel %vm1891_vm8, %v2056_v43, 0.0 }
 0x2b7   :  { %v2154_v12 = vsel %vm1891_vm8, %v2058_v21, 0.0  ;;  %v2062_v21 = vmul.f32 %v7868_v45, %v7868_v45 }
 0x2b8   :  { %v1952_v28 = vadd.f32 %v1951_v46, %v1950_v2  ;;  %v2147_v40 = vadd.f32 %v2146_v6, %v2145_v4  ;;  %v8030_v2 = vpop.f32.mrf.mxu1  ;;  %v2059_v4 = vmul.f32 %v7803_v10, %v7803_v10  ;;  %v2152_v46 = vsel %vm1891_vm8, %v2057_v9, 0.0 }
 0x2b9   :  { %11331 = vst [vmem:[#allocation9_spill] sm:$0xff] %v8030_v2  ;;  %v1961_v9 = vsel %vm1891_vm8, %v7819_v57, 0.0 }
 0x2ba   :  { %v1954_v41 = vadd.f32 %v1953_v58, %v1952_v28  ;;  %v2149_v18 = vadd.f32 %v2148_v37, %v2147_v40  ;;  %v1957_v28 = vsel %vm1891_vm8, %v7832_v39, 0.0  ;;  %v1959_v37 = vsel %vm1891_vm8, %v7803_v10, 0.0 }
 0x2bb   :  { %v2060_v58 = vmul.f32 %v7819_v57, %v7819_v57  ;;  %v1963_v10 = vsel %vm1891_vm8, %v7848_v7, 0.0 }
 0x2bc   :  { %v1956_v6 = vadd.f32 %v1955_v63, %v1954_v41  ;;  %v2151_v25 = vadd.f32 %v2150_v54, %v2149_v18  ;;  %v8042_v63 = vpop.f32.mrf.mxu1  ;;  %v2156_v54 = vsel %vm1891_vm8, %v2059_v4, 0.0 }
 0x2bd   :  { %11332 = vst [vmem:[#allocation16_spill] sm:$0xff] %v8042_v63 }
 0x2be   :  { %v1958_v40 = vadd.f32 %v1957_v28, %v1956_v6  ;;  %v2153_v43 = vadd.f32 %v2152_v46, %v2151_v25  ;;  %v2061_v6 = vmul.f32 %v7848_v7, %v7848_v7  ;;  %v2158_v28 = vsel %vm1891_vm8, %v2060_v58, 0.0 }
 0x2bf   :  { %v2162_v7 = vsel %vm1891_vm8, %v2062_v21, 0.0  ;;  %v2066_v21 = vmul.f32 %v7932_v48, %v7932_v48 }
 0x2c0   :  { %v1960_v41 = vadd.f32 %v1959_v37, %v1958_v40  ;;  %v2155_v18 = vadd.f32 %v2154_v12, %v2153_v43  ;;  %v8054_v40 = vpop.f32.mrf.mxu1  ;;  %v2063_v43 = vmul.f32 %v7839_v8, %v7839_v8  ;;  %v2160_v37 = vsel %vm1891_vm8, %v2061_v6, 0.0 }
 0x2c1   :  { %11333 = vst [vmem:[#allocation19_spill] sm:$0xff] %v8054_v40  ;;  %v1969_v6 = vsel %vm1891_vm8, %v7855_v11, 0.0 }
 0x2c2   :  { %v1962_v25 = vadd.f32 %v1961_v9, %v1960_v41  ;;  %v2157_v46 = vadd.f32 %v2156_v54, %v2155_v18  ;;  %v1965_v41 = vsel %vm1891_vm8, %v7868_v45, 0.0  ;;  %v1967_v54 = vsel %vm1891_vm8, %v7839_v8, 0.0 }
 0x2c3   :  { %v2064_v9 = vmul.f32 %v7855_v11, %v7855_v11  ;;  %v1971_v8 = vsel %vm1891_vm8, %v7900_v20, 0.0 }
 0x2c4   :  { %v1964_v12 = vadd.f32 %v1963_v10, %v1962_v25  ;;  %v2159_v4 = vadd.f32 %v2158_v28, %v2157_v46  ;;  %v8066_v10 = vpop.f32.mrf.mxu1  ;;  %v2164_v28 = vsel %vm1891_vm8, %v2063_v43, 0.0 }
 0x2c5   :  { %11334 = vst [vmem:[#allocation21_spill] sm:$0xff] %v8066_v10 }
 0x2c6   :  { %v1966_v18 = vadd.f32 %v1965_v41, %v1964_v12  ;;  %v2161_v58 = vadd.f32 %v2160_v37, %v2159_v4  ;;  %v2065_v12 = vmul.f32 %v7900_v20, %v7900_v20  ;;  %v2166_v41 = vsel %vm1891_vm8, %v2064_v9, 0.0 }
 0x2c7   :  { %v2170_v20 = vsel %vm1891_vm8, %v2066_v21, 0.0 }
 0x2c8   :  { %v1968_v25 = vadd.f32 %v1967_v54, %v1966_v18  ;;  %v2163_v46 = vadd.f32 %v2162_v7, %v2161_v58  ;;  %v8078_v18 = vpop.f32.mrf.mxu1  ;;  %v2067_v58 = vmul.f32 %v7882_v13, %v7882_v13  ;;  %v2168_v54 = vsel %vm1891_vm8, %v2065_v12, 0.0 }
 0x2c9   :  { %11335 = vst [vmem:[#allocation18_spill] sm:$0xff] %v8078_v18 }
 0x2ca   :  { %v1970_v4 = vadd.f32 %v1969_v6, %v1968_v25  ;;  %v2165_v37 = vadd.f32 %v2164_v28, %v2163_v46  ;;  %v1973_v25 = vsel %vm1891_vm8, %v7932_v48, 0.0  ;;  %v1975_v28 = vsel %vm1891_vm8, %v7882_v13, 0.0 }
 0x2cb   :  { %v2068_v6 = vmul.f32 %v7914_v15, %v7914_v15  ;;  %v1979_v13 = vsel %vm1891_vm8, %v7964_v1, 0.0 }
 0x2cc   :  { %v2167_v7 = vadd.f32 %v2166_v41, %v2165_v37  ;;  %v1972_v43 = vadd.f32 %v1971_v8, %v1970_v4  ;;  %v5560_v8 = vld [vmem:[%s11002_s7] sm:$0xff]   ;;  %v8093_v4 = vpop.f32.mrf.mxu1  ;;  %v2172_v41 = vsel %vm1891_vm8, %v2067_v58, 0.0 }
 0x2cd   :  { %11336 = vst [vmem:[#allocation20_spill] sm:$0xff] %v8093_v4  ;;  %5454 = vmatprep.subr.bf16.mxu1 %v5560_v8  ;;  %v2174_v21 = vsel %vm1891_vm8, %v2068_v6, 0.0 }
 0x2ce   :  { %v1974_v46 = vadd.f32 %v1973_v25, %v1972_v43  ;;  %v2169_v9 = vadd.f32 %v2168_v54, %v2167_v7  ;;  %v1977_v7 = vsel %vm1891_vm8, %v7914_v15, 0.0  ;;  %v2069_v43 = vmul.f32 %v7964_v1, %v7964_v1  ;;  %5455 = vmatpush3.bf16.msra.mxu1 %v5560_v8 }
 0x2cf   :  { %v1981_v8 = vsel %vm1891_vm8, %v7994_v60, 0.0 }
 0x2d0   :  { %v1976_v12 = vadd.f32 %v1975_v28, %v1974_v46  ;;  %v2171_v37 = vadd.f32 %v2170_v20, %v2169_v9  ;;  %v2070_v20 = vmul.f32 %v7994_v60, %v7994_v60  ;;  %v8105_v9 = vpop.f32.mrf.mxu1  ;;  %v2071_v28 = vmul.f32 %v7946_v30, %v7946_v30 }
 0x2d1   :  { %11337 = vst [vmem:[#allocation4_spill] sm:$0xff] %v8105_v9  ;;  %v2176_v15 = vsel %vm1891_vm8, %v2069_v43, 0.0  ;;  %v1985_v43 = vsel %vm1891_vm8, %v7978_v59, 0.0 }
 0x2d2   :  { %v1978_v54 = vadd.f32 %v1977_v7, %v1976_v12  ;;  %v2173_v25 = vadd.f32 %v2172_v41, %v2171_v37  ;;  %v1983_v37 = vsel %vm1891_vm8, %v7946_v30, 0.0  ;;  %v2072_v41 = vmul.f32 %v7978_v59, %v7978_v59 }
 0x2d3   :  { %v1987_v30 = vsel %vm1891_vm8, %v8018_v5, 0.0 }
 0x2d4   :  { %v1980_v46 = vadd.f32 %v1979_v13, %v1978_v54  ;;  %v2175_v58 = vadd.f32 %v2174_v21, %v2173_v25  ;;  %v2178_v13 = vsel %vm1891_vm8, %v2070_v20, 0.0  ;;  %v8117_v25 = vpop.f32.mrf.mxu1  ;;  %v2180_v21 = vsel %vm1891_vm8, %v2071_v28, 0.0 }
 0x2d5   :  { %11338 = vst [vmem:[#allocation2_spill] sm:$0xff] %v8117_v25  ;;  %v2074_v20 = vmul.f32 %v8042_v63, %v8042_v63  ;;  %v2075_v28 = vmul.f32 %v8006_v22, %v8006_v22 }
 0x2d6   :  { %v1982_v12 = vadd.f32 %v1981_v8, %v1980_v46  ;;  %v2177_v6 = vadd.f32 %v2176_v15, %v2175_v58  ;;  %v2073_v15 = vmul.f32 %v8018_v5, %v8018_v5  ;;  %v2182_v8 = vsel %vm1891_vm8, %v2072_v41, 0.0 }
 0x2d7   :  { %v2188_v5 = vsel %vm1891_vm8, %v2075_v28, 0.0  ;;  %v2079_v28 = vmul.f32 %v8054_v40, %v8054_v40 }
 0x2d8   :  { %v1984_v7 = vadd.f32 %v1983_v37, %v1982_v12  ;;  %v2179_v54 = vadd.f32 %v2178_v13, %v2177_v6  ;;  %v8129_v37 = vpop.f32.mrf.mxu1  ;;  %v2184_v13 = vsel %vm1891_vm8, %v2073_v15, 0.0  ;;  %v1993_v15 = vsel %vm1891_vm8, %v8030_v2, 0.0 }
 0x2d9   :  { %11339 = vst [vmem:[#allocation23_spill] sm:$0xff] %v8129_v37 }
 0x2da   :  { %v1986_v46 = vadd.f32 %v1985_v43, %v1984_v7  ;;  %v2181_v58 = vadd.f32 %v2180_v21, %v2179_v54  ;;  %v1989_v7 = vsel %vm1891_vm8, %v8042_v63, 0.0  ;;  %v1991_v21 = vsel %vm1891_vm8, %v8006_v22, 0.0 }
 0x2db   :  { %v2076_v43 = vmul.f32 %v8030_v2, %v8030_v2  ;;  %v1995_v22 = vsel %vm1891_vm8, %v8066_v10, 0.0 }
 0x2dc   :  { %v1988_v12 = vadd.f32 %v1987_v30, %v1986_v46  ;;  %v2183_v6 = vadd.f32 %v2182_v8, %v2181_v58  ;;  %v2186_v30 = vsel %vm1891_vm8, %v2074_v20, 0.0  ;;  %v8141_v8 = vpop.f32.mrf.mxu1  ;;  %v2078_v20 = vmul.f32 %v8093_v4, %v8093_v4 }
 0x2dd   :  { %11340 = vst [vmem:[#allocation24_spill] sm:$0xff] %v8141_v8 }
 0x2de   :  { %v1990_v54 = vadd.f32 %v1989_v7, %v1988_v12  ;;  %v2185_v41 = vadd.f32 %v2184_v13, %v2183_v6  ;;  %v2077_v12 = vmul.f32 %v8066_v10, %v8066_v10  ;;  %v2190_v7 = vsel %vm1891_vm8, %v2076_v43, 0.0 }
 0x2df   :  { %v2196_v10 = vsel %vm1891_vm8, %v2079_v28, 0.0  ;;  %v2083_v28 = vmul.f32 %v8105_v9, %v8105_v9 }
 0x2e0   :  { %v1992_v46 = vadd.f32 %v1991_v21, %v1990_v54  ;;  %v2187_v58 = vadd.f32 %v2186_v30, %v2185_v41  ;;  %v8153_v21 = vpop.f32.mrf.mxu1  ;;  %v2192_v30 = vsel %vm1891_vm8, %v2077_v12, 0.0  ;;  %v2001_v12 = vsel %vm1891_vm8, %v8078_v18, 0.0 }
 0x2e1   :  { %11341 = vst [vmem:[#allocation25_spill] sm:$0xff] %v8153_v21 }
 0x2e2   :  { %v1994_v6 = vadd.f32 %v1993_v15, %v1992_v46  ;;  %v2189_v13 = vadd.f32 %v2188_v5, %v2187_v58  ;;  %v1997_v5 = vsel %vm1891_vm8, %v8093_v4, 0.0  ;;  %v1999_v58 = vsel %vm1891_vm8, %v8054_v40, 0.0 }
 0x2e3   :  { %v2080_v15 = vmul.f32 %v8078_v18, %v8078_v18  ;;  %v2003_v40 = vsel %vm1891_vm8, %v8117_v25, 0.0 }
 0x2e4   :  { %v1996_v54 = vadd.f32 %v1995_v22, %v1994_v6  ;;  %v2191_v41 = vadd.f32 %v2190_v7, %v2189_v13  ;;  %v2194_v22 = vsel %vm1891_vm8, %v2078_v20, 0.0  ;;  %v8165_v7 = vpop.f32.mrf.mxu1  ;;  %v2082_v20 = vmul.f32 %v8141_v8, %v8141_v8 }
 0x2e5   :  { %11342 = vst [vmem:[#allocation26_spill] sm:$0xff] %v8165_v7 }
 0x2e6   :  { %v1998_v46 = vadd.f32 %v1997_v5, %v1996_v54  ;;  %v2193_v43 = vadd.f32 %v2192_v30, %v2191_v41  ;;  %v2081_v54 = vmul.f32 %v8117_v25, %v8117_v25  ;;  %v2198_v5 = vsel %vm1891_vm8, %v2080_v15, 0.0 }
 0x2e7   :  { %v2204_v25 = vsel %vm1891_vm8, %v2083_v28, 0.0 }
 0x2e8   :  { %v2000_v6 = vadd.f32 %v1999_v58, %v1998_v46  ;;  %v2195_v13 = vadd.f32 %v2194_v22, %v2193_v43  ;;  %v8177_v58 = vpop.f32.mrf.mxu1  ;;  %v2200_v22 = vsel %vm1891_vm8, %v2081_v54, 0.0  ;;  %v2009_v54 = vsel %vm1891_vm8, %v8129_v37, 0.0 }
 0x2ea   :  { %v2197_v41 = vadd.f32 %v2196_v10, %v2195_v13  ;;  %v2002_v30 = vadd.f32 %v2001_v12, %v2000_v6  ;;  %v2005_v10 = vsel %vm1891_vm8, %v8141_v8, 0.0  ;;  %v2007_v13 = vsel %vm1891_vm8, %v8105_v9, 0.0 }
 0x2eb   :  { %v2084_v12 = vmul.f32 %v8129_v37, %v8129_v37  ;;  %v2011_v9 = vsel %vm1891_vm8, %v8165_v7, 0.0 }
 0x2ec   :  { %v2004_v46 = vadd.f32 %v2003_v40, %v2002_v30  ;;  %v2199_v43 = vadd.f32 %v2198_v5, %v2197_v41  ;;  %v2202_v40 = vsel %vm1891_vm8, %v2082_v20, 0.0  ;;  %v1879_v5 = vpop.f32.mrf.mxu1  ;;  %v11363_v39 = vld [vmem:[#allocation26_spill] sm:$0xff] }
 0x2ed   :  { %v2086_v8 = vmul.f32 %v1879_v5, %v1879_v5 }
 0x2ee   :  { %v2201_v6 = vadd.f32 %v2200_v22, %v2199_v43  ;;  %v2006_v15 = vadd.f32 %v2005_v10, %v2004_v46  ;;  %v2085_v43 = vmul.f32 %v8165_v7, %v8165_v7  ;;  %v2206_v10 = vsel %vm1891_vm8, %v2084_v12, 0.0 }
 0x2ef   :  { %v2088_v12 = vmul.f32 %v8177_v58, %v8177_v58 }
 0x2f0   :  { %v2008_v41 = vadd.f32 %v2007_v13, %v2006_v15  ;;  %v2203_v30 = vadd.f32 %v2202_v40, %v2201_v6  ;;  %v2087_v6 = vmul.f32 %v8153_v21, %v8153_v21  ;;  %v2208_v28 = vsel %vm1891_vm8, %v2085_v43, 0.0 }
 0x2f1   :  { %v2013_v13 = vsel %vm1891_vm8, %v1879_v5, 0.0 }
 0x2f2   :  { %v2205_v46 = vadd.f32 %v2204_v25, %v2203_v30  ;;  %v2010_v22 = vadd.f32 %v2009_v54, %v2008_v41  ;;  %v2015_v25 = vsel %vm1891_vm8, %v8153_v21, 0.0  ;;  %v2210_v41 = vsel %vm1891_vm8, %v2086_v8, 0.0 }
 0x2f3   :  { %v2212_v54 = vsel %vm1891_vm8, %v2087_v6, 0.0 }
 0x2f4   :  { %v2012_v20 = vadd.f32 %v2011_v9, %v2010_v22  ;;  %v2207_v15 = vadd.f32 %v2206_v10, %v2205_v46  ;;  %v2017_v46 = vsel %vm1891_vm8, %v8177_v58, 0.0  ;;  %v2214_v10 = vsel %vm1891_vm8, %v2088_v12, 0.0 }
 0x2f6   :  { %v2209_v40 = vadd.f32 %v2208_v28, %v2207_v15  ;;  %v2014_v37 = vadd.f32 %v2013_v13, %v2012_v20 }
 0x2f8   :  { %v2016_v30 = vadd.f32 %v2015_v25, %v2014_v37  ;;  %v2211_v9 = vadd.f32 %v2210_v41, %v2209_v40 }
 0x2fa   :  { %v2018_v43 = vadd.f32 %v2017_v46, %v2016_v30  ;;  %v2213_v22 = vadd.f32 %v2212_v54, %v2211_v9  ;;  %v8215_v30 = vld [vmem:[%s11003_s5] ss:$0 sm:$0xff] }
 0x2fc   :  { %v2019_v20 = vrot.slane %v2018_v43, 4  ;;  %v2215_v15 = vadd.f32 %v2214_v10, %v2213_v22 }
 0x2fe   :  { %v2020_v28 = vadd.f32 %v2019_v20, %v2018_v43  ;;  %v2216_v13 = vrot.slane %v2215_v15, 4 }
 0x300   :  { %v2021_v21 = vrot.slane %v2020_v28, 2  ;;  %v2217_v7 = vadd.f32 %v2216_v13, %v2215_v15  ;;  %v11351_v15 = vld [vmem:[#allocation14_spill] sm:$0xff] }
 0x302   :  { %v2022_v18 = vadd.f32 %v2021_v21, %v2020_v28  ;;  %v2218_v4 = vrot.slane %v2217_v7, 2  ;;  %v11362_v21 = vld [vmem:[#allocation23_spill] sm:$0xff] }
 0x304   :  { %v2023_v8 = vrot.slane %v2022_v18, 1  ;;  %v2219_v37 = vadd.f32 %v2218_v4, %v2217_v7  ;;  %v11358_v4 = vld [vmem:[#allocation18_spill] sm:$0xff] }
 0x306   :  { %v2024_v40 = vadd.f32 %v2023_v8, %v2022_v18  ;;  %v2220_v25 = vrot.slane %v2219_v37, 1  ;;  %v11352_v8 = vld [vmem:[#allocation3_spill] sm:$0xff]  ;;  %v11360_v18 = vld [vmem:[#allocation24_spill] sm:$0xff] }
 0x308   :  { %v2221_v6 = vadd.f32 %v2220_v25, %v2219_v37  ;;  %v8210_v41 = vmul.f32 0.001953125, %v2024_v40  ;;  %v11346_v25 = vld [vmem:[#allocation8_spill] sm:$0xff]  ;;  %v11349_v40 = vld [vmem:[#allocation17_spill] sm:$0xff] }
 0x309   :  { %v11361_v37 = vld [vmem:[#allocation4_spill] sm:$0xff] }
 0x30a   :  { %v2223_v12 = vmul.f32 0.001953125, %v2221_v6  ;;  %v2224_v9 = vmul.f32 %v8210_v41, %v8210_v41  ;;  %v2288_v54 = vsub.f32 %v1879_v5, %v8210_v41  ;;  %v11343_v6 = vld [vmem:[#allocation6_spill] sm:$0xff]  ;;  %v11365_v63 = vsub.f32 %v7766_v34, %v8210_v41 }
 0x30b   :  { %v11359_v5 = vld [vmem:[#allocation2_spill] sm:$0xff]  ;;  %v11366_v2 = vsub.f32 %v7776_v17, %v8210_v41  ;;  %v11367_v43 = vsub.f32 %v7764_v35, %v8210_v41  ;;  %v11369_v13 = vsub.f32 %v7770_v36, %v8210_v41 }
 0x30c   :  { %v2225_v7 = vsub.f32 %v2223_v12, %v2224_v9  ;;  %v8227_v46 = vmul.f32 %v8215_v30, %v2288_v54  ;;  %v11344_v9 = vld [vmem:[#allocation22_spill] sm:$0xff]  ;;  %v11350_v12 = vld [vmem:[#allocation15_spill] sm:$0xff]  ;;  %v8353_v22 = vmul.f32 %v8215_v30, %v11365_v63 }
 0x30d   :  { %v11348_v54 = vld [vmem:[#allocation10_spill] sm:$0xff]  ;;  %v8359_v20 = vmul.f32 %v8215_v30, %v11366_v2  ;;  %v8365_v10 = vmul.f32 %v8215_v30, %v11367_v43  ;;  %v8371_v34 = vmul.f32 %v8215_v30, %v11369_v13  ;;  %v11372_v2 = vsub.f32 %v7798_v33, %v8210_v41 }
 0x30e   :  { %v2361_v28 = vadd.f32 1e-05, %v2225_v7  ;;  %v11364_v7 = vld [vmem:[#allocation25_spill] sm:$0xff]  ;;  %v8378_v17 = vld [vmem:[%s11004_s6] ss:$0 sm:$0xff]  ;;  %v11373_v43 = vsub.f32 %v7814_v55, %v8210_v41  ;;  %v11374_v13 = vsub.f32 %v7788_v53, %v8210_v41  ;;  %v11376_v55 = vsub.f32 %v7834_v49, %v8210_v41 }
 0x30f   :  { %11368 = vst [vmem:[#allocation6_spill] sm:$0xff] %v8365_v10  ;;  %11370 = vst [vmem:[#allocation22_spill] sm:$0xff] %v8371_v34  ;;  %v8384_v35 = vmul.f32 %v8215_v30, %v11372_v2  ;;  %v11375_v10 = vsub.f32 %v7807_v44, %v8210_v41  ;;  %v11377_v53 = vsub.f32 %v7850_v24, %v8210_v41 }
 0x310   :  { %5563 = vrsqrt.f32 %v2361_v28  ;;  %v11347_v28 = vld [vmem:[#allocation12_spill] sm:$0xff]  ;;  %11371 = vst [vmem:[#allocation8_spill] sm:$0xff] %v8378_v17  ;;  %v8390_v36 = vmul.f32 %v8215_v30, %v11373_v43  ;;  %v8396_v34 = vmul.f32 %v8215_v30, %v11374_v13  ;;  %v8410_v43 = vmul.f32 %v8215_v30, %v11376_v55 }
 0x311   :  { %v8402_v33 = vmul.f32 %v8215_v30, %v11375_v10  ;;  %v8416_v13 = vmul.f32 %v8215_v30, %v11377_v53  ;;  %v11378_v44 = vsub.f32 %v7825_v56, %v8210_v41  ;;  %v11380_v55 = vsub.f32 %v7870_v16, %v8210_v41 }
 0x312   :  { %v11381_v53 = vsub.f32 %v7884_v32, %v8210_v41  ;;  %v11384_v16 = vsub.f32 %v7877_v52, %v8210_v41  ;;  %v11385_v32 = vsub.f32 %v7902_v29, %v8210_v41 }
 0x313   :  { %v8422_v10 = vmul.f32 %v8215_v30, %v11378_v44  ;;  %v8434_v24 = vmul.f32 %v8215_v30, %v11380_v55  ;;  %v11382_v44 = vsub.f32 %v7861_v42, %v8210_v41  ;;  %v11386_v42 = vsub.f32 %v7916_v3, %v8210_v41 }
 0x314   :  { %v8440_v56 = vmul.f32 %v8215_v30, %v11381_v53  ;;  %v8455_v55 = vmul.f32 %v8215_v30, %v11384_v16  ;;  %v8461_v53 = vmul.f32 %v8215_v30, %v11385_v32  ;;  %v11388_v16 = vsub.f32 %v7909_v27, %v8210_v41 }
 0x315   :  { %v11389_v32 = vsub.f32 %v7934_v50, %v8210_v41 }
 0x316   :  { %v8479_v29 = vmul.f32 %v8215_v30, %v11388_v16  ;;  %v11392_v16 = vsub.f32 %v7941_v38, %v8210_v41 }
 0x317   :  { %v8485_v3 = vmul.f32 %v8215_v30, %v11389_v32  ;;  %v11393_v32 = vsub.f32 %v7966_v0, %v8210_v41 }
 0x318   :  { %v8503_v50 = vmul.f32 %v8215_v30, %v11392_v16  ;;  %v11396_v16 = vsub.f32 %v7973_v26, %v8210_v41 }
 0x31a   :  { %v8527_v0 = vmul.f32 %v8215_v30, %v11396_v16  ;;  %v11402_v16 = vsub.f32 %v7782_v62, %v8210_v41  ;;  %v11406_v62 = vsub.f32 %v7868_v45, %v8210_v41 }
 0x31d   :  { %v8373_v63 = vpop.eup %5563 }
 0x31e   :  { %v2424_v2 = vmul.f32 %v8373_v63, %v8227_v46  ;;  %v11379_v46 = vsub.f32 %v7843_v31, %v8210_v41  ;;  %v8446_v31 = vmul.f32 %v8215_v30, %v11382_v44  ;;  %v8467_v44 = vmul.f32 %v8215_v30, %v11386_v42 }
 0x31f   :  { %v11390_v42 = vsub.f32 %v7948_v47, %v8210_v41  ;;  %v8509_v47 = vmul.f32 %v8215_v30, %v11393_v32  ;;  %v11397_v32 = vsub.f32 %v11343_v6, %v8210_v41  ;;  %v11403_v6 = vsub.f32 %v11346_v25, %v8210_v41 }
 0x320   :  { %v8428_v49 = vmul.f32 %v8215_v30, %v11379_v46  ;;  %v8449_v46 = vadd.f32 %v8378_v17, %v2424_v2  ;;  %v11387_v2 = vsub.f32 %v7893_v61, %v8210_v41  ;;  %v8571_v25 = vmul.f32 %v8215_v30, %v11406_v62 }
 0x321   :  { %v8491_v61 = vmul.f32 %v8215_v30, %v11390_v42  ;;  %v11394_v42 = vsub.f32 %v7980_v14, %v8210_v41  ;;  %v8533_v14 = vmul.f32 %v8215_v30, %v11397_v32  ;;  %v8553_v32 = vmul.f32 %v8215_v30, %v11403_v6 }
 0x322   :  { %11383 = vst [vmem:[#allocation12_spill] sm:$0xff] %v8449_v46  ;;  %v8473_v52 = vmul.f32 %v8215_v30, %v11387_v2  ;;  %v11391_v2 = vsub.f32 %v7925_v19, %v8210_v41  ;;  %v2328_v46 = vmul.f32 %v8215_v30, %v11402_v16  ;;  %v11407_v16 = vsub.f32 %v11348_v54, %v8210_v41 }
 0x323   :  { %v8515_v19 = vmul.f32 %v8215_v30, %v11394_v42  ;;  %11398 = vst [vmem:[#allocation10_spill] sm:$0xff] %v8533_v14  ;;  %v11399_v42 = vsub.f32 %v7796_v51, %v8210_v41  ;;  %v11404_v51 = vsub.f32 %v7819_v57, %v8210_v41  ;;  %v11408_v6 = vsub.f32 %v7855_v11, %v8210_v41 }
 0x324   :  { %v8497_v27 = vmul.f32 %v8215_v30, %v11391_v2  ;;  %v11395_v2 = vsub.f32 %v7957_v23, %v8210_v41  ;;  %v8577_v57 = vmul.f32 %v8215_v30, %v11407_v16  ;;  %v11411_v62 = vsub.f32 %v11350_v12, %v8210_v41 }
 0x325   :  { %v8539_v23 = vmul.f32 %v8215_v30, %v11399_v42  ;;  %v8559_v42 = vmul.f32 %v8215_v30, %v11404_v51  ;;  %v11409_v51 = vsub.f32 %v11349_v40, %v8210_v41  ;;  %v11412_v16 = vsub.f32 %v11351_v15, %v8210_v41 }
 0x326   :  { %v8521_v38 = vmul.f32 %v8215_v30, %v11395_v2  ;;  %v11401_v2 = vsub.f32 %v11344_v9, %v8210_v41  ;;  %v11405_v9 = vsub.f32 %v11347_v28, %v8210_v41  ;;  %v8583_v28 = vmul.f32 %v8215_v30, %v11408_v6 }
 0x327   :  { %11400 = vst [vmem:[#allocation17_spill] sm:$0xff] %v8539_v23  ;;  %v8589_v45 = vmul.f32 %v8215_v30, %v11409_v51  ;;  %v8601_v11 = vmul.f32 %v8215_v30, %v11411_v62  ;;  %v8607_v40 = vmul.f32 %v8215_v30, %v11412_v16  ;;  %v11413_v6 = vsub.f32 %v7964_v1, %v8210_v41  ;;  %v11417_v16 = vld [vmem:[#allocation7_spill] sm:$0xff] }
 0x328   :  { %v2327_v26 = vmul.f32 %v8215_v30, %v11401_v2  ;;  %v8565_v2 = vmul.f32 %v8215_v30, %v11405_v9  ;;  %v11410_v9 = vsub.f32 %v7932_v48, %v8210_v41  ;;  %v11414_v51 = vsub.f32 %v7994_v60, %v8210_v41 }
 0x329   :  { %v8613_v48 = vmul.f32 %v8215_v30, %v11413_v6  ;;  %v11416_v62 = vsub.f32 %v7978_v59, %v8210_v41  ;;  %v11418_v6 = vsub.f32 %v11417_v16, %v8210_v41 }
 0x32a   :  { %v8595_v54 = vmul.f32 %v8215_v30, %v11410_v9  ;;  %v8619_v12 = vmul.f32 %v8215_v30, %v11414_v51  ;;  %v11415_v9 = vsub.f32 %v11352_v8, %v8210_v41  ;;  %v11420_v51 = vld [vmem:[#allocation16_spill] sm:$0xff] }
 0x32b   :  { %v8631_v1 = vmul.f32 %v8215_v30, %v11416_v62  ;;  %v8637_v60 = vmul.f32 %v8215_v30, %v11418_v6  ;;  %v11421_v17 = vsub.f32 %v11420_v51, %v8210_v41  ;;  %v11426_v62 = vld [vmem:[#allocation9_spill] sm:$0xff] }
 0x32c   :  { %v8625_v15 = vmul.f32 %v8215_v30, %v11415_v9  ;;  %v11423_v9 = vld [vmem:[#allocation5_spill] sm:$0xff]  ;;  %v11427_v14 = vsub.f32 %v11426_v62, %v8210_v41 }
 0x32d   :  { %11419 = vst [vmem:[#allocation15_spill] sm:$0xff] %v8637_v60  ;;  %v8643_v8 = vmul.f32 %v8215_v30, %v11421_v17  ;;  %v11424_v23 = vsub.f32 %v11423_v9, %v8210_v41  ;;  %v11428_v6 = vld [vmem:[#allocation21_spill] sm:$0xff]  ;;  %v11430_v17 = vld [vmem:[#allocation20_spill] sm:$0xff] }
 0x32e   :  { %v8655_v16 = vmul.f32 %v8215_v30, %v11427_v14  ;;  %v11429_v60 = vsub.f32 %v11428_v6, %v8210_v41  ;;  %v11434_v14 = vsub.f32 %v11358_v4, %v8210_v41 }
 0x32f   :  { %11422 = vst [vmem:[#allocation14_spill] sm:$0xff] %v8643_v8  ;;  %v8649_v59 = vmul.f32 %v8215_v30, %v11424_v23  ;;  %v11431_v8 = vsub.f32 %v11430_v17, %v8210_v41  ;;  %v11432_v23 = vld [vmem:[#allocation19_spill] sm:$0xff] }
 0x330   :  { %v8661_v51 = vmul.f32 %v8215_v30, %v11429_v60  ;;  %v8679_v6 = vmul.f32 %v8215_v30, %v11434_v14  ;;  %v11435_v60 = vsub.f32 %v11359_v5, %v8210_v41  ;;  %v11440_v14 = vsub.f32 %v11362_v21, %v8210_v41 }
 0x331   :  { %11425 = vst [vmem:[#allocation3_spill] sm:$0xff] %v8649_v59  ;;  %v8667_v9 = vmul.f32 %v8215_v30, %v11431_v8  ;;  %v11433_v59 = vsub.f32 %v11432_v23, %v8210_v41  ;;  %v11437_v8 = vsub.f32 %v11360_v18, %v8210_v41  ;;  %v11446_v21 = vsub.f32 %v8177_v58, %v8210_v41  ;;  %v11450_v58 = vld [vmem:[#allocation22_spill] sm:$0xff] }
 0x332   :  { %v8685_v17 = vmul.f32 %v8215_v30, %v11435_v60  ;;  %v8703_v5 = vmul.f32 %v8215_v30, %v11440_v14  ;;  %v11442_v60 = vld [vmem:[#allocation11_spill] sm:$0xff] }
 0x333   :  { %v8673_v62 = vmul.f32 %v8215_v30, %v11433_v59  ;;  %v8691_v23 = vmul.f32 %v8215_v30, %v11437_v8  ;;  %v11439_v59 = vsub.f32 %v11361_v37, %v8210_v41  ;;  %v11444_v8 = vsub.f32 %v11363_v39, %v8210_v41 }
 0x334   :  { %11436 = vst [vmem:[#allocation18_spill] sm:$0xff] %v8685_v17  ;;  %11441 = vst [vmem:[#allocation24_spill] sm:$0xff] %v8703_v5  ;;  %v11443_v17 = vsub.f32 %v11442_v60, %v8210_v41  ;;  %v11445_v37 = vsub.f32 %v11364_v7, %v8210_v41  ;;  %v8723_v14 = vmul.f32 %v8215_v30, %v11446_v21  ;;  %v11447_v60 = vld [vmem:[#allocation13_spill] sm:$0xff] }
 0x335   :  { %11438 = vst [vmem:[#allocation2_spill] sm:$0xff] %v8691_v23  ;;  %v8697_v4 = vmul.f32 %v8215_v30, %v11439_v59  ;;  %v2357_v23 = vmul.f32 %v8215_v30, %v11444_v8  ;;  %v8731_v39 = vmul.f32 %v8373_v63, %v8353_v22  ;;  %v8735_v7 = vmul.f32 %v8373_v63, %v8359_v20  ;;  %v11449_v8 = vld [vmem:[#allocation6_spill] sm:$0xff] }
 0x336   :  { %v2329_v18 = vmul.f32 %v8215_v30, %v11443_v17  ;;  %v8717_v59 = vmul.f32 %v8215_v30, %v11445_v37  ;;  %v11448_v17 = vsub.f32 %v11447_v60, %v8210_v41  ;;  %v8739_v37 = vmul.f32 %v8373_v63, %v11449_v8  ;;  %v11454_v8 = vld [vmem:[#allocation14_spill] sm:$0xff] }
 0x337   :  { %v8743_v21 = vmul.f32 %v8373_v63, %v11450_v58  ;;  %v8747_v41 = vmul.f32 %v8373_v63, %v8384_v35  ;;  %v8755_v22 = vmul.f32 %v8373_v63, %v8396_v34  ;;  %v8759_v20 = vmul.f32 %v8373_v63, %v8402_v33 }
 0x338   :  { %v2330_v5 = vmul.f32 %v8215_v30, %v11448_v17  ;;  %v8751_v30 = vmul.f32 %v8373_v63, %v8390_v36  ;;  %v8763_v60 = vmul.f32 %v8373_v63, %v8410_v43  ;;  %v8767_v35 = vmul.f32 %v8373_v63, %v8416_v13  ;;  %v11455_v58 = vld [vmem:[#allocation3_spill] sm:$0xff] }
 0x339   :  { %v8771_v36 = vmul.f32 %v8373_v63, %v8422_v10  ;;  %v8775_v34 = vmul.f32 %v8373_v63, %v8428_v49  ;;  %v8779_v33 = vmul.f32 %v8373_v63, %v8434_v24  ;;  %v8783_v43 = vmul.f32 %v8373_v63, %v8440_v56 }
 0x33a   :  { %v8787_v13 = vmul.f32 %v8373_v63, %v8446_v31  ;;  %v8791_v10 = vmul.f32 %v8373_v63, %v8455_v55  ;;  %v8795_v49 = vmul.f32 %v8373_v63, %v8461_v53  ;;  %v8799_v24 = vmul.f32 %v8373_v63, %v8467_v44 }
 0x33b   :  { %v8803_v56 = vmul.f32 %v8373_v63, %v8473_v52  ;;  %v8807_v31 = vmul.f32 %v8373_v63, %v8479_v29  ;;  %v8811_v55 = vmul.f32 %v8373_v63, %v8485_v3  ;;  %v8815_v53 = vmul.f32 %v8373_v63, %v8491_v61 }
 0x33c   :  { %v8819_v44 = vmul.f32 %v8373_v63, %v8497_v27  ;;  %v8823_v52 = vmul.f32 %v8373_v63, %v8503_v50  ;;  %v8827_v29 = vmul.f32 %v8373_v63, %v8509_v47  ;;  %v8831_v3 = vmul.f32 %v8373_v63, %v8515_v19 }
 0x33d   :  { %v8835_v61 = vmul.f32 %v8373_v63, %v8521_v38  ;;  %v8839_v27 = vmul.f32 %v8373_v63, %v8527_v0  ;;  %v8842_v17 = vmul.f32 %v8373_v63, %v2327_v26  ;;  %v8845_v50 = vmul.f32 %v8373_v63, %v2328_v46 }
 0x33e   :  { %v8848_v47 = vmul.f32 %v8373_v63, %v2329_v18  ;;  %v8851_v19 = vmul.f32 %v8373_v63, %v2330_v5  ;;  %v8855_v38 = vmul.f32 %v8373_v63, %v8553_v32  ;;  %v8859_v0 = vmul.f32 %v8373_v63, %v8559_v42  ;;  %v11453_v18 = vld [vmem:[#allocation15_spill] sm:$0xff] }
 0x33f   :  { %v8863_v26 = vmul.f32 %v8373_v63, %v8565_v2  ;;  %v8867_v46 = vmul.f32 %v8373_v63, %v8571_v25  ;;  %v8871_v5 = vmul.f32 %v8373_v63, %v8577_v57  ;;  %v8875_v32 = vmul.f32 %v8373_v63, %v8583_v28 }
 0x340   :  { %11451 = vst [vmem:[#allocation4_spill] sm:$0xff] %v8848_v47  ;;  %11452 = vst [vmem:[#allocation23_spill] sm:$0xff] %v8851_v19  ;;  %v8879_v42 = vmul.f32 %v8373_v63, %v8589_v45  ;;  %v8883_v2 = vmul.f32 %v8373_v63, %v8595_v54  ;;  %v8887_v25 = vmul.f32 %v8373_v63, %v8601_v11  ;;  %v11459_v19 = vld [vmem:[#allocation18_spill] sm:$0xff] }
 0x341   :  { %v8891_v57 = vmul.f32 %v8373_v63, %v8607_v40  ;;  %v8895_v28 = vmul.f32 %v8373_v63, %v8613_v48  ;;  %v8899_v45 = vmul.f32 %v8373_v63, %v8619_v12  ;;  %v8903_v54 = vmul.f32 %v8373_v63, %v8625_v15  ;;  %v11461_v47 = vld [vmem:[#allocation2_spill] sm:$0xff] }
 0x342   :  { %v8907_v11 = vmul.f32 %v8373_v63, %v8631_v1  ;;  %v8911_v40 = vmul.f32 %v8373_v63, %v11453_v18  ;;  %v8915_v48 = vmul.f32 %v8373_v63, %v11454_v8  ;;  %v8919_v12 = vmul.f32 %v8373_v63, %v11455_v58 }
 0x343   :  { %v8923_v15 = vmul.f32 %v8373_v63, %v8655_v16  ;;  %v8927_v1 = vmul.f32 %v8373_v63, %v8661_v51  ;;  %v8931_v18 = vmul.f32 %v8373_v63, %v8667_v9  ;;  %v8935_v8 = vmul.f32 %v8373_v63, %v8673_v62 }
 0x344   :  { %v8939_v58 = vmul.f32 %v8373_v63, %v8679_v6  ;;  %v8943_v16 = vmul.f32 %v8373_v63, %v11459_v19  ;;  %v8947_v51 = vmul.f32 %v8373_v63, %v11461_v47  ;;  %v8951_v9 = vmul.f32 %v8373_v63, %v8697_v4  ;;  %v11465_v6 = vld [vmem:[#allocation10_spill] sm:$0xff]  ;;  %v11466_v19 = vld [vmem:[#allocation17_spill] sm:$0xff] }
 0x345   :  { %11456 = vst [vmem:[#allocation26_spill] sm:$0xff] %v8931_v18  ;;  %11457 = vst [vmem:[#allocation25_spill] sm:$0xff] %v8935_v8  ;;  %v11464_v18 = vld [vmem:[#allocation24_spill] sm:$0xff]  ;;  %v8958_v8 = vmul.f32 %v8373_v63, %v2357_v23  ;;  %v2425_v47 = vmul.f32 %v8373_v63, %v8717_v59  ;;  %v2426_v4 = vmul.f32 %v8373_v63, %v8723_v14 }
 0x346   :  { %11458 = vst [vmem:[#allocation7_spill] sm:$0xff] %v8939_v58  ;;  %11460 = vst [vmem:[#allocation16_spill] sm:$0xff] %v8943_v16  ;;  %v8955_v62 = vmul.f32 %v8373_v63, %v11464_v18  ;;  %v2391_v58 = vmul.f32 %v8373_v63, %v11465_v6  ;;  %v2392_v16 = vmul.f32 %v8373_v63, %v11466_v19 }
 0x347   :  { %11462 = vst [vmem:[#allocation5_spill] sm:$0xff] %v8947_v51  ;;  %11463 = vst [vmem:[#allocation9_spill] sm:$0xff] %v8951_v9  ;;  %v11467_v9 = vld [vmem:[#allocation8_spill] sm:$0xff] }
 0x348   :  { %v8970_v51 = vadd.f32 %v11467_v9, %v8731_v39  ;;  %v8974_v23 = vadd.f32 %v11467_v9, %v8735_v7  ;;  %v8978_v18 = vadd.f32 %v11467_v9, %v8739_v37  ;;  %v8982_v6 = vadd.f32 %v11467_v9, %v8743_v21 }
 0x349   :  { %v8986_v59 = vadd.f32 %v11467_v9, %v8747_v41  ;;  %v8990_v63 = vadd.f32 %v11467_v9, %v8751_v30  ;;  %v8994_v14 = vadd.f32 %v11467_v9, %v8755_v22  ;;  %v8998_v39 = vadd.f32 %v11467_v9, %v8759_v20 }
 0x34a   :  { %v9002_v7 = vadd.f32 %v11467_v9, %v8763_v60  ;;  %v9006_v37 = vadd.f32 %v11467_v9, %v8767_v35  ;;  %v9010_v21 = vadd.f32 %v11467_v9, %v8771_v36  ;;  %v9014_v41 = vadd.f32 %v11467_v9, %v8775_v34 }
 0x34b   :  { %v9018_v30 = vadd.f32 %v11467_v9, %v8779_v33  ;;  %v9022_v22 = vadd.f32 %v11467_v9, %v8783_v43  ;;  %v9026_v20 = vadd.f32 %v11467_v9, %v8787_v13  ;;  %v9030_v60 = vadd.f32 %v11467_v9, %v8791_v10 }
 0x34c   :  { %v9034_v35 = vadd.f32 %v11467_v9, %v8795_v49  ;;  %v9038_v36 = vadd.f32 %v11467_v9, %v8799_v24  ;;  %v9042_v34 = vadd.f32 %v11467_v9, %v8803_v56  ;;  %v9046_v33 = vadd.f32 %v11467_v9, %v8807_v31 }
 0x34d   :  { %v9050_v43 = vadd.f32 %v11467_v9, %v8811_v55  ;;  %v9054_v13 = vadd.f32 %v11467_v9, %v8815_v53  ;;  %v9058_v10 = vadd.f32 %v11467_v9, %v8819_v44  ;;  %v9062_v49 = vadd.f32 %v11467_v9, %v8823_v52  ;;  %v11474_v19 = vld [vmem:[#allocation7_spill] sm:$0xff] }
 0x34e   :  { %v9066_v24 = vadd.f32 %v11467_v9, %v8827_v29  ;;  %v9070_v56 = vadd.f32 %v11467_v9, %v8831_v3  ;;  %v9074_v31 = vadd.f32 %v11467_v9, %v8835_v61  ;;  %v9078_v55 = vadd.f32 %v11467_v9, %v8839_v27 }
 0x34f   :  { %v9081_v53 = vadd.f32 %v11467_v9, %v2391_v58  ;;  %v9084_v44 = vadd.f32 %v11467_v9, %v2392_v16  ;;  %v9088_v52 = vadd.f32 %v11467_v9, %v8842_v17  ;;  %v9092_v29 = vadd.f32 %v11467_v9, %v8845_v50  ;;  %v11471_v58 = vld [vmem:[#allocation26_spill] sm:$0xff]  ;;  %v11472_v16 = vld [vmem:[#allocation25_spill] sm:$0xff] }
 0x350   :  { %v9096_v3 = vadd.f32 %v11467_v9, %v8855_v38  ;;  %v9100_v61 = vadd.f32 %v11467_v9, %v8859_v0  ;;  %v9104_v27 = vadd.f32 %v11467_v9, %v8863_v26  ;;  %v9108_v17 = vadd.f32 %v11467_v9, %v8867_v46 }
 0x351   :  { %v9112_v50 = vadd.f32 %v11467_v9, %v8871_v5  ;;  %v9116_v38 = vadd.f32 %v11467_v9, %v8875_v32  ;;  %v9120_v0 = vadd.f32 %v11467_v9, %v8879_v42  ;;  %v9124_v26 = vadd.f32 %v11467_v9, %v8883_v2 }
 0x352   :  { %v9128_v46 = vadd.f32 %v11467_v9, %v8887_v25  ;;  %v9132_v5 = vadd.f32 %v11467_v9, %v8891_v57  ;;  %v9136_v32 = vadd.f32 %v11467_v9, %v8895_v28  ;;  %v9140_v42 = vadd.f32 %v11467_v9, %v8899_v45 }
 0x353   :  { %v9144_v2 = vadd.f32 %v11467_v9, %v8903_v54  ;;  %v9148_v25 = vadd.f32 %v11467_v9, %v8907_v11  ;;  %v9152_v57 = vadd.f32 %v11467_v9, %v8911_v40  ;;  %v9156_v28 = vadd.f32 %v11467_v9, %v8915_v48 }
 0x354   :  { %v9160_v45 = vadd.f32 %v11467_v9, %v8919_v12  ;;  %v9164_v54 = vadd.f32 %v11467_v9, %v8923_v15  ;;  %v9168_v11 = vadd.f32 %v11467_v9, %v8927_v1  ;;  %v9172_v40 = vadd.f32 %v11467_v9, %v11471_v58 }
 0x355   :  { %v9176_v48 = vadd.f32 %v11467_v9, %v11472_v16  ;;  %v9180_v12 = vadd.f32 %v11467_v9, %v11474_v19  ;;  %v9196_v16 = vadd.f32 %v11467_v9, %v8955_v62  ;;  %v9200_v19 = vadd.f32 %v11467_v9, %v8958_v8 }
 0x356   :  { %11468 = vst [vmem:[#allocation21_spill] sm:$0xff] %v9160_v45  ;;  %11469 = vst [vmem:[#allocation20_spill] sm:$0xff] %v9164_v54  ;;  %v11476_v45 = vld [vmem:[#allocation16_spill] sm:$0xff]  ;;  %v11478_v54 = vld [vmem:[#allocation5_spill] sm:$0xff]  ;;  %vm2500_vm3 = vcmp.gt.f32.partialorder %v8978_v18, 0.0  ;;  %vm2501_vm9 = vcmp.gt.f32.partialorder %v8982_v6, 0.0 }
 0x357   :  { %11470 = vst [vmem:[#allocation19_spill] sm:$0xff] %v9168_v11  ;;  %11473 = vst [vmem:[#allocation11_spill] sm:$0xff] %v9176_v48  ;;  %v9184_v15 = vadd.f32 %v11467_v9, %v11476_v45  ;;  %v9188_v1 = vadd.f32 %v11467_v9, %v11478_v54  ;;  %v11480_v11 = vld [vmem:[#allocation9_spill] sm:$0xff]  ;;  %v9206_v45 = vadd.f32 %v11467_v9, %v2426_v4  ;;  %v2564_v54 = vmul.f32 0.1, %v8978_v18 }
 0x358   :  { %11475 = vst [vmem:[#allocation13_spill] sm:$0xff] %v9180_v12  ;;  %v9192_v58 = vadd.f32 %v11467_v9, %v11480_v11  ;;  %11482 = vst [vmem:[#allocation14_spill] sm:$0xff] %v9196_v16  ;;  %v9203_v12 = vadd.f32 %v11467_v9, %v2425_v47  ;;  %v11486_v11 = vld [vmem:[#allocation4_spill] sm:$0xff]  ;;  %v2565_v16 = vmul.f32 0.1, %v8982_v6  ;;  %vm2498_vm10 = vcmp.gt.f32.partialorder %v8970_v51, 0.0 }
 0x359   :  { %11477 = vst [vmem:[#allocation6_spill] sm:$0xff] %v9184_v15  ;;  %11479 = vst [vmem:[#allocation22_spill] sm:$0xff] %v9188_v1  ;;  %v9213_v62 = vadd.f32 %v11467_v9, %v11486_v11  ;;  %vm2499_vm11 = vcmp.gt.f32.partialorder %v8974_v23, 0.0  ;;  %v2628_v8 = vsel %vm2500_vm3, %v8978_v18, %v2564_v54  ;;  %v2562_v47 = vmul.f32 0.1, %v8970_v51 }
 0x35a   :  { %11481 = vst [vmem:[#allocation15_spill] sm:$0xff] %v9192_v58  ;;  %11483 = vst [vmem:[#allocation3_spill] sm:$0xff] %v9200_v19  ;;  %v2563_v4 = vmul.f32 0.1, %v8974_v23  ;;  %vm2502_vm12 = vcmp.gt.f32.partialorder %v8986_v59, 0.0  ;;  %vm2503_vm13 = vcmp.gt.f32.partialorder %v8990_v63, 0.0 }
 0x35b   :  { %11484 = vst [vmem:[#allocation18_spill] sm:$0xff] %v9203_v12  ;;  %11485 = vst [vmem:[#allocation2_spill] sm:$0xff] %v9206_v45  ;;  %v2629_v45 = vsel %vm2501_vm9, %v8982_v6, %v2565_v16  ;;  %v2566_v11 = vmul.f32 0.1, %v8986_v59  ;;  %v2567_v12 = vmul.f32 0.1, %v8990_v63  ;;  %v2626_v58 = vsel %vm2498_vm10, %v8970_v51, %v2562_v47 }
 0x35c   :  { %v2691_v19 = vpack.c.bf16 %v2629_v45, %v2628_v8  ;;  %v2627_v1 = vsel %vm2499_vm11, %v8974_v23, %v2563_v4  ;;  %vm2504_vm14 = vcmp.gt.f32.partialorder %v8994_v14, 0.0  ;;  %vm2505_vm15 = vcmp.gt.f32.partialorder %v8998_v39, 0.0 }
 0x35d   :  { %v2690_v18 = vpack.c.bf16 %v2627_v1, %v2626_v58  ;;  %v2630_v54 = vsel %vm2502_vm12, %v8986_v59, %v2566_v11  ;;  %v2631_v15 = vsel %vm2503_vm13, %v8990_v63, %v2567_v12  ;;  %v2568_v16 = vmul.f32 0.1, %v8994_v14  ;;  %v11487_v59 = vld [vmem:[#allocation23_spill] sm:$0xff] }
 0x35e   :  { %v2692_v6 = vpack.c.bf16 %v2631_v15, %v2630_v54  ;;  %v2569_v48 = vmul.f32 0.1, %v8998_v39  ;;  %vm2506_vm0 = vcmp.gt.f32.partialorder %v9002_v7, 0.0  ;;  %vm2507_vm1 = vcmp.gt.f32.partialorder %v9006_v37, 0.0 }
 0x35f   :  { %5456 = vmatprep.mubr.msk.bf16.mxu1 %vm1891_vm8, %v2690_v18  ;;  %v2570_v51 = vmul.f32 0.1, %v9002_v7  ;;  %v2571_v23 = vmul.f32 0.1, %v9006_v37  ;;  %vm2508_vm2 = vcmp.gt.f32.partialorder %v9010_v21, 0.0  ;;  %v9242_v63 = vadd.f32 %v11467_v9, %v11487_v59 }
 0x360   :  { %v2587_v12 = vmul.f32 0.1, %v9070_v56  ;;  %5457 = vmatmul.mubr.msk.bf16.vlgmr.msra.gmra.mxu1 %vm1891_vm8, %v2691_v19  ;;  %vm2509_vm4 = vcmp.gt.f32.partialorder %v9014_v41, 0.0  ;;  %v2572_v15 = vmul.f32 0.1, %v9010_v21  ;;  %v2632_v1 = vsel %vm2504_vm14, %v8994_v14, %v2568_v16 }
 0x361   :  { %5460 = vmatprep.mubr.msk.bf16.mxu1 %vm1891_vm8, %v2692_v6  ;;  %v2633_v58 = vsel %vm2505_vm15, %v8998_v39, %v2569_v48  ;;  %v2634_v9 = vsel %vm2506_vm0, %v9002_v7, %v2570_v51  ;;  %v2573_v45 = vmul.f32 0.1, %v9014_v41  ;;  %v2635_v19 = vsel %vm2507_vm1, %v9006_v37, %v2571_v23 }
 0x362   :  { %v2636_v8 = vsel %vm2508_vm2, %v9010_v21, %v2572_v15  ;;  %vm2510_vm5 = vcmp.gt.f32.partialorder %v9018_v30, 0.0  ;;  %vm2511_vm6 = vcmp.gt.f32.partialorder %v9022_v22, 0.0  ;;  %v2574_v14 = vmul.f32 0.1, %v9018_v30 }
 0x363   :  { %v2637_v47 = vsel %vm2509_vm4, %v9014_v41, %v2573_v45  ;;  %v2575_v4 = vmul.f32 0.1, %v9022_v22  ;;  %vm2512_vm7 = vcmp.gt.f32.partialorder %v9026_v20, 0.0  ;;  %v2693_v39 = vpack.c.bf16 %v2633_v58, %v2632_v1 }
 0x364   :  { %vm2513_vm3 = vcmp.gt.f32.partialorder %v9030_v60, 0.0  ;;  %v2576_v7 = vmul.f32 0.1, %v9026_v20  ;;  %v2577_v37 = vmul.f32 0.1, %v9030_v60  ;;  %v2694_v21 = vpack.c.bf16 %v2635_v19, %v2634_v9 }
 0x365   :  { %v2695_v48 = vpack.c.bf16 %v2637_v47, %v2636_v8  ;;  %v2638_v11 = vsel %vm2510_vm5, %v9018_v30, %v2574_v14  ;;  %vm2514_vm9 = vcmp.gt.f32.partialorder %v9034_v35, 0.0  ;;  %v2639_v41 = vsel %vm2511_vm6, %v9022_v22, %v2575_v4 }
 0x366   :  { %v9272_v18 = vsel %vm2512_vm7, %v9026_v20, %v2576_v7  ;;  %vm2515_vm10 = vcmp.gt.f32.partialorder %v9038_v36, 0.0  ;;  %v2578_v54 = vmul.f32 0.1, %v9034_v35  ;;  %v9277_v6 = vsel %vm2513_vm3, %v9030_v60, %v2577_v37 }
 0x367   :  { %v2579_v16 = vmul.f32 0.1, %v9038_v36  ;;  %vm2516_vm11 = vcmp.gt.f32.partialorder %v9042_v34, 0.0  ;;  %vm2517_vm12 = vcmp.gt.f32.partialorder %v9046_v33, 0.0  ;;  %v2580_v22 = vmul.f32 0.1, %v9042_v34 }
 0x368   :  { %5461 = vmatmul.mubr.msk.bf16.gmra.mxu1 %vm1891_vm8, %v2693_v39  ;;  %v9284_v30 = vsel %vm2514_vm9, %v9034_v35, %v2578_v54  ;;  %v2581_v20 = vmul.f32 0.1, %v9046_v33  ;;  %vm2518_vm13 = vcmp.gt.f32.partialorder %v9050_v43, 0.0  ;;  %vm2519_vm14 = vcmp.gt.f32.partialorder %v9054_v13, 0.0 }
 0x369   :  { %5464 = vmatprep.mubr.msk.bf16.mxu1 %vm1891_vm8, %v2694_v21  ;;  %v9291_v60 = vsel %vm2515_vm10, %v9038_v36, %v2579_v16  ;;  %v2582_v51 = vmul.f32 0.1, %v9050_v43  ;;  %v2583_v23 = vmul.f32 0.1, %v9054_v13  ;;  %v2696_v59 = vpack.c.bf16 %v2639_v41, %v2638_v11 }
 0x36a   :  { %v2697_v35 = vpack.c.bf16 %v9277_v6, %v9272_v18  ;;  %v9299_v15 = vsel %vm2516_vm11, %v9042_v34, %v2580_v22  ;;  %v9302_v1 = vsel %vm2517_vm12, %v9046_v33, %v2581_v20  ;;  %vm2520_vm15 = vcmp.gt.f32.partialorder %v9058_v10, 0.0 }
 0x36b   :  { %v9305_v58 = vsel %vm2518_vm13, %v9050_v43, %v2582_v51  ;;  %v9308_v36 = vsel %vm2519_vm14, %v9054_v13, %v2583_v23  ;;  %vm2521_vm0 = vcmp.gt.f32.partialorder %v9062_v49, 0.0  ;;  %v2698_v9 = vpack.c.bf16 %v9291_v60, %v9284_v30 }
 0x36c   :  { %v2584_v45 = vmul.f32 0.1, %v9058_v10  ;;  %v2585_v34 = vmul.f32 0.1, %v9062_v49  ;;  %vm2522_vm1 = vcmp.gt.f32.partialorder %v9066_v24, 0.0  ;;  %v2699_v33 = vpack.c.bf16 %v9302_v1, %v9299_v15 }
 0x36d   :  { %v2700_v43 = vpack.c.bf16 %v9308_v36, %v9305_v58  ;;  %vm2523_vm2 = vcmp.gt.f32.partialorder %v9070_v56, 0.0  ;;  %v2586_v13 = vmul.f32 0.1, %v9066_v24  ;;  %v2588_v14 = vmul.f32 0.1, %v9074_v31 }
 0x36e   :  { %v9324_v19 = vsel %vm2520_vm15, %v9058_v10, %v2584_v45  ;;  %v9327_v8 = vsel %vm2521_vm0, %v9062_v49, %v2585_v34  ;;  %v9330_v47 = vsel %vm2523_vm2, %v9070_v56, %v2587_v12  ;;  %vm2524_vm4 = vcmp.gt.f32.partialorder %v9074_v31, 0.0 }
 0x36f   :  { %v9334_v4 = vsel %vm2522_vm1, %v9066_v24, %v2586_v13  ;;  %vm2525_vm5 = vcmp.gt.f32.partialorder %v9078_v55, 0.0  ;;  %v2589_v39 = vmul.f32 0.1, %v9078_v55  ;;  %v2701_v10 = vpack.c.bf16 %v9327_v8, %v9324_v19  ;;  %v11495_v8 = vld [vmem:[#allocation15_spill] sm:$0xff] }
 0x370   :  { %5465 = vmatmul.mubr.msk.bf16.gmra.mxu1 %vm1891_vm8, %v2695_v48  ;;  %v2702_v49 = vpack.c.bf16 %v9330_v47, %v9334_v4  ;;  %vm2526_vm6 = vcmp.gt.f32.partialorder %v9081_v53, 0.0  ;;  %v2590_v56 = vmul.f32 0.1, %v9081_v53  ;;  %vm2527_vm7 = vcmp.gt.f32.partialorder %v9084_v44, 0.0 }
 0x371   :  { %5468 = vmatprep.mubr.msk.bf16.mxu1 %vm1891_vm8, %v2696_v59  ;;  %v2591_v24 = vmul.f32 0.1, %v9084_v44  ;;  %vm2528_vm3 = vcmp.gt.f32.partialorder %v9088_v52, 0.0  ;;  %vm2529_vm9 = vcmp.gt.f32.partialorder %v9092_v29, 0.0  ;;  %v9352_v12 = vsel %vm2524_vm4, %v9074_v31, %v2588_v14 }
 0x372   :  { %v9355_v7 = vsel %vm2525_vm5, %v9078_v55, %v2589_v39  ;;  %v2592_v37 = vmul.f32 0.1, %v9088_v52  ;;  %v2593_v21 = vmul.f32 0.1, %v9092_v29  ;;  %v9360_v48 = vsel %vm2526_vm6, %v9081_v53, %v2590_v56 }
 0x373   :  { %vm2530_vm10 = vcmp.gt.f32.partialorder %v9213_v62, 0.0  ;;  %vm2531_vm11 = vcmp.gt.f32.partialorder %v9242_v63, 0.0  ;;  %v2594_v11 = vmul.f32 0.1, %v9213_v62  ;;  %v9366_v41 = vsel %vm2527_vm7, %v9084_v44, %v2591_v24 }
 0x374   :  { %v9369_v31 = vsel %vm2528_vm3, %v9088_v52, %v2592_v37  ;;  %v9372_v55 = vsel %vm2529_vm9, %v9092_v29, %v2593_v21  ;;  %v2595_v18 = vmul.f32 0.1, %v9242_v63  ;;  %vm2532_vm12 = vcmp.gt.f32.partialorder %v9096_v3, 0.0  ;;  %v11489_v37 = vld [vmem:[#allocation20_spill] sm:$0xff] }
 0x375   :  { %v2705_v53 = vpack.c.bf16 %v9372_v55, %v9369_v31  ;;  %v9378_v54 = vsel %vm2530_vm10, %v9213_v62, %v2594_v11  ;;  %vm2533_vm13 = vcmp.gt.f32.partialorder %v9100_v61, 0.0  ;;  %v2596_v52 = vmul.f32 0.1, %v9096_v3  ;;  %v11490_v11 = vld [vmem:[#allocation19_spill] sm:$0xff] }
 0x376   :  { %v9383_v44 = vsel %vm2531_vm11, %v9242_v63, %v2595_v18  ;;  %v2597_v29 = vmul.f32 0.1, %v9100_v61  ;;  %vm2534_vm14 = vcmp.gt.f32.partialorder %v9104_v27, 0.0  ;;  %vm2535_vm15 = vcmp.gt.f32.partialorder %v9108_v17, 0.0 }
 0x377   :  { %v2706_v6 = vpack.c.bf16 %v9383_v44, %v9378_v54  ;;  %v2598_v62 = vmul.f32 0.1, %v9104_v27  ;;  %v2599_v16 = vmul.f32 0.1, %v9108_v17  ;;  %v9395_v63 = vsel %vm2532_vm12, %v9096_v3, %v2596_v52 }
 0x378   :  { %5469 = vmatmul.mubr.msk.bf16.gmra.mxu1 %vm1891_vm8, %v2697_v35  ;;  %v9398_v30 = vsel %vm2533_vm13, %v9100_v61, %v2597_v29  ;;  %vm2536_vm0 = vcmp.gt.f32.partialorder %v9112_v50, 0.0  ;;  %vm2537_vm1 = vcmp.gt.f32.partialorder %v9116_v38, 0.0  ;;  %v2600_v3 = vmul.f32 0.1, %v9112_v50 }
 0x379   :  { %5472 = vmatprep.mubr.msk.bf16.mxu1 %vm1891_vm8, %v2698_v9  ;;  %v2707_v22 = vpack.c.bf16 %v9398_v30, %v9395_v63  ;;  %v9406_v20 = vsel %vm2534_vm14, %v9104_v27, %v2598_v62  ;;  %v9409_v60 = vsel %vm2535_vm15, %v9108_v17, %v2599_v16  ;;  %v2601_v51 = vmul.f32 0.1, %v9116_v38  ;;  %v11491_v62 = vld [vmem:[#allocation11_spill] sm:$0xff]  ;;  %v11492_v16 = vld [vmem:[#allocation13_spill] sm:$0xff] }
 0x37a   :  { %v2708_v61 = vpack.c.bf16 %v9409_v60, %v9406_v20  ;;  %vm2538_vm2 = vcmp.gt.f32.partialorder %v9120_v0, 0.0  ;;  %vm2539_vm4 = vcmp.gt.f32.partialorder %v9124_v26, 0.0  ;;  %v9418_v23 = vsel %vm2536_vm0, %v9112_v50, %v2600_v3 }
 0x37b   :  { %v2602_v27 = vmul.f32 0.1, %v9120_v0  ;;  %v2603_v59 = vmul.f32 0.1, %v9124_v26  ;;  %vm2540_vm5 = vcmp.gt.f32.partialorder %v9128_v46, 0.0  ;;  %v9424_v17 = vsel %vm2537_vm1, %v9116_v38, %v2601_v51 }
 0x37c   :  { %vm2541_vm6 = vcmp.gt.f32.partialorder %v9132_v5, 0.0  ;;  %v2604_v35 = vmul.f32 0.1, %v9128_v46  ;;  %v2605_v9 = vmul.f32 0.1, %v9132_v5  ;;  %v2709_v45 = vpack.c.bf16 %v9424_v17, %v9418_v23 }
 0x37d   :  { %v9432_v50 = vsel %vm2538_vm2, %v9120_v0, %v2602_v27  ;;  %v9435_v34 = vsel %vm2539_vm4, %v9124_v26, %v2603_v59  ;;  %vm2542_vm7 = vcmp.gt.f32.partialorder %v9136_v32, 0.0  ;;  %vm2543_vm3 = vcmp.gt.f32.partialorder %v9140_v42, 0.0 }
 0x37e   :  { %v2710_v38 = vpack.c.bf16 %v9435_v34, %v9432_v50  ;;  %v9441_v13 = vsel %vm2540_vm5, %v9128_v46, %v2604_v35  ;;  %v9444_v14 = vsel %vm2541_vm6, %v9132_v5, %v2605_v9  ;;  %v2606_v39 = vmul.f32 0.1, %v9136_v32 }
 0x37f   :  { %v2711_v0 = vpack.c.bf16 %v9444_v14, %v9441_v13  ;;  %v2607_v26 = vmul.f32 0.1, %v9140_v42  ;;  %vm2544_vm9 = vcmp.gt.f32.partialorder %v9144_v2, 0.0  ;;  %vm2545_vm10 = vcmp.gt.f32.partialorder %v9148_v25, 0.0 }
 0x380   :  { %5473 = vmatmul.mubr.msk.bf16.gmra.mxu1 %vm1891_vm8, %v2699_v33  ;;  %v2608_v46 = vmul.f32 0.1, %v9144_v2  ;;  %v2609_v5 = vmul.f32 0.1, %v9148_v25  ;;  %vm2546_vm11 = vcmp.gt.f32.partialorder %v9152_v57, 0.0  ;;  %v9465_v56 = vsel %vm2542_vm7, %v9136_v32, %v2606_v39  ;;  %v11493_v39 = vld [vmem:[#allocation6_spill] sm:$0xff] }
 0x381   :  { %5476 = vmatprep.mubr.msk.bf16.mxu1 %vm1891_vm8, %v2700_v43  ;;  %v9468_v15 = vsel %vm2543_vm3, %v9140_v42, %v2607_v26  ;;  %vm2547_vm12 = vcmp.gt.f32.partialorder %v9156_v28, 0.0  ;;  %v2610_v1 = vmul.f32 0.1, %v9152_v57  ;;  %v2611_v36 = vmul.f32 0.1, %v9156_v28  ;;  %v11488_v43 = vld [vmem:[#allocation21_spill] sm:$0xff] }
 0x382   :  { %v2712_v33 = vpack.c.bf16 %v9468_v15, %v9465_v56  ;;  %v9475_v24 = vsel %vm2544_vm9, %v9144_v2, %v2608_v46  ;;  %v9478_v58 = vsel %vm2545_vm10, %v9148_v25, %v2609_v5  ;;  %vm2548_vm13 = vcmp.gt.f32.partialorder %v11488_v43, 0.0  ;;  %v11494_v26 = vld [vmem:[#allocation22_spill] sm:$0xff] }
 0x383   :  { %v2713_v32 = vpack.c.bf16 %v9478_v58, %v9475_v24  ;;  %v9484_v42 = vsel %vm2546_vm11, %v9152_v57, %v2610_v1  ;;  %vm2549_vm14 = vcmp.gt.f32.partialorder %v11489_v37, 0.0  ;;  %v9489_v21 = vsel %vm2547_vm12, %v9156_v28, %v2611_v36  ;;  %v11496_v5 = vld [vmem:[#allocation14_spill] sm:$0xff] }
 0x384   :  { %v2612_v2 = vmul.f32 0.1, %v11488_v43  ;;  %v2613_v25 = vmul.f32 0.1, %v11489_v37  ;;  %vm2550_vm15 = vcmp.gt.f32.partialorder %v11490_v11, 0.0  ;;  %v2714_v18 = vpack.c.bf16 %v9489_v21, %v9484_v42 }
 0x385   :  { %vm2551_vm0 = vcmp.gt.f32.partialorder %v9172_v40, 0.0  ;;  %v2614_v57 = vmul.f32 0.1, %v11490_v11  ;;  %v2615_v52 = vmul.f32 0.1, %v9172_v40  ;;  %vm2552_vm1 = vcmp.gt.f32.partialorder %v11491_v62, 0.0 }
 0x386   :  { %v9500_v29 = vsel %vm2548_vm13, %v11488_v43, %v2612_v2  ;;  %v9503_v28 = vsel %vm2549_vm14, %v11489_v37, %v2613_v25  ;;  %vm2553_vm2 = vcmp.gt.f32.partialorder %v11492_v16, 0.0  ;;  %v2616_v59 = vmul.f32 0.1, %v11491_v62 }
 0x387   :  { %v2715_v3 = vpack.c.bf16 %v9503_v28, %v9500_v29  ;;  %v2678_v51 = vsel %vm2550_vm15, %v11490_v11, %v2614_v57  ;;  %v2679_v27 = vsel %vm2551_vm0, %v9172_v40, %v2615_v52  ;;  %v2617_v9 = vmul.f32 0.1, %v11492_v16  ;;  %v11498_v11 = vld [vmem:[#allocation12_spill] sm:$0xff]  ;;  %v11499_v28 = vld [vmem:[#allocation18_spill] sm:$0xff] }
 0x388   :  { %5477 = vmatmul.mubr.msk.bf16.gmra.mxu1 %vm1891_vm8, %v2701_v10  ;;  %v2716_v35 = vpack.c.bf16 %v2679_v27, %v2678_v51  ;;  %vm2554_vm4 = vcmp.gt.f32.partialorder %v11493_v39, 0.0  ;;  %vm2555_vm5 = vcmp.gt.f32.partialorder %v11494_v26, 0.0  ;;  %v2680_v40 = vsel %vm2552_vm1, %v11491_v62, %v2616_v59 }
 0x389   :  { %5480 = vmatprep.mubr.msk.bf16.mxu1 %vm1891_vm8, %v2702_v49  ;;  %v2618_v46 = vmul.f32 0.1, %v11493_v39  ;;  %v2619_v19 = vmul.f32 0.1, %v11494_v26  ;;  %vm2556_vm6 = vcmp.gt.f32.partialorder %v11495_v8, 0.0  ;;  %v2681_v10 = vsel %vm2553_vm2, %v11492_v16, %v2617_v9  ;;  %v11497_v49 = vld [vmem:[#allocation3_spill] sm:$0xff] }
 0x38a   :  { %vm2557_vm7 = vcmp.gt.f32.partialorder %v11496_v5, 0.0  ;;  %v2620_v1 = vmul.f32 0.1, %v11495_v8  ;;  %v2621_v36 = vmul.f32 0.1, %v11496_v5  ;;  %v2717_v43 = vpack.c.bf16 %v2681_v10, %v2680_v40  ;;  %v11500_v16 = vld [vmem:[#allocation2_spill] sm:$0xff] }
 0x38b   :  { %v2682_v47 = vsel %vm2554_vm4, %v11493_v39, %v2618_v46  ;;  %v2683_v4 = vsel %vm2555_vm5, %v11494_v26, %v2619_v19  ;;  %vm2558_vm3 = vcmp.gt.f32.partialorder %v11497_v49, 0.0  ;;  %vm2559_vm9 = vcmp.gt.f32.partialorder %v11498_v11, 0.0 }
 0x38c   :  { %v2718_v37 = vpack.c.bf16 %v2683_v4, %v2682_v47  ;;  %v2684_v2 = vsel %vm2556_vm6, %v11495_v8, %v2620_v1  ;;  %v2685_v25 = vsel %vm2557_vm7, %v11496_v5, %v2621_v36  ;;  %v2622_v52 = vmul.f32 0.1, %v11497_v49 }
 0x38d   :  { %v2719_v57 = vpack.c.bf16 %v2685_v25, %v2684_v2  ;;  %v2623_v29 = vmul.f32 0.1, %v11498_v11  ;;  %vm2560_vm10 = vcmp.gt.f32.partialorder %v11499_v28, 0.0  ;;  %v2703_v62 = vpack.c.bf16 %v9355_v7, %v9352_v12 }
 0x38e   :  { %vm2561_vm11 = vcmp.gt.f32.partialorder %v11500_v16, 0.0  ;;  %v2624_v51 = vmul.f32 0.1, %v11499_v28  ;;  %v2625_v27 = vmul.f32 0.1, %v11500_v16  ;;  %v2704_v59 = vpack.c.bf16 %v9366_v41, %v9360_v48 }
 0x38f   :  { %v2686_v9 = vsel %vm2558_vm3, %v11497_v49, %v2622_v52  ;;  %v2687_v39 = vsel %vm2559_vm9, %v11498_v11, %v2623_v29  ;;  %v3122_v48 = vlaneseq }
 0x390   :  { %5481 = vmatmul.mubr.msk.bf16.gmra.mxu1 %vm1891_vm8, %v2703_v62  ;;  %v2720_v26 = vpack.c.bf16 %v2687_v39, %v2686_v9  ;;  %v2688_v40 = vsel %vm2560_vm10, %v11499_v28, %v2624_v51  ;;  %v2689_v12 = vsel %vm2561_vm11, %v11500_v16, %v2625_v27 }
 0x391   :  { %5484 = vmatprep.mubr.msk.bf16.mxu1 %vm1891_vm8, %v2704_v59  ;;  %v2721_v7 = vpack.c.bf16 %v2689_v12, %v2688_v40  ;;  %v9577_v41 = vshrl.u32 %v3122_v48, 7 }
 0x393   :  { %11501 = vst [vmem:[#allocation24_spill] sm:$0xff] %v9577_v41  ;;  %v3125_v31 = vadd.s32 16, %v9577_v41  ;;  %v3187_v30 = vcvt.s32.f32 %v9577_v41  ;;  %v3126_v60 = vadd.s32 24, %v9577_v41  ;;  %v3124_v17 = vadd.s32 8, %v9577_v41 }
 0x394   :  { %v3129_v34 = vadd.s32 48, %v9577_v41  ;;  %v3128_v19 = vadd.s32 40, %v9577_v41  ;;  %v3133_v29 = vadd.s32 80, %v9577_v41 }
 0x395   :  { %v3189_v55 = vcvt.s32.f32 %v3125_v31  ;;  %v3251_v20 = vadd.f32 0.5, %v3187_v30  ;;  %v3190_v23 = vcvt.s32.f32 %v3126_v60  ;;  %v3188_v13 = vcvt.s32.f32 %v3124_v17  ;;  %v9629_v31 = vld [vmem:[%s11005_s9 + $0x2] ss:$0 sm:$0xff] }
 0x396   :  { %v3192_v4 = vcvt.s32.f32 %v3128_v19 }
 0x397   :  { %v3252_v15 = vadd.f32 0.5, %v3188_v13 }
 0x398   :  { %5485 = vmatmul.mubr.msk.bf16.gmra.mxu1 %vm1891_vm8, %v2705_v53  ;;  %v3253_v53 = vadd.f32 0.5, %v3189_v55  ;;  %v3256_v52 = vadd.f32 0.5, %v3192_v4 }
 0x399   :  { %5488 = vmatprep.mubr.msk.bf16.mxu1 %vm1891_vm8, %v2706_v6  ;;  %v3317_v21 = vmul.f32 0.00390625, %v3252_v15 }
 0x39a   :  { %v3318_v54 = vmul.f32 0.00390625, %v3253_v53  ;;  %v3321_v39 = vmul.f32 0.00390625, %v3256_v52  ;;  %v3132_v52 = vadd.s32 72, %v9577_v41 }
 0x39b   :  { %v3381_v10 = vfloor.f32 %v3317_v21 }
 0x39c   :  { %v3382_v44 = vfloor.f32 %v3318_v54  ;;  %v3385_v54 = vfloor.f32 %v3321_v39 }
 0x39e   :  { %v3446_v6 = vmul.f32 256.0, %v3382_v44  ;;  %v3197_v44 = vcvt.s32.f32 %v3133_v29 }
 0x3a0   :  { %5489 = vmatmul.mubr.msk.bf16.gmra.mxu1 %vm1891_vm8, %v2707_v22  ;;  %v9600_v63 = vsub.f32 %v3189_v55, %v3446_v6 }
 0x3a1   :  { %5492 = vmatprep.mubr.msk.bf16.mxu1 %vm1891_vm8, %v2708_v61  ;;  %v3316_v61 = vmul.f32 0.00390625, %v3251_v20 }
 0x3a2   :  { %v3574_v22 = vadd.f32 0.5, %v9600_v63 }
 0x3a3   :  { %v3380_v50 = vfloor.f32 %v3316_v61  ;;  %v3449_v61 = vmul.f32 256.0, %v3385_v54  ;;  %v3135_v54 = vadd.s32 96, %v9577_v41 }
 0x3a5   :  { %v3444_v14 = vmul.f32 256.0, %v3380_v50 }
 0x3a7   :  { %v3508_v58 = vsub.f32 %v3187_v30, %v3444_v14  ;;  %v9637_v14 = vsub.f32 %v3192_v4, %v3449_v61 }
 0x3a8   :  { %5493 = vmatmul.mubr.msk.bf16.gmra.mxu1 %vm1891_vm8, %v2709_v45  ;;  %v9608_v45 = vmul.f32 0.0625, %v3574_v22 }
 0x3a9   :  { %5496 = vmatprep.mubr.msk.bf16.mxu1 %vm1891_vm8, %v2710_v38  ;;  %v3254_v38 = vadd.f32 0.5, %v3190_v23  ;;  %v3577_v21 = vadd.f32 0.5, %v9637_v14 }
 0x3aa   :  { %v3703_v24 = vfloor.f32 %v9608_v45 }
 0x3ab   :  { %v3319_v56 = vmul.f32 0.00390625, %v3254_v38 }
 0x3ac   :  { %v3767_v36 = vmul.f32 16.0, %v3703_v24  ;;  %v9635_v17 = vmul.f32 %v9629_v31, %v3703_v24 }
 0x3ad   :  { %v3383_v42 = vfloor.f32 %v3319_v56 }
 0x3ae   :  { %v3831_v27 = vsub.f32 %v9600_v63, %v3767_v36 }
 0x3af   :  { %v3447_v8 = vmul.f32 256.0, %v3383_v42 }
 0x3b0   :  { %5497 = vmatmul.mubr.msk.bf16.gmra.mxu1 %vm1891_vm8, %v2711_v0  ;;  %v3193_v0 = vcvt.s32.f32 %v3129_v34 }
 0x3b1   :  { %5500 = vmatprep.mubr.msk.bf16.mxu1 %vm1891_vm8, %v2712_v33  ;;  %v3127_v33 = vadd.s32 32, %v9577_v41  ;;  %v9616_v49 = vsub.f32 %v3190_v23, %v3447_v8  ;;  %v3261_v23 = vadd.f32 0.5, %v3197_v44 }
 0x3b3   :  { %v3575_v28 = vadd.f32 0.5, %v9616_v49 }
 0x3b5   :  { %v3640_v40 = vmul.f32 0.0625, %v3575_v28 }
 0x3b7   :  { %v3704_v6 = vfloor.f32 %v3640_v40 }
 0x3b8   :  { %5501 = vmatmul.mubr.msk.bf16.gmra.mxu1 %vm1891_vm8, %v2713_v32  ;;  %v3257_v32 = vadd.f32 0.5, %v3193_v0 }
 0x3b9   :  { %5504 = vmatprep.mubr.msk.bf16.mxu1 %vm1891_vm8, %v2714_v18  ;;  %v3191_v18 = vcvt.s32.f32 %v3127_v33  ;;  %v3768_v45 = vmul.f32 16.0, %v3704_v6 }
 0x3ba   :  { %v3322_v46 = vmul.f32 0.00390625, %v3257_v32 }
 0x3bb   :  { %v3255_v5 = vadd.f32 0.5, %v3191_v18  ;;  %v3832_v32 = vsub.f32 %v9616_v49, %v3768_v45 }
 0x3bc   :  { %v3386_v47 = vfloor.f32 %v3322_v46 }
 0x3bd   :  { %v3320_v2 = vmul.f32 0.00390625, %v3255_v5  ;;  %v3131_v5 = vadd.s32 64, %v9577_v41 }
 0x3bf   :  { %v3384_v16 = vfloor.f32 %v3320_v2  ;;  %v3195_v2 = vcvt.s32.f32 %v3131_v5 }
 0x3c0   :  { %5505 = vmatmul.mubr.msk.bf16.gmra.mxu1 %vm1891_vm8, %v2715_v3  ;;  %v3130_v3 = vadd.s32 56, %v9577_v41 }
 0x3c1   :  { %5508 = vmatprep.mubr.msk.bf16.mxu1 %vm1891_vm8, %v2716_v35  ;;  %v3572_v35 = vadd.f32 0.5, %v3508_v58 }
 0x3c2   :  { %v3194_v1 = vcvt.s32.f32 %v3130_v3 }
 0x3c4   :  { %v3258_v25 = vadd.f32 0.5, %v3194_v1 }
 0x3c6   :  { %v3323_v51 = vmul.f32 0.00390625, %v3258_v25 }
 0x3c8   :  { %5509 = vmatmul.mubr.msk.bf16.gmra.mxu1 %vm1891_vm8, %v2717_v43  ;;  %v3637_v43 = vmul.f32 0.0625, %v3572_v35  ;;  %v3387_v48 = vfloor.f32 %v3323_v51 }
 0x3c9   :  { %5512 = vmatprep.mubr.msk.bf16.mxu1 %vm1891_vm8, %v2718_v37  ;;  %v3445_v37 = vmul.f32 256.0, %v3381_v10  ;;  %v3642_v10 = vmul.f32 0.0625, %v3577_v21 }
 0x3ca   :  { %v3701_v11 = vfloor.f32 %v3637_v43  ;;  %v3451_v22 = vmul.f32 256.0, %v3387_v48 }
 0x3cb   :  { %v3509_v62 = vsub.f32 %v3188_v13, %v3445_v37  ;;  %v3706_v37 = vfloor.f32 %v3642_v10 }
 0x3cc   :  { %v3765_v59 = vmul.f32 16.0, %v3701_v11  ;;  %v3515_v13 = vsub.f32 %v3194_v1, %v3451_v22  ;;  %v9643_v15 = vmul.f32 %v9629_v31, %v3701_v11 }
 0x3cd   :  { %v3573_v12 = vadd.f32 0.5, %v3509_v62  ;;  %v3770_v40 = vmul.f32 16.0, %v3706_v37 }
 0x3ce   :  { %v3829_v55 = vsub.f32 %v3508_v58, %v3765_v59  ;;  %v3579_v42 = vadd.f32 0.5, %v3515_v13  ;;  %v3259_v59 = vadd.f32 0.5, %v3195_v2 }
 0x3cf   :  { %v3638_v63 = vmul.f32 0.0625, %v3573_v12  ;;  %v3196_v12 = vcvt.s32.f32 %v3132_v52 }
 0x3d0   :  { %5513 = vmatmul.mubr.msk.bf16.gmra.mxu1 %vm1891_vm8, %v2719_v57  ;;  %v3450_v57 = vmul.f32 256.0, %v3386_v47  ;;  %v3644_v8 = vmul.f32 0.0625, %v3579_v42 }
 0x3d1   :  { %5516 = vmatprep.mubr.msk.bf16.mxu1 %vm1891_vm8, %v2720_v26  ;;  %v9624_v26 = vld [vmem:[%s11005_s9 + $0x1] ss:$0 sm:$0xff]  ;;  %v3702_v50 = vfloor.f32 %v3638_v63  ;;  %v3260_v63 = vadd.f32 0.5, %v3196_v12 }
 0x3d2   :  { %v3514_v9 = vsub.f32 %v3193_v0, %v3450_v57  ;;  %v9632_v20 = vmul.f32 %v9624_v26, %v3831_v27  ;;  %v3326_v0 = vmul.f32 0.00390625, %v3261_v23  ;;  %v9640_v56 = vmul.f32 %v9624_v26, %v3829_v55 }
 0x3d3   :  { %v3766_v33 = vmul.f32 16.0, %v3702_v50  ;;  %v9652_v1 = vmul.f32 %v9629_v31, %v3702_v50  ;;  %v9658_v4 = vmul.f32 %v9624_v26, %v3832_v32  ;;  %v3708_v49 = vfloor.f32 %v3644_v8 }
 0x3d4   :  { %v3578_v53 = vadd.f32 0.5, %v3514_v9  ;;  %v3390_v46 = vfloor.f32 %v3326_v0  ;;  %v3134_v57 = vadd.s32 88, %v9577_v41  ;;  %v3324_v55 = vmul.f32 0.00390625, %v3259_v59 }
 0x3d5   :  { %v3830_v3 = vsub.f32 %v3509_v62, %v3766_v33  ;;  %v9674_v51 = vmul.f32 %v9629_v31, %v3708_v49  ;;  %v3199_v23 = vcvt.s32.f32 %v3135_v54  ;;  %v3325_v45 = vmul.f32 0.00390625, %v3260_v63 }
 0x3d6   :  { %v3643_v60 = vmul.f32 0.0625, %v3578_v53  ;;  %v3454_v47 = vmul.f32 256.0, %v3390_v46  ;;  %v3834_v0 = vsub.f32 %v9637_v14, %v3770_v40 }
 0x3d7   :  { %v9661_v25 = vmul.f32 %v9624_v26, %v3830_v3  ;;  %v3389_v32 = vfloor.f32 %v3325_v45  ;;  %v3263_v42 = vadd.f32 0.5, %v3199_v23 }
 0x3d8   :  { %5517 = vmatmul.mubr.msk.bf16.gmra.mxu1 %vm1891_vm8, %v2721_v7  ;;  %v3448_v7 = vmul.f32 256.0, %v3384_v16  ;;  %v3707_v38 = vfloor.f32 %v3643_v60  ;;  %v9663_v11 = vsub.f32 %v3197_v44, %v3454_v47  ;;  %v3772_v16 = vmul.f32 16.0, %v3708_v49 }
 0x3d9   :  { %v3388_v60 = vfloor.f32 %v3324_v55  ;;  %v3453_v8 = vmul.f32 256.0, %v3389_v32  ;;  %v3328_v5 = vmul.f32 0.00390625, %v3263_v42  ;;  %v9692_v47 = vmul.f32 %v9624_v26, %v3834_v0 }
 0x3da   :  { %v3512_v30 = vsub.f32 %v3191_v18, %v3448_v7  ;;  %v3771_v24 = vmul.f32 16.0, %v3707_v38  ;;  %v9648_v18 = vmul.f32 %v9629_v31, %v3704_v6  ;;  %v9655_v36 = vmul.f32 %v9629_v31, %v3707_v38 }
 0x3db   :  { %v3582_v27 = vadd.f32 0.5, %v9663_v11  ;;  %v3836_v39 = vsub.f32 %v3515_v13, %v3772_v16  ;;  %v3137_v7 = vadd.s32 112, %v9577_v41  ;;  %v9683_v6 = vmul.f32 %v9629_v31, %v3706_v37 }
 0x3dc   :  { %v3576_v34 = vadd.f32 0.5, %v3512_v30  ;;  %v3835_v19 = vsub.f32 %v3514_v9, %v3771_v24  ;;  %v3198_v9 = vcvt.s32.f32 %v3134_v57  ;;  %v3136_v38 = vadd.s32 104, %v9577_v41 }
 0x3dd   :  { %v3647_v48 = vmul.f32 0.0625, %v3582_v27  ;;  %v9688_v13 = vmul.f32 %v9624_v26, %v3836_v39  ;;  %v3452_v33 = vmul.f32 256.0, %v3388_v60  ;;  %v3517_v57 = vsub.f32 %v3196_v12, %v3453_v8 }
 0x3de   :  { %v3641_v58 = vmul.f32 0.0625, %v3576_v34  ;;  %v9668_v29 = vmul.f32 %v9624_v26, %v3835_v19  ;;  %v3262_v53 = vadd.f32 0.5, %v3198_v9  ;;  %v3138_v34 = vadd.s32 120, %v9577_v41 }
 0x3df   :  { %v3711_v22 = vfloor.f32 %v3647_v48  ;;  %v3200_v19 = vcvt.s32.f32 %v3136_v38  ;;  %v3581_v40 = vadd.f32 0.5, %v3517_v57  ;;  %v9696_v60 = vadd.s32 144, %v9577_v41 }
 0x3e0   :  { %v3705_v35 = vfloor.f32 %v3641_v58  ;;  %v3327_v61 = vmul.f32 0.00390625, %v3262_v53  ;;  %v3202_v21 = vcvt.s32.f32 %v3138_v34  ;;  %vm4942_vm8 = vcmask 195584  }
 0x3e1   :  { %v3775_v3 = vmul.f32 16.0, %v3711_v22  ;;  %v3264_v14 = vadd.f32 0.5, %v3200_v19 }
 0x3e2   :  { %v3769_v43 = vmul.f32 16.0, %v3705_v35  ;;  %v9671_v62 = vmul.f32 %v9629_v31, %v3705_v35  ;;  %v3391_v58 = vfloor.f32 %v3327_v61  ;;  %v3516_v35 = vsub.f32 %v3195_v2, %v3452_v33 }
 0x3e3   :  { %v3839_v27 = vsub.f32 %v9663_v11, %v3775_v3  ;;  %v3329_v39 = vmul.f32 0.00390625, %v3264_v14 }
 0x3e4   :  { %v3833_v28 = vsub.f32 %v3512_v30, %v3769_v43  ;;  %v3201_v30 = vcvt.s32.f32 %v3137_v7  ;;  %v3455_v46 = vmul.f32 256.0, %v3391_v58  ;;  %v3266_v43 = vadd.f32 0.5, %v3202_v21 }
 0x3e5   :  { %v3580_v49 = vadd.f32 0.5, %v3516_v35  ;;  %v3393_v63 = vfloor.f32 %v3329_v39  ;;  %v9704_v32 = vmul.f32 %v9624_v26, %v3839_v27 }
 0x3e6   :  { %v9680_v44 = vmul.f32 %v9624_v26, %v3833_v28  ;;  %v3265_v50 = vadd.f32 0.5, %v3201_v30  ;;  %v3519_v37 = vsub.f32 %v3198_v9, %v3455_v46  ;;  %v3392_v28 = vfloor.f32 %v3328_v5 }
 0x3e7   :  { %v3331_v16 = vmul.f32 0.00390625, %v3266_v43  ;;  %v3645_v59 = vmul.f32 0.0625, %v3580_v49  ;;  %v3646_v9 = vmul.f32 0.0625, %v3581_v40  ;;  %v3457_v38 = vmul.f32 256.0, %v3393_v63 }
 0x3e8   :  { %v3330_v24 = vmul.f32 0.00390625, %v3265_v50  ;;  %v3583_v2 = vadd.f32 0.5, %v3519_v37  ;;  %v3456_v48 = vmul.f32 256.0, %v3392_v28  ;;  %v9699_v50 = vmul.f32 %v9629_v31, %v3711_v22 }
 0x3e9   :  { %v3395_v55 = vfloor.f32 %v3331_v16  ;;  %v3709_v53 = vfloor.f32 %v3645_v59  ;;  %v3710_v0 = vfloor.f32 %v3646_v9  ;;  %v9706_v42 = vsub.f32 %v3200_v19, %v3457_v38 }
 0x3ea   :  { %v3394_v10 = vfloor.f32 %v3330_v24  ;;  %v3648_v54 = vmul.f32 0.0625, %v3583_v2  ;;  %v3520_v61 = vsub.f32 %v3199_v23, %v3456_v48  ;;  %v3205_v23 = vcvt.s32.f32 %v9696_v60 }
 0x3eb   :  { %v3459_v45 = vmul.f32 256.0, %v3395_v55  ;;  %v3773_v11 = vmul.f32 16.0, %v3709_v53  ;;  %v3774_v46 = vmul.f32 16.0, %v3710_v0  ;;  %v3585_v43 = vadd.f32 0.5, %v9706_v42 }
 0x3ec   :  { %v3458_v52 = vmul.f32 256.0, %v3394_v10  ;;  %v3712_v34 = vfloor.f32 %v3648_v54  ;;  %v3584_v33 = vadd.f32 0.5, %v3520_v61  ;;  %v9710_v10 = vmul.f32 %v9629_v31, %v3709_v53 }
 0x3ed   :  { %v9701_v58 = vsub.f32 %v3202_v21, %v3459_v45  ;;  %v3837_v3 = vsub.f32 %v3516_v35, %v3773_v11  ;;  %v3838_v14 = vsub.f32 %v3517_v57, %v3774_v46  ;;  %v9718_v28 = vmul.f32 %v9629_v31, %v3710_v0 }
 0x3ee   :  { %v3522_v7 = vsub.f32 %v3201_v30, %v3458_v52  ;;  %v3776_v24 = vmul.f32 16.0, %v3712_v34  ;;  %v3649_v8 = vmul.f32 0.0625, %v3584_v33  ;;  %v9713_v5 = vmul.f32 %v9629_v31, %v3712_v34 }
 0x3ef   :  { %v3587_v21 = vadd.f32 0.5, %v9701_v58  ;;  %v3650_v16 = vmul.f32 0.0625, %v3585_v43  ;;  %v3269_v27 = vadd.f32 0.5, %v3205_v23  ;;  %v9721_v59 = vmul.f32 %v9624_v26, %v3837_v3 }
 0x3f0   :  { %v3586_v12 = vadd.f32 0.5, %v3522_v7  ;;  %v3840_v49 = vsub.f32 %v3519_v37, %v3776_v24  ;;  %v3713_v52 = vfloor.f32 %v3649_v8  ;;  %v3139_v57 = vadd.s32 128, %v9577_v41 }
 0x3f1   :  { %v3652_v35 = vmul.f32 0.0625, %v3587_v21  ;;  %v3714_v55 = vfloor.f32 %v3650_v16  ;;  %v3334_v37 = vmul.f32 0.00390625, %v3269_v27  ;;  %v9731_v54 = vmul.f32 %v9624_v26, %v3838_v14 }
 0x3f2   :  { %v3651_v30 = vmul.f32 0.0625, %v3586_v12  ;;  %v3777_v40 = vmul.f32 16.0, %v3713_v52  ;;  %v9728_v53 = vmul.f32 %v9624_v26, %v3840_v49  ;;  %v3142_v63 = vadd.s32 152, %v9577_v41 }
 0x3f3   :  { %v3716_v48 = vfloor.f32 %v3652_v35  ;;  %v3140_v60 = vadd.s32 136, %v9577_v41  ;;  %v9739_v12 = vmul.f32 %v9629_v31, %v3713_v52  ;;  %v3398_v34 = vfloor.f32 %v3334_v37 }
 0x3f4   :  { %v3715_v22 = vfloor.f32 %v3651_v30  ;;  %v3841_v9 = vsub.f32 %v3520_v61, %v3777_v40  ;;  %v3203_v38 = vcvt.s32.f32 %v3139_v57  ;;  %v3206_v0 = vcvt.s32.f32 %v3142_v63 }
 0x3f5   :  { %11504 = vst [vmem:[#allocation8_spill] sm:$0xff] %v9739_v12  ;;  %v9741_v45 = vmul.f32 16.0, %v3716_v48  ;;  %v9744_v11 = vmul.f32 %v9629_v31, %v3716_v48  ;;  %v9746_v30 = vmul.f32 16.0, %v3714_v55  ;;  %v9749_v33 = vmul.f32 %v9629_v31, %v3714_v55 }
 0x3f6   :  { %v3779_v19 = vmul.f32 16.0, %v3715_v22  ;;  %v9724_v39 = vmul.f32 %v9629_v31, %v3715_v22  ;;  %v3204_v24 = vcvt.s32.f32 %v3140_v60  ;;  %v3145_v3 = vadd.s32 176, %v9577_v41 }
 0x3f7   :  { %11505 = vst [vmem:[#allocation26_spill] sm:$0xff] %v9744_v11  ;;  %11506 = vst [vmem:[#allocation25_spill] sm:$0xff] %v9749_v33  ;;  %v3462_v61 = vmul.f32 256.0, %v3398_v34  ;;  %v3267_v46 = vadd.f32 0.5, %v3203_v38  ;;  %v3270_v22 = vadd.f32 0.5, %v3206_v0  ;;  %v3143_v8 = vadd.s32 160, %v9577_v41 }
 0x3f8   :  { %v3843_v2 = vsub.f32 %v3522_v7, %v3779_v19  ;;  %11502 = vst [vmem:[#allocation10_spill] sm:$0xff] %v9724_v39  ;;  %v9754_v21 = vmul.f32 %v9624_v26, %v3841_v9  ;;  %v3844_v43 = vsub.f32 %v9701_v58, %v9741_v45  ;;  %v3268_v49 = vadd.f32 0.5, %v3204_v24 }
 0x3f9   :  { %v3209_v14 = vcvt.s32.f32 %v3145_v3  ;;  %v3526_v19 = vsub.f32 %v3205_v23, %v3462_v61  ;;  %v3332_v52 = vmul.f32 0.00390625, %v3267_v46  ;;  %v3335_v35 = vmul.f32 0.00390625, %v3270_v22 }
 0x3fa   :  { %v9736_v7 = vmul.f32 %v9624_v26, %v3843_v2  ;;  %11507 = vst [vmem:[#allocation7_spill] sm:$0xff] %v9754_v21  ;;  %v3207_v16 = vcvt.s32.f32 %v3143_v8  ;;  %v3333_v27 = vmul.f32 0.00390625, %v3268_v49  ;;  %v3146_v40 = vadd.s32 184, %v9577_v41 }
 0x3fb   :  { %v3273_v2 = vadd.f32 0.5, %v3209_v14  ;;  %v3144_v48 = vadd.s32 168, %v9577_v41  ;;  %v3590_v55 = vadd.f32 0.5, %v3526_v19  ;;  %v3396_v37 = vfloor.f32 %v3332_v52 }
 0x3fc   :  { %11503 = vst [vmem:[#allocation17_spill] sm:$0xff] %v9736_v7  ;;  %v3399_v57 = vfloor.f32 %v3335_v35  ;;  %v3271_v63 = vadd.f32 0.5, %v3207_v16  ;;  %v3397_v60 = vfloor.f32 %v3333_v27  ;;  %v3210_v34 = vcvt.s32.f32 %v3146_v40 }
 0x3fd   :  { %v3338_v9 = vmul.f32 0.00390625, %v3273_v2  ;;  %v3208_v58 = vcvt.s32.f32 %v3144_v48  ;;  %v3655_v45 = vmul.f32 0.0625, %v3590_v55  ;;  %v3460_v3 = vmul.f32 256.0, %v3396_v37 }
 0x3fe   :  { %v3463_v23 = vmul.f32 256.0, %v3399_v57  ;;  %v3336_v61 = vmul.f32 0.00390625, %v3271_v63  ;;  %v3461_v46 = vmul.f32 256.0, %v3397_v60  ;;  %v3274_v8 = vadd.f32 0.5, %v3210_v34 }
 0x3ff   :  { %v3402_v22 = vfloor.f32 %v3338_v9  ;;  %v3272_v49 = vadd.f32 0.5, %v3208_v58  ;;  %v3719_v33 = vfloor.f32 %v3655_v45  ;;  %v3524_v11 = vsub.f32 %v3203_v38, %v3460_v3 }
 0x400   :  { %v9760_v12 = vsub.f32 %v3206_v0, %v3463_v23  ;;  %v3400_v21 = vfloor.f32 %v3336_v61  ;;  %v3525_v52 = vsub.f32 %v3204_v24, %v3461_v46  ;;  %v3339_v39 = vmul.f32 0.00390625, %v3274_v8 }
 0x401   :  { %v3466_v35 = vmul.f32 256.0, %v3402_v22  ;;  %v3337_v27 = vmul.f32 0.00390625, %v3272_v49  ;;  %v3842_v2 = vsub.f32 %v9706_v42, %v9746_v30  ;;  %v3783_v40 = vmul.f32 16.0, %v3719_v33 }
 0x402   :  { %v3588_v48 = vadd.f32 0.5, %v3524_v11  ;;  %v3591_v55 = vadd.f32 0.5, %v9760_v12  ;;  %v3589_v37 = vadd.f32 0.5, %v3525_v52  ;;  %v3464_v63 = vmul.f32 256.0, %v3400_v21 }
 0x403   :  { %v3530_v57 = vsub.f32 %v3209_v14, %v3466_v35  ;;  %v3403_v60 = vfloor.f32 %v3339_v39  ;;  %v3847_v9 = vsub.f32 %v3526_v19, %v3783_v40  ;;  %v3401_v45 = vfloor.f32 %v3337_v27 }
 0x404   :  { %v3653_v38 = vmul.f32 0.0625, %v3588_v48  ;;  %v3656_v0 = vmul.f32 0.0625, %v3591_v55  ;;  %v3654_v3 = vmul.f32 0.0625, %v3589_v37  ;;  %v3528_v23 = vsub.f32 %v3207_v16, %v3464_v63 }
 0x405   :  { %v3594_v24 = vadd.f32 0.5, %v3530_v57  ;;  %v3467_v61 = vmul.f32 256.0, %v3403_v60  ;;  %v9766_v46 = vmul.f32 %v9624_v26, %v3844_v43  ;;  %v3465_v22 = vmul.f32 256.0, %v3401_v45 }
 0x406   :  { %v3717_v42 = vfloor.f32 %v3653_v38  ;;  %v3720_v30 = vfloor.f32 %v3656_v0  ;;  %v3718_v8 = vfloor.f32 %v3654_v3  ;;  %v3592_v7 = vadd.f32 0.5, %v3528_v23  ;;  %v9796_v0 = vld [vmem:[%s11006_s8] ss:$0 sm:$0xff] }
 0x407   :  { %v3659_v49 = vmul.f32 0.0625, %v3594_v24  ;;  %v9768_v14 = vsub.f32 %v3210_v34, %v3467_v61  ;;  %v9771_v39 = vmul.f32 %v9624_v26, %v3842_v2  ;;  %v9774_v21 = vmul.f32 %v9629_v31, %v3719_v33 }
 0x408   :  { %v3781_v19 = vmul.f32 16.0, %v3717_v42  ;;  %v3784_v16 = vmul.f32 16.0, %v3720_v30  ;;  %v9777_v35 = vmul.f32 %v9624_v26, %v3847_v9  ;;  %v3782_v43 = vmul.f32 16.0, %v3718_v8 }
 0x409   :  { %11508 = vst [vmem:[#allocation16_spill] sm:$0xff] %v9771_v39  ;;  %11509 = vst [vmem:[#allocation5_spill] sm:$0xff] %v9774_v21  ;;  %v3723_v27 = vfloor.f32 %v3659_v49  ;;  %v3657_v40 = vmul.f32 0.0625, %v3592_v7  ;;  %v9780_v55 = vmul.f32 %v9629_v31, %v3717_v42  ;;  %v3595_v34 = vadd.f32 0.5, %v9768_v14 }
 0x40a   :  { %11510 = vst [vmem:[#allocation9_spill] sm:$0xff] %v9777_v35  ;;  %v3845_v48 = vsub.f32 %v3524_v11, %v3781_v19  ;;  %v9783_v37 = vsub.f32 %v3208_v58, %v3465_v22  ;;  %v3848_v2 = vsub.f32 %v9760_v12, %v3784_v16  ;;  %v3846_v33 = vsub.f32 %v3525_v52, %v3782_v43  ;;  %v9813_v22 = vld [vmem:[%s11005_s9 + $0x3] ss:$0 sm:$0xff] }
 0x40b   :  { %11511 = vst [vmem:[#allocation4_spill] sm:$0xff] %v9780_v55  ;;  %v3787_v63 = vmul.f32 16.0, %v3723_v27  ;;  %v3721_v60 = vfloor.f32 %v3657_v40  ;;  %v9787_v38 = vmul.f32 %v9629_v31, %v3720_v30  ;;  %v9790_v9 = vmul.f32 %v9629_v31, %v3718_v8 }
 0x40c   :  { %v3660_v7 = vmul.f32 0.0625, %v3595_v34  ;;  %v3593_v11 = vadd.f32 0.5, %v9783_v37  ;;  %v9799_v58 = vmul.f32 %v9624_v26, %v3845_v48  ;;  %v9802_v52 = vmul.f32 %v9629_v31, %v3723_v27 }
 0x40d   :  { %11512 = vst [vmem:[#allocation23_spill] sm:$0xff] %v9787_v38  ;;  %11513 = vst [vmem:[#allocation21_spill] sm:$0xff] %v9790_v9  ;;  %v3851_v12 = vsub.f32 %v3530_v57, %v3787_v63  ;;  %v3785_v45 = vmul.f32 16.0, %v3721_v60  ;;  %v9805_v61 = vadd.s32 208, %v9577_v41  ;;  %v9808_v42 = vadd.s32 192, %v9577_v41 }
 0x40e   :  { %11514 = vst [vmem:[#allocation20_spill] sm:$0xff] %v9799_v58  ;;  %11515 = vst [vmem:[#allocation19_spill] sm:$0xff] %v9802_v52  ;;  %v3724_v3 = vfloor.f32 %v3660_v7  ;;  %v3658_v24 = vmul.f32 0.0625, %v3593_v11  ;;  %v9816_v57 = vmul.f32 %v9624_v26, %v3848_v2  ;;  %v9819_v8 = vmul.f32 %v9624_v26, %v3846_v33 }
 0x40f   :  { %v3849_v49 = vsub.f32 %v3528_v23, %v3785_v45  ;;  %v9822_v19 = vadd.s32 216, %v9577_v41  ;;  %v9826_v43 = vmul.f32 %v9624_v26, %v3851_v12  ;;  %v9829_v27 = vmul.f32 %v9629_v31, %v3721_v60 }
 0x410   :  { %11516 = vst [vmem:[#allocation11_spill] sm:$0xff] %v9816_v57  ;;  %11517 = vst [vmem:[#allocation13_spill] sm:$0xff] %v9819_v8  ;;  %v9832_v40 = vadd.s32 200, %v9577_v41  ;;  %v9834_v34 = vmul.f32 16.0, %v3724_v3  ;;  %v3722_v2 = vfloor.f32 %v3658_v24  ;;  %v3213_v23 = vcvt.s32.f32 %v9805_v61 }
 0x411   :  { %11518 = vst [vmem:[#allocation6_spill] sm:$0xff] %v9822_v19  ;;  %11519 = vst [vmem:[#allocation22_spill] sm:$0xff] %v9826_v43  ;;  %v11133_v33 = vcvt.s32.f32 %v9808_v42  ;;  %v9841_v12 = vmul.f32 %v9629_v31, %v3724_v3  ;;  %v9844_v45 = vmul.f32 %v9624_v26, %v3849_v49 }
 0x412   :  { %11520 = vst [vmem:[#allocation15_spill] sm:$0xff] %v9829_v27  ;;  %11521 = vst [vmem:[#allocation14_spill] sm:$0xff] %v9832_v40  ;;  %v3852_v3 = vsub.f32 %v9768_v14, %v9834_v34 }
 0x413   :  { %11522 = vst [vmem:[#allocation3_spill] sm:$0xff] %v9841_v12  ;;  %11523 = vst [vmem:[#allocation12_spill] sm:$0xff] %v9844_v45  ;;  %v3275_v24 = vadd.f32 0.5, %v11133_v33  ;;  %v9853_v12 = vmul.f32 16.0, %v3722_v2 }
 0x415   :  { %v3340_v43 = vmul.f32 0.00390625, %v3275_v24 }
 0x420   :  { %v5458_v30 = vpop.f32.mrf.mxu1 }
 0x421   :  { %v2876_v16 = vadd.f32 %v5458_v30, %v9796_v0  ;;  %v3277_v30 = vadd.f32 0.5, %v3213_v23 }
 0x422   :  { %v2867_v48 = vpop.f32.mrf.mxu1 }
 0x423   :  { %v5150_v63 = vmul.f32 -1.442695, %v2876_v16  ;;  %v4620_v7 = vmul.f32 %v9813_v22, %v2876_v16  ;;  %v2868_v11 = vadd.f32 %v9796_v0, %v2867_v48  ;;  %v3342_v49 = vmul.f32 0.00390625, %v3277_v30 }
 0x424   :  { %v5459_v60 = vpop.f32.mrf.mxu1 }
 0x425   :  { %5565 = vpow2.f32 %v5150_v63  ;;  %v4686_v41 = vmul.f32 1.442695, %v4620_v7  ;;  %v5148_v27 = vmul.f32 -1.442695, %v2868_v11  ;;  %v4618_v16 = vmul.f32 %v9813_v22, %v2868_v11 }
 0x426   :  { %v2879_v48 = vadd.f32 %v5459_v60, %v9796_v0  ;;  %v2870_v52 = vpop.f32.mrf.mxu1  ;;  %v9858_v11 = vmul.f32 %v9629_v31, %v3722_v2 }
 0x427   :  { %5567 = vpow2.f32 %v4686_v41  ;;  %v4682_v45 = vmul.f32 1.442695, %v4618_v16  ;;  %v2871_v33 = vadd.f32 %v9796_v0, %v2870_v52  ;;  %v3406_v16 = vfloor.f32 %v3342_v49 }
 0x428   :  { %5569 = vpow2.f32 %v5148_v27  ;;  %v5151_v63 = vmul.f32 -1.442695, %v2879_v48  ;;  %v4621_v7 = vmul.f32 %v9813_v22, %v2879_v48  ;;  %v5462_v61 = vpop.f32.mrf.mxu1  ;;  %11524 = vst [vmem:[#allocation18_spill] sm:$0xff] %v9858_v11  ;;  %v3404_v52 = vfloor.f32 %v3340_v43 }
 0x429   :  { %5571 = vpow2.f32 %v4682_v45  ;;  %v5149_v60 = vmul.f32 -1.442695, %v2871_v33  ;;  %v4619_v14 = vmul.f32 %v9813_v22, %v2871_v33  ;;  %v2892_v34 = vadd.f32 %v5462_v61, %v9796_v0 }
 0x42a   :  { %5573 = vpow2.f32 %v5151_v63  ;;  %v4688_v41 = vmul.f32 1.442695, %v4621_v7  ;;  %v2883_v30 = vpop.f32.mrf.mxu1  ;;  %v3470_v45 = vmul.f32 256.0, %v3406_v16  ;;  %v3468_v11 = vmul.f32 256.0, %v3404_v52 }
 0x42b   :  { %5575 = vpow2.f32 %v5149_v60  ;;  %v4684_v27 = vmul.f32 1.442695, %v4619_v14  ;;  %v5154_v24 = vmul.f32 -1.442695, %v2892_v34  ;;  %v4624_v48 = vmul.f32 %v9813_v22, %v2892_v34 }
 0x42c   :  { %5577 = vpow2.f32 %v4688_v41  ;;  %v2884_v31 = vadd.f32 %v9796_v0, %v2883_v30  ;;  %v5463_v2 = vpop.f32.mrf.mxu1  ;;  %v3850_v63 = vsub.f32 %v9783_v37, %v9853_v12  ;;  %v9868_v60 = vsub.f32 %v3213_v23, %v3470_v45 }
 0x42d   :  { %5579 = vpow2.f32 %v4684_v27  ;;  %v4694_v33 = vmul.f32 1.442695, %v4624_v48  ;;  %v2895_v61 = vadd.f32 %v5463_v2, %v9796_v0  ;;  %v11525_v37 = vcvt.s32.f32 %v9808_v42 }
 0x42e   :  { %5581 = vpow2.f32 %v5154_v24  ;;  %v5152_v43 = vmul.f32 -1.442695, %v2884_v31  ;;  %v4622_v49 = vmul.f32 %v9813_v22, %v2884_v31  ;;  %v2886_v7 = vpop.f32.mrf.mxu1  ;;  %v3598_v52 = vadd.f32 0.5, %v9868_v60 }
 0x42f   :  { %5583 = vpow2.f32 %v4694_v33  ;;  %v5155_v14 = vmul.f32 -1.442695, %v2895_v61  ;;  %v4625_v34 = vmul.f32 %v9813_v22, %v2895_v61  ;;  %v2887_v41 = vadd.f32 %v9796_v0, %v2886_v7 }
 0x430   :  { %5585 = vpow2.f32 %v5152_v43  ;;  %v4690_v30 = vmul.f32 1.442695, %v4622_v49  ;;  %v5466_v16 = vpop.f32.mrf.mxu1  ;;  %v9875_v12 = vsub.f32 %v11525_v37, %v3468_v11  ;;  %v9880_v45 = vmul.f32 %v9624_v26, %v3852_v3  ;;  %v9888_v49 = vld [vmem:[%s11005_s9 + $0x4] ss:$0 sm:$0xff] }
 0x431   :  { %5587 = vpow2.f32 %v5155_v14  ;;  %v4696_v27 = vmul.f32 1.442695, %v4625_v34  ;;  %v5153_v24 = vmul.f32 -1.442695, %v2887_v41  ;;  %v4623_v23 = vmul.f32 %v9813_v22, %v2887_v41 }
 0x432   :  { %11526 = vst [vmem:[#allocation2_spill] sm:$0xff] %v9875_v12  ;;  %v5566_v48 = vpop.eup %5565  ;;  %5589 = vpow2.f32 %v4690_v30  ;;  %v2908_v31 = vadd.f32 %v5466_v16, %v9796_v0  ;;  %v2899_v2 = vpop.f32.mrf.mxu1  ;;  %11527 = vst [vmem:[#allocation27_spill] sm:$0xff] %v9880_v45  ;;  %v9882_v33 = vmul.f32 0.0625, %v3598_v52  ;;  %v9892_v3 = vmul.f32 %v9624_v26, %v3850_v63 }
 0x433   :  { %v4092_v61 = vadd.f32 1.0, %v5566_v48  ;;  %5591 = vpow2.f32 %v4696_v27  ;;  %v4692_v42 = vmul.f32 1.442695, %v4623_v23  ;;  %v2900_v11 = vadd.f32 %v9796_v0, %v2899_v2 }
 0x434   :  { %v5568_v43 = vpop.eup %5567  ;;  %5593 = vpow2.f32 %v5153_v24  ;;  %v5158_v7 = vmul.f32 -1.442695, %v2908_v31  ;;  %v4628_v14 = vmul.f32 %v9813_v22, %v2908_v31  ;;  %v5467_v34 = vpop.f32.mrf.mxu1  ;;  %11528 = vst [vmem:[#allocation28_spill] sm:$0xff] %v9892_v3  ;;  %v9896_v16 = vadd.f32 0.5, %v9875_v12 }
 0x435   :  { %v5570_v41 = vpop.eup %5569  ;;  %5595 = vrcp.f32 %v4092_v61  ;;  %v4626_v30 = vmul.f32 %v9813_v22, %v2900_v11  ;;  %v11530_v52 = vcvt.s32.f32 %v9822_v19  ;;  %v2911_v48 = vadd.f32 %v5467_v34, %v9796_v0 }
 0x436   :  { %11529 = vst [vmem:[#allocation29_spill] sm:$0xff] %v9896_v16  ;;  %v5572_v27 = vpop.eup %5571  ;;  %v4090_v24 = vadd.f32 1.0, %v5570_v41  ;;  %5597 = vpow2.f32 %v4692_v42  ;;  %v4702_v23 = vmul.f32 1.442695, %v4628_v14  ;;  %v2902_v31 = vpop.f32.mrf.mxu1  ;;  %v9904_v63 = vmul.f32 %v5568_v43, %v9888_v49 }
 0x437   :  { %v9900_v37 = vadd.f32 0.5, %v11530_v52  ;;  %v5574_v26 = vpop.eup %5573  ;;  %5599 = vpow2.f32 %v5158_v7  ;;  %v2903_v2 = vadd.f32 %v9796_v0, %v2902_v31  ;;  %v5156_v45 = vmul.f32 -1.442695, %v2900_v11 }
 0x438   :  { %v5576_v3 = vpop.eup %5575  ;;  %5601 = vrcp.f32 %v4090_v24  ;;  %v4093_v52 = vadd.f32 1.0, %v5574_v26  ;;  %v4629_v41 = vmul.f32 %v9813_v22, %v2911_v48  ;;  %v5470_v42 = vpop.f32.mrf.mxu1  ;;  %v4698_v34 = vmul.f32 1.442695, %v4626_v30 }
 0x439   :  { %11531 = vst [vmem:[#allocation30_spill] sm:$0xff] %v9900_v37  ;;  %v5578_v14 = vpop.eup %5577  ;;  %v4091_v9 = vadd.f32 1.0, %v5576_v3  ;;  %5603 = vpow2.f32 %v4702_v23  ;;  %v4627_v19 = vmul.f32 %v9813_v22, %v2903_v2  ;;  %v9911_v7 = vmul.f32 %v5572_v27, %v9888_v49 }
 0x43a   :  { %v5580_v43 = vpop.eup %5579  ;;  %5605 = vrcp.f32 %v4093_v52  ;;  %v5159_v31 = vmul.f32 -1.442695, %v2911_v48  ;;  %v2924_v61 = vadd.f32 %v5470_v42, %v9796_v0  ;;  %v2915_v24 = vpop.f32.mrf.mxu1  ;;  %v9915_v11 = vmul.f32 %v5578_v14, %v9888_v49 }
 0x43b   :  { %v5582_v26 = vpop.eup %5581  ;;  %5607 = vrcp.f32 %v4091_v9  ;;  %v5157_v40 = vmul.f32 -1.442695, %v2903_v2  ;;  %v2916_v3 = vadd.f32 %v9796_v0, %v2915_v24  ;;  %v4704_v8 = vmul.f32 1.442695, %v4629_v41 }
 0x43c   :  { %v5584_v30 = vpop.eup %5583  ;;  %v4096_v23 = vadd.f32 1.0, %v5582_v26  ;;  %5609 = vpow2.f32 %v5156_v45  ;;  %v4632_v27 = vmul.f32 %v9813_v22, %v2924_v61  ;;  %v5471_v38 = vpop.f32.mrf.mxu1  ;;  %v9920_v48 = vmul.f32 %v5580_v43, %v9888_v49 }
 0x43d   :  { %v5586_v52 = vpop.eup %5585  ;;  %5611 = vpow2.f32 %v4698_v34  ;;  %v4700_v42 = vmul.f32 1.442695, %v4627_v19  ;;  %v4630_v14 = vmul.f32 %v9813_v22, %v2916_v3  ;;  %v5162_v2 = vmul.f32 -1.442695, %v2924_v61 }
 0x43e   :  { %v5588_v12 = vpop.eup %5587  ;;  %5613 = vrcp.f32 %v4096_v23  ;;  %v4094_v9 = vadd.f32 1.0, %v5586_v52  ;;  %v2927_v24 = vadd.f32 %v5471_v38, %v9796_v0  ;;  %v2918_v26 = vpop.f32.mrf.mxu1  ;;  %v9925_v41 = vmul.f32 %v5584_v30, %v9888_v49 }
 0x43f   :  { %v5590_v45 = vpop.eup %5589  ;;  %v4097_v57 = vadd.f32 1.0, %v5588_v12  ;;  %5615 = vpow2.f32 %v5159_v31  ;;  %v2919_v43 = vadd.f32 %v9796_v0, %v2918_v26  ;;  %v4710_v19 = vmul.f32 1.442695, %v4632_v27 }
 0x440   :  { %v5592_v55 = vpop.eup %5591  ;;  %5617 = vrcp.f32 %v4094_v9  ;;  %v5160_v34 = vmul.f32 -1.442695, %v2916_v3  ;;  %v4633_v23 = vmul.f32 %v9813_v22, %v2927_v24  ;;  %v5474_v52 = vpop.f32.mrf.mxu1  ;;  %v9930_v38 = vmul.f32 %v5590_v45, %v9888_v49 }
 0x441   :  { %v5594_v61 = vpop.eup %5593  ;;  %5619 = vrcp.f32 %v4097_v57  ;;  %v4706_v37 = vmul.f32 1.442695, %v4630_v14  ;;  %v4631_v30 = vmul.f32 %v9813_v22, %v2919_v43  ;;  %v5163_v26 = vmul.f32 -1.442695, %v2927_v24  ;;  %v9942_v14 = vld [vmem:[%s11005_s9] ss:$0 sm:$0xff] }
 0x442   :  { %v5596_v12 = vpop.eup %5595  ;;  %v4095_v31 = vadd.f32 1.0, %v5594_v61  ;;  %5621 = vpow2.f32 %v4704_v8  ;;  %v2940_v58 = vadd.f32 %v5474_v52, %v9796_v0  ;;  %v2931_v9 = vpop.f32.mrf.mxu1  ;;  %v9936_v21 = vmul.f32 %v5592_v55, %v9888_v49 }
 0x443   :  { %v5598_v27 = vpop.eup %5597  ;;  %v4352_v3 = vadd.f32 %v5596_v12, %v9632_v20  ;;  %5623 = vpow2.f32 %v5157_v40  ;;  %v2932_v45 = vadd.f32 %v9796_v0, %v2931_v9  ;;  %v4712_v8 = vmul.f32 1.442695, %v4633_v23 }
 0x444   :  { %v5600_v57 = vpop.eup %5599  ;;  %5625 = vrcp.f32 %v4095_v31  ;;  %v5161_v24 = vmul.f32 -1.442695, %v2919_v43  ;;  %v4636_v52 = vmul.f32 %v9813_v22, %v2940_v58  ;;  %v4708_v55 = vmul.f32 1.442695, %v4631_v30  ;;  %v5475_v39 = vpop.f32.mrf.mxu1 }
 0x445   :  { %v5602_v61 = vpop.eup %5601  ;;  %v4484_v20 = vadd.f32 %v9635_v17, %v4352_v3  ;;  %v4100_v12 = vadd.f32 1.0, %v5600_v57  ;;  %5627 = vpow2.f32 %v4700_v42  ;;  %v9948_v35 = vmul.f32 %v5598_v27, %v9888_v49 }
 0x446   :  { %v5604_v40 = vpop.eup %5603  ;;  %v4350_v9 = vadd.f32 %v5602_v61, %v9640_v56  ;;  %5629 = vpow2.f32 %v5162_v2  ;;  %v5166_v16 = vmul.f32 -1.442695, %v2940_v58  ;;  %v9951_v23 = vmul.f32 -1.442695, %v2932_v45 }
 0x447   :  { %v5606_v31 = vpop.eup %5605  ;;  %v4552_v43 = vmul.f32 %v9942_v14, %v4484_v20  ;;  %5631 = vrcp.f32 %v4100_v12  ;;  %v4634_v17 = vmul.f32 %v9813_v22, %v2932_v45  ;;  %v4718_v56 = vmul.f32 1.442695, %v4636_v52 }
 0x448   :  { %v5608_v3 = vpop.eup %5607  ;;  %v4482_v42 = vadd.f32 %v9643_v15, %v4350_v9  ;;  %v4353_v30 = vadd.f32 %v5606_v31, %v9658_v4  ;;  %5633 = vpow2.f32 %v4710_v19  ;;  %v2943_v57 = vadd.f32 %v5475_v39, %v9796_v0  ;;  %v2934_v15 = vpop.f32.mrf.mxu1 }
 0x449   :  { %v5610_v27 = vpop.eup %5609  ;;  %v4880_v2 = vadd.f32 %v9904_v63, %v4552_v43  ;;  %v4351_v58 = vadd.f32 %v5608_v3, %v9661_v25  ;;  %5635 = vpow2.f32 %v5160_v34  ;;  %v9967_v25 = vmul.f32 %v5604_v40, %v9888_v49 }
 0x44a   :  { %v5612_v61 = vpop.eup %5611  ;;  %v4550_v20 = vmul.f32 %v9942_v14, %v4482_v42  ;;  %v4485_v45 = vadd.f32 %v9648_v18, %v4353_v30  ;;  %v4098_v12 = vadd.f32 1.0, %v5610_v27  ;;  %5637 = vpow2.f32 %v4706_v37  ;;  %v5478_v40 = vpop.f32.mrf.mxu1 }
 0x44b   :  { %v5614_v9 = vpop.eup %5613  ;;  %4945 = vst.msk [vmem:[%s11007_s10 + $0x10] sm:$0xff] %vm4942_vm8, %v4880_v2  ;;  %v4483_v4 = vadd.f32 %v9652_v1, %v4351_v58  ;;  %5639 = vpow2.f32 %v5163_v26  ;;  %v4714_v39 = vmul.f32 1.442695, %v4634_v17  ;;  %v4637_v1 = vmul.f32 %v9813_v22, %v2943_v57 }
 0x44c   :  { %v5616_v63 = vpop.eup %5615  ;;  %v4878_v19 = vadd.f32 %v9911_v7, %v4550_v20  ;;  %v4553_v18 = vmul.f32 %v9942_v14, %v4485_v45  ;;  %v4356_v37 = vadd.f32 %v5614_v9, %v9668_v29  ;;  %5641 = vrcp.f32 %v4098_v12 }
 0x44d   :  { %v5618_v34 = vpop.eup %5617  ;;  %v4551_v52 = vmul.f32 %v9942_v14, %v4483_v4  ;;  %v4101_v31 = vadd.f32 1.0, %v5616_v63  ;;  %5643 = vpow2.f32 %v4712_v8  ;;  %v2935_v42 = vadd.f32 %v9796_v0, %v2934_v15 }
 0x44e   :  { %v5620_v43 = vpop.eup %5619  ;;  %4943 = vst.msk [vmem:[%s11007_s10] sm:$0xff] %vm4942_vm8, %v4878_v19  ;;  %v4881_v7 = vadd.f32 %v9915_v11, %v4553_v18  ;;  %v4488_v26 = vadd.f32 %v9655_v36, %v4356_v37  ;;  %v4354_v29 = vadd.f32 %v5618_v34, %v9680_v44  ;;  %5645 = vpow2.f32 %v5161_v24 }
 0x44f   :  { %v5622_v17 = vpop.eup %5621  ;;  %v4879_v3 = vadd.f32 %v9920_v48, %v4551_v52  ;;  %v4357_v8 = vadd.f32 %v5620_v43, %v9688_v13  ;;  %5647 = vrcp.f32 %v4101_v31  ;;  %v5167_v11 = vmul.f32 -1.442695, %v2943_v57  ;;  %v2947_v57 = vpop.f32.mrf.mxu1 }
 0x450   :  { %v5624_v30 = vpop.eup %5623  ;;  %4946 = vst.msk [vmem:[%s11007_s10 + $0x18] sm:$0xff] %vm4942_vm8, %v4881_v7  ;;  %v4556_v36 = vmul.f32 %v9942_v14, %v4488_v26  ;;  %v4486_v44 = vadd.f32 %v9671_v62, %v4354_v29  ;;  %5649 = vpow2.f32 %v4708_v55  ;;  %v9996_v48 = vmul.f32 %v5612_v61, %v9888_v49 }
 0x451   :  { %v5626_v24 = vpop.eup %5625  ;;  %4944 = vst.msk [vmem:[%s11007_s10 + $0x8] sm:$0xff] %vm4942_vm8, %v4879_v3  ;;  %v4489_v13 = vadd.f32 %v9674_v51, %v4357_v8  ;;  %v4099_v27 = vadd.f32 1.0, %v5624_v30  ;;  %5651 = vpow2.f32 %v5166_v16  ;;  %v4720_v12 = vmul.f32 1.442695, %v4637_v1  ;;  %v5479_v19 = vpop.f32.mrf.mxu1 }
 0x452   :  { %v5628_v2 = vpop.eup %5627  ;;  %v4884_v58 = vadd.f32 %v9925_v41, %v4556_v36  ;;  %v4554_v62 = vmul.f32 %v9942_v14, %v4486_v44  ;;  %v4355_v55 = vadd.f32 %v5626_v24, %v9692_v47  ;;  %5653 = vpow2.f32 %v4718_v56 }
 0x453   :  { %v5630_v20 = vpop.eup %5629  ;;  %v4557_v45 = vmul.f32 %v9942_v14, %v4489_v13  ;;  %5655 = vrcp.f32 %v4099_v27  ;;  %v4635_v51 = vmul.f32 %v9813_v22, %v2935_v42  ;;  %v10013_v4 = vmul.f32 %v5622_v17, %v9888_v49  ;;  %v2950_v17 = vpop.f32.mrf.mxu1 }
 0x454   :  { %v5632_v61 = vpop.eup %5631  ;;  %4949 = vst.msk [vmem:[%s11007_s10 + $0x30] sm:$0xff] %vm4942_vm8, %v4884_v58  ;;  %v4882_v16 = vadd.f32 %v9930_v38, %v4554_v62  ;;  %v4487_v41 = vadd.f32 %v9683_v6, %v4355_v55  ;;  %v4104_v47 = vadd.f32 1.0, %v5630_v20  ;;  %5657 = vpow2.f32 %v9951_v23 }
 0x455   :  { %v5634_v56 = vpop.eup %5633  ;;  %v4885_v15 = vadd.f32 %v9936_v21, %v4557_v45  ;;  %v4360_v9 = vadd.f32 %v5632_v61, %v9704_v32  ;;  %5659 = vpow2.f32 %v4714_v39  ;;  %v5165_v38 = vmul.f32 -1.442695, %v2935_v42  ;;  %v5482_v55 = vpop.f32.mrf.mxu1 }
 0x456   :  { %v5636_v63 = vpop.eup %5635  ;;  %4947 = vst.msk [vmem:[%s11007_s10 + $0x20] sm:$0xff] %vm4942_vm8, %v4882_v16  ;;  %v4555_v6 = vmul.f32 %v9942_v14, %v4487_v41  ;;  %5661 = vrcp.f32 %v4104_v47  ;;  %v2956_v23 = vadd.f32 %v5478_v40, %v9796_v0  ;;  %v2948_v18 = vadd.f32 %v9796_v0, %v2947_v57 }
 0x457   :  { %v5638_v21 = vpop.eup %5637  ;;  %4950 = vst.msk [vmem:[%s11007_s10 + $0x38] sm:$0xff] %vm4942_vm8, %v4885_v15  ;;  %v4492_v32 = vadd.f32 %v9699_v50, %v4360_v9  ;;  %v4102_v39 = vadd.f32 1.0, %v5636_v63  ;;  %5663 = vpow2.f32 %v5167_v11  ;;  %v4716_v52 = vmul.f32 1.442695, %v4635_v51 }
 0x458   :  { %v5640_v37 = vpop.eup %5639  ;;  %v4883_v34 = vadd.f32 %v9948_v35, %v4555_v6  ;;  %5665 = vpow2.f32 %v4720_v12  ;;  %v5170_v31 = vmul.f32 -1.442695, %v2956_v23  ;;  %v4640_v26 = vmul.f32 %v9813_v22, %v2956_v23 }
 0x459   :  { %v5642_v1 = vpop.eup %5641  ;;  %v4560_v43 = vmul.f32 %v9942_v14, %v4492_v32  ;;  %5667 = vrcp.f32 %v4102_v39  ;;  %v4105_v7 = vadd.f32 1.0, %v5640_v37  ;;  %v10036_v35 = vmul.f32 %v5628_v2, %v9888_v49 }
 0x45a   :  { %v5644_v29 = vpop.eup %5643  ;;  %4948 = vst.msk [vmem:[%s11007_s10 + $0x28] sm:$0xff] %vm4942_vm8, %v4883_v34  ;;  %v4358_v50 = vadd.f32 %v5642_v1, %v9721_v59  ;;  %5669 = vpow2.f32 %v5165_v38  ;;  %v4638_v40 = vmul.f32 %v9813_v22, %v2948_v18  ;;  %v10041_v42 = vmul.f32 %v5634_v56, %v9888_v49  ;;  %v11534_v1 = vld [vmem:[#allocation10_spill] sm:$0xff] }
 0x45b   :  { %v5646_v3 = vpop.eup %5645  ;;  %v4888_v8 = vadd.f32 %v9967_v25, %v4560_v43  ;;  %5671 = vrcp.f32 %v4105_v7  ;;  %v4726_v30 = vmul.f32 1.442695, %v4640_v26  ;;  %v5168_v59 = vmul.f32 -1.442695, %v2948_v18 }
 0x45c   :  { %v5648_v36 = vpop.eup %5647  ;;  %v4490_v44 = vadd.f32 %v9710_v10, %v4358_v50  ;;  %v4103_v11 = vadd.f32 1.0, %v5646_v3  ;;  %5673 = vpow2.f32 %v4716_v52  ;;  %v10050_v25 = vmul.f32 %v5638_v21, %v9888_v49  ;;  %v11532_v21 = vld [vmem:[#allocation17_spill] sm:$0xff] }
 0x45d   :  { %v5650_v24 = vpop.eup %5649  ;;  %4953 = vst.msk [vmem:[%s11007_s10 + $0x50] sm:$0xff] %vm4942_vm8, %v4888_v8  ;;  %v4361_v13 = vadd.f32 %v5648_v36, %v9728_v53  ;;  %5675 = vpow2.f32 %v5170_v31  ;;  %v2959_v27 = vadd.f32 %v5479_v19, %v9796_v0  ;;  %v4722_v58 = vmul.f32 1.442695, %v4638_v40  ;;  %v11535_v40 = vld [vmem:[#allocation7_spill] sm:$0xff]  ;;  %v2963_v8 = vpop.f32.mrf.mxu1 }
 0x45e   :  { %v5652_v2 = vpop.eup %5651  ;;  %v4558_v10 = vmul.f32 %v9942_v14, %v4490_v44  ;;  %5677 = vrcp.f32 %v4103_v11  ;;  %v2951_v62 = vadd.f32 %v9796_v0, %v2950_v17  ;;  %v10058_v61 = vmul.f32 %v5644_v29, %v9888_v49 }
 0x45f   :  { %v5654_v57 = vpop.eup %5653  ;;  %v4493_v20 = vadd.f32 %v9713_v5, %v4361_v13  ;;  %v4108_v45 = vadd.f32 1.0, %v5652_v2  ;;  %5679 = vpow2.f32 %v4726_v30  ;;  %v5171_v53 = vmul.f32 -1.442695, %v2959_v27 }
 0x460   :  { %v5656_v12 = vpop.eup %5655  ;;  %v4886_v51 = vadd.f32 %v9996_v48, %v4558_v10  ;;  %5681 = vpow2.f32 %v5168_v59  ;;  %v4641_v16 = vmul.f32 %v9813_v22, %v2959_v27  ;;  %v2972_v5 = vadd.f32 %v5482_v55, %v9796_v0 }
 0x461   :  { %v5658_v41 = vpop.eup %5657  ;;  %v4561_v47 = vmul.f32 %v9942_v14, %v4493_v20  ;;  %v4359_v56 = vadd.f32 %v5656_v12, %v9731_v54  ;;  %5683 = vrcp.f32 %v4108_v45  ;;  %v5169_v63 = vmul.f32 -1.442695, %v2951_v62  ;;  %v11538_v45 = vld [vmem:[#allocation26_spill] sm:$0xff] }
 0x462   :  { %v5660_v15 = vpop.eup %5659  ;;  %4951 = vst.msk [vmem:[%s11007_s10 + $0x40] sm:$0xff] %vm4942_vm8, %v4886_v51  ;;  %v4106_v48 = vadd.f32 1.0, %v5658_v41  ;;  %5685 = vpow2.f32 %v4722_v58  ;;  %v4728_v9 = vmul.f32 1.442695, %v4641_v16  ;;  %v4639_v54 = vmul.f32 %v9813_v22, %v2951_v62  ;;  %v11539_v51 = vld [vmem:[#allocation16_spill] sm:$0xff]  ;;  %v11540_v16 = vld [vmem:[#allocation29_spill] sm:$0xff] }
 0x463   :  { %v5662_v6 = vpop.eup %5661  ;;  %v4889_v38 = vadd.f32 %v10013_v4, %v4561_v47  ;;  %v4491_v23 = vadd.f32 %v9718_v28, %v4359_v56  ;;  %5687 = vpow2.f32 %v5171_v53  ;;  %v10073_v39 = vmul.f32 %v5650_v24, %v9888_v49 }
 0x464   :  { %v5664_v19 = vpop.eup %5663  ;;  %v4364_v32 = vadd.f32 %v5662_v6, %v11532_v21  ;;  %5689 = vrcp.f32 %v4106_v48  ;;  %v11533_v18 = vfloor.f32 %v9882_v33  ;;  %v5174_v52 = vmul.f32 -1.442695, %v2972_v5  ;;  %v11541_v6 = vld [vmem:[#allocation25_spill] sm:$0xff] }
 0x465   :  { %v5666_v34 = vpop.eup %5665  ;;  %4954 = vst.msk [vmem:[%s11007_s10 + $0x58] sm:$0xff] %vm4942_vm8, %v4889_v38  ;;  %v4559_v28 = vmul.f32 %v9942_v14, %v4491_v23  ;;  %v4109_v4 = vadd.f32 1.0, %v5664_v19  ;;  %5691 = vpow2.f32 %v4728_v9  ;;  %v10084_v7 = vmul.f32 %v5654_v57, %v9888_v49 }
 0x466   :  { %v3791_v37 = vmul.f32 16.0, %v11533_v18  ;;  %v5668_v31 = vpop.eup %5667  ;;  %v4496_v43 = vadd.f32 %v11534_v1, %v4364_v32  ;;  %v10087_v26 = vmul.f32 %v5660_v15, %v9888_v49  ;;  %5693 = vpow2.f32 %v5169_v63 }
 0x467   :  { %v5670_v29 = vpop.eup %5669  ;;  %v4887_v50 = vadd.f32 %v10036_v35, %v4559_v28  ;;  %v4362_v17 = vadd.f32 %v5668_v31, %v11535_v40  ;;  %5695 = vrcp.f32 %v4109_v4  ;;  %v4724_v3 = vmul.f32 1.442695, %v4639_v54  ;;  %v11536_v35 = vld [vmem:[#allocation8_spill] sm:$0xff]  ;;  %v10130_v54 = vld [vmem:[%s11005_s9 + $0x1] ss:$0 sm:$0xff]  ;;  %v5483_v28 = vpop.f32.mrf.mxu1 }
 0x468   :  { %v5672_v30 = vpop.eup %5671  ;;  %v4564_v36 = vmul.f32 %v9942_v14, %v4496_v43  ;;  %v10093_v44 = vmul.f32 %v5666_v34, %v9888_v49  ;;  %v4107_v11 = vadd.f32 1.0, %v5670_v29  ;;  %v3855_v59 = vsub.f32 %v9868_v60, %v3791_v37  ;;  %v10107_v60 = vld [vmem:[%s11005_s9 + $0x2] ss:$0 sm:$0xff] }
 0x469   :  { %v5674_v24 = vpop.eup %5673  ;;  %4952 = vst.msk [vmem:[%s11007_s10 + $0x48] sm:$0xff] %vm4942_vm8, %v4887_v50  ;;  %v4494_v13 = vadd.f32 %v11536_v35, %v4362_v17  ;;  %v4365_v27 = vadd.f32 %v5672_v30, %v9766_v46  ;;  %5697 = vpow2.f32 %v5174_v52  ;;  %v4644_v2 = vmul.f32 %v9813_v22, %v2972_v5 }
 0x46a   :  { %v5676_v10 = vpop.eup %5675  ;;  %v4892_v58 = vadd.f32 %v10041_v42, %v4564_v36  ;;  %5699 = vrcp.f32 %v4107_v11  ;;  %v11537_v62 = vmov %v11533_v18  ;;  %v2964_v57 = vadd.f32 %v9796_v0, %v2963_v8  ;;  %v11542_v18 = vld [vmem:[#allocation9_spill] sm:$0xff]  ;;  %v11544_v8 = vld [vmem:[#allocation20_spill] sm:$0xff] }
 0x46b   :  { %v10112_v55 = vmul.f32 %v10107_v60, %v11537_v62  ;;  %v5678_v46 = vpop.eup %5677  ;;  %v4562_v20 = vmul.f32 %v9942_v14, %v4494_v13  ;;  %v4497_v53 = vadd.f32 %v11538_v45, %v4365_v27  ;;  %v4112_v12 = vadd.f32 1.0, %v5676_v10  ;;  %v11545_v13 = vld [vmem:[#allocation30_spill] sm:$0xff] }
 0x46c   :  { %5701 = vpow2.f32 %v4724_v3  ;;  %v5680_v42 = vpop.eup %5679  ;;  %4957 = vst.msk [vmem:[%s11007_s10 + $0x70] sm:$0xff] %vm4942_vm8, %v4892_v58  ;;  %v4363_v33 = vadd.f32 %v5678_v46, %v11539_v51  ;;  %v3661_v41 = vmul.f32 0.0625, %v11540_v16  ;;  %v5172_v47 = vmul.f32 -1.442695, %v2964_v57 }
 0x46d   :  { %v4642_v56 = vmul.f32 %v9813_v22, %v2964_v57  ;;  %v5682_v5 = vpop.eup %5681  ;;  %v4890_v15 = vadd.f32 %v10050_v25, %v4562_v20  ;;  %v4565_v48 = vmul.f32 %v9942_v14, %v4497_v53  ;;  %5703 = vrcp.f32 %v4112_v12  ;;  %v11547_v20 = vld [vmem:[#allocation11_spill] sm:$0xff] }
 0x46e   :  { %v4734_v9 = vmul.f32 1.442695, %v4644_v2  ;;  %v5684_v63 = vpop.eup %5683  ;;  %v4495_v38 = vadd.f32 %v11541_v6, %v4363_v33  ;;  %v4110_v23 = vadd.f32 1.0, %v5682_v5  ;;  %v10133_v19 = vmul.f32 %v10130_v54, %v3855_v59  ;;  %v2966_v2 = vpop.f32.mrf.mxu1  ;;  %v11548_v33 = vld [vmem:[#allocation2_spill] sm:$0xff] }
 0x46f   :  { %v3725_v21 = vfloor.f32 %v3661_v41  ;;  %v5686_v32 = vpop.eup %5685  ;;  %4955 = vst.msk [vmem:[%s11007_s10 + $0x60] sm:$0xff] %vm4942_vm8, %v4890_v15  ;;  %v4893_v25 = vadd.f32 %v10058_v61, %v4565_v48  ;;  %v4368_v37 = vadd.f32 %v5684_v63, %v11542_v18  ;;  %v10142_v34 = vmul.f32 %v5674_v24, %v9888_v49  ;;  %v11543_v61 = vld [vmem:[#allocation5_spill] sm:$0xff] }
 0x470   :  { %5705 = vpow2.f32 %v5172_v47  ;;  %v5688_v4 = vpop.eup %5687  ;;  %v4563_v52 = vmul.f32 %v9942_v14, %v4495_v38  ;;  %v10146_v31 = vmul.f32 %v5680_v42, %v9888_v49  ;;  %v4730_v1 = vmul.f32 1.442695, %v4642_v56  ;;  %v11550_v63 = vld [vmem:[#allocation13_spill] sm:$0xff] }
 0x471   :  { %5707 = vrcp.f32 %v4110_v23  ;;  %v5690_v43 = vpop.eup %5689  ;;  %4958 = vst.msk [vmem:[%s11007_s10 + $0x78] sm:$0xff] %vm4942_vm8, %v4893_v25  ;;  %v4500_v29 = vadd.f32 %v11543_v61, %v4368_v37  ;;  %v10154_v50 = vmul.f32 %v5686_v32, %v9888_v49  ;;  %v4113_v40 = vadd.f32 1.0, %v5688_v4  ;;  %v11551_v23 = vld [vmem:[#allocation14_spill] sm:$0xff] }
 0x472   :  { %5709 = vpow2.f32 %v4734_v9  ;;  %v5692_v17 = vpop.eup %5691  ;;  %v4891_v3 = vadd.f32 %v10073_v39, %v4563_v52  ;;  %v4366_v30 = vadd.f32 %v5690_v43, %v11544_v8  ;;  %v10158_v36 = vmul.f32 16.0, %v3725_v21  ;;  %v11546_v39 = vld [vmem:[#allocation4_spill] sm:$0xff]  ;;  %v11552_v25 = vld [vmem:[#allocation6_spill] sm:$0xff] }
 0x473   :  { %v2975_v11 = vadd.f32 %v5483_v28, %v9796_v0  ;;  %v5694_v59 = vpop.eup %5693  ;;  %v4568_v24 = vmul.f32 %v9942_v14, %v4500_v29  ;;  %5711 = vrcp.f32 %v4113_v40  ;;  %v10163_v35 = vmul.f32 %v10107_v60, %v3725_v21  ;;  %v5486_v29 = vpop.f32.mrf.mxu1 }
 0x474   :  { %v3343_v27 = vmul.f32 0.00390625, %v11545_v13  ;;  %v5696_v10 = vpop.eup %5695  ;;  %4956 = vst.msk [vmem:[%s11007_s10 + $0x68] sm:$0xff] %vm4942_vm8, %v4891_v3  ;;  %v4498_v58 = vadd.f32 %v11546_v39, %v4366_v30  ;;  %v4111_v62 = vadd.f32 1.0, %v5694_v59  ;;  %5713 = vpow2.f32 %v4730_v1  ;;  %v11555_v3 = vld [vmem:[#allocation22_spill] sm:$0xff] }
 0x475   :  { %v5175_v57 = vmul.f32 -1.442695, %v2975_v11  ;;  %v4896_v46 = vadd.f32 %v10084_v7, %v4568_v24  ;;  %v4369_v45 = vadd.f32 %v5696_v10, %v11547_v20  ;;  %v4645_v12 = vmul.f32 %v9813_v22, %v2975_v11  ;;  %v11549_v7 = vld [vmem:[#allocation23_spill] sm:$0xff] }
 0x476   :  { %v3407_v53 = vfloor.f32 %v3343_v27  ;;  %v5698_v42 = vpop.eup %5697  ;;  %v4566_v51 = vmul.f32 %v9942_v14, %v4498_v58  ;;  %5715 = vrcp.f32 %v4111_v62  ;;  %v3853_v16 = vsub.f32 %v11548_v33, %v10158_v36  ;;  %v11557_v58 = vld [vmem:[#allocation12_spill] sm:$0xff] }
 0x477   :  { %v2967_v41 = vadd.f32 %v9796_v0, %v2966_v2  ;;  %v5700_v47 = vpop.eup %5699  ;;  %4961 = vst.msk [vmem:[%s11007_s10 + $0x90] sm:$0xff] %vm4942_vm8, %v4896_v46  ;;  %v4501_v56 = vadd.f32 %v11549_v7, %v4369_v45  ;;  %v4116_v5 = vadd.f32 1.0, %v5698_v42  ;;  %5717 = vpow2.f32 %v5175_v57 }
 0x478   :  { %v3471_v15 = vmul.f32 256.0, %v3407_v53  ;;  %v4894_v9 = vadd.f32 %v10087_v26, %v4566_v51  ;;  %v4367_v6 = vadd.f32 %v5700_v47, %v11550_v63  ;;  %v4736_v38 = vmul.f32 1.442695, %v4645_v12  ;;  %v11554_v26 = vld [vmem:[#allocation21_spill] sm:$0xff]  ;;  %v11559_v51 = vld [vmem:[#allocation24_spill] sm:$0xff] }
 0x479   :  { %v5702_v48 = vpop.eup %5701  ;;  %v3212_v21 = vcvt.s32.f32 %v11551_v23  ;;  %v4569_v32 = vmul.f32 %v9942_v14, %v4501_v56  ;;  %5719 = vrcp.f32 %v4116_v5  ;;  %v11553_v18 = vcvt.s32.f32 %v11552_v25  ;;  %v11560_v56 = vld [vmem:[#allocation27_spill] sm:$0xff]  ;;  %v10249_v25 = vld [vmem:[%s11006_s8] ss:$0 sm:$0xff] }
 0x47a   :  { %v5173_v28 = vmul.f32 -1.442695, %v2967_v41  ;;  %v5704_v4 = vpop.eup %5703  ;;  %4959 = vst.msk [vmem:[%s11007_s10 + $0x80] sm:$0xff] %vm4942_vm8, %v4894_v9  ;;  %v4499_v52 = vadd.f32 %v11554_v26, %v4367_v6  ;;  %v10197_v1 = vmul.f32 %v5692_v17, %v9888_v49  ;;  %v4643_v61 = vmul.f32 %v9813_v22, %v2967_v41  ;;  %v11556_v22 = vld [vmem:[#allocation19_spill] sm:$0xff]  ;;  %v2979_v41 = vpop.f32.mrf.mxu1  ;;  %v11562_v26 = vld [vmem:[#allocation28_spill] sm:$0xff] }
 0x47b   :  { %v10189_v37 = vsub.f32 %v11553_v18, %v3471_v15  ;;  %v3276_v43 = vadd.f32 0.5, %v3212_v21  ;;  %v4897_v40 = vadd.f32 %v10093_v44, %v4569_v32  ;;  %v4372_v8 = vadd.f32 %v5704_v4, %v11555_v3  ;;  %v10243_v32 = vld [vmem:[%s11005_s9 + $0x3] ss:$0 sm:$0xff] }
 0x47c   :  { %5721 = vpow2.f32 %v5173_v28  ;;  %v4567_v11 = vmul.f32 %v9942_v14, %v4499_v52  ;;  %v4732_v24 = vmul.f32 1.442695, %v4643_v61  ;;  %v2988_v2 = vadd.f32 %v5486_v29, %v9796_v0  ;;  %v11558_v0 = vld [vmem:[#allocation15_spill] sm:$0xff] }
 0x47d   :  { %v3599_v30 = vadd.f32 0.5, %v10189_v37  ;;  %v5706_v36 = vpop.eup %5705  ;;  %5723 = vpow2.f32 %v4736_v38  ;;  %v3341_v59 = vmul.f32 0.00390625, %v3276_v43  ;;  %4962 = vst.msk [vmem:[%s11007_s10 + $0x98] sm:$0xff] %vm4942_vm8, %v4897_v40  ;;  %v4504_v17 = vadd.f32 %v11556_v22, %v4372_v8  ;;  %v11561_v38 = vld [vmem:[#allocation3_spill] sm:$0xff] }
 0x47e   :  { %v5708_v13 = vpop.eup %5707  ;;  %v4114_v44 = vadd.f32 1.0, %v5706_v36  ;;  %v4895_v39 = vadd.f32 %v10142_v34, %v4567_v11  ;;  %v10215_v57 = vmul.f32 %v10130_v54, %v3853_v16  ;;  %v4835_v45 = vmul.f32 %v5702_v48, %v9888_v49  ;;  %v11563_v36 = vld [vmem:[#allocation18_spill] sm:$0xff] }
 0x47f   :  { %v10209_v27 = vmul.f32 0.0625, %v3599_v30  ;;  %v5710_v10 = vpop.eup %5709  ;;  %v4370_v62 = vadd.f32 %v5708_v13, %v11557_v58  ;;  %v3405_v46 = vfloor.f32 %v3341_v59  ;;  %v4572_v20 = vmul.f32 %v9942_v14, %v4504_v17  ;;  %v5487_v58 = vpop.f32.mrf.mxu1 }
 0x480   :  { %5725 = vrcp.f32 %v4114_v44  ;;  %v5712_v12 = vpop.eup %5711  ;;  %4960 = vst.msk [vmem:[%s11007_s10 + $0x88] sm:$0xff] %vm4942_vm8, %v4895_v39  ;;  %v10226_v33 = vadd.s32 240, %v11559_v51  ;;  %v5178_v16 = vmul.f32 -1.442695, %v2988_v2  ;;  %v4840_v15 = vmul.f32 %v5710_v10, %v9888_v49 }
 0x481   :  { %v3728_v53 = vfloor.f32 %v10209_v27  ;;  %v4502_v34 = vadd.f32 %v11558_v0, %v4370_v62  ;;  %v3469_v42 = vmul.f32 256.0, %v3405_v46  ;;  %v5714_v47 = vpop.eup %5713  ;;  %v4900_v7 = vadd.f32 %v10146_v31, %v4572_v20 }
 0x482   :  { %v4373_v5 = vadd.f32 %v5712_v12, %v11560_v56  ;;  %5727 = vpow2.f32 %v4732_v24  ;;  %v3217_v63 = vcvt.s32.f32 %v10226_v33  ;;  %v2980_v18 = vadd.f32 %v10249_v25, %v2979_v41  ;;  %v2982_v41 = vpop.f32.mrf.mxu1 }
 0x483   :  { %v4570_v48 = vmul.f32 %v9942_v14, %v4502_v34  ;;  %v10232_v9 = vsub.f32 %v3212_v21, %v3469_v42  ;;  %5729 = vpow2.f32 %v5178_v16  ;;  %v5716_v6 = vpop.eup %5715  ;;  %4965 = vst.msk [vmem:[%s11007_s10 + $0xb0] sm:$0xff] %vm4942_vm8, %v4900_v7  ;;  %v3792_v23 = vmul.f32 16.0, %v3728_v53 }
 0x484   :  { %v4505_v31 = vadd.f32 %v11561_v38, %v4373_v5  ;;  %v4648_v21 = vmul.f32 %v10243_v32, %v2988_v2  ;;  %v5718_v28 = vpop.eup %5717  ;;  %v4371_v52 = vadd.f32 %v5716_v6, %v11562_v26  ;;  %v3281_v61 = vadd.f32 0.5, %v3217_v63 }
 0x485   :  { %v4898_v4 = vadd.f32 %v10154_v50, %v4570_v48  ;;  %v3597_v43 = vadd.f32 0.5, %v10232_v9  ;;  %v10257_v40 = vmul.f32 %v5714_v47, %v9888_v49  ;;  %v4117_v3 = vadd.f32 1.0, %v5718_v28 }
 0x486   :  { %v4573_v29 = vmul.f32 %v9942_v14, %v4505_v31  ;;  %v4742_v8 = vmul.f32 1.442695, %v4648_v21  ;;  %v5720_v30 = vpop.eup %5719  ;;  %v4503_v50 = vadd.f32 %v11563_v36, %v4371_v52  ;;  %v3346_v59 = vmul.f32 0.00390625, %v3281_v61 }
 0x487   :  { %4963 = vst.msk [vmem:[%s11007_s10 + $0xa0] sm:$0xff] %vm4942_vm8, %v4898_v4  ;;  %v10264_v11 = vmul.f32 0.0625, %v3597_v43  ;;  %v3151_v24 = vadd.s32 224, %v11559_v51  ;;  %v4376_v22 = vadd.f32 %v5720_v30, %v10133_v19  ;;  %v3856_v17 = vsub.f32 %v10189_v37, %v3792_v23 }
 0x488   :  { %v4901_v13 = vadd.f32 %v10197_v1, %v4573_v29  ;;  %5731 = vrcp.f32 %v4117_v3  ;;  %v4571_v27 = vmul.f32 %v9942_v14, %v4503_v50  ;;  %v3410_v10 = vfloor.f32 %v3346_v59 }
 0x489   :  { %v5722_v44 = vpop.eup %5721  ;;  %v3726_v2 = vfloor.f32 %v10264_v11  ;;  %v5176_v39 = vmul.f32 -1.442695, %v2980_v18  ;;  %v4508_v1 = vadd.f32 %v10112_v55, %v4376_v22  ;;  %v10278_v19 = vmul.f32 %v10107_v60, %v3728_v53 }
 0x48a   :  { %v5724_v62 = vpop.eup %5723  ;;  %4966 = vst.msk [vmem:[%s11007_s10 + $0xb8] sm:$0xff] %vm4942_vm8, %v4901_v13  ;;  %v4115_v37 = vadd.f32 1.0, %v5722_v44  ;;  %v3215_v46 = vcvt.s32.f32 %v3151_v24  ;;  %v4899_v20 = vadd.f32 %v4835_v45, %v4571_v27  ;;  %v3474_v0 = vmul.f32 256.0, %v3410_v10  ;;  %v10320_v44 = vld [vmem:[%s11005_s9 + $0x4] ss:$0 sm:$0xff] }
 0x48b   :  { %v3790_v12 = vmul.f32 16.0, %v3726_v2  ;;  %5733 = vpow2.f32 %v4742_v8  ;;  %v4576_v34 = vmul.f32 %v9942_v14, %v4508_v1  ;;  %v4646_v33 = vmul.f32 %v10243_v32, %v2980_v18 }
 0x48c   :  { %5735 = vrcp.f32 %v4115_v37  ;;  %v3279_v42 = vadd.f32 0.5, %v3215_v46  ;;  %4964 = vst.msk [vmem:[%s11007_s10 + $0xa8] sm:$0xff] %vm4942_vm8, %v4899_v20  ;;  %v4313_v55 = vmul.f32 %v10130_v54, %v3856_v17  ;;  %v10288_v53 = vmul.f32 %v5724_v62, %v9888_v49 }
 0x48d   :  { %v5726_v16 = vpop.eup %5725  ;;  %v10290_v45 = vsub.f32 %v3217_v63, %v3474_v0  ;;  %5737 = vpow2.f32 %v5176_v39  ;;  %v4904_v47 = vadd.f32 %v4840_v15, %v4576_v34  ;;  %v4738_v5 = vmul.f32 1.442695, %v4646_v33  ;;  %v5490_v39 = vpop.f32.mrf.mxu1 }
 0x48e   :  { %v4374_v7 = vadd.f32 %v5726_v16, %v10215_v57  ;;  %v3344_v56 = vmul.f32 0.00390625, %v3279_v42  ;;  %v3854_v6 = vsub.f32 %v10232_v9, %v3790_v12  ;;  %v2991_v31 = vadd.f32 %v10249_v25, %v5487_v58 }
 0x48f   :  { %v5728_v48 = vpop.eup %5727  ;;  %v3602_v38 = vadd.f32 0.5, %v10290_v45  ;;  %v3154_v23 = vadd.s32 248, %v11559_v51  ;;  %4969 = vst.msk [vmem:[%s11007_s10 + $0xd0] sm:$0xff] %vm4942_vm8, %v4904_v47  ;;  %5739 = vpow2.f32 %v4738_v5  ;;  %v2983_v63 = vadd.f32 %v10249_v25, %v2982_v41 }
 0x490   :  { %v5730_v49 = vpop.eup %5729  ;;  %v4506_v15 = vadd.f32 %v10163_v35, %v4374_v7  ;;  %v3408_v57 = vfloor.f32 %v3344_v56  ;;  %v5179_v28 = vmul.f32 -1.442695, %v2991_v31  ;;  %v4649_v52 = vmul.f32 %v10243_v32, %v2991_v31 }
 0x491   :  { %v3667_v21 = vmul.f32 0.0625, %v3602_v38  ;;  %v4120_v9 = vadd.f32 1.0, %v5730_v49  ;;  %v3218_v18 = vcvt.s32.f32 %v3154_v23  ;;  %v3152_v43 = vadd.s32 232, %v11559_v51 }
 0x492   :  { %v4574_v4 = vmul.f32 %v9942_v14, %v4506_v15  ;;  %v3472_v26 = vmul.f32 256.0, %v3408_v57  ;;  %v5177_v3 = vmul.f32 -1.442695, %v2983_v63  ;;  %v4744_v30 = vmul.f32 1.442695, %v4649_v52  ;;  %v2995_v15 = vpop.f32.mrf.mxu1 }
 0x493   :  { %v3731_v61 = vfloor.f32 %v3667_v21  ;;  %5741 = vrcp.f32 %v4120_v9  ;;  %v3282_v29 = vadd.f32 0.5, %v3218_v18  ;;  %v4443_v50 = vmul.f32 %v10107_v60, %v3726_v2 }
 0x494   :  { %v4902_v35 = vadd.f32 %v10257_v40, %v4574_v4  ;;  %v10307_v8 = vsub.f32 %v3215_v46, %v3472_v26  ;;  %5743 = vpow2.f32 %v5179_v28  ;;  %v3216_v24 = vcvt.s32.f32 %v3152_v43 }
 0x495   :  { %v5732_v36 = vpop.eup %5731  ;;  %v3795_v11 = vmul.f32 16.0, %v3731_v61  ;;  %v3347_v59 = vmul.f32 0.00390625, %v3282_v29  ;;  %v4311_v22 = vmul.f32 %v10130_v54, %v3854_v6  ;;  %v4647_v17 = vmul.f32 %v10243_v32, %v2983_v63 }
 0x496   :  { %4967 = vst.msk [vmem:[%s11007_s10 + $0xc0] sm:$0xff] %vm4942_vm8, %v4902_v35  ;;  %v4377_v13 = vadd.f32 %v5732_v36, %v4313_v55  ;;  %v3600_v40 = vadd.f32 0.5, %v10307_v8  ;;  %v4839_v27 = vmul.f32 %v10320_v44, %v5728_v48  ;;  %v3280_v10 = vadd.f32 0.5, %v3216_v24 }
 0x497   :  { %v3411_v2 = vfloor.f32 %v3347_v59  ;;  %5745 = vpow2.f32 %v5177_v3  ;;  %v3859_v1 = vsub.f32 %v10290_v45, %v3795_v11  ;;  %v4448_v20 = vmul.f32 %v10107_v60, %v3731_v61 }
 0x498   :  { %v5734_v58 = vpop.eup %5733  ;;  %v4509_v62 = vadd.f32 %v10278_v19, %v4377_v13  ;;  %v3665_v37 = vmul.f32 0.0625, %v3600_v40  ;;  %5747 = vpow2.f32 %v4744_v30  ;;  %v3345_v0 = vmul.f32 0.00390625, %v3280_v10 }
 0x499   :  { %v5736_v46 = vpop.eup %5735  ;;  %v3475_v12 = vmul.f32 256.0, %v3411_v2  ;;  %v4740_v34 = vmul.f32 1.442695, %v4647_v17  ;;  %v3004_v41 = vadd.f32 %v10249_v25, %v5490_v39  ;;  %v3157_v45 = vadd.s32 272, %v11559_v51  ;;  %v5491_v17 = vpop.f32.mrf.mxu1 }
 0x49a   :  { %v5738_v42 = vpop.eup %5737  ;;  %v4577_v33 = vmul.f32 %v9942_v14, %v4509_v62  ;;  %v4375_v16 = vadd.f32 %v5736_v46, %v4311_v22  ;;  %v3729_v55 = vfloor.f32 %v3665_v37  ;;  %v3409_v19 = vfloor.f32 %v3345_v0 }
 0x49b   :  { %v4118_v47 = vadd.f32 1.0, %v5738_v42  ;;  %v10328_v7 = vsub.f32 %v3218_v18, %v3475_v12  ;;  %v4316_v48 = vmul.f32 %v10130_v54, %v3859_v1  ;;  %v4844_v6 = vmul.f32 %v10320_v44, %v5734_v58 }
 0x49c   :  { %v4905_v56 = vadd.f32 %v10288_v53, %v4577_v33  ;;  %v4507_v5 = vadd.f32 %v4443_v50, %v4375_v16  ;;  %v5740_v38 = vpop.eup %5739  ;;  %v3473_v23 = vmul.f32 256.0, %v3409_v19  ;;  %v3221_v49 = vcvt.s32.f32 %v3157_v45  ;;  %v2998_v16 = vpop.f32.mrf.mxu1 }
 0x49d   :  { %5749 = vrcp.f32 %v4118_v47  ;;  %v3603_v31 = vadd.f32 0.5, %v10328_v7  ;;  %v3793_v53 = vmul.f32 16.0, %v3729_v55  ;;  %v5182_v63 = vmul.f32 -1.442695, %v3004_v41 }
 0x49e   :  { %4970 = vst.msk [vmem:[%s11007_s10 + $0xd8] sm:$0xff] %vm4942_vm8, %v4905_v56  ;;  %v4575_v57 = vmul.f32 %v9942_v14, %v4507_v5  ;;  %5751 = vpow2.f32 %v4740_v34  ;;  %v10340_v9 = vsub.f32 %v3216_v24, %v3473_v23  ;;  %v3285_v18 = vadd.f32 0.5, %v3221_v49 }
 0x49f   :  { %v3668_v21 = vmul.f32 0.0625, %v3603_v31  ;;  %v4652_v28 = vmul.f32 %v10243_v32, %v3004_v41  ;;  %v4446_v52 = vmul.f32 %v10107_v60, %v3729_v55  ;;  %5753 = vpow2.f32 %v5182_v63 }
 0x4a0   :  { %v5742_v4 = vpop.eup %5741  ;;  %v4903_v26 = vadd.f32 %v4839_v27, %v4575_v57  ;;  %v2996_v43 = vadd.f32 %v10249_v25, %v2995_v15  ;;  %v3601_v35 = vadd.f32 0.5, %v10340_v9  ;;  %v3350_v30 = vmul.f32 0.00390625, %v3285_v18 }
 0x4a1   :  { %v5744_v61 = vpop.eup %5743  ;;  %v4380_v29 = vadd.f32 %v5742_v4, %v4316_v48  ;;  %v3732_v3 = vfloor.f32 %v3668_v21  ;;  %v3857_v36 = vsub.f32 %v10307_v8, %v3793_v53  ;;  %v10352_v50 = vmul.f32 %v10320_v44, %v5740_v38 }
 0x4a2   :  { %4968 = vst.msk [vmem:[%s11007_s10 + $0xc8] sm:$0xff] %vm4942_vm8, %v4903_v26  ;;  %v4121_v11 = vadd.f32 1.0, %v5744_v61  ;;  %v3155_v59 = vadd.s32 256, %v11559_v51  ;;  %v3666_v22 = vmul.f32 0.0625, %v3601_v35  ;;  %v4750_v40 = vmul.f32 1.442695, %v4652_v28 }
 0x4a3   :  { %v4512_v24 = vadd.f32 %v4448_v20, %v4380_v29  ;;  %v3796_v13 = vmul.f32 16.0, %v3732_v3  ;;  %v3414_v2 = vfloor.f32 %v3350_v30  ;;  %v5180_v39 = vmul.f32 -1.442695, %v2996_v43 }
 0x4a4   :  { %v5746_v27 = vpop.eup %5745  ;;  %5755 = vrcp.f32 %v4121_v11  ;;  %v3219_v10 = vcvt.s32.f32 %v3155_v59  ;;  %v3730_v1 = vfloor.f32 %v3666_v22  ;;  %v4314_v46 = vmul.f32 %v10130_v54, %v3857_v36 }
 0x4a5   :  { %v5748_v58 = vpop.eup %5747  ;;  %v4580_v62 = vmul.f32 %v9942_v14, %v4512_v24  ;;  %v3860_v8 = vsub.f32 %v10328_v7, %v3796_v13  ;;  %v4119_v37 = vadd.f32 1.0, %v5746_v27  ;;  %v3478_v12 = vmul.f32 256.0, %v3414_v2 }
 0x4a6   :  { %v3283_v20 = vadd.f32 0.5, %v3219_v10  ;;  %v4650_v0 = vmul.f32 %v10243_v32, %v2996_v43  ;;  %v4449_v42 = vmul.f32 %v10107_v60, %v3732_v3  ;;  %v3794_v33 = vmul.f32 16.0, %v3730_v1 }
 0x4a7   :  { %v4908_v34 = vadd.f32 %v4844_v6, %v4580_v62  ;;  %5757 = vrcp.f32 %v4119_v37  ;;  %v10361_v55 = vmul.f32 %v10320_v44, %v5748_v58  ;;  %v10363_v14 = vsub.f32 %v3221_v49, %v3478_v12 }
 0x4a8   :  { %5759 = vpow2.f32 %v4750_v40  ;;  %v3348_v41 = vmul.f32 0.00390625, %v3283_v20  ;;  %v4317_v47 = vmul.f32 %v10130_v54, %v3860_v8  ;;  %v4746_v7 = vmul.f32 1.442695, %v4650_v0 }
 0x4a9   :  { %4973 = vst.msk [vmem:[%s11007_s10 + $0xf0] sm:$0xff] %vm4942_vm8, %v4908_v34  ;;  %5761 = vpow2.f32 %v5180_v39  ;;  %v3007_v19 = vadd.f32 %v10249_v25, %v5491_v17  ;;  %v3606_v56 = vadd.f32 0.5, %v10363_v14  ;;  %v3158_v48 = vadd.s32 280, %v11559_v51  ;;  %v5494_v39 = vpop.f32.mrf.mxu1 }
 0x4aa   :  { %v5750_v45 = vpop.eup %5749  ;;  %v3412_v5 = vfloor.f32 %v3348_v41  ;;  %v2999_v6 = vadd.f32 %v10249_v25, %v2998_v16  ;;  %v3858_v23 = vsub.f32 %v10340_v9, %v3794_v33  ;;  %5763 = vpow2.f32 %v4746_v7  ;;  %v10382_v9 = vld [vmem:[%s11005_s9] ss:$0 sm:$0xff] }
 0x4ab   :  { %v5752_v38 = vpop.eup %5751  ;;  %v4378_v31 = vadd.f32 %v5750_v45, %v4314_v46  ;;  %v5183_v49 = vmul.f32 -1.442695, %v3007_v19  ;;  %v3671_v15 = vmul.f32 0.0625, %v3606_v56  ;;  %v3222_v53 = vcvt.s32.f32 %v3158_v48 }
 0x4ac   :  { %v3476_v57 = vmul.f32 256.0, %v3412_v5  ;;  %v4653_v63 = vmul.f32 %v10243_v32, %v3007_v19  ;;  %v5754_v21 = vpop.eup %5753  ;;  %v3156_v28 = vadd.s32 264, %v11559_v51  ;;  %v5181_v4 = vmul.f32 -1.442695, %v2999_v6 }
 0x4ad   :  { %v4510_v18 = vadd.f32 %v4446_v52, %v4378_v31  ;;  %5765 = vpow2.f32 %v5183_v49  ;;  %v3735_v26 = vfloor.f32 %v3671_v15  ;;  %v4124_v43 = vadd.f32 1.0, %v5754_v21 }
 0x4ae   :  { %v10377_v61 = vsub.f32 %v3219_v10, %v3476_v57  ;;  %v3286_v29 = vadd.f32 0.5, %v3222_v53  ;;  %v4752_v35 = vmul.f32 1.442695, %v4653_v63  ;;  %v3220_v30 = vcvt.s32.f32 %v3156_v28  ;;  %v3011_v28 = vpop.f32.mrf.mxu1 }
 0x4af   :  { %v4578_v3 = vmul.f32 %v10382_v9, %v4510_v18  ;;  %5767 = vpow2.f32 %v5181_v4  ;;  %v4447_v52 = vmul.f32 %v10107_v60, %v3730_v1  ;;  %v3799_v36 = vmul.f32 16.0, %v3735_v26 }
 0x4b0   :  { %5769 = vrcp.f32 %v4124_v43  ;;  %v3604_v11 = vadd.f32 0.5, %v10377_v61  ;;  %v4315_v13 = vmul.f32 %v10130_v54, %v3858_v23  ;;  %v3351_v22 = vmul.f32 0.00390625, %v3286_v29 }
 0x4b1   :  { %v5756_v59 = vpop.eup %5755  ;;  %v4906_v24 = vadd.f32 %v10352_v50, %v4578_v3  ;;  %v3284_v40 = vadd.f32 0.5, %v3220_v30  ;;  %v4843_v27 = vmul.f32 %v10320_v44, %v5752_v38  ;;  %v4651_v10 = vmul.f32 %v10243_v32, %v2999_v6 }
 0x4b2   :  { %v4381_v17 = vadd.f32 %v5756_v59, %v4317_v47  ;;  %v3669_v2 = vmul.f32 0.0625, %v3604_v11  ;;  %v3415_v58 = vfloor.f32 %v3351_v22  ;;  %5771 = vpow2.f32 %v4752_v35 }
 0x4b3   :  { %4971 = vst.msk [vmem:[%s11007_s10 + $0xe0] sm:$0xff] %vm4942_vm8, %v4906_v24  ;;  %v3349_v62 = vmul.f32 0.00390625, %v3284_v40  ;;  %v10396_v50 = vadd.s32 304, %v11559_v51  ;;  %v3863_v37 = vsub.f32 %v10363_v14, %v3799_v36  ;;  %v4452_v46 = vmul.f32 %v10107_v60, %v3735_v26 }
 0x4b4   :  { %v5758_v8 = vpop.eup %5757  ;;  %v4513_v1 = vadd.f32 %v4449_v42, %v4381_v17  ;;  %v3733_v12 = vfloor.f32 %v3669_v2  ;;  %v3479_v34 = vmul.f32 256.0, %v3415_v58  ;;  %v3020_v16 = vadd.f32 %v10249_v25, %v5494_v39  ;;  %v5495_v2 = vpop.f32.mrf.mxu1 }
 0x4b5   :  { %v5760_v20 = vpop.eup %5759  ;;  %v4379_v0 = vadd.f32 %v5758_v8, %v4315_v13  ;;  %v3413_v33 = vfloor.f32 %v3349_v62  ;;  %v4748_v19 = vmul.f32 1.442695, %v4651_v10  ;;  %v3225_v45 = vcvt.s32.f32 %v10396_v50 }
 0x4b6   :  { %v5762_v41 = vpop.eup %5761  ;;  %v4581_v47 = vmul.f32 %v10382_v9, %v4513_v1  ;;  %v3797_v7 = vmul.f32 16.0, %v3733_v12  ;;  %v10403_v5 = vsub.f32 %v3222_v53, %v3479_v34  ;;  %v4320_v38 = vmul.f32 %v10130_v54, %v3863_v37 }
 0x4b7   :  { %v4511_v56 = vadd.f32 %v4447_v52, %v4379_v0  ;;  %v4122_v42 = vadd.f32 1.0, %v5762_v41  ;;  %v3477_v14 = vmul.f32 256.0, %v3413_v33  ;;  %v5764_v48 = vpop.eup %5763  ;;  %v4848_v31 = vmul.f32 %v10320_v44, %v5760_v20 }
 0x4b8   :  { %v4909_v6 = vadd.f32 %v10361_v55, %v4581_v47  ;;  %v3289_v23 = vadd.f32 0.5, %v3225_v45  ;;  %v10410_v15 = vmul.f32 %v10107_v60, %v3733_v12  ;;  %v3607_v57 = vadd.f32 0.5, %v10403_v5  ;;  %v3014_v47 = vpop.f32.mrf.mxu1 }
 0x4b9   :  { %v4579_v49 = vmul.f32 %v10382_v9, %v4511_v56  ;;  %5773 = vrcp.f32 %v4122_v42  ;;  %v3861_v55 = vsub.f32 %v10377_v61, %v3797_v7  ;;  %v10418_v53 = vsub.f32 %v3220_v30, %v3477_v14 }
 0x4ba   :  { %v5766_v63 = vpop.eup %5765  ;;  %4974 = vst.msk [vmem:[%s11007_s10 + $0xf8] sm:$0xff] %vm4942_vm8, %v4909_v6  ;;  %v3354_v21 = vmul.f32 0.00390625, %v3289_v23  ;;  %v5186_v18 = vmul.f32 -1.442695, %v3020_v16  ;;  %v3672_v26 = vmul.f32 0.0625, %v3607_v57  ;;  %5775 = vpow2.f32 %v4748_v19 }
 0x4bb   :  { %v4907_v4 = vadd.f32 %v4843_v27, %v4579_v49  ;;  %v4125_v43 = vadd.f32 1.0, %v5766_v63  ;;  %v3605_v3 = vadd.f32 0.5, %v10418_v53  ;;  %v4656_v52 = vmul.f32 %v10243_v32, %v3020_v16 }
 0x4bc   :  { %v5768_v29 = vpop.eup %5767  ;;  %v3418_v35 = vfloor.f32 %v3354_v21  ;;  %5777 = vpow2.f32 %v5186_v18  ;;  %v3736_v61 = vfloor.f32 %v3672_v26  ;;  %v3012_v11 = vadd.f32 %v10249_v25, %v3011_v28 }
 0x4bd   :  { %v5770_v36 = vpop.eup %5769  ;;  %4972 = vst.msk [vmem:[%s11007_s10 + $0xe8] sm:$0xff] %vm4942_vm8, %v4907_v4  ;;  %5779 = vrcp.f32 %v4125_v43  ;;  %v4123_v30 = vadd.f32 1.0, %v5768_v29  ;;  %v3670_v24 = vmul.f32 0.0625, %v3605_v3  ;;  %v3159_v22 = vadd.s32 288, %v11559_v51 }
 0x4be   :  { %v4384_v59 = vadd.f32 %v5770_v36, %v4320_v38  ;;  %v3482_v13 = vmul.f32 256.0, %v3418_v35  ;;  %v4318_v40 = vmul.f32 %v10130_v54, %v3861_v55  ;;  %v10430_v17 = vmul.f32 %v10320_v44, %v5764_v48 }
 0x4bf   :  { %v3800_v27 = vmul.f32 16.0, %v3736_v61  ;;  %5781 = vrcp.f32 %v4123_v30  ;;  %v5772_v10 = vpop.eup %5771  ;;  %v3734_v58 = vfloor.f32 %v3670_v24  ;;  %v4758_v50 = vmul.f32 1.442695, %v4656_v52 }
 0x4c0   :  { %v4516_v39 = vadd.f32 %v4452_v46, %v4384_v59  ;;  %v10432_v62 = vsub.f32 %v3225_v45, %v3482_v13  ;;  %v3223_v1 = vcvt.s32.f32 %v3159_v22  ;;  %v5184_v37 = vmul.f32 -1.442695, %v3012_v11 }
 0x4c1   :  { %v3864_v8 = vsub.f32 %v10403_v5, %v3800_v27  ;;  %v4654_v12 = vmul.f32 %v10243_v32, %v3012_v11  ;;  %v4453_v0 = vmul.f32 %v10107_v60, %v3736_v61  ;;  %v3798_v34 = vmul.f32 16.0, %v3734_v58 }
 0x4c2   :  { %v4584_v20 = vmul.f32 %v10382_v9, %v4516_v39  ;;  %v3610_v33 = vadd.f32 0.5, %v10432_v62  ;;  %v10440_v16 = vmul.f32 %v10320_v44, %v5772_v10  ;;  %v3287_v46 = vadd.f32 0.5, %v3223_v1 }
 0x4c3   :  { %5783 = vpow2.f32 %v5184_v37  ;;  %v4754_v41 = vmul.f32 1.442695, %v4654_v12  ;;  %v3862_v19 = vsub.f32 %v10418_v53, %v3798_v34  ;;  %v3023_v56 = vadd.f32 %v10249_v25, %v5495_v2 }
 0x4c4   :  { %v4912_v7 = vadd.f32 %v4848_v31, %v4584_v20  ;;  %v10443_v45 = vmul.f32 0.0625, %v3610_v33  ;;  %v4321_v42 = vmul.f32 %v10130_v54, %v3864_v8  ;;  %5785 = vpow2.f32 %v4758_v50 }
 0x4c5   :  { %v3352_v5 = vmul.f32 0.00390625, %v3287_v46  ;;  %v3162_v14 = vadd.s32 312, %v11559_v51  ;;  %5787 = vpow2.f32 %v4754_v41  ;;  %v5187_v38 = vmul.f32 -1.442695, %v3023_v56 }
 0x4c6   :  { %v5774_v48 = vpop.eup %5773  ;;  %4977 = vst.msk [vmem:[%s11007_s10 + $0x110] sm:$0xff] %vm4942_vm8, %v4912_v7  ;;  %v3739_v6 = vfloor.f32 %v10443_v45  ;;  %v3015_v31 = vadd.f32 %v10249_v25, %v3014_v47  ;;  %v4657_v63 = vmul.f32 %v10243_v32, %v3023_v56  ;;  %v4319_v53 = vmul.f32 %v10130_v54, %v3862_v19 }
 0x4c7   :  { %v4382_v23 = vadd.f32 %v5774_v48, %v4318_v40  ;;  %v3416_v49 = vfloor.f32 %v3352_v5  ;;  %v3226_v57 = vcvt.s32.f32 %v3162_v14  ;;  %v5776_v55 = vpop.eup %5775  ;;  %v4451_v21 = vmul.f32 %v10107_v60, %v3734_v58  ;;  %v5498_v58 = vpop.f32.mrf.mxu1 }
 0x4c8   :  { %5789 = vpow2.f32 %v5187_v38  ;;  %v3160_v18 = vadd.s32 296, %v11559_v51  ;;  %v3803_v26 = vmul.f32 16.0, %v3739_v6  ;;  %v4760_v52 = vmul.f32 1.442695, %v4657_v63 }
 0x4c9   :  { %v5778_v28 = vpop.eup %5777  ;;  %v4514_v4 = vadd.f32 %v10410_v15, %v4382_v23  ;;  %v3480_v43 = vmul.f32 256.0, %v3416_v49  ;;  %v3290_v29 = vadd.f32 0.5, %v3226_v57  ;;  %v5185_v61 = vmul.f32 -1.442695, %v3015_v31  ;;  %v3027_v14 = vpop.f32.mrf.mxu1 }
 0x4ca   :  { %v5780_v3 = vpop.eup %5779  ;;  %v4128_v35 = vadd.f32 1.0, %v5778_v28  ;;  %v3224_v36 = vcvt.s32.f32 %v3160_v18  ;;  %v4847_v22 = vmul.f32 %v10320_v44, %v5776_v55  ;;  %v4655_v40 = vmul.f32 %v10243_v32, %v3015_v31 }
 0x4cb   :  { %v4582_v30 = vmul.f32 %v10382_v9, %v4514_v4  ;;  %v4385_v11 = vadd.f32 %v5780_v3, %v4321_v42  ;;  %v10462_v59 = vsub.f32 %v3223_v1, %v3480_v43  ;;  %v3355_v24 = vmul.f32 0.00390625, %v3290_v29 }
 0x4cc   :  { %v5782_v13 = vpop.eup %5781  ;;  %5791 = vrcp.f32 %v4128_v35  ;;  %v3288_v15 = vadd.f32 0.5, %v3224_v36  ;;  %v3867_v50 = vsub.f32 %v10432_v62, %v3803_v26  ;;  %v4756_v33 = vmul.f32 1.442695, %v4655_v40 }
 0x4cd   :  { %v4910_v27 = vadd.f32 %v10430_v17, %v4582_v30  ;;  %v4517_v2 = vadd.f32 %v4453_v0, %v4385_v11  ;;  %v4383_v10 = vadd.f32 %v5782_v13, %v4319_v53  ;;  %v3608_v39 = vadd.f32 0.5, %v10462_v59 }
 0x4ce   :  { %v3419_v8 = vfloor.f32 %v3355_v24  ;;  %5793 = vpow2.f32 %v4760_v52  ;;  %v3353_v1 = vmul.f32 0.00390625, %v3288_v15  ;;  %v3036_v46 = vadd.f32 %v10249_v25, %v5498_v58  ;;  %v10506_v52 = vld [vmem:[%s11005_s9 + $0x2] ss:$0 sm:$0xff] }
 0x4cf   :  { %4975 = vst.msk [vmem:[%s11007_s10 + $0x100] sm:$0xff] %vm4942_vm8, %v4910_v27  ;;  %v4585_v37 = vmul.f32 %v10382_v9, %v4517_v2  ;;  %v4515_v12 = vadd.f32 %v4451_v21, %v4383_v10  ;;  %v3673_v20 = vmul.f32 0.0625, %v3608_v39  ;;  %5795 = vpow2.f32 %v5185_v61  ;;  %v5499_v10 = vpop.f32.mrf.mxu1 }
 0x4d0   :  { %v5784_v17 = vpop.eup %5783  ;;  %v3483_v0 = vmul.f32 256.0, %v3419_v8  ;;  %v3417_v34 = vfloor.f32 %v3353_v1  ;;  %v3165_v5 = vadd.s32 336, %v11559_v51  ;;  %v4324_v23 = vmul.f32 %v10130_v54, %v3867_v50  ;;  %v10515_v50 = vld [vmem:[%s11005_s9 + $0x1] ss:$0 sm:$0xff] }
 0x4d1   :  { %v4913_v62 = vadd.f32 %v10440_v16, %v4585_v37  ;;  %v4583_v41 = vmul.f32 %v10382_v9, %v4515_v12  ;;  %v3737_v47 = vfloor.f32 %v3673_v20  ;;  %v4126_v7 = vadd.f32 1.0, %v5784_v17  ;;  %v5786_v19 = vpop.eup %5785 }
 0x4d2   :  { %v10477_v56 = vsub.f32 %v3226_v57, %v3483_v0  ;;  %v3481_v42 = vmul.f32 256.0, %v3417_v34  ;;  %v5788_v48 = vpop.eup %5787  ;;  %v4456_v16 = vmul.f32 %v10107_v60, %v3739_v6  ;;  %v3229_v63 = vcvt.s32.f32 %v3165_v5 }
 0x4d3   :  { %4978 = vst.msk [vmem:[%s11007_s10 + $0x118] sm:$0xff] %vm4942_vm8, %v4913_v62  ;;  %v4911_v38 = vadd.f32 %v4847_v22, %v4583_v41  ;;  %v3801_v31 = vmul.f32 16.0, %v3737_v47  ;;  %5797 = vrcp.f32 %v4126_v7  ;;  %v5190_v53 = vmul.f32 -1.442695, %v3036_v46  ;;  %v3030_v7 = vpop.f32.mrf.mxu1 }
 0x4d4   :  { %v3611_v49 = vadd.f32 0.5, %v10477_v56  ;;  %v10489_v57 = vsub.f32 %v3224_v36, %v3481_v42  ;;  %5799 = vpow2.f32 %v4756_v33  ;;  %v4660_v45 = vmul.f32 %v10243_v32, %v3036_v46 }
 0x4d5   :  { %v5790_v55 = vpop.eup %5789  ;;  %4976 = vst.msk [vmem:[%s11007_s10 + $0x108] sm:$0xff] %vm4942_vm8, %v4911_v38  ;;  %v3028_v60 = vadd.f32 %v10249_v25, %v3027_v14  ;;  %v3293_v18 = vadd.f32 0.5, %v3229_v63  ;;  %v4852_v28 = vmul.f32 %v10320_v44, %v5786_v19  ;;  %v3865_v4 = vsub.f32 %v10462_v59, %v3801_v31 }
 0x4d6   :  { %v3676_v6 = vmul.f32 0.0625, %v3611_v49  ;;  %v4129_v21 = vadd.f32 1.0, %v5790_v55  ;;  %v3609_v54 = vadd.f32 0.5, %v10489_v57  ;;  %5801 = vpow2.f32 %v5190_v53 }
 0x4d7   :  { %v3163_v26 = vadd.s32 320, %v11559_v51  ;;  %v3358_v3 = vmul.f32 0.00390625, %v3293_v18  ;;  %v4454_v36 = vmul.f32 %v10506_v52, %v3737_v47  ;;  %v4766_v61 = vmul.f32 1.442695, %v4660_v45 }
 0x4d8   :  { %v3740_v43 = vfloor.f32 %v3676_v6  ;;  %5803 = vrcp.f32 %v4129_v21  ;;  %v10501_v29 = vmul.f32 0.0625, %v3609_v54  ;;  %v5188_v11 = vmul.f32 -1.442695, %v3028_v60 }
 0x4d9   :  { %v5792_v35 = vpop.eup %5791  ;;  %v3227_v30 = vcvt.s32.f32 %v3163_v26  ;;  %v4658_v22 = vmul.f32 %v10243_v32, %v3028_v60  ;;  %v4850_v40 = vmul.f32 %v10320_v44, %v5788_v48  ;;  %v3422_v27 = vfloor.f32 %v3358_v3 }
 0x4da   :  { %v4388_v59 = vadd.f32 %v5792_v35, %v4324_v23  ;;  %v3804_v24 = vmul.f32 16.0, %v3740_v43  ;;  %v3738_v13 = vfloor.f32 %v10501_v29  ;;  %5805 = vpow2.f32 %v5188_v11 }
 0x4db   :  { %v5794_v15 = vpop.eup %5793  ;;  %v3291_v2 = vadd.f32 0.5, %v3227_v30  ;;  %v4322_v8 = vmul.f32 %v10515_v50, %v3865_v4  ;;  %v3486_v20 = vmul.f32 256.0, %v3422_v27  ;;  %5807 = vpow2.f32 %v4766_v61 }
 0x4dc   :  { %v5796_v39 = vpop.eup %5795  ;;  %v4520_v58 = vadd.f32 %v4456_v16, %v4388_v59  ;;  %v3868_v1 = vsub.f32 %v10477_v56, %v3804_v24  ;;  %v3802_v37 = vmul.f32 16.0, %v3738_v13  ;;  %v4457_v34 = vmul.f32 %v10506_v52, %v3740_v43 }
 0x4dd   :  { %v4127_v12 = vadd.f32 1.0, %v5796_v39  ;;  %v3356_v17 = vmul.f32 0.00390625, %v3291_v2  ;;  %v10522_v33 = vmul.f32 %v10320_v44, %v5794_v15  ;;  %v4762_v46 = vmul.f32 1.442695, %v4658_v22  ;;  %v5502_v2 = vpop.f32.mrf.mxu1 }
 0x4de   :  { %v4588_v0 = vmul.f32 %v10382_v9, %v4520_v58  ;;  %v10524_v62 = vsub.f32 %v3229_v63, %v3486_v20  ;;  %v3039_v47 = vadd.f32 %v10249_v25, %v5499_v10  ;;  %v4325_v42 = vmul.f32 %v10515_v50, %v3868_v1 }
 0x4df   :  { %5809 = vrcp.f32 %v4127_v12  ;;  %v3420_v41 = vfloor.f32 %v3356_v17  ;;  %v3866_v5 = vsub.f32 %v10489_v57, %v3802_v37  ;;  %v3166_v14 = vadd.s32 344, %v11559_v51 }
 0x4e0   :  { %v5798_v19 = vpop.eup %5797  ;;  %v4916_v56 = vadd.f32 %v4852_v28, %v4588_v0  ;;  %v3614_v38 = vadd.f32 0.5, %v10524_v62  ;;  %v5191_v31 = vmul.f32 -1.442695, %v3039_v47  ;;  %v4661_v63 = vmul.f32 %v10243_v32, %v3039_v47 }
 0x4e1   :  { %v4386_v48 = vadd.f32 %v5798_v19, %v4322_v8  ;;  %v3484_v16 = vmul.f32 256.0, %v3420_v41  ;;  %v5800_v23 = vpop.eup %5799  ;;  %v3230_v49 = vcvt.s32.f32 %v3166_v14  ;;  %v3031_v55 = vadd.f32 %v10249_v25, %v3030_v7 }
 0x4e2   :  { %4981 = vst.msk [vmem:[%s11007_s10 + $0x130] sm:$0xff] %vm4942_vm8, %v4916_v56  ;;  %v3164_v57 = vadd.s32 328, %v11559_v51  ;;  %v3679_v45 = vmul.f32 0.0625, %v3614_v38  ;;  %5811 = vpow2.f32 %v5191_v31  ;;  %v4768_v54 = vmul.f32 1.442695, %v4661_v63 }
 0x4e3   :  { %v4518_v53 = vadd.f32 %v4454_v36, %v4386_v48  ;;  %v10538_v60 = vsub.f32 %v3227_v30, %v3484_v16  ;;  %v5802_v6 = vpop.eup %5801  ;;  %v3294_v21 = vadd.f32 0.5, %v3230_v49  ;;  %v5189_v28 = vmul.f32 -1.442695, %v3031_v55  ;;  %v3043_v16 = vpop.f32.mrf.mxu1 }
 0x4e4   :  { %v3228_v18 = vcvt.s32.f32 %v3164_v57  ;;  %v3743_v43 = vfloor.f32 %v3679_v45  ;;  %v4132_v29 = vadd.f32 1.0, %v5802_v6  ;;  %5813 = vpow2.f32 %v4762_v46 }
 0x4e5   :  { %v5804_v4 = vpop.eup %5803  ;;  %v4586_v26 = vmul.f32 %v10382_v9, %v4518_v53  ;;  %v3612_v3 = vadd.f32 0.5, %v10538_v60  ;;  %v3359_v61 = vmul.f32 0.00390625, %v3294_v21  ;;  %v4455_v30 = vmul.f32 %v10506_v52, %v3738_v13  ;;  %v10577_v21 = vld [vmem:[%s11006_s8] ss:$0 sm:$0xff] }
 0x4e6   :  { %v4389_v35 = vadd.f32 %v5804_v4, %v4325_v42  ;;  %v3292_v36 = vadd.f32 0.5, %v3228_v18  ;;  %v3807_v59 = vmul.f32 16.0, %v3743_v43  ;;  %5815 = vrcp.f32 %v4132_v29 }
 0x4e7   :  { %v4914_v11 = vadd.f32 %v4850_v40, %v4586_v26  ;;  %v5806_v24 = vpop.eup %5805  ;;  %v10543_v15 = vmul.f32 0.0625, %v3612_v3  ;;  %v3423_v27 = vfloor.f32 %v3359_v61  ;;  %5817 = vpow2.f32 %v4768_v54 }
 0x4e8   :  { %v4521_v22 = vadd.f32 %v4457_v34, %v4389_v35  ;;  %v4323_v10 = vmul.f32 %v10515_v50, %v3866_v5  ;;  %v4130_v39 = vadd.f32 1.0, %v5806_v24  ;;  %v3357_v40 = vmul.f32 0.00390625, %v3292_v36  ;;  %v5808_v13 = vpop.eup %5807 }
 0x4e9   :  { %4979 = vst.msk [vmem:[%s11007_s10 + $0x120] sm:$0xff] %vm4942_vm8, %v4914_v11  ;;  %5819 = vpow2.f32 %v5189_v28  ;;  %v3871_v8 = vsub.f32 %v10524_v62, %v3807_v59  ;;  %v3741_v1 = vfloor.f32 %v10543_v15  ;;  %v3487_v37 = vmul.f32 256.0, %v3423_v27  ;;  %v5503_v27 = vpop.f32.mrf.mxu1 }
 0x4ea   :  { %v4589_v58 = vmul.f32 %v10382_v9, %v4521_v22  ;;  %5821 = vrcp.f32 %v4130_v39  ;;  %v3421_v12 = vfloor.f32 %v3357_v40  ;;  %v4659_v20 = vmul.f32 %v10243_v32, %v3031_v55  ;;  %v10593_v40 = vld [vmem:[%s11005_s9 + $0x3] ss:$0 sm:$0xff] }
 0x4eb   :  { %v3052_v17 = vadd.f32 %v10249_v25, %v5502_v2  ;;  %v4851_v46 = vmul.f32 %v10320_v44, %v5800_v23  ;;  %v3805_v41 = vmul.f32 16.0, %v3741_v1  ;;  %v4460_v7 = vmul.f32 %v10506_v52, %v3743_v43 }
 0x4ec   :  { %v5810_v0 = vpop.eup %5809  ;;  %v4917_v34 = vadd.f32 %v10522_v33, %v4589_v58  ;;  %v10558_v19 = vsub.f32 %v3230_v49, %v3487_v37  ;;  %v3485_v62 = vmul.f32 256.0, %v3421_v12  ;;  %v4328_v56 = vmul.f32 %v10515_v50, %v3871_v8 }
 0x4ed   :  { %v4387_v47 = vadd.f32 %v5810_v0, %v4323_v10  ;;  %v3169_v25 = vadd.s32 368, %v11559_v51  ;;  %v5194_v42 = vmul.f32 -1.442695, %v3052_v17  ;;  %v4664_v33 = vmul.f32 %v10243_v32, %v3052_v17 }
 0x4ee   :  { %4982 = vst.msk [vmem:[%s11007_s10 + $0x138] sm:$0xff] %vm4942_vm8, %v4917_v34  ;;  %v3615_v14 = vadd.f32 0.5, %v10558_v19  ;;  %v10568_v48 = vsub.f32 %v3228_v18, %v3485_v62  ;;  %v4764_v38 = vmul.f32 1.442695, %v4659_v20  ;;  %v3869_v23 = vsub.f32 %v10538_v60, %v3805_v41 }
 0x4ef   :  { %v4519_v5 = vadd.f32 %v4455_v30, %v4387_v47  ;;  %v5812_v31 = vpop.eup %5811  ;;  %v3233_v49 = vcvt.s32.f32 %v3169_v25  ;;  %5823 = vpow2.f32 %v5194_v42  ;;  %v4774_v63 = vmul.f32 1.442695, %v4664_v33 }
 0x4f0   :  { %v3680_v57 = vmul.f32 0.0625, %v3615_v14  ;;  %v4133_v53 = vadd.f32 1.0, %v5812_v31  ;;  %v3613_v45 = vadd.f32 0.5, %v10568_v48  ;;  %v4856_v32 = vmul.f32 %v10320_v44, %v5808_v13 }
 0x4f1   :  { %v4587_v55 = vmul.f32 %v10382_v9, %v4519_v5  ;;  %v3297_v6 = vadd.f32 0.5, %v3233_v49  ;;  %v3044_v54 = vadd.f32 %v10577_v21, %v3043_v16  ;;  %v3167_v60 = vadd.s32 352, %v11559_v51  ;;  %v5814_v18 = vpop.eup %5813 }
 0x4f2   :  { %v3744_v4 = vfloor.f32 %v3680_v57  ;;  %5825 = vrcp.f32 %v4133_v53  ;;  %v10581_v26 = vmul.f32 0.0625, %v3613_v45  ;;  %v4326_v11 = vmul.f32 %v10515_v50, %v3869_v23 }
 0x4f3   :  { %v4915_v28 = vadd.f32 %v4851_v46, %v4587_v55  ;;  %v5816_v43 = vpop.eup %5815  ;;  %5827 = vpow2.f32 %v4764_v38  ;;  %v3362_v29 = vmul.f32 0.00390625, %v3297_v6  ;;  %v3231_v3 = vcvt.s32.f32 %v3167_v60 }
 0x4f4   :  { %v5192_v35 = vmul.f32 -1.442695, %v3044_v54  ;;  %v5818_v61 = vpop.eup %5817  ;;  %v4392_v36 = vadd.f32 %v5816_v43, %v4328_v56  ;;  %v3808_v30 = vmul.f32 16.0, %v3744_v4  ;;  %5829 = vpow2.f32 %v4774_v63 }
 0x4f5   :  { %4980 = vst.msk [vmem:[%s11007_s10 + $0x128] sm:$0xff] %vm4942_vm8, %v4915_v28  ;;  %v4458_v24 = vmul.f32 %v10506_v52, %v3741_v1  ;;  %v3426_v22 = vfloor.f32 %v3362_v29  ;;  %v3295_v15 = vadd.f32 0.5, %v3231_v3  ;;  %v3742_v10 = vfloor.f32 %v10581_v26 }
 0x4f6   :  { %v5820_v59 = vpop.eup %5819  ;;  %5831 = vpow2.f32 %v5192_v35  ;;  %v4524_v2 = vadd.f32 %v4460_v7, %v4392_v36  ;;  %v4662_v13 = vmul.f32 %v10593_v40, %v3044_v54  ;;  %v4854_v8 = vmul.f32 %v10320_v44, %v5814_v18  ;;  %v3046_v7 = vpop.f32.mrf.mxu1 }
 0x4f7   :  { %v4131_v39 = vadd.f32 1.0, %v5820_v59  ;;  %v5822_v58 = vpop.eup %5821  ;;  %v10598_v1 = vmul.f32 %v10320_v44, %v5818_v61  ;;  %v3490_v37 = vmul.f32 256.0, %v3426_v22  ;;  %v3360_v12 = vmul.f32 0.00390625, %v3295_v15 }
 0x4f8   :  { %v4592_v20 = vmul.f32 %v10382_v9, %v4524_v2  ;;  %v4390_v17 = vadd.f32 %v5822_v58, %v4326_v11  ;;  %v3872_v0 = vsub.f32 %v10558_v19, %v3808_v30  ;;  %v4461_v34 = vmul.f32 %v10506_v52, %v3744_v4  ;;  %v5506_v36 = vpop.f32.mrf.mxu1  ;;  %v10635_v58 = vld [vmem:[%s11005_s9 + $0x4] ss:$0 sm:$0xff] }
 0x4f9   :  { %5833 = vrcp.f32 %v4131_v39  ;;  %v10603_v46 = vsub.f32 %v3233_v49, %v3490_v37  ;;  %v3424_v41 = vfloor.f32 %v3360_v12  ;;  %v3055_v47 = vadd.f32 %v10577_v21, %v5503_v27 }
 0x4fa   :  { %v4920_v62 = vadd.f32 %v4856_v32, %v4592_v20  ;;  %v4522_v56 = vadd.f32 %v4458_v24, %v4390_v17  ;;  %v3806_v44 = vmul.f32 16.0, %v3742_v10  ;;  %v4770_v25 = vmul.f32 1.442695, %v4662_v13  ;;  %v3059_v20 = vpop.f32.mrf.mxu1 }
 0x4fb   :  { %v3618_v42 = vadd.f32 0.5, %v10603_v46  ;;  %v3488_v33 = vmul.f32 256.0, %v3424_v41  ;;  %v10608_v5 = vadd.s32 376, %v11559_v51  ;;  %v5195_v19 = vmul.f32 -1.442695, %v3055_v47 }
 0x4fc   :  { %v5824_v14 = vpop.eup %5823  ;;  %4985 = vst.msk [vmem:[%s11007_s10 + $0x150] sm:$0xff] %vm4942_vm8, %v4920_v62  ;;  %v4590_v38 = vmul.f32 %v10382_v9, %v4522_v56  ;;  %v4329_v16 = vmul.f32 %v10515_v50, %v3872_v0  ;;  %v4665_v31 = vmul.f32 %v10593_v40, %v3055_v47  ;;  %v3047_v23 = vadd.f32 %v10577_v21, %v3046_v7 }
 0x4fd   :  { %v3683_v49 = vmul.f32 0.0625, %v3618_v42  ;;  %v4136_v63 = vadd.f32 1.0, %v5824_v14  ;;  %v10618_v55 = vsub.f32 %v3231_v3, %v3488_v33  ;;  %v3234_v57 = vcvt.s32.f32 %v10608_v5 }
 0x4fe   :  { %v4918_v53 = vadd.f32 %v4854_v8, %v4590_v38  ;;  %5835 = vpow2.f32 %v5195_v19  ;;  %v4776_v45 = vmul.f32 1.442695, %v4665_v31  ;;  %v3168_v32 = vadd.s32 360, %v11559_v51 }
 0x4ff   :  { %v5826_v6 = vpop.eup %5825  ;;  %v3870_v54 = vsub.f32 %v10568_v48, %v3806_v44  ;;  %v3747_v60 = vfloor.f32 %v3683_v49  ;;  %5837 = vrcp.f32 %v4136_v63  ;;  %v3616_v18 = vadd.f32 0.5, %v10618_v55 }
 0x500   :  { %v5828_v28 = vpop.eup %5827  ;;  %4983 = vst.msk [vmem:[%s11007_s10 + $0x140] sm:$0xff] %vm4942_vm8, %v4918_v53  ;;  %v4393_v4 = vadd.f32 %v5826_v6, %v4329_v16  ;;  %v4459_v26 = vmul.f32 %v10506_v52, %v3742_v10  ;;  %v3298_v43 = vadd.f32 0.5, %v3234_v57  ;;  %v3232_v29 = vcvt.s32.f32 %v3168_v32 }
 0x501   :  { %v5830_v3 = vpop.eup %5829  ;;  %v3811_v35 = vmul.f32 16.0, %v3747_v60  ;;  %v3681_v61 = vmul.f32 0.0625, %v3616_v18  ;;  %5839 = vpow2.f32 %v4770_v25  ;;  %v5193_v48 = vmul.f32 -1.442695, %v3047_v23 }
 0x502   :  { %v4525_v30 = vadd.f32 %v4461_v34, %v4393_v4  ;;  %v3363_v59 = vmul.f32 0.00390625, %v3298_v43  ;;  %5841 = vpow2.f32 %v4776_v45  ;;  %v3296_v24 = vadd.f32 0.5, %v3232_v29 }
 0x503   :  { %v5832_v11 = vpop.eup %5831  ;;  %v4327_v22 = vmul.f32 %v10515_v50, %v3870_v54  ;;  %v3745_v15 = vfloor.f32 %v3681_v61  ;;  %5843 = vpow2.f32 %v5193_v48  ;;  %v4663_v13 = vmul.f32 %v10593_v40, %v3047_v23 }
 0x504   :  { %v4134_v27 = vadd.f32 1.0, %v5832_v11  ;;  %v4593_v2 = vmul.f32 %v10382_v9, %v4525_v30  ;;  %v3427_v10 = vfloor.f32 %v3363_v59  ;;  %v3361_v39 = vmul.f32 0.00390625, %v3296_v24 }
 0x505   :  { %v4855_v8 = vmul.f32 %v10635_v58, %v5828_v28  ;;  %v3875_v37 = vsub.f32 %v10603_v46, %v3811_v35  ;;  %v10640_v12 = vmul.f32 %v10635_v58, %v5830_v3  ;;  %v3809_v34 = vmul.f32 16.0, %v3745_v15 }
 0x506   :  { %5845 = vrcp.f32 %v4134_v27  ;;  %v5834_v17 = vpop.eup %5833  ;;  %v4921_v0 = vadd.f32 %v10598_v1, %v4593_v2  ;;  %v3491_v41 = vmul.f32 256.0, %v3427_v10  ;;  %v3425_v47 = vfloor.f32 %v3361_v39 }
 0x507   :  { %v4391_v7 = vadd.f32 %v5834_v17, %v4327_v22  ;;  %v4464_v62 = vmul.f32 %v10506_v52, %v3747_v60  ;;  %v3068_v56 = vadd.f32 %v10577_v21, %v5506_v36  ;;  %v3173_v44 = vadd.s32 400, %v11559_v51 }
 0x508   :  { %4986 = vst.msk [vmem:[%s11007_s10 + $0x158] sm:$0xff] %vm4942_vm8, %v4921_v0  ;;  %v10650_v46 = vsub.f32 %v3234_v57, %v3491_v41  ;;  %v3489_v25 = vmul.f32 256.0, %v3425_v47  ;;  %v4772_v42 = vmul.f32 1.442695, %v4663_v13  ;;  %v3060_v1 = vadd.f32 %v10577_v21, %v3059_v20 }
 0x509   :  { %v4523_v33 = vadd.f32 %v4459_v26, %v4391_v7  ;;  %v4332_v5 = vmul.f32 %v10515_v50, %v3875_v37  ;;  %v3237_v19 = vcvt.s32.f32 %v3173_v44  ;;  %v5198_v14 = vmul.f32 -1.442695, %v3068_v56 }
 0x50a   :  { %v3873_v38 = vsub.f32 %v10618_v55, %v3809_v34  ;;  %v3619_v16 = vadd.f32 0.5, %v10650_v46  ;;  %v10656_v31 = vsub.f32 %v3232_v29, %v3489_v25  ;;  %v10659_v23 = vadd.s32 384, %v11559_v51 }
 0x50b   :  { %v5836_v49 = vpop.eup %5835  ;;  %v4591_v63 = vmul.f32 %v10382_v9, %v4523_v33  ;;  %v3301_v57 = vadd.f32 0.5, %v3237_v19  ;;  %5847 = vpow2.f32 %v5198_v14  ;;  %v4668_v53 = vmul.f32 %v10593_v40, %v3068_v56 }
 0x50c   :  { %v5838_v45 = vpop.eup %5837  ;;  %v3684_v32 = vmul.f32 0.0625, %v3619_v16  ;;  %v4137_v6 = vadd.f32 1.0, %v5836_v49  ;;  %v3617_v54 = vadd.f32 0.5, %v10656_v31  ;;  %v5196_v55 = vmul.f32 -1.442695, %v3060_v1 }
 0x50d   :  { %v4919_v60 = vadd.f32 %v4855_v8, %v4591_v63  ;;  %v4396_v18 = vadd.f32 %v5838_v45, %v4332_v5  ;;  %v3366_v28 = vmul.f32 0.00390625, %v3301_v57  ;;  %v3235_v4 = vcvt.s32.f32 %v10659_v23 }
 0x50e   :  { %v5840_v26 = vpop.eup %5839  ;;  %v4462_v43 = vmul.f32 %v10506_v52, %v3745_v15  ;;  %v3748_v29 = vfloor.f32 %v3684_v32  ;;  %5849 = vrcp.f32 %v4137_v6  ;;  %v10666_v3 = vmul.f32 0.0625, %v3617_v54  ;;  %v5507_v15 = vpop.f32.mrf.mxu1 }
 0x50f   :  { %v5842_v35 = vpop.eup %5841  ;;  %4984 = vst.msk [vmem:[%s11007_s10 + $0x148] sm:$0xff] %vm4942_vm8, %v4919_v60  ;;  %v4528_v61 = vadd.f32 %v4464_v62, %v4396_v18  ;;  %v4330_v48 = vmul.f32 %v10515_v50, %v3873_v38  ;;  %v3430_v36 = vfloor.f32 %v3366_v28  ;;  %v3299_v11 = vadd.f32 0.5, %v3235_v4 }
 0x510   :  { %v5844_v30 = vpop.eup %5843  ;;  %v3812_v59 = vmul.f32 16.0, %v3748_v29  ;;  %v3746_v24 = vfloor.f32 %v10666_v3  ;;  %v4782_v22 = vmul.f32 1.442695, %v4668_v53  ;;  %5851 = vpow2.f32 %v5196_v55  ;;  %v3062_v62 = vpop.f32.mrf.mxu1 }
 0x511   :  { %v4596_v27 = vmul.f32 %v10382_v9, %v4528_v61  ;;  %v4135_v2 = vadd.f32 1.0, %v5844_v30  ;;  %v3494_v10 = vmul.f32 256.0, %v3430_v36  ;;  %v3364_v39 = vmul.f32 0.00390625, %v3299_v11 }
 0x512   :  { %v3876_v8 = vsub.f32 %v10650_v46, %v3812_v59  ;;  %v3810_v37 = vmul.f32 16.0, %v3746_v24  ;;  %5853 = vpow2.f32 %v4772_v42  ;;  %v4666_v20 = vmul.f32 %v10593_v40, %v3060_v1 }
 0x513   :  { %v5846_v13 = vpop.eup %5845  ;;  %v4924_v17 = vadd.f32 %v10640_v12, %v4596_v27  ;;  %5855 = vrcp.f32 %v4135_v2  ;;  %v10678_v34 = vsub.f32 %v3237_v19, %v3494_v10  ;;  %v4858_v41 = vmul.f32 %v10635_v58, %v5840_v26 }
 0x514   :  { %v4394_v0 = vadd.f32 %v5846_v13, %v4330_v48  ;;  %v4465_v47 = vmul.f32 %v10506_v52, %v3748_v29  ;;  %5857 = vpow2.f32 %v4782_v22  ;;  %v3428_v7 = vfloor.f32 %v3364_v39  ;;  %v5510_v29 = vpop.f32.mrf.mxu1  ;;  %v10713_v39 = vld [vmem:[%s11005_s9] ss:$0 sm:$0xff] }
 0x515   :  { %4989 = vst.msk [vmem:[%s11007_s10 + $0x170] sm:$0xff] %vm4942_vm8, %v4924_v17  ;;  %v4333_v44 = vmul.f32 %v10515_v50, %v3876_v8  ;;  %v3622_v12 = vadd.f32 0.5, %v10678_v34  ;;  %v3071_v46 = vadd.f32 %v10577_v21, %v5507_v15  ;;  %v3874_v25 = vsub.f32 %v10656_v31, %v3810_v37 }
 0x516   :  { %v4526_v56 = vadd.f32 %v4462_v43, %v4394_v0  ;;  %v3492_v42 = vmul.f32 256.0, %v3428_v7  ;;  %v4778_v1 = vmul.f32 1.442695, %v4666_v20  ;;  %v3174_v33 = vadd.s32 408, %v11559_v51 }
 0x517   :  { %v3687_v19 = vmul.f32 0.0625, %v3622_v12  ;;  %v5199_v14 = vmul.f32 -1.442695, %v3071_v46  ;;  %v3063_v38 = vadd.f32 %v10577_v21, %v3062_v62  ;;  %v4669_v63 = vmul.f32 %v10593_v40, %v3071_v46 }
 0x518   :  { %v4594_v5 = vmul.f32 %v10382_v9, %v4526_v56  ;;  %v5848_v16 = vpop.eup %5847  ;;  %v10693_v23 = vsub.f32 %v3235_v4, %v3492_v42  ;;  %v3238_v49 = vcvt.s32.f32 %v3174_v33  ;;  %v3172_v57 = vadd.s32 392, %v11559_v51 }
 0x519   :  { %v3751_v31 = vfloor.f32 %v3687_v19  ;;  %v4140_v45 = vadd.f32 1.0, %v5848_v16  ;;  %5859 = vpow2.f32 %v5199_v14  ;;  %v4861_v55 = vmul.f32 %v10635_v58, %v5842_v35 }
 0x51a   :  { %v4922_v53 = vadd.f32 %v4858_v41, %v4594_v5  ;;  %v3620_v32 = vadd.f32 0.5, %v10693_v23  ;;  %5861 = vpow2.f32 %v4778_v1  ;;  %v3302_v9 = vadd.f32 0.5, %v3238_v49 }
 0x51b   :  { %v3236_v6 = vcvt.s32.f32 %v3172_v57  ;;  %v5850_v54 = vpop.eup %5849  ;;  %5863 = vrcp.f32 %v4140_v45  ;;  %v4784_v60 = vmul.f32 1.442695, %v4669_v63  ;;  %v5197_v18 = vmul.f32 -1.442695, %v3063_v38 }
 0x51c   :  { %4987 = vst.msk [vmem:[%s11007_s10 + $0x160] sm:$0xff] %vm4942_vm8, %v4922_v53  ;;  %v4397_v28 = vadd.f32 %v5850_v54, %v4333_v44  ;;  %v3815_v4 = vmul.f32 16.0, %v3751_v31  ;;  %v10703_v26 = vmul.f32 0.0625, %v3620_v32  ;;  %v3367_v43 = vmul.f32 0.00390625, %v3302_v9 }
 0x51d   :  { %v5852_v3 = vpop.eup %5851  ;;  %v4331_v61 = vmul.f32 %v10515_v50, %v3874_v25  ;;  %v4463_v48 = vmul.f32 %v10506_v52, %v3746_v24  ;;  %v3300_v36 = vadd.f32 0.5, %v3236_v6  ;;  %5865 = vpow2.f32 %v5197_v18  ;;  %v3075_v25 = vpop.f32.mrf.mxu1 }
 0x51e   :  { %v4529_v11 = vadd.f32 %v4465_v47, %v4397_v28  ;;  %v3749_v30 = vfloor.f32 %v10703_v26  ;;  %v4138_v35 = vadd.f32 1.0, %v5852_v3  ;;  %v3431_v59 = vfloor.f32 %v3367_v43 }
 0x51f   :  { %v5854_v22 = vpop.eup %5853  ;;  %5867 = vpow2.f32 %v4784_v60  ;;  %v3365_v15 = vmul.f32 0.00390625, %v3300_v36  ;;  %v4667_v27 = vmul.f32 %v10593_v40, %v3063_v38  ;;  %v3084_v2 = vadd.f32 %v10577_v21, %v5510_v29 }
 0x520   :  { %v5856_v10 = vpop.eup %5855  ;;  %v4597_v24 = vmul.f32 %v10713_v39, %v4529_v11  ;;  %v3879_v13 = vsub.f32 %v10678_v34, %v3815_v4  ;;  %v3813_v8 = vmul.f32 16.0, %v3749_v30  ;;  %5869 = vrcp.f32 %v4138_v35 }
 0x521   :  { %v5858_v37 = vpop.eup %5857  ;;  %v4395_v20 = vadd.f32 %v5856_v10, %v4331_v61  ;;  %v3495_v17 = vmul.f32 256.0, %v3431_v59  ;;  %v3429_v0 = vfloor.f32 %v3365_v15  ;;  %v4780_v41 = vmul.f32 1.442695, %v4667_v27  ;;  %v5511_v10 = vpop.f32.mrf.mxu1 }
 0x522   :  { %v4925_v47 = vadd.f32 %v4861_v55, %v4597_v24  ;;  %v4859_v7 = vmul.f32 %v10635_v58, %v5854_v22  ;;  %v3177_v62 = vadd.s32 432, %v11559_v51  ;;  %v5202_v56 = vmul.f32 -1.442695, %v3084_v2 }
 0x523   :  { %v4527_v44 = vadd.f32 %v4463_v48, %v4395_v20  ;;  %v4468_v12 = vmul.f32 %v10506_v52, %v3751_v31  ;;  %v10722_v46 = vsub.f32 %v3238_v49, %v3495_v17  ;;  %v3493_v34 = vmul.f32 256.0, %v3429_v0 }
 0x524   :  { %4990 = vst.msk [vmem:[%s11007_s10 + $0x178] sm:$0xff] %vm4942_vm8, %v4925_v47  ;;  %v4336_v42 = vmul.f32 %v10515_v50, %v3879_v13  ;;  %v3877_v1 = vsub.f32 %v10693_v23, %v3813_v8  ;;  %v3241_v33 = vcvt.s32.f32 %v3177_v62  ;;  %5871 = vpow2.f32 %v5202_v56 }
 0x525   :  { %v4595_v5 = vmul.f32 %v10713_v39, %v4527_v44  ;;  %v3623_v19 = vadd.f32 0.5, %v10722_v46  ;;  %v10732_v14 = vsub.f32 %v3236_v6, %v3493_v34  ;;  %5873 = vpow2.f32 %v4780_v41 }
 0x526   :  { %v5860_v38 = vpop.eup %5859  ;;  %v3305_v16 = vadd.f32 0.5, %v3241_v33  ;;  %v4672_v49 = vmul.f32 %v10593_v40, %v3084_v2  ;;  %v3076_v63 = vadd.f32 %v10577_v21, %v3075_v25  ;;  %v3175_v57 = vadd.s32 416, %v11559_v51 }
 0x527   :  { %v5862_v53 = vpop.eup %5861  ;;  %v4923_v31 = vadd.f32 %v4859_v7, %v4595_v5  ;;  %v3688_v23 = vmul.f32 0.0625, %v3623_v19  ;;  %v4141_v45 = vadd.f32 1.0, %v5860_v38  ;;  %v3621_v32 = vadd.f32 0.5, %v10732_v14 }
 0x528   :  { %v5864_v9 = vpop.eup %5863  ;;  %v4864_v54 = vmul.f32 %v10635_v58, %v5858_v37  ;;  %v3370_v6 = vmul.f32 0.00390625, %v3305_v16  ;;  %v3239_v55 = vcvt.s32.f32 %v3175_v57  ;;  %v5200_v60 = vmul.f32 -1.442695, %v3076_v63 }
 0x529   :  { %4988 = vst.msk [vmem:[%s11007_s10 + $0x168] sm:$0xff] %vm4942_vm8, %v4923_v31  ;;  %v4400_v18 = vadd.f32 %v5864_v9, %v4336_v42  ;;  %v3752_v28 = vfloor.f32 %v3688_v23  ;;  %5875 = vrcp.f32 %v4141_v45  ;;  %v3686_v4 = vmul.f32 0.0625, %v3621_v32 }
 0x52a   :  { %v5866_v43 = vpop.eup %5865  ;;  %v4334_v29 = vmul.f32 %v10515_v50, %v3877_v1  ;;  %v3434_v3 = vfloor.f32 %v3370_v6  ;;  %v3303_v61 = vadd.f32 0.5, %v3239_v55  ;;  %5877 = vpow2.f32 %v5200_v60 }
 0x52b   :  { %v4532_v48 = vadd.f32 %v4468_v12, %v4400_v18  ;;  %v3816_v36 = vmul.f32 16.0, %v3752_v28  ;;  %v3750_v11 = vfloor.f32 %v3686_v4  ;;  %v4790_v35 = vmul.f32 1.442695, %v4672_v49  ;;  %v3078_v12 = vpop.f32.mrf.mxu1 }
 0x52c   :  { %v5868_v59 = vpop.eup %5867  ;;  %v4466_v22 = vmul.f32 %v10506_v52, %v3749_v30  ;;  %v4139_v15 = vadd.f32 1.0, %v5866_v43  ;;  %v3498_v27 = vmul.f32 256.0, %v3434_v3  ;;  %v3368_v2 = vmul.f32 0.00390625, %v3303_v61 }
 0x52d   :  { %v5870_v24 = vpop.eup %5869  ;;  %v4600_v13 = vmul.f32 %v10713_v39, %v4532_v48  ;;  %v4862_v8 = vmul.f32 %v10635_v58, %v5862_v53  ;;  %v3880_v37 = vsub.f32 %v10722_v46, %v3816_v36  ;;  %v3814_v20 = vmul.f32 16.0, %v3750_v11 }
 0x52e   :  { %v4398_v17 = vadd.f32 %v5870_v24, %v4334_v29  ;;  %5879 = vrcp.f32 %v4139_v15  ;;  %v10750_v0 = vsub.f32 %v3241_v33, %v3498_v27  ;;  %v3432_v41 = vfloor.f32 %v3368_v2  ;;  %v5514_v27 = vpop.f32.mrf.mxu1 }
 0x52f   :  { %v4928_v26 = vadd.f32 %v4864_v54, %v4600_v13  ;;  %v4469_v30 = vmul.f32 %v10506_v52, %v3752_v28  ;;  %v10754_v47 = vmul.f32 %v10635_v58, %v5868_v59  ;;  %5881 = vpow2.f32 %v4790_v35 }
 0x530   :  { %v4530_v7 = vadd.f32 %v4466_v22, %v4398_v17  ;;  %v3626_v62 = vadd.f32 0.5, %v10750_v0  ;;  %v3496_v56 = vmul.f32 256.0, %v3432_v41  ;;  %v3087_v44 = vadd.f32 %v10577_v21, %v5511_v10 }
 0x531   :  { %v5872_v46 = vpop.eup %5871  ;;  %4993 = vst.msk [vmem:[%s11007_s10 + $0x190] sm:$0xff] %vm4942_vm8, %v4928_v26  ;;  %v4337_v34 = vmul.f32 %v10515_v50, %v3880_v37  ;;  %v3878_v25 = vsub.f32 %v10732_v14, %v3814_v20  ;;  %v4670_v42 = vmul.f32 %v10593_v40, %v3076_v63  ;;  %v3178_v1 = vadd.s32 440, %v11559_v51 }
 0x532   :  { %v5874_v33 = vpop.eup %5873  ;;  %v4598_v5 = vmul.f32 %v10713_v39, %v4530_v7  ;;  %v3691_v19 = vmul.f32 0.0625, %v3626_v62  ;;  %v4144_v38 = vadd.f32 1.0, %v5872_v46  ;;  %v10767_v16 = vsub.f32 %v3239_v55, %v3496_v56  ;;  %v3091_v56 = vpop.f32.mrf.mxu1 }
 0x533   :  { %v3242_v49 = vcvt.s32.f32 %v3178_v1  ;;  %v5203_v57 = vmul.f32 -1.442695, %v3087_v44  ;;  %v4673_v53 = vmul.f32 %v10593_v40, %v3087_v44  ;;  %v3079_v31 = vadd.f32 %v10577_v21, %v3078_v12 }
 0x534   :  { %v4926_v23 = vadd.f32 %v4862_v8, %v4598_v5  ;;  %v3755_v45 = vfloor.f32 %v3691_v19  ;;  %5883 = vrcp.f32 %v4144_v38  ;;  %v3624_v14 = vadd.f32 0.5, %v10767_v16 }
 0x535   :  { %v4786_v63 = vmul.f32 1.442695, %v4670_v42  ;;  %v3306_v32 = vadd.f32 0.5, %v3242_v49  ;;  %5885 = vpow2.f32 %v5203_v57  ;;  %v3176_v9 = vadd.s32 424, %v11559_v51 }
 0x536   :  { %v5876_v54 = vpop.eup %5875  ;;  %4991 = vst.msk [vmem:[%s11007_s10 + $0x180] sm:$0xff] %vm4942_vm8, %v4926_v23  ;;  %v4335_v6 = vmul.f32 %v10515_v50, %v3878_v25  ;;  %v4467_v55 = vmul.f32 %v10506_v52, %v3750_v11  ;;  %v3819_v60 = vmul.f32 16.0, %v3755_v45  ;;  %v10779_v18 = vmul.f32 0.0625, %v3624_v14 }
 0x537   :  { %v5878_v28 = vpop.eup %5877  ;;  %v4401_v4 = vadd.f32 %v5876_v54, %v4337_v34  ;;  %v4863_v43 = vmul.f32 %v10635_v58, %v5874_v33  ;;  %v3371_v29 = vmul.f32 0.00390625, %v3306_v32  ;;  %v3240_v3 = vcvt.s32.f32 %v3176_v9 }
 0x538   :  { %v3753_v61 = vfloor.f32 %v10779_v18  ;;  %v4142_v48 = vadd.f32 1.0, %v5878_v28  ;;  %v4792_v36 = vmul.f32 1.442695, %v4673_v53  ;;  %v5201_v35 = vmul.f32 -1.442695, %v3079_v31  ;;  %v5515_v18 = vpop.f32.mrf.mxu1 }
 0x539   :  { %v4533_v59 = vadd.f32 %v4469_v30, %v4401_v4  ;;  %5887 = vpow2.f32 %v4786_v63  ;;  %v3435_v22 = vfloor.f32 %v3371_v29  ;;  %v3304_v15 = vadd.f32 0.5, %v3240_v3  ;;  %v10818_v28 = vld [vmem:[%s11005_s9 + $0x2] ss:$0 sm:$0xff] }
 0x53a   :  { %v3883_v11 = vsub.f32 %v10750_v0, %v3819_v60  ;;  %v3817_v2 = vmul.f32 16.0, %v3753_v61  ;;  %5889 = vrcp.f32 %v4142_v48  ;;  %v4671_v10 = vmul.f32 %v10593_v40, %v3079_v31 }
 0x53b   :  { %v5880_v24 = vpop.eup %5879  ;;  %v4601_v13 = vmul.f32 %v10713_v39, %v4533_v59  ;;  %v3499_v8 = vmul.f32 256.0, %v3435_v22  ;;  %v3369_v37 = vmul.f32 0.00390625, %v3304_v15  ;;  %5891 = vpow2.f32 %v5201_v35 }
 0x53c   :  { %v5882_v20 = vpop.eup %5881  ;;  %v4399_v17 = vadd.f32 %v5880_v24, %v4335_v6  ;;  %v4472_v41 = vmul.f32 %v10506_v52, %v3755_v45  ;;  %5893 = vpow2.f32 %v4792_v36  ;;  %v3100_v26 = vadd.f32 %v10577_v21, %v5514_v27 }
 0x53d   :  { %v4929_v30 = vadd.f32 %v10754_v47, %v4601_v13  ;;  %v10789_v0 = vsub.f32 %v3242_v49, %v3499_v8  ;;  %v3433_v7 = vfloor.f32 %v3369_v37  ;;  %v3181_v62 = vadd.s32 464, %v11559_v51 }
 0x53e   :  { %v4531_v44 = vadd.f32 %v4467_v55, %v4399_v17  ;;  %v4340_v12 = vmul.f32 %v10515_v50, %v3883_v11  ;;  %v3881_v46 = vsub.f32 %v10767_v16, %v3817_v2  ;;  %v5206_v34 = vmul.f32 -1.442695, %v3100_v26 }
 0x53f   :  { %4994 = vst.msk [vmem:[%s11007_s10 + $0x198] sm:$0xff] %vm4942_vm8, %v4929_v30  ;;  %v3627_v52 = vadd.f32 0.5, %v10789_v0  ;;  %v3497_v47 = vmul.f32 256.0, %v3433_v7  ;;  %v4788_v25 = vmul.f32 1.442695, %v4671_v10  ;;  %v3245_v42 = vcvt.s32.f32 %v3181_v62 }
 0x540   :  { %v4599_v1 = vmul.f32 %v10713_v39, %v4531_v44  ;;  %5895 = vpow2.f32 %v5206_v34  ;;  %v4676_v33 = vmul.f32 %v10593_v40, %v3100_v26  ;;  %v3092_v5 = vadd.f32 %v10577_v21, %v3091_v56 }
 0x541   :  { %v5884_v19 = vpop.eup %5883  ;;  %v3692_v38 = vmul.f32 0.0625, %v3627_v52  ;;  %v10802_v16 = vsub.f32 %v3240_v3, %v3497_v47  ;;  %v3309_v49 = vadd.f32 0.5, %v3245_v42  ;;  %v10805_v57 = vadd.s32 448, %v11559_v51 }
 0x542   :  { %v5886_v53 = vpop.eup %5885  ;;  %v4927_v31 = vadd.f32 %v4863_v43, %v4599_v1  ;;  %v4404_v23 = vadd.f32 %v5884_v19, %v4340_v12  ;;  %v4868_v45 = vmul.f32 %v10635_v58, %v5882_v20  ;;  %v5204_v14 = vmul.f32 -1.442695, %v3092_v5 }
 0x543   :  { %v3756_v63 = vfloor.f32 %v3692_v38  ;;  %v4145_v32 = vadd.f32 1.0, %v5886_v53  ;;  %v3625_v9 = vadd.f32 0.5, %v10802_v16  ;;  %v3374_v54 = vmul.f32 0.00390625, %v3309_v49 }
 0x544   :  { %4992 = vst.msk [vmem:[%s11007_s10 + $0x188] sm:$0xff] %vm4942_vm8, %v4927_v31  ;;  %v4536_v6 = vadd.f32 %v4472_v41, %v4404_v23  ;;  %v4338_v55 = vmul.f32 %v10515_v50, %v3881_v46  ;;  %5897 = vpow2.f32 %v4788_v25  ;;  %v3243_v60 = vcvt.s32.f32 %v10805_v57  ;;  %v3094_v46 = vpop.f32.mrf.mxu1 }
 0x545   :  { %v4470_v4 = vmul.f32 %v10818_v28, %v3753_v61  ;;  %v3820_v43 = vmul.f32 16.0, %v3756_v63  ;;  %5899 = vrcp.f32 %v4145_v32  ;;  %v4798_v29 = vmul.f32 1.442695, %v4676_v33 }
 0x546   :  { %v5888_v3 = vpop.eup %5887  ;;  %v4604_v48 = vmul.f32 %v10713_v39, %v4536_v6  ;;  %v10822_v36 = vmul.f32 0.0625, %v3625_v9  ;;  %v3438_v50 = vfloor.f32 %v3374_v54  ;;  %v3307_v35 = vadd.f32 0.5, %v3243_v60  ;;  %v5518_v54 = vpop.f32.mrf.mxu1 }
 0x547   :  { %v5890_v59 = vpop.eup %5889  ;;  %5901 = vpow2.f32 %v5204_v14  ;;  %v3103_v22 = vadd.f32 %v10577_v21, %v5515_v18  ;;  %v4866_v24 = vmul.f32 %v10635_v58, %v5888_v3  ;;  %v4674_v37 = vmul.f32 %v10593_v40, %v3092_v5  ;;  %v10848_v5 = vld [vmem:[%s11005_s9 + $0x1] ss:$0 sm:$0xff] }
 0x548   :  { %v5892_v15 = vpop.eup %5891  ;;  %v4932_v27 = vadd.f32 %v4868_v45, %v4604_v48  ;;  %v4402_v11 = vadd.f32 %v5890_v59, %v4338_v55  ;;  %v3754_v2 = vfloor.f32 %v10822_v36  ;;  %v3502_v61 = vmul.f32 256.0, %v3438_v50 }
 0x549   :  { %v5894_v10 = vpop.eup %5893  ;;  %v4143_v13 = vadd.f32 1.0, %v5892_v15  ;;  %v3372_v8 = vmul.f32 0.00390625, %v3307_v35  ;;  %v3884_v17 = vsub.f32 %v10789_v0, %v3820_v43  ;;  %5903 = vpow2.f32 %v4798_v29 }
 0x54a   :  { %4997 = vst.msk [vmem:[%s11007_s10 + $0x1b0] sm:$0xff] %vm4942_vm8, %v4932_v27  ;;  %v4534_v20 = vadd.f32 %v4470_v4, %v4402_v11  ;;  %v10833_v41 = vsub.f32 %v3245_v42, %v3502_v61  ;;  %v10836_v30 = vadd.s32 472, %v11559_v51  ;;  %v5207_v7 = vmul.f32 -1.442695, %v3103_v22 }
 0x54b   :  { %5905 = vrcp.f32 %v4143_v13  ;;  %v3436_v26 = vfloor.f32 %v3372_v8  ;;  %v4473_v56 = vmul.f32 %v10818_v28, %v3756_v63  ;;  %v3818_v44 = vmul.f32 16.0, %v3754_v2 }
 0x54c   :  { %v4602_v62 = vmul.f32 %v10713_v39, %v4534_v20  ;;  %v3630_v12 = vadd.f32 0.5, %v10833_v41  ;;  %v4794_v52 = vmul.f32 1.442695, %v4674_v37  ;;  %v3246_v47 = vcvt.s32.f32 %v10836_v30 }
 0x54d   :  { %v5896_v0 = vpop.eup %5895  ;;  %v3500_v34 = vmul.f32 256.0, %v3436_v26  ;;  %5907 = vpow2.f32 %v5207_v7  ;;  %v4677_v33 = vmul.f32 %v10593_v40, %v3103_v22  ;;  %v4341_v19 = vmul.f32 %v10848_v5, %v3884_v17 }
 0x54e   :  { %v4930_v25 = vadd.f32 %v4866_v24, %v4602_v62  ;;  %v3695_v42 = vmul.f32 0.0625, %v3630_v12  ;;  %v4148_v1 = vadd.f32 1.0, %v5896_v0  ;;  %v3310_v49 = vadd.f32 0.5, %v3246_v47  ;;  %v3107_v0 = vpop.f32.mrf.mxu1 }
 0x54f   :  { %v10851_v38 = vsub.f32 %v3243_v60, %v3500_v34  ;;  %v3095_v57 = vadd.f32 %v10577_v21, %v3094_v46  ;;  %v3882_v53 = vsub.f32 %v10802_v16, %v3818_v44  ;;  %v3180_v23 = vadd.s32 456, %v11559_v51 }
 0x550   :  { %4995 = vst.msk [vmem:[%s11007_s10 + $0x1a0] sm:$0xff] %vm4942_vm8, %v4930_v25  ;;  %v3759_v31 = vfloor.f32 %v3695_v42  ;;  %5909 = vrcp.f32 %v4148_v1  ;;  %v4869_v14 = vmul.f32 %v10635_v58, %v5894_v10  ;;  %v3375_v32 = vmul.f32 0.00390625, %v3310_v49 }
 0x551   :  { %v5898_v45 = vpop.eup %5897  ;;  %v3628_v63 = vadd.f32 0.5, %v10851_v38  ;;  %v5205_v9 = vmul.f32 -1.442695, %v3095_v57  ;;  %5911 = vpow2.f32 %v4794_v52  ;;  %v4800_v60 = vmul.f32 1.442695, %v4677_v33 }
 0x552   :  { %v5900_v6 = vpop.eup %5899  ;;  %v3823_v55 = vmul.f32 16.0, %v3759_v31  ;;  %v3244_v18 = vcvt.s32.f32 %v3180_v23  ;;  %v3439_v16 = vfloor.f32 %v3375_v32  ;;  %v4339_v3 = vmul.f32 %v10848_v5, %v3882_v53  ;;  %v10892_v53 = vld [vmem:[%s11006_s8] ss:$0 sm:$0xff] }
 0x553   :  { %v4405_v4 = vadd.f32 %v5900_v6, %v4341_v19  ;;  %v3693_v43 = vmul.f32 0.0625, %v3628_v63  ;;  %5913 = vpow2.f32 %v5205_v9  ;;  %v10864_v50 = vadd.f32 %v10577_v21, %v5518_v54 }
 0x554   :  { %v5902_v29 = vpop.eup %5901  ;;  %v3308_v48 = vadd.f32 0.5, %v3244_v18  ;;  %v3185_v35 = vadd.s32 496, %v11559_v51  ;;  %v3503_v27 = vmul.f32 256.0, %v3439_v16  ;;  %v3887_v11 = vsub.f32 %v10833_v41, %v3823_v55  ;;  %v5519_v16 = vpop.f32.mrf.mxu1 }
 0x555   :  { %v4537_v59 = vadd.f32 %v4473_v56, %v4405_v4  ;;  %v3757_v22 = vfloor.f32 %v3693_v43  ;;  %v4146_v15 = vadd.f32 1.0, %v5902_v29  ;;  %5915 = vpow2.f32 %v4800_v60 }
 0x556   :  { %v3373_v61 = vmul.f32 0.00390625, %v3308_v48  ;;  %v3249_v10 = vcvt.s32.f32 %v3185_v35  ;;  %v5904_v24 = vpop.eup %5903  ;;  %v4471_v8 = vmul.f32 %v10818_v28, %v3754_v2  ;;  %v4867_v21 = vmul.f32 %v10635_v58, %v5898_v45 }
 0x557   :  { %v4605_v13 = vmul.f32 %v10713_v39, %v4537_v59  ;;  %5917 = vrcp.f32 %v4146_v15  ;;  %v4476_v20 = vmul.f32 %v10818_v28, %v3759_v31  ;;  %v3821_v17 = vmul.f32 16.0, %v3757_v22 }
 0x558   :  { %v5906_v37 = vpop.eup %5905  ;;  %v10874_v26 = vsub.f32 %v3246_v47, %v3503_v27  ;;  %v3437_v41 = vfloor.f32 %v3373_v61  ;;  %v4675_v62 = vmul.f32 %v10593_v40, %v3095_v57  ;;  %v3313_v56 = vadd.f32 0.5, %v3249_v10 }
 0x559   :  { %v4933_v30 = vadd.f32 %v4869_v14, %v4605_v13  ;;  %v4403_v7 = vadd.f32 %v5906_v37, %v4339_v3  ;;  %v4344_v36 = vmul.f32 %v10848_v5, %v3887_v11  ;;  %v5210_v46 = vmul.f32 -1.442695, %v10864_v50 }
 0x55a   :  { %v5908_v44 = vpop.eup %5907  ;;  %v3631_v2 = vadd.f32 0.5, %v10874_v26  ;;  %v3501_v12 = vmul.f32 256.0, %v3437_v41  ;;  %v4872_v52 = vmul.f32 %v10635_v58, %v5904_v24  ;;  %v3378_v25 = vmul.f32 0.00390625, %v3313_v56 }
 0x55b   :  { %4998 = vst.msk [vmem:[%s11007_s10 + $0x1b8] sm:$0xff] %vm4942_vm8, %v4933_v30  ;;  %v4535_v34 = vadd.f32 %v4471_v8, %v4403_v7  ;;  %v4149_v47 = vadd.f32 1.0, %v5908_v44  ;;  %v3885_v42 = vsub.f32 %v10851_v38, %v3821_v17  ;;  %5919 = vpow2.f32 %v5210_v46 }
 0x55c   :  { %v3696_v1 = vmul.f32 0.0625, %v3631_v2  ;;  %v10886_v33 = vsub.f32 %v3244_v18, %v3501_v12  ;;  %v3442_v57 = vfloor.f32 %v3378_v25  ;;  %v10895_v31 = vadd.f32 %v10892_v53, %v3107_v0  ;;  %v3110_v0 = vpop.f32.mrf.mxu1 }
 0x55d   :  { %v5910_v19 = vpop.eup %5909  ;;  %v4603_v49 = vmul.f32 %v10713_v39, %v4535_v34  ;;  %5921 = vrcp.f32 %v4149_v47  ;;  %v4796_v14 = vmul.f32 1.442695, %v4675_v62  ;;  %v4474_v9 = vmul.f32 %v10818_v28, %v3757_v22 }
 0x55e   :  { %v4408_v23 = vadd.f32 %v5910_v19, %v4344_v36  ;;  %v3760_v45 = vfloor.f32 %v3696_v1  ;;  %v3629_v38 = vadd.f32 0.5, %v10886_v33  ;;  %v5912_v63 = vpop.eup %5911  ;;  %v3506_v54 = vmul.f32 256.0, %v3442_v57 }
 0x55f   :  { %v4931_v32 = vadd.f32 %v4867_v21, %v4603_v49  ;;  %v3183_v6 = vadd.s32 480, %v11559_v51  ;;  %v4342_v18 = vmul.f32 %v10848_v5, %v3885_v42  ;;  %v5208_v35 = vmul.f32 -1.442695, %v10895_v31 }
 0x560   :  { %v5914_v55 = vpop.eup %5913  ;;  %v4540_v60 = vadd.f32 %v4476_v20, %v4408_v23  ;;  %v3824_v4 = vmul.f32 16.0, %v3760_v45  ;;  %v3694_v43 = vmul.f32 0.0625, %v3629_v38  ;;  %v10905_v3 = vsub.f32 %v3249_v10, %v3506_v54 }
 0x561   :  { %4996 = vst.msk [vmem:[%s11007_s10 + $0x1a8] sm:$0xff] %vm4942_vm8, %v4931_v32  ;;  %v4147_v29 = vadd.f32 1.0, %v5914_v55  ;;  %v3247_v48 = vcvt.s32.f32 %v3183_v6  ;;  %v4680_v27 = vmul.f32 %v10593_v40, %v10864_v50  ;;  %v10914_v13 = vadd.f32 %v10892_v53, %v5519_v16  ;;  %v5964_v55 = vld [vmem:[%s11005_s9 + $0x3] ss:$0 sm:$0xff] }
 0x562   :  { %v4608_v59 = vmul.f32 %v10713_v39, %v4540_v60  ;;  %v3888_v22 = vsub.f32 %v10874_v26, %v3824_v4  ;;  %v3758_v15 = vfloor.f32 %v3694_v43  ;;  %v5916_v11 = vpop.eup %5915  ;;  %v3634_v61 = vadd.f32 0.5, %v10905_v3 }
 0x563   :  { %5923 = vrcp.f32 %v4147_v29  ;;  %v3311_v24 = vadd.f32 0.5, %v3247_v48  ;;  %v4806_v50 = vmul.f32 1.442695, %v4680_v27  ;;  %v3186_v17 = vadd.s32 504, %v11559_v51 }
 0x564   :  { %v5918_v10 = vpop.eup %5917  ;;  %v4936_v8 = vadd.f32 %v4872_v52, %v4608_v59  ;;  %5925 = vpow2.f32 %v4796_v14  ;;  %v3822_v37 = vmul.f32 16.0, %v3758_v15  ;;  %v10920_v40 = vmul.f32 0.0625, %v3634_v61 }
 0x565   :  { %v4406_v21 = vadd.f32 %v5918_v10, %v4342_v18  ;;  %v3376_v20 = vmul.f32 0.00390625, %v3311_v24  ;;  %5927 = vpow2.f32 %v5208_v35  ;;  %v4345_v41 = vmul.f32 %v10848_v5, %v3888_v22 }
 0x566   :  { %5001 = vst.msk [vmem:[%s11007_s10 + $0x1d0] sm:$0xff] %vm4942_vm8, %v4936_v8  ;;  %v5211_v7 = vmul.f32 -1.442695, %v10914_v13  ;;  %v4870_v62 = vmul.f32 %v10635_v58, %v5912_v63  ;;  %v3250_v56 = vcvt.s32.f32 %v3186_v17  ;;  %v4477_v2 = vmul.f32 %v10818_v28, %v3760_v45 }
 0x567   :  { %v4538_v26 = vadd.f32 %v4474_v9, %v4406_v21  ;;  %v3440_v30 = vfloor.f32 %v3376_v20  ;;  %v3886_v12 = vsub.f32 %v10886_v33, %v3822_v37  ;;  %v3763_v52 = vfloor.f32 %v10920_v40 }
 0x568   :  { %v5920_v44 = vpop.eup %5919  ;;  %v3314_v25 = vadd.f32 0.5, %v3250_v56  ;;  %5929 = vpow2.f32 %v5211_v7  ;;  %v3111_v57 = vadd.f32 %v10892_v53, %v3110_v0  ;;  %v4873_v23 = vmul.f32 %v10635_v58, %v5916_v11 }
 0x569   :  { %v4606_v36 = vmul.f32 %v10713_v39, %v4538_v26  ;;  %v3504_v46 = vmul.f32 256.0, %v3440_v30  ;;  %v4152_v47 = vadd.f32 1.0, %v5920_v44  ;;  %5931 = vpow2.f32 %v4806_v50 }
 0x56a   :  { %v5922_v34 = vpop.eup %5921  ;;  %v3379_v49 = vmul.f32 0.00390625, %v3314_v25  ;;  %v4343_v45 = vmul.f32 %v10848_v5, %v3886_v12  ;;  %v3827_v14 = vmul.f32 16.0, %v3763_v52  ;;  %v3184_v32 = vadd.s32 488, %v11559_v51 }
 0x56b   :  { %v4934_v42 = vadd.f32 %v4870_v62, %v4606_v36  ;;  %v4409_v1 = vadd.f32 %v5922_v34, %v4345_v41  ;;  %v10930_v19 = vsub.f32 %v3247_v48, %v3504_v46  ;;  %5933 = vrcp.f32 %v4152_v47 }
 0x56c   :  { %v3443_v63 = vfloor.f32 %v3379_v49  ;;  %v5209_v9 = vmul.f32 -1.442695, %v3111_v57  ;;  %v4475_v53 = vmul.f32 %v10818_v28, %v3758_v15  ;;  %v4678_v58 = vmul.f32 %v5964_v55, %v10895_v31 }
 0x56d   :  { %4999 = vst.msk [vmem:[%s11007_s10 + $0x1c0] sm:$0xff] %vm4942_vm8, %v4934_v42  ;;  %v4541_v33 = vadd.f32 %v4477_v2, %v4409_v1  ;;  %v3632_v38 = vadd.f32 0.5, %v10930_v19  ;;  %v3248_v4 = vcvt.s32.f32 %v3184_v32  ;;  %v3891_v48 = vsub.f32 %v10905_v3, %v3827_v14  ;;  %v10957_v3 = vld [vmem:[%s11005_s9 + $0x4] ss:$0 sm:$0xff] }
 0x56e   :  { %v3507_v18 = vmul.f32 256.0, %v3443_v63  ;;  %5935 = vpow2.f32 %v5209_v9  ;;  %v4802_v27 = vmul.f32 1.442695, %v4678_v58  ;;  %v4681_v61 = vmul.f32 %v5964_v55, %v10914_v13 }
 0x56f   :  { %v4609_v54 = vmul.f32 %v10713_v39, %v4541_v33  ;;  %v3697_v6 = vmul.f32 0.0625, %v3632_v38  ;;  %v3312_v59 = vadd.f32 0.5, %v3248_v4  ;;  %v4348_v21 = vmul.f32 %v10848_v5, %v3891_v48 }
 0x570   :  { %v5924_v60 = vpop.eup %5923  ;;  %v3571_v35 = vsub.f32 %v3250_v56, %v3507_v18  ;;  %v4480_v17 = vmul.f32 %v10818_v28, %v3763_v52  ;;  %v4808_v7 = vmul.f32 1.442695, %v4681_v61  ;;  %v4679_v36 = vmul.f32 %v5964_v55, %v3111_v57 }
 0x571   :  { %v5926_v43 = vpop.eup %5925  ;;  %v4937_v16 = vadd.f32 %v4873_v23, %v4609_v54  ;;  %v4407_v29 = vadd.f32 %v5924_v60, %v4343_v45  ;;  %v3761_v15 = vfloor.f32 %v3697_v6  ;;  %v3377_v24 = vmul.f32 0.00390625, %v3312_v59 }
 0x572   :  { %v5928_v51 = vpop.eup %5927  ;;  %v3635_v11 = vadd.f32 0.5, %v3571_v35  ;;  %v4871_v8 = vmul.f32 %v10957_v3, %v5926_v43  ;;  %v4804_v1 = vmul.f32 1.442695, %v4679_v36 }
 0x573   :  { %5002 = vst.msk [vmem:[%s11007_s10 + $0x1d8] sm:$0xff] %vm4942_vm8, %v4937_v16  ;;  %v4539_v22 = vadd.f32 %v4475_v53, %v4407_v29  ;;  %v4150_v31 = vadd.f32 1.0, %v5928_v51  ;;  %v3441_v20 = vfloor.f32 %v3377_v24  ;;  %v3825_v13 = vmul.f32 16.0, %v3761_v15 }
 0x574   :  { %v3700_v37 = vmul.f32 0.0625, %v3635_v11 }
 0x575   :  { %v4607_v10 = vmul.f32 %v10713_v39, %v4539_v22  ;;  %5937 = vrcp.f32 %v4150_v31  ;;  %v5930_v40 = vpop.eup %5929  ;;  %v3505_v62 = vmul.f32 256.0, %v3441_v20  ;;  %v3889_v2 = vsub.f32 %v10930_v19, %v3825_v13 }
 0x576   :  { %5939 = vpow2.f32 %v4802_v27  ;;  %v5932_v26 = vpop.eup %5931  ;;  %v3764_v41 = vfloor.f32 %v3700_v37  ;;  %v4153_v30 = vadd.f32 1.0, %v5930_v40  ;;  %v4478_v19 = vmul.f32 %v10818_v28, %v3761_v15 }
 0x577   :  { %v4935_v50 = vadd.f32 %v4871_v8, %v4607_v10  ;;  %v3569_v12 = vsub.f32 %v3248_v4, %v3505_v62  ;;  %v4876_v25 = vmul.f32 %v10957_v3, %v5932_v26  ;;  %v4346_v49 = vmul.f32 %v10848_v5, %v3889_v2 }
 0x578   :  { %v5934_v56 = vpop.eup %5933  ;;  %5941 = vrcp.f32 %v4153_v30  ;;  %v3828_v0 = vmul.f32 16.0, %v3764_v41  ;;  %v4481_v53 = vmul.f32 %v10818_v28, %v3764_v41 }
 0x579   :  { %5000 = vst.msk [vmem:[%s11007_s10 + $0x1c8] sm:$0xff] %vm4942_vm8, %v4935_v50  ;;  %v4412_v44 = vadd.f32 %v5934_v56, %v4348_v21  ;;  %5943 = vpow2.f32 %v4808_v7  ;;  %v3633_v52 = vadd.f32 0.5, %v3569_v12 }
 0x57a   :  { %v3892_v45 = vsub.f32 %v3571_v35, %v3828_v0 }
 0x57b   :  { %v4544_v46 = vadd.f32 %v4480_v17, %v4412_v44  ;;  %v5936_v34 = vpop.eup %5935  ;;  %v3698_v33 = vmul.f32 0.0625, %v3633_v52 }
 0x57c   :  { %v4151_v42 = vadd.f32 1.0, %v5936_v34  ;;  %v4349_v9 = vmul.f32 %v10848_v5, %v3892_v45 }
 0x57d   :  { %v4612_v47 = vmul.f32 %v10713_v39, %v4544_v46  ;;  %v3762_v57 = vfloor.f32 %v3698_v33 }
 0x57e   :  { %5945 = vrcp.f32 %v4151_v42 }
 0x57f   :  { %v4940_v23 = vadd.f32 %v4876_v25, %v4612_v47  ;;  %5947 = vpow2.f32 %v4804_v1  ;;  %v3826_v63 = vmul.f32 16.0, %v3762_v57  ;;  %v4479_v35 = vmul.f32 %v10818_v28, %v3762_v57 }
 0x581   :  { %5005 = vst.msk [vmem:[%s11007_s10 + $0x1f0] sm:$0xff] %vm4942_vm8, %v4940_v23  ;;  %v3890_v6 = vsub.f32 %v3569_v12, %v3826_v63 }
 0x582   :  { %v5938_v38 = vpop.eup %5937 }
 0x583   :  { %v4410_v14 = vadd.f32 %v5938_v38, %v4346_v49  ;;  %v5940_v32 = vpop.eup %5939  ;;  %v4347_v29 = vmul.f32 %v10848_v5, %v3890_v6 }
 0x584   :  { %v4874_v60 = vmul.f32 %v10957_v3, %v5940_v32 }
 0x585   :  { %v4542_v54 = vadd.f32 %v4478_v19, %v4410_v14  ;;  %v5942_v55 = vpop.eup %5941 }
 0x586   :  { %v4413_v18 = vadd.f32 %v5942_v55, %v4349_v9  ;;  %v5944_v4 = vpop.eup %5943 }
 0x587   :  { %v4610_v58 = vmul.f32 %v10713_v39, %v4542_v54  ;;  %v4877_v48 = vmul.f32 %v10957_v3, %v5944_v4 }
 0x588   :  { %v4545_v16 = vadd.f32 %v4481_v53, %v4413_v18 }
 0x589   :  { %v4938_v43 = vadd.f32 %v4874_v60, %v4610_v58 }
 0x58a   :  { %v4613_v51 = vmul.f32 %v10713_v39, %v4545_v16 }
 0x58b   :  { %5003 = vst.msk [vmem:[%s11007_s10 + $0x1e0] sm:$0xff] %vm4942_vm8, %v4938_v43  ;;  %v5946_v59 = vpop.eup %5945 }
 0x58c   :  { %v4941_v22 = vadd.f32 %v4877_v48, %v4613_v51  ;;  %v4411_v15 = vadd.f32 %v5946_v59, %v4347_v29  ;;  %v5948_v31 = vpop.eup %5947 }
 0x58d   :  { %v4875_v11 = vmul.f32 %v10957_v3, %v5948_v31 }
 0x58e   :  { %5006 = vst.msk [vmem:[%s11007_s10 + $0x1f8] sm:$0xff] %vm4942_vm8, %v4941_v22  ;;  %v4543_v5 = vadd.f32 %v4479_v35, %v4411_v15 }
 0x590   :  { %v4611_v27 = vmul.f32 %v10713_v39, %v4543_v5 }
 0x592   :  { %v4939_v61 = vadd.f32 %v4875_v11, %v4611_v27 }
 0x594   :  { %5004 = vst.msk [vmem:[%s11007_s10 + $0x1e8] sm:$0xff] %vm4942_vm8, %v4939_v61 }

</bundles_post_ra>
